<compile_context>
chip_gen: v5e
topology: v5e:2x2
jax: 0.10.0
libtpu: 0.0.40
codegen_flags: <defaults>
</compile_context>

<pallas_src>
import jax
import jax.numpy as jnp
from jax.experimental import pallas as pl
from jax.experimental.pallas import tpu as pltpu


def _round_up(x, m):
    return ((x + m - 1) // m) * m


def _choose_tm(m, max_tm=1024):
    """Largest divisor of m (<= max_tm) that is sublane aligned; prefer grid >= 2."""
    divs = [t for t in range(1, min(max_tm, m) + 1)
            if m % t == 0 and (t % 8 == 0 or t == m)]
    if not divs:
        return m
    multi = [t for t in divs if m // t >= 2]   # grid >= 2 -> v7x megacore split
    return max(multi) if multi else max(divs)


_COMPILER_PARAMS = pltpu.CompilerParams(
    dimension_semantics=("parallel",),
    vmem_limit_bytes=32 * 1024 * 1024,
)


# ---------------------------------------------------------------------------
# Pallas kernels
# ---------------------------------------------------------------------------
def _make_conv_kernel(relu, has_res):
    """Fused (patches @ W_bnfolded) + bias [+ residual] [+ relu] kernel."""
    if has_res:
        def kernel(p_ref, w_ref, b_ref, r_ref, o_ref):
            acc = jnp.dot(p_ref[...], w_ref[...],
                          preferred_element_type=jnp.float32)
            acc = acc + b_ref[...] + r_ref[...].astype(jnp.float32)
            if relu:
                acc = jnp.maximum(acc, 0.0)
            o_ref[...] = acc.astype(o_ref.dtype)
    else:
        def kernel(p_ref, w_ref, b_ref, o_ref):
            acc = jnp.dot(p_ref[...], w_ref[...],
                          preferred_element_type=jnp.float32)
            acc = acc + b_ref[...]
            if relu:
                acc = jnp.maximum(acc, 0.0)
            o_ref[...] = acc.astype(o_ref.dtype)
    return kernel


def _final_kernel(p_ref, w_ref, b_ref, r_ref, fcw_ref, fcb_ref, o_ref):
    """Last conv + BN bias + residual + ReLU + avg-pool + Linear, one image/tile."""
    acc = jnp.dot(p_ref[...], w_ref[...], preferred_element_type=jnp.float32)
    acc = jnp.maximum(acc + b_ref[...] + r_ref[...].astype(jnp.float32), 0.0)
    # mean_rows(acc) @ FC == mean_rows(acc @ FC) (linearity): do the wide MXU
    # matmul first, then a cheap sublane reduction -- avoids a separate head
    # pallas_call and an HBM round trip of the final activation.
    proj = jnp.dot(acc, fcw_ref[...], preferred_element_type=jnp.float32)
    inv_hw = 1.0 / acc.shape[0]
    logits = jnp.sum(proj, axis=0, keepdims=True) * inv_hw + fcb_ref[...]
    o_ref[...] = logits.reshape(o_ref.shape)


# ---------------------------------------------------------------------------
# Glue: im2col patch extraction (pure slicing / concat, no FLOPs).
# K padding is appended inside the same concatenate so the 9x-expanded patch
# matrix is written once, already in bf16.
# ---------------------------------------------------------------------------
def _im2col(x, k, stride, padding, kp):
    n, h, w, c = x.shape
    xp = jnp.pad(x, ((0, 0), (padding, padding), (padding, padding), (0, 0)))
    ho = (h + 2 * padding - k) // stride + 1
    wo = (w + 2 * padding - k) // stride + 1
    cols = []
    for di in range(k):
        for dj in range(k):
            cols.append(xp[:, di:di + stride * ho:stride,
                           dj:dj + stride * wo:stride, :])
    kk = k * k * c
    if kp > kk:
        cols.append(jnp.zeros((n, ho, wo, kp - kk), x.dtype))
    patches = jnp.concatenate(cols, axis=-1)                # (N,Ho,Wo,kp)
    return patches.reshape(n * ho * wo, kp), ho, wo


def _prep_weight(w_mat, scale, bias, kp, cp):
    """Fold BN scale into the weights (bf16); keep the bias in f32."""
    kk, cout = w_mat.shape
    w = w_mat * scale[None, :]
    w = jnp.pad(w, ((0, kp - kk), (0, cp - cout))).astype(jnp.bfloat16)
    b = jnp.pad(bias.reshape(1, -1), ((0, 0), (0, cp - cout))).astype(jnp.float32)
    return w, b


# ---------------------------------------------------------------------------
# Fused conv + BN (+ residual) (+ relu) wrapper
# ---------------------------------------------------------------------------
def conv_bn(x, w_mat, scale, bias, *, k, stride, padding, relu, residual=None):
    kk, cout = w_mat.shape
    cin = kk // (k * k)
    n = x.shape[0]
    kp = _round_up(kk, 128)
    cp = _round_up(cout, 128)

    # Slice to the valid channels only when building im2col (activations are
    # stored channel-padded); cast to bf16 to halve patch HBM traffic.
    xs = x[..., :cin].astype(jnp.bfloat16)
    patches, ho, wo = _im2col(xs, k, stride, padding, kp)
    m = patches.shape[0]
    tm = _choose_tm(m)
    grid = (m // tm,)

    w_p, b_p = _prep_weight(w_mat, scale, bias, kp, cp)

    in_specs = [
        pl.BlockSpec((tm, kp), lambda i: (i, 0)),
        pl.BlockSpec((kp, cp), lambda i: (0, 0)),
        pl.BlockSpec((1, cp), lambda i: (0, 0)),
    ]
    args = [patches, w_p, b_p]

    has_res = residual is not None
    if has_res:
        r = residual.reshape(m, residual.shape[-1]).astype(jnp.bfloat16)
        assert r.shape[1] == cp, (r.shape, cp)
        in_specs.append(pl.BlockSpec((tm, cp), lambda i: (i, 0)))
        args.append(r)

    out = pl.pallas_call(
        _make_conv_kernel(relu, has_res),
        out_shape=jax.ShapeDtypeStruct((m, cp), jnp.bfloat16),
        grid_spec=pltpu.PrefetchScalarGridSpec(
            num_scalar_prefetch=0,
            grid=grid,
            in_specs=in_specs,
            out_specs=pl.BlockSpec((tm, cp), lambda i: (i, 0)),
        ),
        compiler_params=_COMPILER_PARAMS,
    )(*args)
    # Channel-padded, lane-dense bf16 NHWC; callers slice only for im2col.
    return out.reshape(n, ho, wo, cp)


def conv_bn_head(x, w_mat, scale, bias, residual, fc_w, fc_b, *, k, padding):
    """Final block conv2 fused with residual + ReLU + avg-pool + Linear."""
    kk, cout = w_mat.shape
    cin = kk // (k * k)
    n = x.shape[0]
    kp = _round_up(kk, 128)
    cp = _round_up(cout, 128)
    nclass = fc_w.shape[1]
    cpo = _round_up(nclass, 128)

    xs = x[..., :cin].astype(jnp.bfloat16)
    patches, ho, wo = _im2col(xs, k, 1, padding, kp)
    m = patches.shape[0]
    tm = ho * wo                         # one image per grid step (grid = batch)
    assert m == n * tm and tm % 8 == 0, (m, n, tm)

    w_p, b_p = _prep_weight(w_mat, scale, bias, kp, cp)
    r = residual.reshape(m, residual.shape[-1]).astype(jnp.bfloat16)
    assert r.shape[1] == cp, (r.shape, cp)
    fcw_p = jnp.pad(fc_w, ((0, cp - fc_w.shape[0]),
                           (0, cpo - nclass))).astype(jnp.float32)
    fcb_p = jnp.pad(fc_b.reshape(1, -1),
                    ((0, 0), (0, cpo - nclass))).astype(jnp.float32)

    out = pl.pallas_call(
        _final_kernel,
        out_shape=jax.ShapeDtypeStruct((n, 1, cpo), jnp.float32),
        grid_spec=pltpu.PrefetchScalarGridSpec(
            num_scalar_prefetch=0,
            grid=(n,),
            in_specs=[
                pl.BlockSpec((tm, kp), lambda i: (i, 0)),
                pl.BlockSpec((kp, cp), lambda i: (0, 0)),
                pl.BlockSpec((1, cp), lambda i: (0, 0)),
                pl.BlockSpec((tm, cp), lambda i: (i, 0)),
                pl.BlockSpec((cp, cpo), lambda i: (0, 0)),
                pl.BlockSpec((1, cpo), lambda i: (0, 0)),
            ],
            out_specs=pl.BlockSpec((1, 1, cpo), lambda i: (i, 0, 0)),
        ),
        compiler_params=_COMPILER_PARAMS,
    )(patches, w_p, b_p, r, fcw_p, fcb_p)
    return out[:, :, :nclass]            # (N, 1, 10)


# ---------------------------------------------------------------------------
# Deterministic parameter initialization (shapes from the PyTorch module)
# ---------------------------------------------------------------------------
def _conv_weight(key, cin, cout, k):
    fan_in = cin * k * k
    w = jax.random.normal(key, (k, k, cin, cout), jnp.float32)
    # (kh, kw, cin, cout) -> (kh*kw*cin, cout), matching im2col patch order.
    return (w / jnp.sqrt(fan_in)).reshape(k * k * cin, cout)


def _bn_params(key, c, eps=1e-5):
    k1, k2, k3, k4 = jax.random.split(key, 4)
    gamma = 1.0 + 0.1 * jax.random.normal(k1, (c,), jnp.float32)
    beta = 0.1 * jax.random.normal(k2, (c,), jnp.float32)
    mean = 0.1 * jax.random.normal(k3, (c,), jnp.float32)
    var = 1.0 + 0.1 * jnp.abs(jax.random.normal(k4, (c,), jnp.float32))
    scale = gamma / jnp.sqrt(var + eps)
    bias = beta - mean * scale
    return scale, bias


# (cin, cout, stride, skip) for layer1 .. layer9 (static config, kept out of
# the jitted params pytree).
_BLOCK_CFG = [
    (16, 16, 1, False), (16, 16, 1, False), (16, 16, 1, False),
    (16, 32, 2, True),  (32, 32, 1, False), (32, 32, 1, False),
    (32, 64, 2, True),  (64, 64, 1, False), (64, 64, 1, False),
]


def init_resnet20_params(key):
    keys = iter(jax.random.split(key, 64))
    params = {
        "stem_w": _conv_weight(next(keys), 3, 16, 3),
        "stem_bn": _bn_params(next(keys), 16),
        "blocks": [],
    }
    for cin, cout, stride, skip in _BLOCK_CFG:
        blk = {
            "conv1_w": _conv_weight(next(keys), cin, cout, 3),
            "bn1": _bn_params(next(keys), cout),
            "conv2_w": _conv_weight(next(keys), cout, cout, 3),
            "bn2": _bn_params(next(keys), cout),
        }
        if skip:
            blk["skip_w"] = _conv_weight(next(keys), cin, cout, 1)
            blk["skip_bn"] = _bn_params(next(keys), cout)
        params["blocks"].append(blk)
    params["fc_w"] = jax.random.normal(next(keys), (64, 10),
                                       jnp.float32) / jnp.sqrt(64.0)
    params["fc_b"] = 0.1 * jax.random.normal(next(keys), (10,), jnp.float32)
    return params


# ---------------------------------------------------------------------------
# Forward pass
# ---------------------------------------------------------------------------
def res_block(x, blk, stride, skip, head=None):
    h = conv_bn(x, blk["conv1_w"], *blk["bn1"], k=3, stride=stride, padding=1,
                relu=True)
    if skip:
        res = conv_bn(x, blk["skip_w"], *blk["skip_bn"], k=1, stride=stride,
                      padding=0, relu=False)
    else:
        res = x            # already channel-padded bf16 -> no slice/re-pad
    if head is None:
        return conv_bn(h, blk["conv2_w"], *blk["bn2"], k=3, stride=1,
                       padding=1, relu=True, residual=res)
    fc_w, fc_b = head
    return conv_bn_head(h, blk["conv2_w"], *blk["bn2"], res, fc_w, fc_b,
                        k=3, padding=1)


def resnet20_forward(x_nchw, params):
    # NCHW -> NHWC
    x = jnp.transpose(x_nchw, (0, 2, 3, 1)).astype(jnp.float32)
    out = conv_bn(x, params["stem_w"], *params["stem_bn"], k=3, stride=1,
                  padding=1, relu=True)
    blocks = params["blocks"]
    for blk, (_, _, stride, skip) in zip(blocks[:-1], _BLOCK_CFG[:-1]):
        out = res_block(out, blk, stride, skip)
    _, _, stride, skip = _BLOCK_CFG[-1]
    # Last block: conv2 epilogue also does avg-pool + Linear -> (N, 1, 10).
    return res_block(out, blocks[-1], stride, skip,
                     head=(params["fc_w"], params["fc_b"]))


# ---------------------------------------------------------------------------
if __name__ == "__main__":
    key = jax.random.PRNGKey(0)
    k_x, k_p = jax.random.split(key)
    # CIFAR-style input: 3 channels, 32x32 spatial (AvgPool2d(8) after two /2
    # stages requires 32x32), small batch of 2.
    x = jax.random.normal(k_x, (2, 3, 32, 32), jnp.float32)
    params = init_resnet20_params(k_p)

    fwd = jax.jit(resnet20_forward)
    logits = fwd(x, params)
    logits = jax.block_until_ready(logits)

    assert logits.shape == (2, 1, 10), logits.shape
    assert bool(jnp.all(jnp.isfinite(logits)))
    print("KERNEL_OK")
</pallas_src>

<mosaic_0001>
module attributes {stable_mosaic.version = 11 : i64} {
  func.func @kernel(%arg0: i32, %arg1: memref<1024x128xbf16, #tpu.memory_space<vmem>>, %arg2: memref<128x128xbf16, #tpu.memory_space<vmem>>, %arg3: memref<1x128xf32, #tpu.memory_space<vmem>>, %arg4: memref<1024x128xbf16, #tpu.memory_space<vmem>>) attributes {dimension_semantics = [#tpu.dimension_semantics<parallel>], iteration_bounds = array<i64: 2>, scalar_prefetch = 0 : i64, scratch_operands = 0 : i64, tpu.core_type = #tpu.core_type<tc>, window_params = [{transform_indices = @transform_0, window_bounds = array<i64: 1024, 128>}, {pipeline_mode = #tpu.pipeline_mode<synchronous>, transform_indices = @transform_1, window_bounds = array<i64: 128, 128>}, {pipeline_mode = #tpu.pipeline_mode<synchronous>, transform_indices = @transform_2, window_bounds = array<i64: 1, 128>}, {transform_indices = @transform_3, window_bounds = array<i64: 1024, 128>}]} {
    %c0 = arith.constant 0 : index
    %c0_0 = arith.constant 0 : index
    %0 = vector.load %arg1[%c0, %c0_0] : memref<1024x128xbf16, #tpu.memory_space<vmem>>, vector<1024x128xbf16>
    %c0_1 = arith.constant 0 : index
    %c0_2 = arith.constant 0 : index
    %1 = vector.load %arg2[%c0_1, %c0_2] : memref<128x128xbf16, #tpu.memory_space<vmem>>, vector<128x128xbf16>
    %cst = arith.constant dense<0.000000e+00> : vector<1024x128xf32>
    %2 = tpu.matmul %0, %1, %cst {dimension_numbers = #tpu.dot_dimension_numbers<[1], [0], [0], [1], [0, 0, 1, 1], [], []>} : vector<1024x128xbf16>, vector<128x128xbf16>, vector<1024x128xf32> -> vector<1024x128xf32>
    %c0_3 = arith.constant 0 : index
    %c0_4 = arith.constant 0 : index
    %3 = vector.load %arg3[%c0_3, %c0_4] : memref<1x128xf32, #tpu.memory_space<vmem>>, vector<1x128xf32>
    %4 = vector.broadcast %3 : vector<1x128xf32> to vector<1024x128xf32>
    %5 = arith.addf %2, %4 : vector<1024x128xf32>
    %cst_5 = arith.constant 0.000000e+00 : f32
    %6 = vector.broadcast %cst_5 : f32 to vector<1024x128xf32>
    %7 = arith.maximumf %5, %6 : vector<1024x128xf32>
    %8 = arith.truncf %7 : vector<1024x128xf32> to vector<1024x128xbf16>
    %c0_6 = arith.constant 0 : index
    %c0_7 = arith.constant 0 : index
    %9 = vector.load %arg4[%c0_6, %c0_7] : memref<1024x128xbf16, #tpu.memory_space<vmem>>, vector<1024x128xbf16>
    tpu.vector_store %arg4[%c0_6, %c0_7], %8 {strides = array<i32>} : memref<1024x128xbf16, #tpu.memory_space<vmem>>, vector<1024x128xbf16>,
    return
  }
  func.func @transform_0(%arg0: i32) -> (i32, i32) {
    %c0_i32 = arith.constant 0 : i32
    %c0_i32_0 = arith.constant 0 : i32
    return %arg0, %c0_i32 : i32, i32
  }
  func.func @transform_1(%arg0: i32) -> (i32, i32) {
    %c0_i32 = arith.constant 0 : i32
    %c0_i32_0 = arith.constant 0 : i32
    %c0_i32_1 = arith.constant 0 : i32
    return %c0_i32, %c0_i32_0 : i32, i32
  }
  func.func @transform_2(%arg0: i32) -> (i32, i32) {
    %c0_i32 = arith.constant 0 : i32
    %c0_i32_0 = arith.constant 0 : i32
    %c0_i32_1 = arith.constant 0 : i32
    return %c0_i32, %c0_i32_0 : i32, i32
  }
  func.func @transform_3(%arg0: i32) -> (i32, i32) {
    %c0_i32 = arith.constant 0 : i32
    %c0_i32_0 = arith.constant 0 : i32
    return %arg0, %c0_i32 : i32, i32
  }
}

module attributes {stable_mosaic.version = 11 : i64} {
  func.func @kernel(%arg0: i32, %arg1: memref<1024x256xbf16, #tpu.memory_space<vmem>>, %arg2: memref<256x128xbf16, #tpu.memory_space<vmem>>, %arg3: memref<1x128xf32, #tpu.memory_space<vmem>>, %arg4: memref<1024x128xbf16, #tpu.memory_space<vmem>>) attributes {dimension_semantics = [#tpu.dimension_semantics<parallel>], iteration_bounds = array<i64: 2>, scalar_prefetch = 0 : i64, scratch_operands = 0 : i64, tpu.core_type = #tpu.core_type<tc>, window_params = [{transform_indices = @transform_0, window_bounds = array<i64: 1024, 256>}, {pipeline_mode = #tpu.pipeline_mode<synchronous>, transform_indices = @transform_1, window_bounds = array<i64: 256, 128>}, {pipeline_mode = #tpu.pipeline_mode<synchronous>, transform_indices = @transform_2, window_bounds = array<i64: 1, 128>}, {transform_indices = @transform_3, window_bounds = array<i64: 1024, 128>}]} {
    %c0 = arith.constant 0 : index
    %c0_0 = arith.constant 0 : index
    %0 = vector.load %arg1[%c0, %c0_0] : memref<1024x256xbf16, #tpu.memory_space<vmem>>, vector<1024x256xbf16>
    %c0_1 = arith.constant 0 : index
    %c0_2 = arith.constant 0 : index
    %1 = vector.load %arg2[%c0_1, %c0_2] : memref<256x128xbf16, #tpu.memory_space<vmem>>, vector<256x128xbf16>
    %cst = arith.constant dense<0.000000e+00> : vector<1024x128xf32>
    %2 = tpu.matmul %0, %1, %cst {dimension_numbers = #tpu.dot_dimension_numbers<[1], [0], [0], [1], [0, 0, 1, 1], [], []>} : vector<1024x256xbf16>, vector<256x128xbf16>, vector<1024x128xf32> -> vector<1024x128xf32>
    %c0_3 = arith.constant 0 : index
    %c0_4 = arith.constant 0 : index
    %3 = vector.load %arg3[%c0_3, %c0_4] : memref<1x128xf32, #tpu.memory_space<vmem>>, vector<1x128xf32>
    %4 = vector.broadcast %3 : vector<1x128xf32> to vector<1024x128xf32>
    %5 = arith.addf %2, %4 : vector<1024x128xf32>
    %cst_5 = arith.constant 0.000000e+00 : f32
    %6 = vector.broadcast %cst_5 : f32 to vector<1024x128xf32>
    %7 = arith.maximumf %5, %6 : vector<1024x128xf32>
    %8 = arith.truncf %7 : vector<1024x128xf32> to vector<1024x128xbf16>
    %c0_6 = arith.constant 0 : index
    %c0_7 = arith.constant 0 : index
    %9 = vector.load %arg4[%c0_6, %c0_7] : memref<1024x128xbf16, #tpu.memory_space<vmem>>, vector<1024x128xbf16>
    tpu.vector_store %arg4[%c0_6, %c0_7], %8 {strides = array<i32>} : memref<1024x128xbf16, #tpu.memory_space<vmem>>, vector<1024x128xbf16>,
    return
  }
  func.func @transform_0(%arg0: i32) -> (i32, i32) {
    %c0_i32 = arith.constant 0 : i32
    %c0_i32_0 = arith.constant 0 : i32
    return %arg0, %c0_i32 : i32, i32
  }
  func.func @transform_1(%arg0: i32) -> (i32, i32) {
    %c0_i32 = arith.constant 0 : i32
    %c0_i32_0 = arith.constant 0 : i32
    %c0_i32_1 = arith.constant 0 : i32
    return %c0_i32, %c0_i32_0 : i32, i32
  }
  func.func @transform_2(%arg0: i32) -> (i32, i32) {
    %c0_i32 = arith.constant 0 : i32
    %c0_i32_0 = arith.constant 0 : i32
    %c0_i32_1 = arith.constant 0 : i32
    return %c0_i32, %c0_i32_0 : i32, i32
  }
  func.func @transform_3(%arg0: i32) -> (i32, i32) {
    %c0_i32 = arith.constant 0 : i32
    %c0_i32_0 = arith.constant 0 : i32
    return %arg0, %c0_i32 : i32, i32
  }
}

module attributes {stable_mosaic.version = 11 : i64} {
  func.func @kernel(%arg0: i32, %arg1: memref<1024x256xbf16, #tpu.memory_space<vmem>>, %arg2: memref<256x128xbf16, #tpu.memory_space<vmem>>, %arg3: memref<1x128xf32, #tpu.memory_space<vmem>>, %arg4: memref<1024x128xbf16, #tpu.memory_space<vmem>>, %arg5: memref<1024x128xbf16, #tpu.memory_space<vmem>>) attributes {dimension_semantics = [#tpu.dimension_semantics<parallel>], iteration_bounds = array<i64: 2>, scalar_prefetch = 0 : i64, scratch_operands = 0 : i64, tpu.core_type = #tpu.core_type<tc>, window_params = [{transform_indices = @transform_0, window_bounds = array<i64: 1024, 256>}, {pipeline_mode = #tpu.pipeline_mode<synchronous>, transform_indices = @transform_1, window_bounds = array<i64: 256, 128>}, {pipeline_mode = #tpu.pipeline_mode<synchronous>, transform_indices = @transform_2, window_bounds = array<i64: 1, 128>}, {transform_indices = @transform_3, window_bounds = array<i64: 1024, 128>}, {transform_indices = @transform_4, window_bounds = array<i64: 1024, 128>}]} {
    %c0 = arith.constant 0 : index
    %c0_0 = arith.constant 0 : index
    %0 = vector.load %arg1[%c0, %c0_0] : memref<1024x256xbf16, #tpu.memory_space<vmem>>, vector<1024x256xbf16>
    %c0_1 = arith.constant 0 : index
    %c0_2 = arith.constant 0 : index
    %1 = vector.load %arg2[%c0_1, %c0_2] : memref<256x128xbf16, #tpu.memory_space<vmem>>, vector<256x128xbf16>
    %cst = arith.constant dense<0.000000e+00> : vector<1024x128xf32>
    %2 = tpu.matmul %0, %1, %cst {dimension_numbers = #tpu.dot_dimension_numbers<[1], [0], [0], [1], [0, 0, 1, 1], [], []>} : vector<1024x256xbf16>, vector<256x128xbf16>, vector<1024x128xf32> -> vector<1024x128xf32>
    %c0_3 = arith.constant 0 : index
    %c0_4 = arith.constant 0 : index
    %3 = vector.load %arg3[%c0_3, %c0_4] : memref<1x128xf32, #tpu.memory_space<vmem>>, vector<1x128xf32>
    %4 = vector.broadcast %3 : vector<1x128xf32> to vector<1024x128xf32>
    %5 = arith.addf %2, %4 : vector<1024x128xf32>
    %c0_5 = arith.constant 0 : index
    %c0_6 = arith.constant 0 : index
    %6 = vector.load %arg4[%c0_5, %c0_6] : memref<1024x128xbf16, #tpu.memory_space<vmem>>, vector<1024x128xbf16>
    %7 = arith.extf %6 : vector<1024x128xbf16> to vector<1024x128xf32>
    %8 = arith.addf %5, %7 : vector<1024x128xf32>
    %cst_7 = arith.constant 0.000000e+00 : f32
    %9 = vector.broadcast %cst_7 : f32 to vector<1024x128xf32>
    %10 = arith.maximumf %8, %9 : vector<1024x128xf32>
    %11 = arith.truncf %10 : vector<1024x128xf32> to vector<1024x128xbf16>
    %c0_8 = arith.constant 0 : index
    %c0_9 = arith.constant 0 : index
    %12 = vector.load %arg5[%c0_8, %c0_9] : memref<1024x128xbf16, #tpu.memory_space<vmem>>, vector<1024x128xbf16>
    tpu.vector_store %arg5[%c0_8, %c0_9], %11 {strides = array<i32>} : memref<1024x128xbf16, #tpu.memory_space<vmem>>, vector<1024x128xbf16>,
    return
  }
  func.func @transform_0(%arg0: i32) -> (i32, i32) {
    %c0_i32 = arith.constant 0 : i32
    %c0_i32_0 = arith.constant 0 : i32
    return %arg0, %c0_i32 : i32, i32
  }
  func.func @transform_1(%arg0: i32) -> (i32, i32) {
    %c0_i32 = arith.constant 0 : i32
    %c0_i32_0 = arith.constant 0 : i32
    %c0_i32_1 = arith.constant 0 : i32
    return %c0_i32, %c0_i32_0 : i32, i32
  }
  func.func @transform_2(%arg0: i32) -> (i32, i32) {
    %c0_i32 = arith.constant 0 : i32
    %c0_i32_0 = arith.constant 0 : i32
    %c0_i32_1 = arith.constant 0 : i32
    return %c0_i32, %c0_i32_0 : i32, i32
  }
  func.func @transform_3(%arg0: i32) -> (i32, i32) {
    %c0_i32 = arith.constant 0 : i32
    %c0_i32_0 = arith.constant 0 : i32
    return %arg0, %c0_i32 : i32, i32
  }
  func.func @transform_4(%arg0: i32) -> (i32, i32) {
    %c0_i32 = arith.constant 0 : i32
    %c0_i32_0 = arith.constant 0 : i32
    return %arg0, %c0_i32 : i32, i32
  }
}

module attributes {stable_mosaic.version = 11 : i64} {
  func.func @kernel(%arg0: i32, %arg1: memref<256x256xbf16, #tpu.memory_space<vmem>>, %arg2: memref<256x128xbf16, #tpu.memory_space<vmem>>, %arg3: memref<1x128xf32, #tpu.memory_space<vmem>>, %arg4: memref<256x128xbf16, #tpu.memory_space<vmem>>) attributes {dimension_semantics = [#tpu.dimension_semantics<parallel>], iteration_bounds = array<i64: 2>, scalar_prefetch = 0 : i64, scratch_operands = 0 : i64, tpu.core_type = #tpu.core_type<tc>, window_params = [{transform_indices = @transform_0, window_bounds = array<i64: 256, 256>}, {pipeline_mode = #tpu.pipeline_mode<synchronous>, transform_indices = @transform_1, window_bounds = array<i64: 256, 128>}, {pipeline_mode = #tpu.pipeline_mode<synchronous>, transform_indices = @transform_2, window_bounds = array<i64: 1, 128>}, {transform_indices = @transform_3, window_bounds = array<i64: 256, 128>}]} {
    %c0 = arith.constant 0 : index
    %c0_0 = arith.constant 0 : index
    %0 = vector.load %arg1[%c0, %c0_0] : memref<256x256xbf16, #tpu.memory_space<vmem>>, vector<256x256xbf16>
    %c0_1 = arith.constant 0 : index
    %c0_2 = arith.constant 0 : index
    %1 = vector.load %arg2[%c0_1, %c0_2] : memref<256x128xbf16, #tpu.memory_space<vmem>>, vector<256x128xbf16>
    %cst = arith.constant dense<0.000000e+00> : vector<256x128xf32>
    %2 = tpu.matmul %0, %1, %cst {dimension_numbers = #tpu.dot_dimension_numbers<[1], [0], [0], [1], [0, 0, 1, 1], [], []>} : vector<256x256xbf16>, vector<256x128xbf16>, vector<256x128xf32> -> vector<256x128xf32>
    %c0_3 = arith.constant 0 : index
    %c0_4 = arith.constant 0 : index
    %3 = vector.load %arg3[%c0_3, %c0_4] : memref<1x128xf32, #tpu.memory_space<vmem>>, vector<1x128xf32>
    %4 = vector.broadcast %3 : vector<1x128xf32> to vector<256x128xf32>
    %5 = arith.addf %2, %4 : vector<256x128xf32>
    %cst_5 = arith.constant 0.000000e+00 : f32
    %6 = vector.broadcast %cst_5 : f32 to vector<256x128xf32>
    %7 = arith.maximumf %5, %6 : vector<256x128xf32>
    %8 = arith.truncf %7 : vector<256x128xf32> to vector<256x128xbf16>
    %c0_6 = arith.constant 0 : index
    %c0_7 = arith.constant 0 : index
    %9 = vector.load %arg4[%c0_6, %c0_7] : memref<256x128xbf16, #tpu.memory_space<vmem>>, vector<256x128xbf16>
    tpu.vector_store %arg4[%c0_6, %c0_7], %8 {strides = array<i32>} : memref<256x128xbf16, #tpu.memory_space<vmem>>, vector<256x128xbf16>,
    return
  }
  func.func @transform_0(%arg0: i32) -> (i32, i32) {
    %c0_i32 = arith.constant 0 : i32
    %c0_i32_0 = arith.constant 0 : i32
    return %arg0, %c0_i32 : i32, i32
  }
  func.func @transform_1(%arg0: i32) -> (i32, i32) {
    %c0_i32 = arith.constant 0 : i32
    %c0_i32_0 = arith.constant 0 : i32
    %c0_i32_1 = arith.constant 0 : i32
    return %c0_i32, %c0_i32_0 : i32, i32
  }
  func.func @transform_2(%arg0: i32) -> (i32, i32) {
    %c0_i32 = arith.constant 0 : i32
    %c0_i32_0 = arith.constant 0 : i32
    %c0_i32_1 = arith.constant 0 : i32
    return %c0_i32, %c0_i32_0 : i32, i32
  }
  func.func @transform_3(%arg0: i32) -> (i32, i32) {
    %c0_i32 = arith.constant 0 : i32
    %c0_i32_0 = arith.constant 0 : i32
    return %arg0, %c0_i32 : i32, i32
  }
}

module attributes {stable_mosaic.version = 11 : i64} {
  func.func @kernel(%arg0: i32, %arg1: memref<256x128xbf16, #tpu.memory_space<vmem>>, %arg2: memref<128x128xbf16, #tpu.memory_space<vmem>>, %arg3: memref<1x128xf32, #tpu.memory_space<vmem>>, %arg4: memref<256x128xbf16, #tpu.memory_space<vmem>>) attributes {dimension_semantics = [#tpu.dimension_semantics<parallel>], iteration_bounds = array<i64: 2>, scalar_prefetch = 0 : i64, scratch_operands = 0 : i64, tpu.core_type = #tpu.core_type<tc>, window_params = [{transform_indices = @transform_0, window_bounds = array<i64: 256, 128>}, {pipeline_mode = #tpu.pipeline_mode<synchronous>, transform_indices = @transform_1, window_bounds = array<i64: 128, 128>}, {pipeline_mode = #tpu.pipeline_mode<synchronous>, transform_indices = @transform_2, window_bounds = array<i64: 1, 128>}, {transform_indices = @transform_3, window_bounds = array<i64: 256, 128>}]} {
    %c0 = arith.constant 0 : index
    %c0_0 = arith.constant 0 : index
    %0 = vector.load %arg1[%c0, %c0_0] : memref<256x128xbf16, #tpu.memory_space<vmem>>, vector<256x128xbf16>
    %c0_1 = arith.constant 0 : index
    %c0_2 = arith.constant 0 : index
    %1 = vector.load %arg2[%c0_1, %c0_2] : memref<128x128xbf16, #tpu.memory_space<vmem>>, vector<128x128xbf16>
    %cst = arith.constant dense<0.000000e+00> : vector<256x128xf32>
    %2 = tpu.matmul %0, %1, %cst {dimension_numbers = #tpu.dot_dimension_numbers<[1], [0], [0], [1], [0, 0, 1, 1], [], []>} : vector<256x128xbf16>, vector<128x128xbf16>, vector<256x128xf32> -> vector<256x128xf32>
    %c0_3 = arith.constant 0 : index
    %c0_4 = arith.constant 0 : index
    %3 = vector.load %arg3[%c0_3, %c0_4] : memref<1x128xf32, #tpu.memory_space<vmem>>, vector<1x128xf32>
    %4 = vector.broadcast %3 : vector<1x128xf32> to vector<256x128xf32>
    %5 = arith.addf %2, %4 : vector<256x128xf32>
    %6 = arith.truncf %5 : vector<256x128xf32> to vector<256x128xbf16>
    %c0_5 = arith.constant 0 : index
    %c0_6 = arith.constant 0 : index
    %7 = vector.load %arg4[%c0_5, %c0_6] : memref<256x128xbf16, #tpu.memory_space<vmem>>, vector<256x128xbf16>
    tpu.vector_store %arg4[%c0_5, %c0_6], %6 {strides = array<i32>} : memref<256x128xbf16, #tpu.memory_space<vmem>>, vector<256x128xbf16>,
    return
  }
  func.func @transform_0(%arg0: i32) -> (i32, i32) {
    %c0_i32 = arith.constant 0 : i32
    %c0_i32_0 = arith.constant 0 : i32
    return %arg0, %c0_i32 : i32, i32
  }
  func.func @transform_1(%arg0: i32) -> (i32, i32) {
    %c0_i32 = arith.constant 0 : i32
    %c0_i32_0 = arith.constant 0 : i32
    %c0_i32_1 = arith.constant 0 : i32
    return %c0_i32, %c0_i32_0 : i32, i32
  }
  func.func @transform_2(%arg0: i32) -> (i32, i32) {
    %c0_i32 = arith.constant 0 : i32
    %c0_i32_0 = arith.constant 0 : i32
    %c0_i32_1 = arith.constant 0 : i32
    return %c0_i32, %c0_i32_0 : i32, i32
  }
  func.func @transform_3(%arg0: i32) -> (i32, i32) {
    %c0_i32 = arith.constant 0 : i32
    %c0_i32_0 = arith.constant 0 : i32
    return %arg0, %c0_i32 : i32, i32
  }
}

module attributes {stable_mosaic.version = 11 : i64} {
  func.func @kernel(%arg0: i32, %arg1: memref<256x384xbf16, #tpu.memory_space<vmem>>, %arg2: memref<384x128xbf16, #tpu.memory_space<vmem>>, %arg3: memref<1x128xf32, #tpu.memory_space<vmem>>, %arg4: memref<256x128xbf16, #tpu.memory_space<vmem>>, %arg5: memref<256x128xbf16, #tpu.memory_space<vmem>>) attributes {dimension_semantics = [#tpu.dimension_semantics<parallel>], iteration_bounds = array<i64: 2>, scalar_prefetch = 0 : i64, scratch_operands = 0 : i64, tpu.core_type = #tpu.core_type<tc>, window_params = [{transform_indices = @transform_0, window_bounds = array<i64: 256, 384>}, {pipeline_mode = #tpu.pipeline_mode<synchronous>, transform_indices = @transform_1, window_bounds = array<i64: 384, 128>}, {pipeline_mode = #tpu.pipeline_mode<synchronous>, transform_indices = @transform_2, window_bounds = array<i64: 1, 128>}, {transform_indices = @transform_3, window_bounds = array<i64: 256, 128>}, {transform_indices = @transform_4, window_bounds = array<i64: 256, 128>}]} {
    %c0 = arith.constant 0 : index
    %c0_0 = arith.constant 0 : index
    %0 = vector.load %arg1[%c0, %c0_0] : memref<256x384xbf16, #tpu.memory_space<vmem>>, vector<256x384xbf16>
    %c0_1 = arith.constant 0 : index
    %c0_2 = arith.constant 0 : index
    %1 = vector.load %arg2[%c0_1, %c0_2] : memref<384x128xbf16, #tpu.memory_space<vmem>>, vector<384x128xbf16>
    %cst = arith.constant dense<0.000000e+00> : vector<256x128xf32>
    %2 = tpu.matmul %0, %1, %cst {dimension_numbers = #tpu.dot_dimension_numbers<[1], [0], [0], [1], [0, 0, 1, 1], [], []>} : vector<256x384xbf16>, vector<384x128xbf16>, vector<256x128xf32> -> vector<256x128xf32>
    %c0_3 = arith.constant 0 : index
    %c0_4 = arith.constant 0 : index
    %3 = vector.load %arg3[%c0_3, %c0_4] : memref<1x128xf32, #tpu.memory_space<vmem>>, vector<1x128xf32>
    %4 = vector.broadcast %3 : vector<1x128xf32> to vector<256x128xf32>
    %5 = arith.addf %2, %4 : vector<256x128xf32>
    %c0_5 = arith.constant 0 : index
    %c0_6 = arith.constant 0 : index
    %6 = vector.load %arg4[%c0_5, %c0_6] : memref<256x128xbf16, #tpu.memory_space<vmem>>, vector<256x128xbf16>
    %7 = arith.extf %6 : vector<256x128xbf16> to vector<256x128xf32>
    %8 = arith.addf %5, %7 : vector<256x128xf32>
    %cst_7 = arith.constant 0.000000e+00 : f32
    %9 = vector.broadcast %cst_7 : f32 to vector<256x128xf32>
    %10 = arith.maximumf %8, %9 : vector<256x128xf32>
    %11 = arith.truncf %10 : vector<256x128xf32> to vector<256x128xbf16>
    %c0_8 = arith.constant 0 : index
    %c0_9 = arith.constant 0 : index
    %12 = vector.load %arg5[%c0_8, %c0_9] : memref<256x128xbf16, #tpu.memory_space<vmem>>, vector<256x128xbf16>
    tpu.vector_store %arg5[%c0_8, %c0_9], %11 {strides = array<i32>} : memref<256x128xbf16, #tpu.memory_space<vmem>>, vector<256x128xbf16>,
    return
  }
  func.func @transform_0(%arg0: i32) -> (i32, i32) {
    %c0_i32 = arith.constant 0 : i32
    %c0_i32_0 = arith.constant 0 : i32
    return %arg0, %c0_i32 : i32, i32
  }
  func.func @transform_1(%arg0: i32) -> (i32, i32) {
    %c0_i32 = arith.constant 0 : i32
    %c0_i32_0 = arith.constant 0 : i32
    %c0_i32_1 = arith.constant 0 : i32
    return %c0_i32, %c0_i32_0 : i32, i32
  }
  func.func @transform_2(%arg0: i32) -> (i32, i32) {
    %c0_i32 = arith.constant 0 : i32
    %c0_i32_0 = arith.constant 0 : i32
    %c0_i32_1 = arith.constant 0 : i32
    return %c0_i32, %c0_i32_0 : i32, i32
  }
  func.func @transform_3(%arg0: i32) -> (i32, i32) {
    %c0_i32 = arith.constant 0 : i32
    %c0_i32_0 = arith.constant 0 : i32
    return %arg0, %c0_i32 : i32, i32
  }
  func.func @transform_4(%arg0: i32) -> (i32, i32) {
    %c0_i32 = arith.constant 0 : i32
    %c0_i32_0 = arith.constant 0 : i32
    return %arg0, %c0_i32 : i32, i32
  }
}

module attributes {stable_mosaic.version = 11 : i64} {
  func.func @kernel(%arg0: i32, %arg1: memref<256x384xbf16, #tpu.memory_space<vmem>>, %arg2: memref<384x128xbf16, #tpu.memory_space<vmem>>, %arg3: memref<1x128xf32, #tpu.memory_space<vmem>>, %arg4: memref<256x128xbf16, #tpu.memory_space<vmem>>) attributes {dimension_semantics = [#tpu.dimension_semantics<parallel>], iteration_bounds = array<i64: 2>, scalar_prefetch = 0 : i64, scratch_operands = 0 : i64, tpu.core_type = #tpu.core_type<tc>, window_params = [{transform_indices = @transform_0, window_bounds = array<i64: 256, 384>}, {pipeline_mode = #tpu.pipeline_mode<synchronous>, transform_indices = @transform_1, window_bounds = array<i64: 384, 128>}, {pipeline_mode = #tpu.pipeline_mode<synchronous>, transform_indices = @transform_2, window_bounds = array<i64: 1, 128>}, {transform_indices = @transform_3, window_bounds = array<i64: 256, 128>}]} {
    %c0 = arith.constant 0 : index
    %c0_0 = arith.constant 0 : index
    %0 = vector.load %arg1[%c0, %c0_0] : memref<256x384xbf16, #tpu.memory_space<vmem>>, vector<256x384xbf16>
    %c0_1 = arith.constant 0 : index
    %c0_2 = arith.constant 0 : index
    %1 = vector.load %arg2[%c0_1, %c0_2] : memref<384x128xbf16, #tpu.memory_space<vmem>>, vector<384x128xbf16>
    %cst = arith.constant dense<0.000000e+00> : vector<256x128xf32>
    %2 = tpu.matmul %0, %1, %cst {dimension_numbers = #tpu.dot_dimension_numbers<[1], [0], [0], [1], [0, 0, 1, 1], [], []>} : vector<256x384xbf16>, vector<384x128xbf16>, vector<256x128xf32> -> vector<256x128xf32>
    %c0_3 = arith.constant 0 : index
    %c0_4 = arith.constant 0 : index
    %3 = vector.load %arg3[%c0_3, %c0_4] : memref<1x128xf32, #tpu.memory_space<vmem>>, vector<1x128xf32>
    %4 = vector.broadcast %3 : vector<1x128xf32> to vector<256x128xf32>
    %5 = arith.addf %2, %4 : vector<256x128xf32>
    %cst_5 = arith.constant 0.000000e+00 : f32
    %6 = vector.broadcast %cst_5 : f32 to vector<256x128xf32>
    %7 = arith.maximumf %5, %6 : vector<256x128xf32>
    %8 = arith.truncf %7 : vector<256x128xf32> to vector<256x128xbf16>
    %c0_6 = arith.constant 0 : index
    %c0_7 = arith.constant 0 : index
    %9 = vector.load %arg4[%c0_6, %c0_7] : memref<256x128xbf16, #tpu.memory_space<vmem>>, vector<256x128xbf16>
    tpu.vector_store %arg4[%c0_6, %c0_7], %8 {strides = array<i32>} : memref<256x128xbf16, #tpu.memory_space<vmem>>, vector<256x128xbf16>,
    return
  }
  func.func @transform_0(%arg0: i32) -> (i32, i32) {
    %c0_i32 = arith.constant 0 : i32
    %c0_i32_0 = arith.constant 0 : i32
    return %arg0, %c0_i32 : i32, i32
  }
  func.func @transform_1(%arg0: i32) -> (i32, i32) {
    %c0_i32 = arith.constant 0 : i32
    %c0_i32_0 = arith.constant 0 : i32
    %c0_i32_1 = arith.constant 0 : i32
    return %c0_i32, %c0_i32_0 : i32, i32
  }
  func.func @transform_2(%arg0: i32) -> (i32, i32) {
    %c0_i32 = arith.constant 0 : i32
    %c0_i32_0 = arith.constant 0 : i32
    %c0_i32_1 = arith.constant 0 : i32
    return %c0_i32, %c0_i32_0 : i32, i32
  }
  func.func @transform_3(%arg0: i32) -> (i32, i32) {
    %c0_i32 = arith.constant 0 : i32
    %c0_i32_0 = arith.constant 0 : i32
    return %arg0, %c0_i32 : i32, i32
  }
}

module attributes {stable_mosaic.version = 11 : i64} {
  func.func @kernel(%arg0: i32, %arg1: memref<64x384xbf16, #tpu.memory_space<vmem>>, %arg2: memref<384x128xbf16, #tpu.memory_space<vmem>>, %arg3: memref<1x128xf32, #tpu.memory_space<vmem>>, %arg4: memref<64x128xbf16, #tpu.memory_space<vmem>>) attributes {dimension_semantics = [#tpu.dimension_semantics<parallel>], iteration_bounds = array<i64: 2>, scalar_prefetch = 0 : i64, scratch_operands = 0 : i64, tpu.core_type = #tpu.core_type<tc>, window_params = [{transform_indices = @transform_0, window_bounds = array<i64: 64, 384>}, {pipeline_mode = #tpu.pipeline_mode<synchronous>, transform_indices = @transform_1, window_bounds = array<i64: 384, 128>}, {pipeline_mode = #tpu.pipeline_mode<synchronous>, transform_indices = @transform_2, window_bounds = array<i64: 1, 128>}, {transform_indices = @transform_3, window_bounds = array<i64: 64, 128>}]} {
    %c0 = arith.constant 0 : index
    %c0_0 = arith.constant 0 : index
    %0 = vector.load %arg1[%c0, %c0_0] : memref<64x384xbf16, #tpu.memory_space<vmem>>, vector<64x384xbf16>
    %c0_1 = arith.constant 0 : index
    %c0_2 = arith.constant 0 : index
    %1 = vector.load %arg2[%c0_1, %c0_2] : memref<384x128xbf16, #tpu.memory_space<vmem>>, vector<384x128xbf16>
    %cst = arith.constant dense<0.000000e+00> : vector<64x128xf32>
    %2 = tpu.matmul %0, %1, %cst {dimension_numbers = #tpu.dot_dimension_numbers<[1], [0], [0], [1], [0, 0, 1, 1], [], []>} : vector<64x384xbf16>, vector<384x128xbf16>, vector<64x128xf32> -> vector<64x128xf32>
    %c0_3 = arith.constant 0 : index
    %c0_4 = arith.constant 0 : index
    %3 = vector.load %arg3[%c0_3, %c0_4] : memref<1x128xf32, #tpu.memory_space<vmem>>, vector<1x128xf32>
    %4 = vector.broadcast %3 : vector<1x128xf32> to vector<64x128xf32>
    %5 = arith.addf %2, %4 : vector<64x128xf32>
    %cst_5 = arith.constant 0.000000e+00 : f32
    %6 = vector.broadcast %cst_5 : f32 to vector<64x128xf32>
    %7 = arith.maximumf %5, %6 : vector<64x128xf32>
    %8 = arith.truncf %7 : vector<64x128xf32> to vector<64x128xbf16>
    %c0_6 = arith.constant 0 : index
    %c0_7 = arith.constant 0 : index
    %9 = vector.load %arg4[%c0_6, %c0_7] : memref<64x128xbf16, #tpu.memory_space<vmem>>, vector<64x128xbf16>
    tpu.vector_store %arg4[%c0_6, %c0_7], %8 {strides = array<i32>} : memref<64x128xbf16, #tpu.memory_space<vmem>>, vector<64x128xbf16>,
    return
  }
  func.func @transform_0(%arg0: i32) -> (i32, i32) {
    %c0_i32 = arith.constant 0 : i32
    %c0_i32_0 = arith.constant 0 : i32
    return %arg0, %c0_i32 : i32, i32
  }
  func.func @transform_1(%arg0: i32) -> (i32, i32) {
    %c0_i32 = arith.constant 0 : i32
    %c0_i32_0 = arith.constant 0 : i32
    %c0_i32_1 = arith.constant 0 : i32
    return %c0_i32, %c0_i32_0 : i32, i32
  }
  func.func @transform_2(%arg0: i32) -> (i32, i32) {
    %c0_i32 = arith.constant 0 : i32
    %c0_i32_0 = arith.constant 0 : i32
    %c0_i32_1 = arith.constant 0 : i32
    return %c0_i32, %c0_i32_0 : i32, i32
  }
  func.func @transform_3(%arg0: i32) -> (i32, i32) {
    %c0_i32 = arith.constant 0 : i32
    %c0_i32_0 = arith.constant 0 : i32
    return %arg0, %c0_i32 : i32, i32
  }
}

module attributes {stable_mosaic.version = 11 : i64} {
  func.func @kernel(%arg0: i32, %arg1: memref<64x128xbf16, #tpu.memory_space<vmem>>, %arg2: memref<128x128xbf16, #tpu.memory_space<vmem>>, %arg3: memref<1x128xf32, #tpu.memory_space<vmem>>, %arg4: memref<64x128xbf16, #tpu.memory_space<vmem>>) attributes {dimension_semantics = [#tpu.dimension_semantics<parallel>], iteration_bounds = array<i64: 2>, scalar_prefetch = 0 : i64, scratch_operands = 0 : i64, tpu.core_type = #tpu.core_type<tc>, window_params = [{transform_indices = @transform_0, window_bounds = array<i64: 64, 128>}, {pipeline_mode = #tpu.pipeline_mode<synchronous>, transform_indices = @transform_1, window_bounds = array<i64: 128, 128>}, {pipeline_mode = #tpu.pipeline_mode<synchronous>, transform_indices = @transform_2, window_bounds = array<i64: 1, 128>}, {transform_indices = @transform_3, window_bounds = array<i64: 64, 128>}]} {
    %c0 = arith.constant 0 : index
    %c0_0 = arith.constant 0 : index
    %0 = vector.load %arg1[%c0, %c0_0] : memref<64x128xbf16, #tpu.memory_space<vmem>>, vector<64x128xbf16>
    %c0_1 = arith.constant 0 : index
    %c0_2 = arith.constant 0 : index
    %1 = vector.load %arg2[%c0_1, %c0_2] : memref<128x128xbf16, #tpu.memory_space<vmem>>, vector<128x128xbf16>
    %cst = arith.constant dense<0.000000e+00> : vector<64x128xf32>
    %2 = tpu.matmul %0, %1, %cst {dimension_numbers = #tpu.dot_dimension_numbers<[1], [0], [0], [1], [0, 0, 1, 1], [], []>} : vector<64x128xbf16>, vector<128x128xbf16>, vector<64x128xf32> -> vector<64x128xf32>
    %c0_3 = arith.constant 0 : index
    %c0_4 = arith.constant 0 : index
    %3 = vector.load %arg3[%c0_3, %c0_4] : memref<1x128xf32, #tpu.memory_space<vmem>>, vector<1x128xf32>
    %4 = vector.broadcast %3 : vector<1x128xf32> to vector<64x128xf32>
    %5 = arith.addf %2, %4 : vector<64x128xf32>
    %6 = arith.truncf %5 : vector<64x128xf32> to vector<64x128xbf16>
    %c0_5 = arith.constant 0 : index
    %c0_6 = arith.constant 0 : index
    %7 = vector.load %arg4[%c0_5, %c0_6] : memref<64x128xbf16, #tpu.memory_space<vmem>>, vector<64x128xbf16>
    tpu.vector_store %arg4[%c0_5, %c0_6], %6 {strides = array<i32>} : memref<64x128xbf16, #tpu.memory_space<vmem>>, vector<64x128xbf16>,
    return
  }
  func.func @transform_0(%arg0: i32) -> (i32, i32) {
    %c0_i32 = arith.constant 0 : i32
    %c0_i32_0 = arith.constant 0 : i32
    return %arg0, %c0_i32 : i32, i32
  }
  func.func @transform_1(%arg0: i32) -> (i32, i32) {
    %c0_i32 = arith.constant 0 : i32
    %c0_i32_0 = arith.constant 0 : i32
    %c0_i32_1 = arith.constant 0 : i32
    return %c0_i32, %c0_i32_0 : i32, i32
  }
  func.func @transform_2(%arg0: i32) -> (i32, i32) {
    %c0_i32 = arith.constant 0 : i32
    %c0_i32_0 = arith.constant 0 : i32
    %c0_i32_1 = arith.constant 0 : i32
    return %c0_i32, %c0_i32_0 : i32, i32
  }
  func.func @transform_3(%arg0: i32) -> (i32, i32) {
    %c0_i32 = arith.constant 0 : i32
    %c0_i32_0 = arith.constant 0 : i32
    return %arg0, %c0_i32 : i32, i32
  }
}

module attributes {stable_mosaic.version = 11 : i64} {
  func.func @kernel(%arg0: i32, %arg1: memref<64x640xbf16, #tpu.memory_space<vmem>>, %arg2: memref<640x128xbf16, #tpu.memory_space<vmem>>, %arg3: memref<1x128xf32, #tpu.memory_space<vmem>>, %arg4: memref<64x128xbf16, #tpu.memory_space<vmem>>) attributes {dimension_semantics = [#tpu.dimension_semantics<parallel>], iteration_bounds = array<i64: 2>, scalar_prefetch = 0 : i64, scratch_operands = 0 : i64, tpu.core_type = #tpu.core_type<tc>, window_params = [{transform_indices = @transform_0, window_bounds = array<i64: 64, 640>}, {pipeline_mode = #tpu.pipeline_mode<synchronous>, transform_indices = @transform_1, window_bounds = array<i64: 640, 128>}, {pipeline_mode = #tpu.pipeline_mode<synchronous>, transform_indices = @transform_2, window_bounds = array<i64: 1, 128>}, {transform_indices = @transform_3, window_bounds = array<i64: 64, 128>}]} {
    %c0 = arith.constant 0 : index
    %c0_0 = arith.constant 0 : index
    %0 = vector.load %arg1[%c0, %c0_0] : memref<64x640xbf16, #tpu.memory_space<vmem>>, vector<64x640xbf16>
    %c0_1 = arith.constant 0 : index
    %c0_2 = arith.constant 0 : index
    %1 = vector.load %arg2[%c0_1, %c0_2] : memref<640x128xbf16, #tpu.memory_space<vmem>>, vector<640x128xbf16>
    %cst = arith.constant dense<0.000000e+00> : vector<64x128xf32>
    %2 = tpu.matmul %0, %1, %cst {dimension_numbers = #tpu.dot_dimension_numbers<[1], [0], [0], [1], [0, 0, 1, 1], [], []>} : vector<64x640xbf16>, vector<640x128xbf16>, vector<64x128xf32> -> vector<64x128xf32>
    %c0_3 = arith.constant 0 : index
    %c0_4 = arith.constant 0 : index
    %3 = vector.load %arg3[%c0_3, %c0_4] : memref<1x128xf32, #tpu.memory_space<vmem>>, vector<1x128xf32>
    %4 = vector.broadcast %3 : vector<1x128xf32> to vector<64x128xf32>
    %5 = arith.addf %2, %4 : vector<64x128xf32>
    %cst_5 = arith.constant 0.000000e+00 : f32
    %6 = vector.broadcast %cst_5 : f32 to vector<64x128xf32>
    %7 = arith.maximumf %5, %6 : vector<64x128xf32>
    %8 = arith.truncf %7 : vector<64x128xf32> to vector<64x128xbf16>
    %c0_6 = arith.constant 0 : index
    %c0_7 = arith.constant 0 : index
    %9 = vector.load %arg4[%c0_6, %c0_7] : memref<64x128xbf16, #tpu.memory_space<vmem>>, vector<64x128xbf16>
    tpu.vector_store %arg4[%c0_6, %c0_7], %8 {strides = array<i32>} : memref<64x128xbf16, #tpu.memory_space<vmem>>, vector<64x128xbf16>,
    return
  }
  func.func @transform_0(%arg0: i32) -> (i32, i32) {
    %c0_i32 = arith.constant 0 : i32
    %c0_i32_0 = arith.constant 0 : i32
    return %arg0, %c0_i32 : i32, i32
  }
  func.func @transform_1(%arg0: i32) -> (i32, i32) {
    %c0_i32 = arith.constant 0 : i32
    %c0_i32_0 = arith.constant 0 : i32
    %c0_i32_1 = arith.constant 0 : i32
    return %c0_i32, %c0_i32_0 : i32, i32
  }
  func.func @transform_2(%arg0: i32) -> (i32, i32) {
    %c0_i32 = arith.constant 0 : i32
    %c0_i32_0 = arith.constant 0 : i32
    %c0_i32_1 = arith.constant 0 : i32
    return %c0_i32, %c0_i32_0 : i32, i32
  }
  func.func @transform_3(%arg0: i32) -> (i32, i32) {
    %c0_i32 = arith.constant 0 : i32
    %c0_i32_0 = arith.constant 0 : i32
    return %arg0, %c0_i32 : i32, i32
  }
}

module attributes {stable_mosaic.version = 11 : i64} {
  func.func @kernel(%arg0: i32, %arg1: memref<64x640xbf16, #tpu.memory_space<vmem>>, %arg2: memref<640x128xbf16, #tpu.memory_space<vmem>>, %arg3: memref<1x128xf32, #tpu.memory_space<vmem>>, %arg4: memref<64x128xbf16, #tpu.memory_space<vmem>>, %arg5: memref<64x128xbf16, #tpu.memory_space<vmem>>) attributes {dimension_semantics = [#tpu.dimension_semantics<parallel>], iteration_bounds = array<i64: 2>, scalar_prefetch = 0 : i64, scratch_operands = 0 : i64, tpu.core_type = #tpu.core_type<tc>, window_params = [{transform_indices = @transform_0, window_bounds = array<i64: 64, 640>}, {pipeline_mode = #tpu.pipeline_mode<synchronous>, transform_indices = @transform_1, window_bounds = array<i64: 640, 128>}, {pipeline_mode = #tpu.pipeline_mode<synchronous>, transform_indices = @transform_2, window_bounds = array<i64: 1, 128>}, {transform_indices = @transform_3, window_bounds = array<i64: 64, 128>}, {transform_indices = @transform_4, window_bounds = array<i64: 64, 128>}]} {
    %c0 = arith.constant 0 : index
    %c0_0 = arith.constant 0 : index
    %0 = vector.load %arg1[%c0, %c0_0] : memref<64x640xbf16, #tpu.memory_space<vmem>>, vector<64x640xbf16>
    %c0_1 = arith.constant 0 : index
    %c0_2 = arith.constant 0 : index
    %1 = vector.load %arg2[%c0_1, %c0_2] : memref<640x128xbf16, #tpu.memory_space<vmem>>, vector<640x128xbf16>
    %cst = arith.constant dense<0.000000e+00> : vector<64x128xf32>
    %2 = tpu.matmul %0, %1, %cst {dimension_numbers = #tpu.dot_dimension_numbers<[1], [0], [0], [1], [0, 0, 1, 1], [], []>} : vector<64x640xbf16>, vector<640x128xbf16>, vector<64x128xf32> -> vector<64x128xf32>
    %c0_3 = arith.constant 0 : index
    %c0_4 = arith.constant 0 : index
    %3 = vector.load %arg3[%c0_3, %c0_4] : memref<1x128xf32, #tpu.memory_space<vmem>>, vector<1x128xf32>
    %4 = vector.broadcast %3 : vector<1x128xf32> to vector<64x128xf32>
    %5 = arith.addf %2, %4 : vector<64x128xf32>
    %c0_5 = arith.constant 0 : index
    %c0_6 = arith.constant 0 : index
    %6 = vector.load %arg4[%c0_5, %c0_6] : memref<64x128xbf16, #tpu.memory_space<vmem>>, vector<64x128xbf16>
    %7 = arith.extf %6 : vector<64x128xbf16> to vector<64x128xf32>
    %8 = arith.addf %5, %7 : vector<64x128xf32>
    %cst_7 = arith.constant 0.000000e+00 : f32
    %9 = vector.broadcast %cst_7 : f32 to vector<64x128xf32>
    %10 = arith.maximumf %8, %9 : vector<64x128xf32>
    %11 = arith.truncf %10 : vector<64x128xf32> to vector<64x128xbf16>
    %c0_8 = arith.constant 0 : index
    %c0_9 = arith.constant 0 : index
    %12 = vector.load %arg5[%c0_8, %c0_9] : memref<64x128xbf16, #tpu.memory_space<vmem>>, vector<64x128xbf16>
    tpu.vector_store %arg5[%c0_8, %c0_9], %11 {strides = array<i32>} : memref<64x128xbf16, #tpu.memory_space<vmem>>, vector<64x128xbf16>,
    return
  }
  func.func @transform_0(%arg0: i32) -> (i32, i32) {
    %c0_i32 = arith.constant 0 : i32
    %c0_i32_0 = arith.constant 0 : i32
    return %arg0, %c0_i32 : i32, i32
  }
  func.func @transform_1(%arg0: i32) -> (i32, i32) {
    %c0_i32 = arith.constant 0 : i32
    %c0_i32_0 = arith.constant 0 : i32
    %c0_i32_1 = arith.constant 0 : i32
    return %c0_i32, %c0_i32_0 : i32, i32
  }
  func.func @transform_2(%arg0: i32) -> (i32, i32) {
    %c0_i32 = arith.constant 0 : i32
    %c0_i32_0 = arith.constant 0 : i32
    %c0_i32_1 = arith.constant 0 : i32
    return %c0_i32, %c0_i32_0 : i32, i32
  }
  func.func @transform_3(%arg0: i32) -> (i32, i32) {
    %c0_i32 = arith.constant 0 : i32
    %c0_i32_0 = arith.constant 0 : i32
    return %arg0, %c0_i32 : i32, i32
  }
  func.func @transform_4(%arg0: i32) -> (i32, i32) {
    %c0_i32 = arith.constant 0 : i32
    %c0_i32_0 = arith.constant 0 : i32
    return %arg0, %c0_i32 : i32, i32
  }
}

module attributes {stable_mosaic.version = 11 : i64} {
  func.func @_final_kernel(%arg0: i32, %arg1: memref<64x640xbf16, #tpu.memory_space<vmem>>, %arg2: memref<640x128xbf16, #tpu.memory_space<vmem>>, %arg3: memref<1x128xf32, #tpu.memory_space<vmem>>, %arg4: memref<64x128xbf16, #tpu.memory_space<vmem>>, %arg5: memref<128x128xf32, #tpu.memory_space<vmem>>, %arg6: memref<1x128xf32, #tpu.memory_space<vmem>>, %arg7: memref<1x1x128xf32, #tpu.memory_space<vmem>>) attributes {dimension_semantics = [#tpu.dimension_semantics<parallel>], iteration_bounds = array<i64: 2>, scalar_prefetch = 0 : i64, scratch_operands = 0 : i64, tpu.core_type = #tpu.core_type<tc>, window_params = [{transform_indices = @transform_0, window_bounds = array<i64: 64, 640>}, {pipeline_mode = #tpu.pipeline_mode<synchronous>, transform_indices = @transform_1, window_bounds = array<i64: 640, 128>}, {pipeline_mode = #tpu.pipeline_mode<synchronous>, transform_indices = @transform_2, window_bounds = array<i64: 1, 128>}, {transform_indices = @transform_3, window_bounds = array<i64: 64, 128>}, {pipeline_mode = #tpu.pipeline_mode<synchronous>, transform_indices = @transform_4, window_bounds = array<i64: 128, 128>}, {pipeline_mode = #tpu.pipeline_mode<synchronous>, transform_indices = @transform_5, window_bounds = array<i64: 1, 128>}, {transform_indices = @transform_6, window_bounds = array<i64: 1, 1, 128>}]} {
    %c0 = arith.constant 0 : index
    %c0_0 = arith.constant 0 : index
    %0 = vector.load %arg1[%c0, %c0_0] : memref<64x640xbf16, #tpu.memory_space<vmem>>, vector<64x640xbf16>
    %c0_1 = arith.constant 0 : index
    %c0_2 = arith.constant 0 : index
    %1 = vector.load %arg2[%c0_1, %c0_2] : memref<640x128xbf16, #tpu.memory_space<vmem>>, vector<640x128xbf16>
    %cst = arith.constant dense<0.000000e+00> : vector<64x128xf32>
    %2 = tpu.matmul %0, %1, %cst {dimension_numbers = #tpu.dot_dimension_numbers<[1], [0], [0], [1], [0, 0, 1, 1], [], []>} : vector<64x640xbf16>, vector<640x128xbf16>, vector<64x128xf32> -> vector<64x128xf32>
    %c0_3 = arith.constant 0 : index
    %c0_4 = arith.constant 0 : index
    %3 = vector.load %arg3[%c0_3, %c0_4] : memref<1x128xf32, #tpu.memory_space<vmem>>, vector<1x128xf32>
    %4 = vector.broadcast %3 : vector<1x128xf32> to vector<64x128xf32>
    %5 = arith.addf %2, %4 : vector<64x128xf32>
    %c0_5 = arith.constant 0 : index
    %c0_6 = arith.constant 0 : index
    %6 = vector.load %arg4[%c0_5, %c0_6] : memref<64x128xbf16, #tpu.memory_space<vmem>>, vector<64x128xbf16>
    %7 = arith.extf %6 : vector<64x128xbf16> to vector<64x128xf32>
    %8 = arith.addf %5, %7 : vector<64x128xf32>
    %cst_7 = arith.constant 0.000000e+00 : f32
    %9 = vector.broadcast %cst_7 : f32 to vector<64x128xf32>
    %10 = arith.maximumf %8, %9 : vector<64x128xf32>
    %c0_8 = arith.constant 0 : index
    %c0_9 = arith.constant 0 : index
    %11 = vector.load %arg5[%c0_8, %c0_9] : memref<128x128xf32, #tpu.memory_space<vmem>>, vector<128x128xf32>
    %cst_10 = arith.constant dense<0.000000e+00> : vector<64x128xf32>
    %12 = tpu.matmul %10, %11, %cst_10 {dimension_numbers = #tpu.dot_dimension_numbers<[1], [0], [0], [1], [0, 0, 1, 1], [], []>} : vector<64x128xf32>, vector<128x128xf32>, vector<64x128xf32> -> vector<64x128xf32>
    %cst_11 = arith.constant dense<0.000000e+00> : vector<128xf32>
    %13 = vector.multi_reduction <add>, %12, %cst_11 [0] : vector<64x128xf32> to vector<128xf32>
    %14 = vector.shape_cast %13 : vector<128xf32> to vector<1x128xf32>
    %cst_12 = arith.constant 1.562500e-02 : f32
    %15 = vector.broadcast %cst_12 : f32 to vector<1x128xf32>
    %16 = arith.mulf %14, %15 : vector<1x128xf32>
    %c0_13 = arith.constant 0 : index
    %c0_14 = arith.constant 0 : index
    %17 = vector.load %arg6[%c0_13, %c0_14] : memref<1x128xf32, #tpu.memory_space<vmem>>, vector<1x128xf32>
    %18 = arith.addf %16, %17 : vector<1x128xf32>
    %19 = vector.shape_cast %18 : vector<1x128xf32> to vector<1x1x128xf32>
    %c0_15 = arith.constant 0 : index
    %c0_16 = arith.constant 0 : index
    %c0_17 = arith.constant 0 : index
    %20 = vector.load %arg7[%c0_15, %c0_16, %c0_17] : memref<1x1x128xf32, #tpu.memory_space<vmem>>, vector<1x1x128xf32>
    tpu.vector_store %arg7[%c0_15, %c0_16, %c0_17], %19 {strides = array<i32>} : memref<1x1x128xf32, #tpu.memory_space<vmem>>, vector<1x1x128xf32>,
    return
  }
  func.func @transform_0(%arg0: i32) -> (i32, i32) {
    %c0_i32 = arith.constant 0 : i32
    %c0_i32_0 = arith.constant 0 : i32
    return %arg0, %c0_i32 : i32, i32
  }
  func.func @transform_1(%arg0: i32) -> (i32, i32) {
    %c0_i32 = arith.constant 0 : i32
    %c0_i32_0 = arith.constant 0 : i32
    %c0_i32_1 = arith.constant 0 : i32
    return %c0_i32, %c0_i32_0 : i32, i32
  }
  func.func @transform_2(%arg0: i32) -> (i32, i32) {
    %c0_i32 = arith.constant 0 : i32
    %c0_i32_0 = arith.constant 0 : i32
    %c0_i32_1 = arith.constant 0 : i32
    return %c0_i32, %c0_i32_0 : i32, i32
  }
  func.func @transform_3(%arg0: i32) -> (i32, i32) {
    %c0_i32 = arith.constant 0 : i32
    %c0_i32_0 = arith.constant 0 : i32
    return %arg0, %c0_i32 : i32, i32
  }
  func.func @transform_4(%arg0: i32) -> (i32, i32) {
    %c0_i32 = arith.constant 0 : i32
    %c0_i32_0 = arith.constant 0 : i32
    %c0_i32_1 = arith.constant 0 : i32
    return %c0_i32, %c0_i32_0 : i32, i32
  }
  func.func @transform_5(%arg0: i32) -> (i32, i32) {
    %c0_i32 = arith.constant 0 : i32
    %c0_i32_0 = arith.constant 0 : i32
    %c0_i32_1 = arith.constant 0 : i32
    return %c0_i32, %c0_i32_0 : i32, i32
  }
  func.func @transform_6(%arg0: i32) -> (i32, i32, i32) {
    %c0_i32 = arith.constant 0 : i32
    %c0_i32_0 = arith.constant 0 : i32
    %c0_i32_1 = arith.constant 0 : i32
    return %arg0, %c0_i32, %c0_i32_0 : i32, i32, i32
  }
}

</mosaic_0001>

<bundles_post_ra>
// kernel: resnet20_forward.21
= control target key start
LH: loop header
LB: loop body
LE: loop exit
PB: predicated region body
PF: predicated region fallthrough
CT: control target
= control target key end

     0   :  { %s2339_s12 = smov 0   ;;  %s2641_s0 = inlined_call_operand.vmem [shape: bf16[2048,128], index: 0, kind: input, shape index: {}]   ;;  %s2642_s1 = inlined_call_operand.vmem [shape: bf16[128,128], index: 1, kind: input, shape index: {}]   ;;  %s2643_s2 = inlined_call_operand.vmem [shape: f32[1,128], index: 2, kind: input, shape index: {}]   ;;  %s2644_s3 = inlined_call_operand.vmem [shape: bf16[2048,128], index: 3, kind: output, shape index: {}]  }
   0x1 LB: > { %s1523_s13 = sadd.s32 4294967295, %s2317_s12   ;;  %p1527_p0 = scmp.ge.s32.totalorder %s2317_s12, 1  ;;  %s2317_s12 = sphi %s2339_s12, %s13_s12  }
   0x2   : > { %p138_p1 = scmp.lt.s32.totalorder %s2317_s12, 3 }
   0x4   : > { %p139_p2 = pnand %p1527_p0, %p138_p1 }
   0x5   : > { %s1528_s22 = sshll.u32 (!%p139_p2), %s1523_s13, 7 }
   0x6   : > { %142 = sbr.rel (%p139_p2) target bundleno = 432 (0x1b0), region = 32  ;;  %p163_p3 = scmp.lt.s32.totalorder (!%p139_p2), %s1528_s22, 255 }
   0xb   : > { %v1893_v0 = vld [vmem:[%s2642_s1 + $0x38] sm:$0xff]  ;;  %v1892_v1 = vld [vmem:[%s2642_s1 + $0x30] sm:$0xff]  ;;  %v1891_v2 = vld [vmem:[%s2642_s1 + $0x28] sm:$0xff]  ;;  %s2646_s22 = smov (!%p163_p3, %s1528_s22), 255 }
   0xc   : > { %754 = vmatpush.bf16.msra.mxu0 %v1893_v0  ;;  %2277 = vmatpush.bf16.msra.mxu1 %v1893_v0  ;;  %v1890_v3 = vld [vmem:[%s2642_s1 + $0x20] sm:$0xff]  ;;  %v1889_v4 = vld [vmem:[%s2642_s1 + $0x18] sm:$0xff]  ;;  %v1888_v5 = vld [vmem:[%s2642_s1 + $0x10] sm:$0xff]  ;;  %s1529_s29 = sshll.u32 %s2646_s22, 2 }
   0xd   : > { %2278 = vmatpush.bf16.msra.mxu2 %v1893_v0  ;;  %2279 = vmatpush.bf16.msra.mxu3 %v1893_v0  ;;  %v1887_v6 = vld [vmem:[%s2642_s1 + $0x8] sm:$0xff]  ;;  %v1886_v7 = vld [vmem:[%s2642_s1] sm:$0xff]  ;;  %s2379_s7 = scalar_lea.vmem %s2641_s0, %s1529_s29  ;;  %s2431_s13 = scalar_lea.vmem %s2644_s3, %s1529_s29 }
   0xe   : > { %v1822_v8 = vld [vmem:[%s2379_s7] sm:$0xff]  ;;  %v1823_v12 = vld [vmem:[%s2379_s7 + $0x8] sm:$0xff]  ;;  %v1824_v16 = vld [vmem:[%s2379_s7 + $0x10] sm:$0xff] }
   0xf   : > { %v1838_v9 = vld [vmem:[%s2379_s7 + $0x80] sm:$0xff]  ;;  %v1839_v13 = vld [vmem:[%s2379_s7 + $0x88] sm:$0xff]  ;;  %v1840_v17 = vld [vmem:[%s2379_s7 + $0x90] sm:$0xff] }
  0x10   : > { %755 = vmatpush.bf16.msra.mxu0 %v1892_v1  ;;  %2280 = vmatpush.bf16.msra.mxu1 %v1892_v1  ;;  %v1854_v10 = vld [vmem:[%s2379_s7 + $0x100] sm:$0xff]  ;;  %v1855_v14 = vld [vmem:[%s2379_s7 + $0x108] sm:$0xff]  ;;  %v1856_v18 = vld [vmem:[%s2379_s7 + $0x110] sm:$0xff] }
  0x11   : > { %2281 = vmatpush.bf16.msra.mxu2 %v1892_v1  ;;  %2282 = vmatpush.bf16.msra.mxu3 %v1892_v1  ;;  %v1870_v11 = vld [vmem:[%s2379_s7 + $0x180] sm:$0xff]  ;;  %v1871_v15 = vld [vmem:[%s2379_s7 + $0x188] sm:$0xff]  ;;  %v1872_v19 = vld [vmem:[%s2379_s7 + $0x190] sm:$0xff] }
  0x12   : > { %v1825_v20 = vld [vmem:[%s2379_s7 + $0x18] sm:$0xff]  ;;  %v1826_v24 = vld [vmem:[%s2379_s7 + $0x20] sm:$0xff]  ;;  %v1827_v28 = vld [vmem:[%s2379_s7 + $0x28] sm:$0xff] }
  0x13   : > { %v1841_v21 = vld [vmem:[%s2379_s7 + $0x98] sm:$0xff]  ;;  %v1842_v25 = vld [vmem:[%s2379_s7 + $0xa0] sm:$0xff]  ;;  %v1843_v29 = vld [vmem:[%s2379_s7 + $0xa8] sm:$0xff] }
  0x14   : > { %756 = vmatpush.bf16.msra.mxu0 %v1891_v2  ;;  %2283 = vmatpush.bf16.msra.mxu1 %v1891_v2  ;;  %v1857_v22 = vld [vmem:[%s2379_s7 + $0x118] sm:$0xff]  ;;  %v1858_v26 = vld [vmem:[%s2379_s7 + $0x120] sm:$0xff]  ;;  %v1859_v30 = vld [vmem:[%s2379_s7 + $0x128] sm:$0xff] }
  0x15   : > { %2284 = vmatpush.bf16.msra.mxu2 %v1891_v2  ;;  %2285 = vmatpush.bf16.msra.mxu3 %v1891_v2  ;;  %v1873_v23 = vld [vmem:[%s2379_s7 + $0x198] sm:$0xff]  ;;  %v1874_v27 = vld [vmem:[%s2379_s7 + $0x1a0] sm:$0xff]  ;;  %v1875_v31 = vld [vmem:[%s2379_s7 + $0x1a8] sm:$0xff] }
  0x16   : > { %v1828_v32 = vld [vmem:[%s2379_s7 + $0x30] sm:$0xff]  ;;  %v1829_v36 = vld [vmem:[%s2379_s7 + $0x38] sm:$0xff]  ;;  %v1830_v40 = vld [vmem:[%s2379_s7 + $0x40] sm:$0xff] }
  0x17   : > { %v1844_v33 = vld [vmem:[%s2379_s7 + $0xb0] sm:$0xff]  ;;  %v1845_v37 = vld [vmem:[%s2379_s7 + $0xb8] sm:$0xff]  ;;  %v1846_v41 = vld [vmem:[%s2379_s7 + $0xc0] sm:$0xff] }
  0x18   : > { %757 = vmatpush.bf16.msra.mxu0 %v1890_v3  ;;  %2286 = vmatpush.bf16.msra.mxu1 %v1890_v3  ;;  %v1860_v34 = vld [vmem:[%s2379_s7 + $0x130] sm:$0xff]  ;;  %v1861_v38 = vld [vmem:[%s2379_s7 + $0x138] sm:$0xff]  ;;  %v1862_v44 = vld [vmem:[%s2379_s7 + $0x140] sm:$0xff] }
  0x19   : > { %2287 = vmatpush.bf16.msra.mxu2 %v1890_v3  ;;  %2288 = vmatpush.bf16.msra.mxu3 %v1890_v3  ;;  %v1876_v35 = vld [vmem:[%s2379_s7 + $0x1b0] sm:$0xff]  ;;  %v1877_v39 = vld [vmem:[%s2379_s7 + $0x1b8] sm:$0xff]  ;;  %v1878_v45 = vld [vmem:[%s2379_s7 + $0x1c0] sm:$0xff] }
  0x1a   : > { %v2420_v46 = vld [vmem:[%s2643_s2] ss:$0 sm:$0xff]  ;;  %v1831_v1 = vld [vmem:[%s2379_s7 + $0x48] sm:$0xff] }
  0x1b   : > { %v1847_v2 = vld [vmem:[%s2379_s7 + $0xc8] sm:$0xff] }
  0x1c   : > { %758 = vmatpush.bf16.msra.mxu0 %v1889_v4  ;;  %2289 = vmatpush.bf16.msra.mxu1 %v1889_v4 }
  0x1d   : > { %2290 = vmatpush.bf16.msra.mxu2 %v1889_v4  ;;  %2291 = vmatpush.bf16.msra.mxu3 %v1889_v4 }
  0x20   : > { %759 = vmatpush.bf16.msra.mxu0 %v1888_v5  ;;  %2292 = vmatpush.bf16.msra.mxu1 %v1888_v5 }
  0x21   : > { %2293 = vmatpush.bf16.msra.mxu2 %v1888_v5  ;;  %2294 = vmatpush.bf16.msra.mxu3 %v1888_v5 }
  0x24   : > { %760 = vmatpush.bf16.msra.mxu0 %v1887_v6  ;;  %2295 = vmatpush.bf16.msra.mxu1 %v1887_v6 }
  0x25   : > { %2296 = vmatpush.bf16.msra.mxu2 %v1887_v6  ;;  %2297 = vmatpush.bf16.msra.mxu3 %v1887_v6 }
  0x28   : > { %761 = vmatpush.bf16.msra.mxu0 %v1886_v7  ;;  %2298 = vmatpush.bf16.msra.mxu1 %v1886_v7 }
  0x29   : > { %2299 = vmatpush.bf16.msra.mxu2 %v1886_v7  ;;  %2300 = vmatpush.bf16.msra.mxu3 %v1886_v7  ;;  %v1863_v7 = vld [vmem:[%s2379_s7 + $0x148] sm:$0xff] }
  0x2b   : > { %762 = vmatmul.bf16.vlgmr.msra.gmra.mxu0 %v1822_v8  ;;  %842 = vmatmul.bf16.vlgmr.msra.gmra.mxu1 %v1838_v9  ;;  %v1879_v8 = vld [vmem:[%s2379_s7 + $0x1c8] sm:$0xff] }
  0x2c   : > { %922 = vmatmul.bf16.vlgmr.msra.gmra.mxu2 %v1854_v10  ;;  %1002 = vmatmul.bf16.vlgmr.msra.gmra.mxu3 %v1870_v11 }
  0x3b   : > { %767 = vmatmul.bf16.gmra.mxu0 %v1823_v12  ;;  %847 = vmatmul.bf16.gmra.mxu1 %v1839_v13 }
  0x3c   : > { %927 = vmatmul.bf16.gmra.mxu2 %v1855_v14  ;;  %1007 = vmatmul.bf16.gmra.mxu3 %v1871_v15 }
  0x4b   : > { %772 = vmatmul.bf16.gmra.mxu0 %v1824_v16  ;;  %852 = vmatmul.bf16.gmra.mxu1 %v1840_v17 }
  0x4c   : > { %932 = vmatmul.bf16.gmra.mxu2 %v1856_v18  ;;  %1012 = vmatmul.bf16.gmra.mxu3 %v1872_v19 }
  0x5b   : > { %777 = vmatmul.bf16.gmra.mxu0 %v1825_v20  ;;  %857 = vmatmul.bf16.gmra.mxu1 %v1841_v21 }
  0x5c   : > { %937 = vmatmul.bf16.gmra.mxu2 %v1857_v22  ;;  %1017 = vmatmul.bf16.gmra.mxu3 %v1873_v23 }
  0x6b   : > { %782 = vmatmul.bf16.gmra.mxu0 %v1826_v24  ;;  %862 = vmatmul.bf16.gmra.mxu1 %v1842_v25 }
  0x6c   : > { %942 = vmatmul.bf16.gmra.mxu2 %v1858_v26  ;;  %1022 = vmatmul.bf16.gmra.mxu3 %v1874_v27 }
  0x7b   : > { %787 = vmatmul.bf16.gmra.mxu0 %v1827_v28  ;;  %867 = vmatmul.bf16.gmra.mxu1 %v1843_v29 }
  0x7c   : > { %947 = vmatmul.bf16.gmra.mxu2 %v1859_v30  ;;  %1027 = vmatmul.bf16.gmra.mxu3 %v1875_v31 }
  0x8b   : > { %792 = vmatmul.bf16.gmra.mxu0 %v1828_v32  ;;  %872 = vmatmul.bf16.gmra.mxu1 %v1844_v33  ;;  %v1832_v33 = vld [vmem:[%s2379_s7 + $0x50] sm:$0xff] }
  0x8c   : > { %952 = vmatmul.bf16.gmra.mxu2 %v1860_v34  ;;  %1032 = vmatmul.bf16.gmra.mxu3 %v1876_v35  ;;  %v1848_v34 = vld [vmem:[%s2379_s7 + $0xd0] sm:$0xff] }
  0x9b   : > { %797 = vmatmul.bf16.gmra.mxu0 %v1829_v36  ;;  %877 = vmatmul.bf16.gmra.mxu1 %v1845_v37 }
  0x9c   : > { %957 = vmatmul.bf16.gmra.mxu2 %v1861_v38  ;;  %1037 = vmatmul.bf16.gmra.mxu3 %v1877_v39  ;;  %v1864_v39 = vld [vmem:[%s2379_s7 + $0x150] sm:$0xff] }
  0xa8   : > { %v763_v42 = vpop.f32.mrf.mxu0  ;;  %v843_v43 = vpop.f32.mrf.mxu1 }
  0xa9   : > { %v764_v47 = vadd.f32 %v2420_v46, %v763_v42  ;;  %v844_v48 = vadd.f32 %v2420_v46, %v843_v43 }
  0xab   : > { %802 = vmatmul.bf16.gmra.mxu0 %v1830_v40  ;;  %882 = vmatmul.bf16.gmra.mxu1 %v1846_v41  ;;  %v1083_v55 = vmax.f32 %v764_v47, 0.0  ;;  %v1115_v56 = vmax.f32 %v844_v48, 0.0  ;;  %v1880_v40 = vld [vmem:[%s2379_s7 + $0x1d0] sm:$0xff] }
  0xac   : > { %962 = vmatmul.bf16.gmra.mxu2 %v1862_v44  ;;  %1042 = vmatmul.bf16.gmra.mxu3 %v1878_v45 }
  0xaf   : > { %v923_v49 = vpop.f32.mrf.mxu2  ;;  %v1003_v50 = vpop.f32.mrf.mxu3 }
  0xb0   : > { %v765_v51 = vpop.f32.mrf.mxu0  ;;  %v845_v52 = vpop.f32.mrf.mxu1  ;;  %v924_v61 = vadd.f32 %v2420_v46, %v923_v49  ;;  %v1004_v62 = vadd.f32 %v2420_v46, %v1003_v50 }
  0xb1   : > { %v766_v53 = vadd.f32 %v2420_v46, %v765_v51  ;;  %v846_v54 = vadd.f32 %v2420_v46, %v845_v52 }
  0xb2   : > { %v1147_v9 = vmax.f32 %v924_v61, 0.0  ;;  %v1179_v10 = vmax.f32 %v1004_v62, 0.0 }
  0xb3   : > { %v1084_v57 = vmax.f32 %v766_v53, 0.0  ;;  %v1116_v58 = vmax.f32 %v846_v54, 0.0 }
  0xb5   : > { %v1897_v59 = vpack.c.bf16 %v1084_v57, %v1083_v55  ;;  %v1977_v60 = vpack.c.bf16 %v1116_v58, %v1115_v56 }
  0xb7   : > { %1898 = vst [vmem:[%s2431_s13] sm:$0xff] %v1897_v59   ;;  %v925_v63 = vpop.f32.mrf.mxu2  ;;  %v1005_v0 = vpop.f32.mrf.mxu3 }
  0xb8   : > { %2229 = vst [vmem:[%s2431_s13 + $0x80] sm:$0xff] %v1977_v60   ;;  %v926_v3 = vadd.f32 %v2420_v46, %v925_v63  ;;  %v1006_v4 = vadd.f32 %v2420_v46, %v1005_v0  ;;  %v768_v5 = vpop.f32.mrf.mxu0  ;;  %v848_v6 = vpop.f32.mrf.mxu1 }
  0xb9   : > { %v769_v15 = vadd.f32 %v2420_v46, %v768_v5  ;;  %v849_v16 = vadd.f32 %v2420_v46, %v848_v6 }
  0xba   : > { %v1148_v11 = vmax.f32 %v926_v3, 0.0  ;;  %v1180_v12 = vmax.f32 %v1006_v4, 0.0  ;;  %v1849_v3 = vld [vmem:[%s2379_s7 + $0xd8] sm:$0xff] }
  0xbb   : > { %807 = vmatmul.bf16.gmra.mxu0 %v1831_v1  ;;  %887 = vmatmul.bf16.gmra.mxu1 %v1847_v2  ;;  %v1085_v23 = vmax.f32 %v769_v15, 0.0  ;;  %v1117_v24 = vmax.f32 %v849_v16, 0.0  ;;  %v1833_v2 = vld [vmem:[%s2379_s7 + $0x58] sm:$0xff] }
  0xbc   : > { %v2057_v13 = vpack.c.bf16 %v1148_v11, %v1147_v9  ;;  %v2137_v14 = vpack.c.bf16 %v1180_v12, %v1179_v10  ;;  %967 = vmatmul.bf16.gmra.mxu2 %v1863_v7  ;;  %1047 = vmatmul.bf16.gmra.mxu3 %v1879_v8  ;;  %v1865_v8 = vld [vmem:[%s2379_s7 + $0x158] sm:$0xff] }
  0xbd   : > { %v1881_v9 = vld [vmem:[%s2379_s7 + $0x1d8] sm:$0xff] }
  0xbe   : > { %2245 = vst [vmem:[%s2431_s13 + $0x100] sm:$0xff] %v2057_v13  }
  0xbf   : > { %2261 = vst [vmem:[%s2431_s13 + $0x180] sm:$0xff] %v2137_v14   ;;  %v928_v17 = vpop.f32.mrf.mxu2  ;;  %v1008_v18 = vpop.f32.mrf.mxu3 }
  0xc0   : > { %v770_v19 = vpop.f32.mrf.mxu0  ;;  %v850_v20 = vpop.f32.mrf.mxu1  ;;  %v929_v29 = vadd.f32 %v2420_v46, %v928_v17  ;;  %v1009_v30 = vadd.f32 %v2420_v46, %v1008_v18 }
  0xc1   : > { %v771_v21 = vadd.f32 %v2420_v46, %v770_v19  ;;  %v851_v22 = vadd.f32 %v2420_v46, %v850_v20 }
  0xc2   : > { %v1149_v41 = vmax.f32 %v929_v29, 0.0  ;;  %v1181_v42 = vmax.f32 %v1009_v30, 0.0 }
  0xc3   : > { %v1086_v25 = vmax.f32 %v771_v21, 0.0  ;;  %v1118_v26 = vmax.f32 %v851_v22, 0.0 }
  0xc5   : > { %v1902_v27 = vpack.c.bf16 %v1086_v25, %v1085_v23  ;;  %v1982_v28 = vpack.c.bf16 %v1118_v26, %v1117_v24 }
  0xc7   : > { %2214 = vst [vmem:[%s2431_s13 + $0x8] sm:$0xff] %v1902_v27   ;;  %v930_v31 = vpop.f32.mrf.mxu2  ;;  %v1010_v32 = vpop.f32.mrf.mxu3 }
  0xc8   : > { %2230 = vst [vmem:[%s2431_s13 + $0x88] sm:$0xff] %v1982_v28   ;;  %v931_v35 = vadd.f32 %v2420_v46, %v930_v31  ;;  %v1011_v36 = vadd.f32 %v2420_v46, %v1010_v32  ;;  %v773_v37 = vpop.f32.mrf.mxu0  ;;  %v853_v38 = vpop.f32.mrf.mxu1 }
  0xc9   : > { %v774_v48 = vadd.f32 %v2420_v46, %v773_v37  ;;  %v854_v49 = vadd.f32 %v2420_v46, %v853_v38 }
  0xca   : > { %v1150_v43 = vmax.f32 %v931_v35, 0.0  ;;  %v1182_v44 = vmax.f32 %v1011_v36, 0.0  ;;  %v1850_v35 = vld [vmem:[%s2379_s7 + $0xe0] sm:$0xff] }
  0xcb   : > { %812 = vmatmul.bf16.gmra.mxu0 %v1832_v33  ;;  %892 = vmatmul.bf16.gmra.mxu1 %v1848_v34  ;;  %v1087_v56 = vmax.f32 %v774_v48, 0.0  ;;  %v1119_v57 = vmax.f32 %v854_v49, 0.0  ;;  %v1834_v34 = vld [vmem:[%s2379_s7 + $0x60] sm:$0xff] }
  0xcc   : > { %v2062_v45 = vpack.c.bf16 %v1150_v43, %v1149_v41  ;;  %v2142_v47 = vpack.c.bf16 %v1182_v44, %v1181_v42  ;;  %972 = vmatmul.bf16.gmra.mxu2 %v1864_v39  ;;  %1052 = vmatmul.bf16.gmra.mxu3 %v1880_v40  ;;  %v1866_v40 = vld [vmem:[%s2379_s7 + $0x160] sm:$0xff] }
  0xcd   : > { %v1882_v41 = vld [vmem:[%s2379_s7 + $0x1e0] sm:$0xff] }
  0xce   : > { %2246 = vst [vmem:[%s2431_s13 + $0x108] sm:$0xff] %v2062_v45  }
  0xcf   : > { %2262 = vst [vmem:[%s2431_s13 + $0x188] sm:$0xff] %v2142_v47   ;;  %v933_v50 = vpop.f32.mrf.mxu2  ;;  %v1013_v51 = vpop.f32.mrf.mxu3 }
  0xd0   : > { %v775_v52 = vpop.f32.mrf.mxu0  ;;  %v855_v53 = vpop.f32.mrf.mxu1  ;;  %v934_v62 = vadd.f32 %v2420_v46, %v933_v50  ;;  %v1014_v63 = vadd.f32 %v2420_v46, %v1013_v51 }
  0xd1   : > { %v776_v54 = vadd.f32 %v2420_v46, %v775_v52  ;;  %v856_v55 = vadd.f32 %v2420_v46, %v855_v53 }
  0xd2   : > { %v1151_v10 = vmax.f32 %v934_v62, 0.0  ;;  %v1183_v11 = vmax.f32 %v1014_v63, 0.0 }
  0xd3   : > { %v1088_v58 = vmax.f32 %v776_v54, 0.0  ;;  %v1120_v59 = vmax.f32 %v856_v55, 0.0 }
  0xd5   : > { %v1907_v60 = vpack.c.bf16 %v1088_v58, %v1087_v56  ;;  %v1987_v61 = vpack.c.bf16 %v1120_v59, %v1119_v57 }
  0xd7   : > { %2215 = vst [vmem:[%s2431_s13 + $0x10] sm:$0xff] %v1907_v60   ;;  %v935_v0 = vpop.f32.mrf.mxu2  ;;  %v1015_v1 = vpop.f32.mrf.mxu3 }
  0xd8   : > { %2231 = vst [vmem:[%s2431_s13 + $0x90] sm:$0xff] %v1987_v61   ;;  %v936_v4 = vadd.f32 %v2420_v46, %v935_v0  ;;  %v1016_v5 = vadd.f32 %v2420_v46, %v1015_v1  ;;  %v778_v6 = vpop.f32.mrf.mxu0  ;;  %v858_v7 = vpop.f32.mrf.mxu1 }
  0xd9   : > { %v779_v16 = vadd.f32 %v2420_v46, %v778_v6  ;;  %v859_v17 = vadd.f32 %v2420_v46, %v858_v7 }
  0xda   : > { %v1152_v12 = vmax.f32 %v936_v4, 0.0  ;;  %v1184_v13 = vmax.f32 %v1016_v5, 0.0  ;;  %v1851_v4 = vld [vmem:[%s2379_s7 + $0xe8] sm:$0xff] }
  0xdb   : > { %817 = vmatmul.bf16.gmra.mxu0 %v1833_v2  ;;  %897 = vmatmul.bf16.gmra.mxu1 %v1849_v3  ;;  %v1089_v24 = vmax.f32 %v779_v16, 0.0  ;;  %v1121_v25 = vmax.f32 %v859_v17, 0.0  ;;  %v1835_v3 = vld [vmem:[%s2379_s7 + $0x68] sm:$0xff] }
  0xdc   : > { %v2067_v14 = vpack.c.bf16 %v1152_v12, %v1151_v10  ;;  %v2147_v15 = vpack.c.bf16 %v1184_v13, %v1183_v11  ;;  %977 = vmatmul.bf16.gmra.mxu2 %v1865_v8  ;;  %1057 = vmatmul.bf16.gmra.mxu3 %v1881_v9  ;;  %v1867_v9 = vld [vmem:[%s2379_s7 + $0x168] sm:$0xff] }
  0xdd   : > { %v1883_v10 = vld [vmem:[%s2379_s7 + $0x1e8] sm:$0xff] }
  0xde   : > { %2247 = vst [vmem:[%s2431_s13 + $0x110] sm:$0xff] %v2067_v14  }
  0xdf   : > { %2263 = vst [vmem:[%s2431_s13 + $0x190] sm:$0xff] %v2147_v15   ;;  %v938_v18 = vpop.f32.mrf.mxu2  ;;  %v1018_v19 = vpop.f32.mrf.mxu3 }
  0xe0   : > { %v780_v20 = vpop.f32.mrf.mxu0  ;;  %v860_v21 = vpop.f32.mrf.mxu1  ;;  %v939_v30 = vadd.f32 %v2420_v46, %v938_v18  ;;  %v1019_v31 = vadd.f32 %v2420_v46, %v1018_v19 }
  0xe1   : > { %v781_v22 = vadd.f32 %v2420_v46, %v780_v20  ;;  %v861_v23 = vadd.f32 %v2420_v46, %v860_v21 }
  0xe2   : > { %v1153_v42 = vmax.f32 %v939_v30, 0.0  ;;  %v1185_v43 = vmax.f32 %v1019_v31, 0.0 }
  0xe3   : > { %v1090_v26 = vmax.f32 %v781_v22, 0.0  ;;  %v1122_v27 = vmax.f32 %v861_v23, 0.0 }
  0xe5   : > { %v1912_v28 = vpack.c.bf16 %v1090_v26, %v1089_v24  ;;  %v1992_v29 = vpack.c.bf16 %v1122_v27, %v1121_v25 }
  0xe7   : > { %2216 = vst [vmem:[%s2431_s13 + $0x18] sm:$0xff] %v1912_v28   ;;  %v940_v32 = vpop.f32.mrf.mxu2  ;;  %v1020_v33 = vpop.f32.mrf.mxu3 }
  0xe8   : > { %2232 = vst [vmem:[%s2431_s13 + $0x98] sm:$0xff] %v1992_v29   ;;  %v941_v36 = vadd.f32 %v2420_v46, %v940_v32  ;;  %v1021_v37 = vadd.f32 %v2420_v46, %v1020_v33  ;;  %v783_v38 = vpop.f32.mrf.mxu0  ;;  %v863_v39 = vpop.f32.mrf.mxu1 }
  0xe9   : > { %v784_v49 = vadd.f32 %v2420_v46, %v783_v38  ;;  %v864_v50 = vadd.f32 %v2420_v46, %v863_v39 }
  0xea   : > { %v1154_v44 = vmax.f32 %v941_v36, 0.0  ;;  %v1186_v45 = vmax.f32 %v1021_v37, 0.0  ;;  %v1852_v36 = vld [vmem:[%s2379_s7 + $0xf0] sm:$0xff] }
  0xeb   : > { %822 = vmatmul.bf16.gmra.mxu0 %v1834_v34  ;;  %902 = vmatmul.bf16.gmra.mxu1 %v1850_v35  ;;  %v1091_v57 = vmax.f32 %v784_v49, 0.0  ;;  %v1123_v58 = vmax.f32 %v864_v50, 0.0  ;;  %v1836_v35 = vld [vmem:[%s2379_s7 + $0x70] sm:$0xff] }
  0xec   : > { %v2072_v47 = vpack.c.bf16 %v1154_v44, %v1153_v42  ;;  %v2152_v48 = vpack.c.bf16 %v1186_v45, %v1185_v43  ;;  %982 = vmatmul.bf16.gmra.mxu2 %v1866_v40  ;;  %1062 = vmatmul.bf16.gmra.mxu3 %v1882_v41  ;;  %v1868_v41 = vld [vmem:[%s2379_s7 + $0x170] sm:$0xff] }
  0xed   : > { %v1884_v42 = vld [vmem:[%s2379_s7 + $0x1f0] sm:$0xff] }
  0xee   : > { %2248 = vst [vmem:[%s2431_s13 + $0x118] sm:$0xff] %v2072_v47  }
  0xef   : > { %2264 = vst [vmem:[%s2431_s13 + $0x198] sm:$0xff] %v2152_v48   ;;  %v943_v51 = vpop.f32.mrf.mxu2  ;;  %v1023_v52 = vpop.f32.mrf.mxu3 }
  0xf0   : > { %v785_v53 = vpop.f32.mrf.mxu0  ;;  %v865_v54 = vpop.f32.mrf.mxu1  ;;  %v944_v63 = vadd.f32 %v2420_v46, %v943_v51  ;;  %v1024_v0 = vadd.f32 %v2420_v46, %v1023_v52 }
  0xf1   : > { %v786_v55 = vadd.f32 %v2420_v46, %v785_v53  ;;  %v866_v56 = vadd.f32 %v2420_v46, %v865_v54 }
  0xf2   : > { %v1155_v11 = vmax.f32 %v944_v63, 0.0  ;;  %v1187_v12 = vmax.f32 %v1024_v0, 0.0 }
  0xf3   : > { %v1092_v59 = vmax.f32 %v786_v55, 0.0  ;;  %v1124_v60 = vmax.f32 %v866_v56, 0.0 }
  0xf5   : > { %v1917_v61 = vpack.c.bf16 %v1092_v59, %v1091_v57  ;;  %v1997_v62 = vpack.c.bf16 %v1124_v60, %v1123_v58 }
  0xf7   : > { %2217 = vst [vmem:[%s2431_s13 + $0x20] sm:$0xff] %v1917_v61   ;;  %v945_v1 = vpop.f32.mrf.mxu2  ;;  %v1025_v2 = vpop.f32.mrf.mxu3 }
  0xf8   : > { %2233 = vst [vmem:[%s2431_s13 + $0xa0] sm:$0xff] %v1997_v62   ;;  %v946_v5 = vadd.f32 %v2420_v46, %v945_v1  ;;  %v1026_v6 = vadd.f32 %v2420_v46, %v1025_v2  ;;  %v788_v7 = vpop.f32.mrf.mxu0  ;;  %v868_v8 = vpop.f32.mrf.mxu1 }
  0xf9   : > { %v789_v17 = vadd.f32 %v2420_v46, %v788_v7  ;;  %v869_v18 = vadd.f32 %v2420_v46, %v868_v8 }
  0xfa   : > { %v1156_v13 = vmax.f32 %v946_v5, 0.0  ;;  %v1188_v14 = vmax.f32 %v1026_v6, 0.0  ;;  %v1853_v5 = vld [vmem:[%s2379_s7 + $0xf8] sm:$0xff] }
  0xfb   : > { %827 = vmatmul.bf16.gmra.mxu0 %v1835_v3  ;;  %907 = vmatmul.bf16.gmra.mxu1 %v1851_v4  ;;  %v1093_v25 = vmax.f32 %v789_v17, 0.0  ;;  %v1125_v26 = vmax.f32 %v869_v18, 0.0  ;;  %v1837_v4 = vld [vmem:[%s2379_s7 + $0x78] sm:$0xff] }
  0xfc   : > { %v2077_v15 = vpack.c.bf16 %v1156_v13, %v1155_v11  ;;  %v2157_v16 = vpack.c.bf16 %v1188_v14, %v1187_v12  ;;  %987 = vmatmul.bf16.gmra.mxu2 %v1867_v9  ;;  %1067 = vmatmul.bf16.gmra.mxu3 %v1883_v10  ;;  %v1869_v10 = vld [vmem:[%s2379_s7 + $0x178] sm:$0xff] }
  0xfd   : > { %v1885_v11 = vld [vmem:[%s2379_s7 + $0x1f8] sm:$0xff] }
  0xfe   : > { %2249 = vst [vmem:[%s2431_s13 + $0x120] sm:$0xff] %v2077_v15  }
  0xff   : > { %2265 = vst [vmem:[%s2431_s13 + $0x1a0] sm:$0xff] %v2157_v16   ;;  %v948_v19 = vpop.f32.mrf.mxu2  ;;  %v1028_v20 = vpop.f32.mrf.mxu3 }
 0x100   : > { %v790_v21 = vpop.f32.mrf.mxu0  ;;  %v870_v22 = vpop.f32.mrf.mxu1  ;;  %v949_v31 = vadd.f32 %v2420_v46, %v948_v19  ;;  %v1029_v32 = vadd.f32 %v2420_v46, %v1028_v20 }
 0x101   : > { %v791_v23 = vadd.f32 %v2420_v46, %v790_v21  ;;  %v871_v24 = vadd.f32 %v2420_v46, %v870_v22 }
 0x102   : > { %v1157_v43 = vmax.f32 %v949_v31, 0.0  ;;  %v1189_v44 = vmax.f32 %v1029_v32, 0.0 }
 0x103   : > { %v1094_v27 = vmax.f32 %v791_v23, 0.0  ;;  %v1126_v28 = vmax.f32 %v871_v24, 0.0 }
 0x105   : > { %v1922_v29 = vpack.c.bf16 %v1094_v27, %v1093_v25  ;;  %v2002_v30 = vpack.c.bf16 %v1126_v28, %v1125_v26 }
 0x107   : > { %2218 = vst [vmem:[%s2431_s13 + $0x28] sm:$0xff] %v1922_v29   ;;  %v950_v33 = vpop.f32.mrf.mxu2  ;;  %v1030_v34 = vpop.f32.mrf.mxu3 }
 0x108   : > { %2234 = vst [vmem:[%s2431_s13 + $0xa8] sm:$0xff] %v2002_v30   ;;  %v951_v37 = vadd.f32 %v2420_v46, %v950_v33  ;;  %v1031_v38 = vadd.f32 %v2420_v46, %v1030_v34  ;;  %v793_v39 = vpop.f32.mrf.mxu0  ;;  %v873_v40 = vpop.f32.mrf.mxu1 }
 0x109   : > { %v794_v50 = vadd.f32 %v2420_v46, %v793_v39  ;;  %v874_v51 = vadd.f32 %v2420_v46, %v873_v40 }
 0x10a   : > { %v1158_v45 = vmax.f32 %v951_v37, 0.0  ;;  %v1190_v47 = vmax.f32 %v1031_v38, 0.0 }
 0x10b   : > { %832 = vmatmul.bf16.gmra.mxu0 %v1836_v35  ;;  %912 = vmatmul.bf16.gmra.mxu1 %v1852_v36  ;;  %v1095_v58 = vmax.f32 %v794_v50, 0.0  ;;  %v1127_v59 = vmax.f32 %v874_v51, 0.0 }
 0x10c   : > { %v2082_v48 = vpack.c.bf16 %v1158_v45, %v1157_v43  ;;  %v2162_v49 = vpack.c.bf16 %v1190_v47, %v1189_v44  ;;  %992 = vmatmul.bf16.gmra.mxu2 %v1868_v41  ;;  %1072 = vmatmul.bf16.gmra.mxu3 %v1884_v42 }
 0x10e   : > { %2250 = vst [vmem:[%s2431_s13 + $0x128] sm:$0xff] %v2082_v48  }
 0x10f   : > { %2266 = vst [vmem:[%s2431_s13 + $0x1a8] sm:$0xff] %v2162_v49   ;;  %v953_v52 = vpop.f32.mrf.mxu2  ;;  %v1033_v53 = vpop.f32.mrf.mxu3 }
 0x110   : > { %v795_v54 = vpop.f32.mrf.mxu0  ;;  %v875_v55 = vpop.f32.mrf.mxu1  ;;  %v954_v0 = vadd.f32 %v2420_v46, %v953_v52  ;;  %v1034_v1 = vadd.f32 %v2420_v46, %v1033_v53 }
 0x111   : > { %v796_v56 = vadd.f32 %v2420_v46, %v795_v54  ;;  %v876_v57 = vadd.f32 %v2420_v46, %v875_v55 }
 0x112   : > { %v1159_v12 = vmax.f32 %v954_v0, 0.0  ;;  %v1191_v13 = vmax.f32 %v1034_v1, 0.0 }
 0x113   : > { %v1096_v60 = vmax.f32 %v796_v56, 0.0  ;;  %v1128_v61 = vmax.f32 %v876_v57, 0.0 }
 0x115   : > { %v1927_v62 = vpack.c.bf16 %v1096_v60, %v1095_v58  ;;  %v2007_v63 = vpack.c.bf16 %v1128_v61, %v1127_v59 }
 0x117   : > { %2219 = vst [vmem:[%s2431_s13 + $0x30] sm:$0xff] %v1927_v62   ;;  %v955_v2 = vpop.f32.mrf.mxu2  ;;  %v1035_v3 = vpop.f32.mrf.mxu3 }
 0x118   : > { %2235 = vst [vmem:[%s2431_s13 + $0xb0] sm:$0xff] %v2007_v63   ;;  %v956_v6 = vadd.f32 %v2420_v46, %v955_v2  ;;  %v1036_v7 = vadd.f32 %v2420_v46, %v1035_v3  ;;  %v798_v8 = vpop.f32.mrf.mxu0  ;;  %v878_v9 = vpop.f32.mrf.mxu1 }
 0x119   : > { %v799_v18 = vadd.f32 %v2420_v46, %v798_v8  ;;  %v879_v19 = vadd.f32 %v2420_v46, %v878_v9 }
 0x11a   : > { %v1160_v14 = vmax.f32 %v956_v6, 0.0  ;;  %v1192_v15 = vmax.f32 %v1036_v7, 0.0 }
 0x11b   : > { %837 = vmatmul.bf16.gmra.mxu0 %v1837_v4  ;;  %917 = vmatmul.bf16.gmra.mxu1 %v1853_v5  ;;  %v1097_v26 = vmax.f32 %v799_v18, 0.0  ;;  %v1129_v27 = vmax.f32 %v879_v19, 0.0 }
 0x11c   : > { %v2087_v16 = vpack.c.bf16 %v1160_v14, %v1159_v12  ;;  %v2167_v17 = vpack.c.bf16 %v1192_v15, %v1191_v13  ;;  %997 = vmatmul.bf16.gmra.mxu2 %v1869_v10  ;;  %1077 = vmatmul.bf16.gmra.mxu3 %v1885_v11 }
 0x11e   : > { %2251 = vst [vmem:[%s2431_s13 + $0x130] sm:$0xff] %v2087_v16  }
 0x11f   : > { %2267 = vst [vmem:[%s2431_s13 + $0x1b0] sm:$0xff] %v2167_v17   ;;  %v958_v20 = vpop.f32.mrf.mxu2  ;;  %v1038_v21 = vpop.f32.mrf.mxu3 }
 0x120   : > { %v800_v22 = vpop.f32.mrf.mxu0  ;;  %v880_v23 = vpop.f32.mrf.mxu1  ;;  %v959_v32 = vadd.f32 %v2420_v46, %v958_v20  ;;  %v1039_v33 = vadd.f32 %v2420_v46, %v1038_v21 }
 0x121   : > { %v801_v24 = vadd.f32 %v2420_v46, %v800_v22  ;;  %v881_v25 = vadd.f32 %v2420_v46, %v880_v23 }
 0x122   : > { %v1161_v40 = vmax.f32 %v959_v32, 0.0  ;;  %v1193_v41 = vmax.f32 %v1039_v33, 0.0 }
 0x123   : > { %v1098_v28 = vmax.f32 %v801_v24, 0.0  ;;  %v1130_v29 = vmax.f32 %v881_v25, 0.0 }
 0x125   : > { %v1932_v30 = vpack.c.bf16 %v1098_v28, %v1097_v26  ;;  %v2012_v31 = vpack.c.bf16 %v1130_v29, %v1129_v27 }
 0x127   : > { %2220 = vst [vmem:[%s2431_s13 + $0x38] sm:$0xff] %v1932_v30   ;;  %v960_v34 = vpop.f32.mrf.mxu2  ;;  %v1040_v35 = vpop.f32.mrf.mxu3 }
 0x128   : > { %2236 = vst [vmem:[%s2431_s13 + $0xb8] sm:$0xff] %v2012_v31   ;;  %v961_v36 = vadd.f32 %v2420_v46, %v960_v34  ;;  %v1041_v37 = vadd.f32 %v2420_v46, %v1040_v35  ;;  %v803_v38 = vpop.f32.mrf.mxu0  ;;  %v883_v39 = vpop.f32.mrf.mxu1 }
 0x129   : > { %v804_v47 = vadd.f32 %v2420_v46, %v803_v38  ;;  %v884_v48 = vadd.f32 %v2420_v46, %v883_v39 }
 0x12a   : > { %v1162_v42 = vmax.f32 %v961_v36, 0.0  ;;  %v1194_v43 = vmax.f32 %v1041_v37, 0.0 }
 0x12b   : > { %v1099_v55 = vmax.f32 %v804_v47, 0.0  ;;  %v1131_v56 = vmax.f32 %v884_v48, 0.0 }
 0x12c   : > { %v2092_v44 = vpack.c.bf16 %v1162_v42, %v1161_v40  ;;  %v2172_v45 = vpack.c.bf16 %v1194_v43, %v1193_v41 }
 0x12e   : > { %2252 = vst [vmem:[%s2431_s13 + $0x138] sm:$0xff] %v2092_v44  }
 0x12f   : > { %2268 = vst [vmem:[%s2431_s13 + $0x1b8] sm:$0xff] %v2172_v45   ;;  %v963_v49 = vpop.f32.mrf.mxu2  ;;  %v1043_v50 = vpop.f32.mrf.mxu3 }
 0x130   : > { %v805_v51 = vpop.f32.mrf.mxu0  ;;  %v885_v52 = vpop.f32.mrf.mxu1  ;;  %v964_v61 = vadd.f32 %v2420_v46, %v963_v49  ;;  %v1044_v62 = vadd.f32 %v2420_v46, %v1043_v50 }
 0x131   : > { %v806_v53 = vadd.f32 %v2420_v46, %v805_v51  ;;  %v886_v54 = vadd.f32 %v2420_v46, %v885_v52 }
 0x132   : > { %v1163_v5 = vmax.f32 %v964_v61, 0.0  ;;  %v1195_v6 = vmax.f32 %v1044_v62, 0.0 }
 0x133   : > { %v1100_v57 = vmax.f32 %v806_v53, 0.0  ;;  %v1132_v58 = vmax.f32 %v886_v54, 0.0 }
 0x135   : > { %v1937_v59 = vpack.c.bf16 %v1100_v57, %v1099_v55  ;;  %v2017_v60 = vpack.c.bf16 %v1132_v58, %v1131_v56 }
 0x137   : > { %2221 = vst [vmem:[%s2431_s13 + $0x40] sm:$0xff] %v1937_v59   ;;  %v965_v63 = vpop.f32.mrf.mxu2  ;;  %v1045_v0 = vpop.f32.mrf.mxu3 }
 0x138   : > { %2237 = vst [vmem:[%s2431_s13 + $0xc0] sm:$0xff] %v2017_v60   ;;  %v966_v1 = vadd.f32 %v2420_v46, %v965_v63  ;;  %v1046_v2 = vadd.f32 %v2420_v46, %v1045_v0  ;;  %v808_v3 = vpop.f32.mrf.mxu0  ;;  %v888_v4 = vpop.f32.mrf.mxu1 }
 0x139   : > { %v809_v11 = vadd.f32 %v2420_v46, %v808_v3  ;;  %v889_v12 = vadd.f32 %v2420_v46, %v888_v4 }
 0x13a   : > { %v1164_v7 = vmax.f32 %v966_v1, 0.0  ;;  %v1196_v8 = vmax.f32 %v1046_v2, 0.0 }
 0x13b   : > { %v1101_v19 = vmax.f32 %v809_v11, 0.0  ;;  %v1133_v20 = vmax.f32 %v889_v12, 0.0 }
 0x13c   : > { %v2097_v9 = vpack.c.bf16 %v1164_v7, %v1163_v5  ;;  %v2177_v10 = vpack.c.bf16 %v1196_v8, %v1195_v6 }
 0x13e   : > { %2253 = vst [vmem:[%s2431_s13 + $0x140] sm:$0xff] %v2097_v9  }
 0x13f   : > { %2269 = vst [vmem:[%s2431_s13 + $0x1c0] sm:$0xff] %v2177_v10   ;;  %v968_v13 = vpop.f32.mrf.mxu2  ;;  %v1048_v14 = vpop.f32.mrf.mxu3 }
 0x140   : > { %v810_v15 = vpop.f32.mrf.mxu0  ;;  %v890_v16 = vpop.f32.mrf.mxu1  ;;  %v969_v25 = vadd.f32 %v2420_v46, %v968_v13  ;;  %v1049_v26 = vadd.f32 %v2420_v46, %v1048_v14 }
 0x141   : > { %v811_v17 = vadd.f32 %v2420_v46, %v810_v15  ;;  %v891_v18 = vadd.f32 %v2420_v46, %v890_v16 }
 0x142   : > { %v1165_v33 = vmax.f32 %v969_v25, 0.0  ;;  %v1197_v34 = vmax.f32 %v1049_v26, 0.0 }
 0x143   : > { %v1102_v21 = vmax.f32 %v811_v17, 0.0  ;;  %v1134_v22 = vmax.f32 %v891_v18, 0.0 }
 0x145   : > { %v1942_v23 = vpack.c.bf16 %v1102_v21, %v1101_v19  ;;  %v2022_v24 = vpack.c.bf16 %v1134_v22, %v1133_v20 }
 0x147   : > { %2222 = vst [vmem:[%s2431_s13 + $0x48] sm:$0xff] %v1942_v23   ;;  %v970_v27 = vpop.f32.mrf.mxu2  ;;  %v1050_v28 = vpop.f32.mrf.mxu3 }
 0x148   : > { %2238 = vst [vmem:[%s2431_s13 + $0xc8] sm:$0xff] %v2022_v24   ;;  %v971_v29 = vadd.f32 %v2420_v46, %v970_v27  ;;  %v1051_v30 = vadd.f32 %v2420_v46, %v1050_v28  ;;  %v813_v31 = vpop.f32.mrf.mxu0  ;;  %v893_v32 = vpop.f32.mrf.mxu1 }
 0x149   : > { %v814_v39 = vadd.f32 %v2420_v46, %v813_v31  ;;  %v894_v40 = vadd.f32 %v2420_v46, %v893_v32 }
 0x14a   : > { %v1166_v35 = vmax.f32 %v971_v29, 0.0  ;;  %v1198_v36 = vmax.f32 %v1051_v30, 0.0 }
 0x14b   : > { %v1103_v48 = vmax.f32 %v814_v39, 0.0  ;;  %v1135_v49 = vmax.f32 %v894_v40, 0.0 }
 0x14c   : > { %v2102_v37 = vpack.c.bf16 %v1166_v35, %v1165_v33  ;;  %v2182_v38 = vpack.c.bf16 %v1198_v36, %v1197_v34 }
 0x14e   : > { %2254 = vst [vmem:[%s2431_s13 + $0x148] sm:$0xff] %v2102_v37  }
 0x14f   : > { %2270 = vst [vmem:[%s2431_s13 + $0x1c8] sm:$0xff] %v2182_v38   ;;  %v973_v41 = vpop.f32.mrf.mxu2  ;;  %v1053_v42 = vpop.f32.mrf.mxu3 }
 0x150   : > { %v815_v43 = vpop.f32.mrf.mxu0  ;;  %v895_v44 = vpop.f32.mrf.mxu1  ;;  %v974_v54 = vadd.f32 %v2420_v46, %v973_v41  ;;  %v1054_v55 = vadd.f32 %v2420_v46, %v1053_v42 }
 0x151   : > { %v816_v45 = vadd.f32 %v2420_v46, %v815_v43  ;;  %v896_v47 = vadd.f32 %v2420_v46, %v895_v44 }
 0x152   : > { %v1167_v62 = vmax.f32 %v974_v54, 0.0  ;;  %v1199_v63 = vmax.f32 %v1054_v55, 0.0 }
 0x153   : > { %v1104_v50 = vmax.f32 %v816_v45, 0.0  ;;  %v1136_v51 = vmax.f32 %v896_v47, 0.0 }
 0x155   : > { %v1947_v52 = vpack.c.bf16 %v1104_v50, %v1103_v48  ;;  %v2027_v53 = vpack.c.bf16 %v1136_v51, %v1135_v49 }
 0x157   : > { %2223 = vst [vmem:[%s2431_s13 + $0x50] sm:$0xff] %v1947_v52   ;;  %v975_v56 = vpop.f32.mrf.mxu2  ;;  %v1055_v57 = vpop.f32.mrf.mxu3 }
 0x158   : > { %2239 = vst [vmem:[%s2431_s13 + $0xd0] sm:$0xff] %v2027_v53   ;;  %v976_v58 = vadd.f32 %v2420_v46, %v975_v56  ;;  %v1056_v59 = vadd.f32 %v2420_v46, %v1055_v57  ;;  %v818_v60 = vpop.f32.mrf.mxu0  ;;  %v898_v61 = vpop.f32.mrf.mxu1 }
 0x159   : > { %v819_v4 = vadd.f32 %v2420_v46, %v818_v60  ;;  %v899_v5 = vadd.f32 %v2420_v46, %v898_v61 }
 0x15a   : > { %v1168_v0 = vmax.f32 %v976_v58, 0.0  ;;  %v1200_v1 = vmax.f32 %v1056_v59, 0.0 }
 0x15b   : > { %v1105_v12 = vmax.f32 %v819_v4, 0.0  ;;  %v1137_v13 = vmax.f32 %v899_v5, 0.0 }
 0x15c   : > { %v2107_v2 = vpack.c.bf16 %v1168_v0, %v1167_v62  ;;  %v2187_v3 = vpack.c.bf16 %v1200_v1, %v1199_v63 }
 0x15e   : > { %2255 = vst [vmem:[%s2431_s13 + $0x150] sm:$0xff] %v2107_v2  }
 0x15f   : > { %2271 = vst [vmem:[%s2431_s13 + $0x1d0] sm:$0xff] %v2187_v3   ;;  %v978_v6 = vpop.f32.mrf.mxu2  ;;  %v1058_v7 = vpop.f32.mrf.mxu3 }
 0x160   : > { %v820_v8 = vpop.f32.mrf.mxu0  ;;  %v900_v9 = vpop.f32.mrf.mxu1  ;;  %v979_v18 = vadd.f32 %v2420_v46, %v978_v6  ;;  %v1059_v19 = vadd.f32 %v2420_v46, %v1058_v7 }
 0x161   : > { %v821_v10 = vadd.f32 %v2420_v46, %v820_v8  ;;  %v901_v11 = vadd.f32 %v2420_v46, %v900_v9 }
 0x162   : > { %v1169_v26 = vmax.f32 %v979_v18, 0.0  ;;  %v1201_v27 = vmax.f32 %v1059_v19, 0.0 }
 0x163   : > { %v1106_v14 = vmax.f32 %v821_v10, 0.0  ;;  %v1138_v15 = vmax.f32 %v901_v11, 0.0 }
 0x165   : > { %v1952_v16 = vpack.c.bf16 %v1106_v14, %v1105_v12  ;;  %v2032_v17 = vpack.c.bf16 %v1138_v15, %v1137_v13 }
 0x167   : > { %2224 = vst [vmem:[%s2431_s13 + $0x58] sm:$0xff] %v1952_v16   ;;  %v980_v20 = vpop.f32.mrf.mxu2  ;;  %v1060_v21 = vpop.f32.mrf.mxu3 }
 0x168   : > { %2240 = vst [vmem:[%s2431_s13 + $0xd8] sm:$0xff] %v2032_v17   ;;  %v981_v22 = vadd.f32 %v2420_v46, %v980_v20  ;;  %v1061_v23 = vadd.f32 %v2420_v46, %v1060_v21  ;;  %v823_v24 = vpop.f32.mrf.mxu0  ;;  %v903_v25 = vpop.f32.mrf.mxu1 }
 0x169   : > { %v824_v32 = vadd.f32 %v2420_v46, %v823_v24  ;;  %v904_v33 = vadd.f32 %v2420_v46, %v903_v25 }
 0x16a   : > { %v1170_v28 = vmax.f32 %v981_v22, 0.0  ;;  %v1202_v29 = vmax.f32 %v1061_v23, 0.0 }
 0x16b   : > { %v1107_v40 = vmax.f32 %v824_v32, 0.0  ;;  %v1139_v41 = vmax.f32 %v904_v33, 0.0 }
 0x16c   : > { %v2112_v30 = vpack.c.bf16 %v1170_v28, %v1169_v26  ;;  %v2192_v31 = vpack.c.bf16 %v1202_v29, %v1201_v27 }
 0x16e   : > { %2256 = vst [vmem:[%s2431_s13 + $0x158] sm:$0xff] %v2112_v30  }
 0x16f   : > { %2272 = vst [vmem:[%s2431_s13 + $0x1d8] sm:$0xff] %v2192_v31   ;;  %v983_v34 = vpop.f32.mrf.mxu2  ;;  %v1063_v35 = vpop.f32.mrf.mxu3  ;;  %v2310_v31 = vld [vmem:[%s2643_s2] ss:$0 sm:$0xff] }
 0x170   : > { %v825_v36 = vpop.f32.mrf.mxu0  ;;  %v905_v37 = vpop.f32.mrf.mxu1  ;;  %v984_v47 = vadd.f32 %v2420_v46, %v983_v34  ;;  %v1064_v48 = vadd.f32 %v2420_v46, %v1063_v35 }
 0x171   : > { %v826_v38 = vadd.f32 %v2420_v46, %v825_v36  ;;  %v906_v39 = vadd.f32 %v2420_v46, %v905_v37 }
 0x172   : > { %v1171_v55 = vmax.f32 %v984_v47, 0.0  ;;  %v1203_v56 = vmax.f32 %v1064_v48, 0.0 }
 0x173   : > { %v1108_v42 = vmax.f32 %v826_v38, 0.0  ;;  %v1140_v43 = vmax.f32 %v906_v39, 0.0 }
 0x175   : > { %v1957_v44 = vpack.c.bf16 %v1108_v42, %v1107_v40  ;;  %v2037_v45 = vpack.c.bf16 %v1140_v43, %v1139_v41 }
 0x177   : > { %2225 = vst [vmem:[%s2431_s13 + $0x60] sm:$0xff] %v1957_v44   ;;  %v985_v49 = vpop.f32.mrf.mxu2  ;;  %v1065_v50 = vpop.f32.mrf.mxu3 }
 0x178   : > { %2241 = vst [vmem:[%s2431_s13 + $0xe0] sm:$0xff] %v2037_v45   ;;  %v986_v51 = vadd.f32 %v2420_v46, %v985_v49  ;;  %v1066_v52 = vadd.f32 %v2420_v46, %v1065_v50  ;;  %v828_v53 = vpop.f32.mrf.mxu0  ;;  %v908_v54 = vpop.f32.mrf.mxu1 }
 0x179   : > { %v829_v61 = vadd.f32 %v2420_v46, %v828_v53  ;;  %v909_v62 = vadd.f32 %v2420_v46, %v908_v54 }
 0x17a   : > { %v1172_v57 = vmax.f32 %v986_v51, 0.0  ;;  %v1204_v58 = vmax.f32 %v1066_v52, 0.0 }
 0x17b   : > { %v1109_v5 = vmax.f32 %v829_v61, 0.0  ;;  %v1141_v6 = vmax.f32 %v909_v62, 0.0 }
 0x17c   : > { %v2117_v59 = vpack.c.bf16 %v1172_v57, %v1171_v55  ;;  %v2197_v60 = vpack.c.bf16 %v1204_v58, %v1203_v56 }
 0x17e   : > { %2257 = vst [vmem:[%s2431_s13 + $0x160] sm:$0xff] %v2117_v59  }
 0x17f   : > { %2273 = vst [vmem:[%s2431_s13 + $0x1e0] sm:$0xff] %v2197_v60   ;;  %v988_v63 = vpop.f32.mrf.mxu2  ;;  %v1068_v0 = vpop.f32.mrf.mxu3 }
 0x180   : > { %v830_v1 = vpop.f32.mrf.mxu0  ;;  %v910_v2 = vpop.f32.mrf.mxu1  ;;  %v989_v11 = vadd.f32 %v2420_v46, %v988_v63  ;;  %v1069_v12 = vadd.f32 %v2420_v46, %v1068_v0 }
 0x181   : > { %v831_v3 = vadd.f32 %v2420_v46, %v830_v1  ;;  %v911_v4 = vadd.f32 %v2420_v46, %v910_v2 }
 0x182   : > { %v1173_v19 = vmax.f32 %v989_v11, 0.0  ;;  %v1205_v20 = vmax.f32 %v1069_v12, 0.0 }
 0x183   : > { %v1110_v7 = vmax.f32 %v831_v3, 0.0  ;;  %v1142_v8 = vmax.f32 %v911_v4, 0.0 }
 0x185   : > { %v1962_v9 = vpack.c.bf16 %v1110_v7, %v1109_v5  ;;  %v2042_v10 = vpack.c.bf16 %v1142_v8, %v1141_v6 }
 0x187   : > { %2226 = vst [vmem:[%s2431_s13 + $0x68] sm:$0xff] %v1962_v9   ;;  %v990_v13 = vpop.f32.mrf.mxu2  ;;  %v1070_v14 = vpop.f32.mrf.mxu3 }
 0x188   : > { %2242 = vst [vmem:[%s2431_s13 + $0xe8] sm:$0xff] %v2042_v10   ;;  %v991_v15 = vadd.f32 %v2420_v46, %v990_v13  ;;  %v1071_v16 = vadd.f32 %v2420_v46, %v1070_v14  ;;  %v833_v17 = vpop.f32.mrf.mxu0  ;;  %v913_v18 = vpop.f32.mrf.mxu1 }
 0x189   : > { %v834_v25 = vadd.f32 %v2420_v46, %v833_v17  ;;  %v914_v26 = vadd.f32 %v2420_v46, %v913_v18 }
 0x18a   : > { %v1174_v21 = vmax.f32 %v991_v15, 0.0  ;;  %v1206_v22 = vmax.f32 %v1071_v16, 0.0 }
 0x18b   : > { %v1111_v34 = vmax.f32 %v834_v25, 0.0  ;;  %v1143_v35 = vmax.f32 %v914_v26, 0.0 }
 0x18c   : > { %v2122_v23 = vpack.c.bf16 %v1174_v21, %v1173_v19  ;;  %v2202_v24 = vpack.c.bf16 %v1206_v22, %v1205_v20 }
 0x18e   : > { %2258 = vst [vmem:[%s2431_s13 + $0x168] sm:$0xff] %v2122_v23  }
 0x18f   : > { %2274 = vst [vmem:[%s2431_s13 + $0x1e8] sm:$0xff] %v2202_v24   ;;  %v993_v27 = vpop.f32.mrf.mxu2  ;;  %v1073_v28 = vpop.f32.mrf.mxu3 }
 0x190   : > { %v835_v29 = vpop.f32.mrf.mxu0  ;;  %v915_v30 = vpop.f32.mrf.mxu1  ;;  %v994_v40 = vadd.f32 %v2310_v31, %v993_v27  ;;  %v1074_v46 = vadd.f32 %v2310_v31, %v1073_v28 }
 0x191   : > { %v836_v32 = vadd.f32 %v2310_v31, %v835_v29  ;;  %v916_v33 = vadd.f32 %v2310_v31, %v915_v30 }
 0x192   : > { %v1175_v48 = vmax.f32 %v994_v40, 0.0  ;;  %v1207_v49 = vmax.f32 %v1074_v46, 0.0 }
 0x193   : > { %v1112_v36 = vmax.f32 %v836_v32, 0.0  ;;  %v1144_v37 = vmax.f32 %v916_v33, 0.0 }
 0x195   : > { %v1967_v38 = vpack.c.bf16 %v1112_v36, %v1111_v34  ;;  %v2047_v39 = vpack.c.bf16 %v1144_v37, %v1143_v35 }
 0x197   : > { %2227 = vst [vmem:[%s2431_s13 + $0x70] sm:$0xff] %v1967_v38   ;;  %v995_v41 = vpop.f32.mrf.mxu2  ;;  %v1075_v42 = vpop.f32.mrf.mxu3 }
 0x198   : > { %2243 = vst [vmem:[%s2431_s13 + $0xf0] sm:$0xff] %v2047_v39   ;;  %v996_v43 = vadd.f32 %v2310_v31, %v995_v41  ;;  %v1076_v44 = vadd.f32 %v2310_v31, %v1075_v42  ;;  %v838_v45 = vpop.f32.mrf.mxu0  ;;  %v918_v47 = vpop.f32.mrf.mxu1 }
 0x199   : > { %v839_v54 = vadd.f32 %v2310_v31, %v838_v45  ;;  %v919_v55 = vadd.f32 %v2310_v31, %v918_v47 }
 0x19a   : > { %v1176_v50 = vmax.f32 %v996_v43, 0.0  ;;  %v1208_v51 = vmax.f32 %v1076_v44, 0.0 }
 0x19b   : > { %v1113_v62 = vmax.f32 %v839_v54, 0.0  ;;  %v1145_v63 = vmax.f32 %v919_v55, 0.0 }
 0x19c   : > { %v2127_v52 = vpack.c.bf16 %v1176_v50, %v1175_v48  ;;  %v2207_v53 = vpack.c.bf16 %v1208_v51, %v1207_v49 }
 0x19e   : > { %2259 = vst [vmem:[%s2431_s13 + $0x170] sm:$0xff] %v2127_v52  }
 0x19f   : > { %2275 = vst [vmem:[%s2431_s13 + $0x1f0] sm:$0xff] %v2207_v53   ;;  %v998_v56 = vpop.f32.mrf.mxu2  ;;  %v1078_v57 = vpop.f32.mrf.mxu3 }
 0x1a0   : > { %v840_v58 = vpop.f32.mrf.mxu0  ;;  %v920_v59 = vpop.f32.mrf.mxu1  ;;  %v999_v4 = vadd.f32 %v2310_v31, %v998_v56  ;;  %v1079_v5 = vadd.f32 %v2310_v31, %v1078_v57 }
 0x1a1   : > { %v841_v60 = vadd.f32 %v2310_v31, %v840_v58  ;;  %v921_v61 = vadd.f32 %v2310_v31, %v920_v59 }
 0x1a2   : > { %v1177_v10 = vmax.f32 %v999_v4, 0.0  ;;  %v1209_v11 = vmax.f32 %v1079_v5, 0.0 }
 0x1a3   : > { %v1114_v0 = vmax.f32 %v841_v60, 0.0  ;;  %v1146_v1 = vmax.f32 %v921_v61, 0.0 }
 0x1a5   : > { %v1972_v2 = vpack.c.bf16 %v1114_v0, %v1113_v62  ;;  %v2052_v3 = vpack.c.bf16 %v1146_v1, %v1145_v63 }
 0x1a7   : > { %2228 = vst [vmem:[%s2431_s13 + $0x78] sm:$0xff] %v1972_v2   ;;  %v1000_v6 = vpop.f32.mrf.mxu2  ;;  %v1080_v7 = vpop.f32.mrf.mxu3 }
 0x1a8   : > { %2244 = vst [vmem:[%s2431_s13 + $0xf8] sm:$0xff] %v2052_v3   ;;  %v1001_v8 = vadd.f32 %v2310_v31, %v1000_v6  ;;  %v1081_v9 = vadd.f32 %v2310_v31, %v1080_v7 }
 0x1aa   : > { %v1178_v12 = vmax.f32 %v1001_v8, 0.0  ;;  %v1210_v13 = vmax.f32 %v1081_v9, 0.0 }
 0x1ac   : > { %v2132_v14 = vpack.c.bf16 %v1178_v12, %v1177_v10  ;;  %v2212_v15 = vpack.c.bf16 %v1210_v13, %v1209_v11 }
 0x1ae   : > { %2260 = vst [vmem:[%s2431_s13 + $0x178] sm:$0xff] %v2132_v14  }
 0x1af   : > { %2276 = vst [vmem:[%s2431_s13 + $0x1f8] sm:$0xff] %v2212_v15  }
 0x1b0 PF: > { %s13_s12 = sadd.s32 1, %s2317_s12  }
 0x1b1   : > { %p10_p4 = scmp.ge.s32.totalorder %s13_s12, 4  }
 0x1b3   :  { %12 = sbr.rel (!%p10_p4) target bundleno = 1 (0x1), region = 62 }

// kernel: resnet20_forward.22
= control target key start
LH: loop header
LB: loop body
LE: loop exit
PB: predicated region body
PF: predicated region fallthrough
CT: control target
= control target key end

     0   :  { %s3346_s12 = smov 0   ;;  %s3882_s0 = inlined_call_operand.vmem [shape: bf16[2048,256], index: 0, kind: input, shape index: {}]   ;;  %s3883_s1 = inlined_call_operand.vmem [shape: bf16[256,128], index: 1, kind: input, shape index: {}]   ;;  %s3884_s2 = inlined_call_operand.vmem [shape: f32[1,128], index: 2, kind: input, shape index: {}]   ;;  %s3885_s3 = inlined_call_operand.vmem [shape: bf16[2048,128], index: 3, kind: output, shape index: {}]  }
   0x1 LB: > { %s2175_s13 = sadd.s32 4294967295, %s3324_s12   ;;  %p2179_p0 = scmp.ge.s32.totalorder %s3324_s12, 1  ;;  %s3324_s12 = sphi %s3346_s12, %s13_s12  }
   0x2   : > { %p139_p1 = scmp.lt.s32.totalorder %s3324_s12, 3 }
   0x4   : > { %p140_p2 = pnand %p2179_p0, %p139_p1 }
   0x5   : > { %s2180_s26 = sshll.u32 (!%p140_p2), %s2175_s13, 7 }
   0x6   : > { %143 = sbr.rel (%p140_p2) target bundleno = 688 (0x2b0), region = 32  ;;  %p165_p3 = scmp.lt.s32.totalorder (!%p140_p2), %s2180_s26, 255 }
   0xb   : > { %v2899_v0 = vld [vmem:[%s3883_s1 + $0x38] sm:$0xff]  ;;  %v2898_v2 = vld [vmem:[%s3883_s1 + $0x30] sm:$0xff]  ;;  %v2897_v4 = vld [vmem:[%s3883_s1 + $0x28] sm:$0xff]  ;;  %s3887_s26 = smov (!%p165_p3, %s2180_s26), 255 }
   0xc   : > { %v2907_v1 = vld [vmem:[%s3883_s1 + $0x78] sm:$0xff]  ;;  %1077 = vmatpush.bf16.msra.mxu0 %v2899_v0  ;;  %3291 = vmatpush.bf16.msra.mxu2 %v2899_v0  ;;  %v2906_v3 = vld [vmem:[%s3883_s1 + $0x70] sm:$0xff]  ;;  %v2905_v5 = vld [vmem:[%s3883_s1 + $0x68] sm:$0xff]  ;;  %s2763_s13 = sshll.u32 %s3887_s26, 3  ;;  %s2184_s28 = sshll.u32 %s3887_s26, 2 }
   0xd   : > { %1406 = vmatpush.bf16.msra.mxu1 %v2907_v1  ;;  %3299 = vmatpush.bf16.msra.mxu3 %v2907_v1  ;;  %v2896_v6 = vld [vmem:[%s3883_s1 + $0x20] sm:$0xff]  ;;  %v2895_v8 = vld [vmem:[%s3883_s1 + $0x18] sm:$0xff]  ;;  %v2894_v10 = vld [vmem:[%s3883_s1 + $0x10] sm:$0xff]  ;;  %s3399_s18 = scalar_lea.vmem %s3882_s0, %s2763_s13  ;;  %s3502_s4 = scalar_lea.vmem %s3885_s3, %s2184_s28 }
   0xe   : > { %v2904_v7 = vld [vmem:[%s3883_s1 + $0x60] sm:$0xff]  ;;  %v2903_v9 = vld [vmem:[%s3883_s1 + $0x58] sm:$0xff]  ;;  %v2902_v11 = vld [vmem:[%s3883_s1 + $0x50] sm:$0xff] }
   0xf   : > { %v2893_v12 = vld [vmem:[%s3883_s1 + $0x8] sm:$0xff]  ;;  %v2892_v14 = vld [vmem:[%s3883_s1] sm:$0xff]  ;;  %v2195_v28 = vld [vmem:[%s3399_s18 + $0x10] sm:$0xf] }
  0x10   : > { %1078 = vmatpush.bf16.msra.mxu0 %v2898_v2  ;;  %3292 = vmatpush.bf16.msra.mxu2 %v2898_v2  ;;  %v2901_v13 = vld [vmem:[%s3883_s1 + $0x48] sm:$0xff]  ;;  %v2900_v15 = vld [vmem:[%s3883_s1 + $0x40] sm:$0xff]  ;;  %v2767_v29 = vld [vmem:[%s3399_s18 + $0x14] sm:$0xf0] }
  0x11   : > { %1407 = vmatpush.bf16.msra.mxu1 %v2906_v3  ;;  %3300 = vmatpush.bf16.msra.mxu3 %v2906_v3  ;;  %v2187_v16 = vld [vmem:[%s3399_s18] sm:$0xf]  ;;  %v2765_v17 = vld [vmem:[%s3399_s18 + $0x4] sm:$0xf0]  ;;  %v2764_v20 = vld [vmem:[%s3399_s18 + $0x4] sm:$0xf]  ;;  %v2196_v36 = vor.u32 %v2767_v29, %v2195_v28 }
  0x12   : > { %v2443_v18 = vld [vmem:[%s3399_s18 + $0x200] sm:$0xf]  ;;  %v2829_v19 = vld [vmem:[%s3399_s18 + $0x204] sm:$0xf0]  ;;  %v2189_v21 = vld [vmem:[%s3399_s18 + $0x8] sm:$0xf0]  ;;  %v2188_v24 = vor.u32 %v2765_v17, %v2187_v16 }
  0x13   : > { %v2828_v22 = vld [vmem:[%s3399_s18 + $0x204] sm:$0xf]  ;;  %v2445_v23 = vld [vmem:[%s3399_s18 + $0x208] sm:$0xf0]  ;;  %v2444_v25 = vor.u32 %v2829_v19, %v2443_v18  ;;  %v2192_v26 = vor.u32 %v2764_v20, %v2189_v21  ;;  %v2451_v30 = vld [vmem:[%s3399_s18 + $0x210] sm:$0xf] }
  0x14   : > { %1079 = vmatpush.bf16.msra.mxu0 %v2897_v4  ;;  %3293 = vmatpush.bf16.msra.mxu2 %v2897_v4  ;;  %v2448_v27 = vor.u32 %v2828_v22, %v2445_v23  ;;  %v2831_v31 = vld [vmem:[%s3399_s18 + $0x214] sm:$0xf0]  ;;  %v2766_v32 = vld [vmem:[%s3399_s18 + $0x14] sm:$0xf]  ;;  %v2197_v33 = vld [vmem:[%s3399_s18 + $0x18] sm:$0xf0] }
  0x15   : > { %1408 = vmatpush.bf16.msra.mxu1 %v2905_v5  ;;  %3301 = vmatpush.bf16.msra.mxu3 %v2905_v5  ;;  %v2830_v34 = vld [vmem:[%s3399_s18 + $0x214] sm:$0xf]  ;;  %v2453_v35 = vld [vmem:[%s3399_s18 + $0x218] sm:$0xf0]  ;;  %v2452_v37 = vor.u32 %v2831_v31, %v2451_v30  ;;  %v2200_v38 = vor.u32 %v2766_v32, %v2197_v33  ;;  %v2203_v40 = vld [vmem:[%s3399_s18 + $0x20] sm:$0xf] }
  0x16   : > { %v2456_v39 = vor.u32 %v2830_v34, %v2453_v35  ;;  %v2769_v41 = vld [vmem:[%s3399_s18 + $0x24] sm:$0xf0]  ;;  %v2459_v42 = vld [vmem:[%s3399_s18 + $0x220] sm:$0xf]  ;;  %v2768_v44 = vld [vmem:[%s3399_s18 + $0x24] sm:$0xf] }
  0x17   : > { %v2833_v43 = vld [vmem:[%s3399_s18 + $0x224] sm:$0xf0]  ;;  %v2205_v45 = vld [vmem:[%s3399_s18 + $0x28] sm:$0xf0]  ;;  %v2832_v46 = vld [vmem:[%s3399_s18 + $0x224] sm:$0xf]  ;;  %v2204_v48 = vor.u32 %v2769_v41, %v2203_v40 }
  0x18   : > { %1080 = vmatpush.bf16.msra.mxu0 %v2896_v6  ;;  %3294 = vmatpush.bf16.msra.mxu2 %v2896_v6  ;;  %v2461_v47 = vld [vmem:[%s3399_s18 + $0x228] sm:$0xf0]  ;;  %v2460_v49 = vor.u32 %v2833_v43, %v2459_v42  ;;  %v2208_v50 = vor.u32 %v2768_v44, %v2205_v45  ;;  %v2211_v52 = vld [vmem:[%s3399_s18 + $0x30] sm:$0xf]  ;;  %v2771_v53 = vld [vmem:[%s3399_s18 + $0x34] sm:$0xf0] }
  0x19   : > { %1409 = vmatpush.bf16.msra.mxu1 %v2904_v7  ;;  %3302 = vmatpush.bf16.msra.mxu3 %v2904_v7  ;;  %v2464_v51 = vor.u32 %v2832_v46, %v2461_v47  ;;  %v2467_v54 = vld [vmem:[%s3399_s18 + $0x230] sm:$0xf]  ;;  %v2835_v55 = vld [vmem:[%s3399_s18 + $0x234] sm:$0xf0]  ;;  %v2770_v56 = vld [vmem:[%s3399_s18 + $0x34] sm:$0xf]  ;;  %v2212_v60 = vor.u32 %v2771_v53, %v2211_v52 }
  0x1a   : > { %v2213_v57 = vld [vmem:[%s3399_s18 + $0x38] sm:$0xf0]  ;;  %v2834_v58 = vld [vmem:[%s3399_s18 + $0x234] sm:$0xf]  ;;  %v2468_v61 = vor.u32 %v2835_v55, %v2467_v54  ;;  %v2219_v0 = vld [vmem:[%s3399_s18 + $0x40] sm:$0xf] }
  0x1b   : > { %v2469_v59 = vld [vmem:[%s3399_s18 + $0x238] sm:$0xf0]  ;;  %v2216_v62 = vor.u32 %v2770_v56, %v2213_v57  ;;  %v2773_v1 = vld [vmem:[%s3399_s18 + $0x44] sm:$0xf0]  ;;  %v2475_v2 = vld [vmem:[%s3399_s18 + $0x240] sm:$0xf] }
  0x1c   : > { %1081 = vmatpush.bf16.msra.mxu0 %v2895_v8  ;;  %3295 = vmatpush.bf16.msra.mxu2 %v2895_v8  ;;  %v2472_v63 = vor.u32 %v2834_v58, %v2469_v59  ;;  %v2837_v3 = vld [vmem:[%s3399_s18 + $0x244] sm:$0xf0]  ;;  %v2772_v4 = vld [vmem:[%s3399_s18 + $0x44] sm:$0xf]  ;;  %v2221_v5 = vld [vmem:[%s3399_s18 + $0x48] sm:$0xf0]  ;;  %v2220_v8 = vor.u32 %v2773_v1, %v2219_v0 }
  0x1d   : > { %1410 = vmatpush.bf16.msra.mxu1 %v2903_v9  ;;  %3303 = vmatpush.bf16.msra.mxu3 %v2903_v9  ;;  %v2836_v6 = vld [vmem:[%s3399_s18 + $0x244] sm:$0xf]  ;;  %v2477_v7 = vld [vmem:[%s3399_s18 + $0x248] sm:$0xf0]  ;;  %v2476_v9 = vor.u32 %v2837_v3, %v2475_v2  ;;  %v2774_v16 = vld [vmem:[%s3399_s18 + $0x54] sm:$0xf] }
  0x1e   : > { %v2229_v17 = vld [vmem:[%s3399_s18 + $0x58] sm:$0xf0]  ;;  %v2838_v18 = vld [vmem:[%s3399_s18 + $0x254] sm:$0xf]  ;;  %v2776_v28 = vld [vmem:[%s3399_s18 + $0x64] sm:$0xf] }
  0x1f   : > { %v2485_v19 = vld [vmem:[%s3399_s18 + $0x258] sm:$0xf0]  ;;  %v2232_v22 = vor.u32 %v2774_v16, %v2229_v17  ;;  %v2237_v29 = vld [vmem:[%s3399_s18 + $0x68] sm:$0xf0]  ;;  %v2840_v30 = vld [vmem:[%s3399_s18 + $0x264] sm:$0xf] }
  0x20   : > { %1082 = vmatpush.bf16.msra.mxu0 %v2894_v10  ;;  %3296 = vmatpush.bf16.msra.mxu2 %v2894_v10  ;;  %v2224_v10 = vor.u32 %v2772_v4, %v2221_v5  ;;  %v2488_v23 = vor.u32 %v2838_v18, %v2485_v19  ;;  %v2493_v31 = vld [vmem:[%s3399_s18 + $0x268] sm:$0xf0]  ;;  %v2240_v34 = vor.u32 %v2776_v28, %v2237_v29  ;;  %v2778_v40 = vld [vmem:[%s3399_s18 + $0x74] sm:$0xf]  ;;  %v2245_v41 = vld [vmem:[%s3399_s18 + $0x78] sm:$0xf0] }
  0x21   : > { %1411 = vmatpush.bf16.msra.mxu1 %v2902_v11  ;;  %3304 = vmatpush.bf16.msra.mxu3 %v2902_v11  ;;  %v2480_v11 = vor.u32 %v2836_v6, %v2477_v7  ;;  %v2496_v35 = vor.u32 %v2840_v30, %v2493_v31  ;;  %v2842_v42 = vld [vmem:[%s3399_s18 + $0x274] sm:$0xf]  ;;  %v2501_v43 = vld [vmem:[%s3399_s18 + $0x278] sm:$0xf0]  ;;  %v2248_v46 = vor.u32 %v2778_v40, %v2245_v41  ;;  %v2780_v52 = vld [vmem:[%s3399_s18 + $0x84] sm:$0xf] }
  0x22   : > { %v2504_v47 = vor.u32 %v2842_v42, %v2501_v43  ;;  %v2253_v53 = vld [vmem:[%s3399_s18 + $0x88] sm:$0xf0]  ;;  %v2844_v54 = vld [vmem:[%s3399_s18 + $0x284] sm:$0xf]  ;;  %v2846_v16 = vld [vmem:[%s3399_s18 + $0x294] sm:$0xf] }
  0x23   : > { %v2509_v55 = vld [vmem:[%s3399_s18 + $0x288] sm:$0xf0]  ;;  %v2256_v59 = vor.u32 %v2780_v52, %v2253_v53  ;;  %v2517_v17 = vld [vmem:[%s3399_s18 + $0x298] sm:$0xf0]  ;;  %v2267_v42 = vld [vmem:[%s3399_s18 + $0xa0] sm:$0xf] }
  0x24   : > { %1083 = vmatpush.bf16.msra.mxu0 %v2893_v12  ;;  %3297 = vmatpush.bf16.msra.mxu2 %v2893_v12  ;;  %v2227_v12 = vld [vmem:[%s3399_s18 + $0x50] sm:$0xf]  ;;  %v2785_v43 = vld [vmem:[%s3399_s18 + $0xa4] sm:$0xf0] }
  0x25   : > { %1412 = vmatpush.bf16.msra.mxu1 %v2901_v13  ;;  %3305 = vmatpush.bf16.msra.mxu3 %v2901_v13  ;;  %v2775_v13 = vld [vmem:[%s3399_s18 + $0x54] sm:$0xf0]  ;;  %v2268_v53 = vor.u32 %v2785_v43, %v2267_v42 }
  0x26   : > { %v2228_v20 = vor.u32 %v2775_v13, %v2227_v12  ;;  %v2782_v12 = vld [vmem:[%s3399_s18 + $0x94] sm:$0xf]  ;;  %v2261_v13 = vld [vmem:[%s3399_s18 + $0x98] sm:$0xf0] }
  0x28   : > { %1084 = vmatpush.bf16.msra.mxu0 %v2892_v14  ;;  %3298 = vmatpush.bf16.msra.mxu2 %v2892_v14  ;;  %v2483_v14 = vld [vmem:[%s3399_s18 + $0x250] sm:$0xf] }
  0x29   : > { %1413 = vmatpush.bf16.msra.mxu1 %v2900_v15  ;;  %3306 = vmatpush.bf16.msra.mxu3 %v2900_v15  ;;  %v2839_v15 = vld [vmem:[%s3399_s18 + $0x254] sm:$0xf0] }
  0x2a   : > { %v2484_v21 = vor.u32 %v2839_v15, %v2483_v14 }
  0x2b   : > { %1085 = vmatmul.bf16.vlgmr.msra.gmra.mxu0 %v2188_v24  ;;  %1245 = vmatmul.bf16.vlgmr.msra.gmra.mxu2 %v2444_v25  ;;  %v2235_v24 = vld [vmem:[%s3399_s18 + $0x60] sm:$0xf]  ;;  %v2777_v25 = vld [vmem:[%s3399_s18 + $0x64] sm:$0xf0] }
  0x2c   : > { %1414 = vmatmul.bf16.vlgmr.msra.gmra.mxu1 %v2192_v26  ;;  %1574 = vmatmul.bf16.vlgmr.msra.gmra.mxu3 %v2448_v27  ;;  %v2491_v26 = vld [vmem:[%s3399_s18 + $0x260] sm:$0xf]  ;;  %v2841_v27 = vld [vmem:[%s3399_s18 + $0x264] sm:$0xf0]  ;;  %v2236_v32 = vor.u32 %v2777_v25, %v2235_v24 }
  0x2d   : > { %v2492_v33 = vor.u32 %v2841_v27, %v2491_v26  ;;  %v2264_v26 = vor.u32 %v2782_v12, %v2261_v13  ;;  %v2520_v27 = vor.u32 %v2846_v16, %v2517_v17  ;;  %v2275_v13 = vld [vmem:[%s3399_s18 + $0xb0] sm:$0xf]  ;;  %v2851_v16 = vld [vmem:[%s3399_s18 + $0x2b4] sm:$0xf0]  ;;  %v2786_v17 = vld [vmem:[%s3399_s18 + $0xb4] sm:$0xf] }
  0x3b   : > { %1090 = vmatmul.bf16.gmra.mxu0 %v2196_v36  ;;  %1250 = vmatmul.bf16.gmra.mxu2 %v2452_v37  ;;  %v2243_v36 = vld [vmem:[%s3399_s18 + $0x70] sm:$0xf]  ;;  %v2779_v37 = vld [vmem:[%s3399_s18 + $0x74] sm:$0xf0] }
  0x3c   : > { %1419 = vmatmul.bf16.gmra.mxu1 %v2200_v38  ;;  %1579 = vmatmul.bf16.gmra.mxu3 %v2456_v39  ;;  %v2499_v38 = vld [vmem:[%s3399_s18 + $0x270] sm:$0xf]  ;;  %v2843_v39 = vld [vmem:[%s3399_s18 + $0x274] sm:$0xf0]  ;;  %v2244_v44 = vor.u32 %v2779_v37, %v2243_v36 }
  0x3d   : > { %v2500_v45 = vor.u32 %v2843_v39, %v2499_v38 }
  0x4b   : > { %1095 = vmatmul.bf16.gmra.mxu0 %v2204_v48  ;;  %1255 = vmatmul.bf16.gmra.mxu2 %v2460_v49  ;;  %v2251_v48 = vld [vmem:[%s3399_s18 + $0x80] sm:$0xf]  ;;  %v2781_v49 = vld [vmem:[%s3399_s18 + $0x84] sm:$0xf0] }
  0x4c   : > { %1424 = vmatmul.bf16.gmra.mxu1 %v2208_v50  ;;  %1584 = vmatmul.bf16.gmra.mxu3 %v2464_v51  ;;  %v2507_v50 = vld [vmem:[%s3399_s18 + $0x280] sm:$0xf]  ;;  %v2845_v51 = vld [vmem:[%s3399_s18 + $0x284] sm:$0xf0]  ;;  %v2252_v56 = vor.u32 %v2781_v49, %v2251_v48 }
  0x4d   : > { %v2508_v57 = vor.u32 %v2845_v51, %v2507_v50  ;;  %v2848_v50 = vld [vmem:[%s3399_s18 + $0x2a4] sm:$0xf]  ;;  %v2525_v51 = vld [vmem:[%s3399_s18 + $0x2a8] sm:$0xf0] }
  0x5b   : > { %1100 = vmatmul.bf16.gmra.mxu0 %v2212_v60  ;;  %1260 = vmatmul.bf16.gmra.mxu2 %v2468_v61  ;;  %v2512_v60 = vor.u32 %v2844_v54, %v2509_v55  ;;  %v3485_v61 = vld [vmem:[%s3884_s2] ss:$0 sm:$0xff] }
  0x5c   : > { %1429 = vmatmul.bf16.gmra.mxu1 %v2216_v62  ;;  %1589 = vmatmul.bf16.gmra.mxu3 %v2472_v63 }
  0x6b   : > { %1105 = vmatmul.bf16.gmra.mxu0 %v2220_v8  ;;  %1265 = vmatmul.bf16.gmra.mxu2 %v2476_v9  ;;  %v2259_v8 = vld [vmem:[%s3399_s18 + $0x90] sm:$0xf]  ;;  %v2783_v9 = vld [vmem:[%s3399_s18 + $0x94] sm:$0xf0] }
  0x6c   : > { %1434 = vmatmul.bf16.gmra.mxu1 %v2224_v10  ;;  %1594 = vmatmul.bf16.gmra.mxu3 %v2480_v11  ;;  %v2515_v10 = vld [vmem:[%s3399_s18 + $0x290] sm:$0xf]  ;;  %v2847_v11 = vld [vmem:[%s3399_s18 + $0x294] sm:$0xf0]  ;;  %v2260_v19 = vor.u32 %v2783_v9, %v2259_v8 }
  0x6d   : > { %v2516_v24 = vor.u32 %v2847_v11, %v2515_v10 }
  0x7b   : > { %1110 = vmatmul.bf16.gmra.mxu0 %v2228_v20  ;;  %1270 = vmatmul.bf16.gmra.mxu2 %v2484_v21 }
  0x7c   : > { %1439 = vmatmul.bf16.gmra.mxu1 %v2232_v22  ;;  %1599 = vmatmul.bf16.gmra.mxu3 %v2488_v23 }
  0x8b   : > { %1115 = vmatmul.bf16.gmra.mxu0 %v2236_v32  ;;  %1275 = vmatmul.bf16.gmra.mxu2 %v2492_v33 }
  0x8c   : > { %1444 = vmatmul.bf16.gmra.mxu1 %v2240_v34  ;;  %1604 = vmatmul.bf16.gmra.mxu3 %v2496_v35 }
  0x9b   : > { %1120 = vmatmul.bf16.gmra.mxu0 %v2244_v44  ;;  %1280 = vmatmul.bf16.gmra.mxu2 %v2500_v45  ;;  %v2523_v44 = vld [vmem:[%s3399_s18 + $0x2a0] sm:$0xf]  ;;  %v2849_v45 = vld [vmem:[%s3399_s18 + $0x2a4] sm:$0xf0] }
  0x9c   : > { %1449 = vmatmul.bf16.gmra.mxu1 %v2248_v46  ;;  %1609 = vmatmul.bf16.gmra.mxu3 %v2504_v47  ;;  %v2784_v46 = vld [vmem:[%s3399_s18 + $0xa4] sm:$0xf]  ;;  %v2269_v47 = vld [vmem:[%s3399_s18 + $0xa8] sm:$0xf0] }
  0xa8   : > { %v1086_v58 = vpop.f32.mrf.mxu0 }
  0xa9   : > { %v1415_v62 = vpop.f32.mrf.mxu1  ;;  %v1087_v63 = vadd.f32 %v3485_v61, %v1086_v58  ;;  %v2524_v58 = vor.u32 %v2849_v45, %v2523_v44 }
  0xab   : > { %1125 = vmatmul.bf16.gmra.mxu0 %v2252_v56  ;;  %1285 = vmatmul.bf16.gmra.mxu2 %v2508_v57  ;;  %v1416_v3 = vadd.f32 %v1415_v62, %v1087_v63  ;;  %v2528_v62 = vor.u32 %v2848_v50, %v2525_v51  ;;  %v2853_v50 = vld [vmem:[%s3399_s18 + $0x2c4] sm:$0xf0]  ;;  %v2788_v51 = vld [vmem:[%s3399_s18 + $0xc4] sm:$0xf] }
  0xac   : > { %1454 = vmatmul.bf16.gmra.mxu1 %v2256_v59  ;;  %1614 = vmatmul.bf16.gmra.mxu3 %v2512_v60  ;;  %v2272_v60 = vor.u32 %v2784_v46, %v2269_v47  ;;  %v2283_v47 = vld [vmem:[%s3399_s18 + $0xc0] sm:$0xf] }
  0xad   : > { %v1735_v14 = vmax.f32 %v1416_v3, 0.0 }
  0xae   : > { %v1246_v0 = vpop.f32.mrf.mxu2 }
  0xaf   : > { %v1575_v1 = vpop.f32.mrf.mxu3  ;;  %v1247_v6 = vadd.f32 %v3485_v61, %v1246_v0 }
  0xb0   : > { %v1088_v2 = vpop.f32.mrf.mxu0 }
  0xb1   : > { %v1089_v4 = vadd.f32 %v3485_v61, %v1088_v2  ;;  %v1417_v5 = vpop.f32.mrf.mxu1  ;;  %v1576_v20 = vadd.f32 %v1575_v1, %v1247_v6 }
  0xb3   : > { %v1418_v7 = vadd.f32 %v1417_v5, %v1089_v4  ;;  %v1799_v30 = vmax.f32 %v1576_v20, 0.0 }
  0xb5   : > { %v1736_v15 = vmax.f32 %v1418_v7, 0.0 }
  0xb6   : > { %v1248_v18 = vpop.f32.mrf.mxu2 }
  0xb7   : > { %v2911_v21 = vpack.c.bf16 %v1736_v15, %v1735_v14  ;;  %v1249_v22 = vadd.f32 %v3485_v61, %v1248_v18  ;;  %v1577_v23 = vpop.f32.mrf.mxu3  ;;  %v2787_v14 = vld [vmem:[%s3399_s18 + $0xb4] sm:$0xf0]  ;;  %v2531_v15 = vld [vmem:[%s3399_s18 + $0x2b0] sm:$0xf]  ;;  %v2277_v18 = vld [vmem:[%s3399_s18 + $0xb8] sm:$0xf0] }
  0xb8   : > { %v1091_v25 = vpop.f32.mrf.mxu0 }
  0xb9   : > { %2912 = vst [vmem:[%s3502_s4] sm:$0xff] %v2911_v21   ;;  %v1578_v28 = vadd.f32 %v1577_v23, %v1249_v22  ;;  %v1420_v29 = vpop.f32.mrf.mxu1  ;;  %v1092_v33 = vadd.f32 %v3485_v61, %v1091_v25  ;;  %v2850_v21 = vld [vmem:[%s3399_s18 + $0x2b4] sm:$0xf]  ;;  %v2533_v22 = vld [vmem:[%s3399_s18 + $0x2b8] sm:$0xf0] }
  0xbb   : > { %v1800_v31 = vmax.f32 %v1578_v28, 0.0  ;;  %1130 = vmatmul.bf16.gmra.mxu0 %v2260_v19  ;;  %1290 = vmatmul.bf16.gmra.mxu2 %v2516_v24  ;;  %v1421_v37 = vadd.f32 %v1420_v29, %v1092_v33  ;;  %v2276_v24 = vor.u32 %v2787_v14, %v2275_v13  ;;  %v2532_v29 = vor.u32 %v2851_v16, %v2531_v15 }
  0xbc   : > { %1459 = vmatmul.bf16.gmra.mxu1 %v2264_v26  ;;  %1619 = vmatmul.bf16.gmra.mxu3 %v2520_v27 }
  0xbd   : > { %v3071_v32 = vpack.c.bf16 %v1800_v31, %v1799_v30  ;;  %v1737_v48 = vmax.f32 %v1421_v37, 0.0  ;;  %v2280_v31 = vor.u32 %v2786_v17, %v2277_v18  ;;  %v2291_v18 = vld [vmem:[%s3399_s18 + $0xd0] sm:$0xf] }
  0xbe   : > { %v1251_v34 = vpop.f32.mrf.mxu2 }
  0xbf   : > { %3259 = vst [vmem:[%s3502_s4 + $0x100] sm:$0xff] %v3071_v32   ;;  %v1580_v35 = vpop.f32.mrf.mxu3  ;;  %v1252_v40 = vadd.f32 %v3485_v61, %v1251_v34  ;;  %v2536_v32 = vor.u32 %v2850_v21, %v2533_v22  ;;  %v2855_v21 = vld [vmem:[%s3399_s18 + $0x2d4] sm:$0xf0]  ;;  %v2790_v22 = vld [vmem:[%s3399_s18 + $0xd4] sm:$0xf] }
  0xc0   : > { %v1093_v36 = vpop.f32.mrf.mxu0 }
  0xc1   : > { %v1094_v38 = vadd.f32 %v3485_v61, %v1093_v36  ;;  %v1422_v39 = vpop.f32.mrf.mxu1  ;;  %v1581_v54 = vadd.f32 %v1580_v35, %v1252_v40 }
  0xc3   : > { %v1423_v41 = vadd.f32 %v1422_v39, %v1094_v38  ;;  %v1801_v1 = vmax.f32 %v1581_v54, 0.0 }
  0xc5   : > { %v1738_v49 = vmax.f32 %v1423_v41, 0.0 }
  0xc6   : > { %v1253_v52 = vpop.f32.mrf.mxu2 }
  0xc7   : > { %v2916_v55 = vpack.c.bf16 %v1738_v49, %v1737_v48  ;;  %v1254_v56 = vadd.f32 %v3485_v61, %v1253_v52  ;;  %v1582_v57 = vpop.f32.mrf.mxu3  ;;  %v2789_v48 = vld [vmem:[%s3399_s18 + $0xc4] sm:$0xf0]  ;;  %v2539_v49 = vld [vmem:[%s3399_s18 + $0x2c0] sm:$0xf]  ;;  %v2285_v52 = vld [vmem:[%s3399_s18 + $0xc8] sm:$0xf0] }
  0xc8   : > { %v1096_v59 = vpop.f32.mrf.mxu0 }
  0xc9   : > { %3228 = vst [vmem:[%s3502_s4 + $0x8] sm:$0xff] %v2916_v55   ;;  %v1583_v63 = vadd.f32 %v1582_v57, %v1254_v56  ;;  %v1425_v0 = vpop.f32.mrf.mxu1  ;;  %v1097_v4 = vadd.f32 %v3485_v61, %v1096_v59  ;;  %v2852_v55 = vld [vmem:[%s3399_s18 + $0x2c4] sm:$0xf]  ;;  %v2541_v56 = vld [vmem:[%s3399_s18 + $0x2c8] sm:$0xf0] }
  0xcb   : > { %v1802_v2 = vmax.f32 %v1583_v63, 0.0  ;;  %1135 = vmatmul.bf16.gmra.mxu0 %v2268_v53  ;;  %1295 = vmatmul.bf16.gmra.mxu2 %v2524_v58  ;;  %v1426_v8 = vadd.f32 %v1425_v0, %v1097_v4  ;;  %v2284_v58 = vor.u32 %v2789_v48, %v2283_v47  ;;  %v2540_v0 = vor.u32 %v2853_v50, %v2539_v49 }
  0xcc   : > { %1464 = vmatmul.bf16.gmra.mxu1 %v2272_v60  ;;  %1624 = vmatmul.bf16.gmra.mxu3 %v2528_v62 }
  0xcd   : > { %v3076_v3 = vpack.c.bf16 %v1802_v2, %v1801_v1  ;;  %v1739_v19 = vmax.f32 %v1426_v8, 0.0  ;;  %v2288_v2 = vor.u32 %v2788_v51, %v2285_v52  ;;  %v2299_v52 = vld [vmem:[%s3399_s18 + $0xe0] sm:$0xf] }
  0xce   : > { %v1256_v5 = vpop.f32.mrf.mxu2 }
  0xcf   : > { %3260 = vst [vmem:[%s3502_s4 + $0x108] sm:$0xff] %v3076_v3   ;;  %v1585_v6 = vpop.f32.mrf.mxu3  ;;  %v1257_v11 = vadd.f32 %v3485_v61, %v1256_v5  ;;  %v2544_v3 = vor.u32 %v2852_v55, %v2541_v56  ;;  %v2857_v55 = vld [vmem:[%s3399_s18 + $0x2e4] sm:$0xf0]  ;;  %v2792_v56 = vld [vmem:[%s3399_s18 + $0xe4] sm:$0xf] }
  0xd0   : > { %v1098_v7 = vpop.f32.mrf.mxu0 }
  0xd1   : > { %v1099_v9 = vadd.f32 %v3485_v61, %v1098_v7  ;;  %v1427_v10 = vpop.f32.mrf.mxu1  ;;  %v1586_v25 = vadd.f32 %v1585_v6, %v1257_v11 }
  0xd3   : > { %v1428_v12 = vadd.f32 %v1427_v10, %v1099_v9  ;;  %v1803_v35 = vmax.f32 %v1586_v25, 0.0 }
  0xd5   : > { %v1740_v20 = vmax.f32 %v1428_v12, 0.0 }
  0xd6   : > { %v1258_v23 = vpop.f32.mrf.mxu2 }
  0xd7   : > { %v2921_v26 = vpack.c.bf16 %v1740_v20, %v1739_v19  ;;  %v1259_v27 = vadd.f32 %v3485_v61, %v1258_v23  ;;  %v1587_v28 = vpop.f32.mrf.mxu3  ;;  %v2791_v19 = vld [vmem:[%s3399_s18 + $0xd4] sm:$0xf0]  ;;  %v2547_v20 = vld [vmem:[%s3399_s18 + $0x2d0] sm:$0xf]  ;;  %v2293_v23 = vld [vmem:[%s3399_s18 + $0xd8] sm:$0xf0] }
  0xd8   : > { %v1101_v30 = vpop.f32.mrf.mxu0 }
  0xd9   : > { %3229 = vst [vmem:[%s3502_s4 + $0x10] sm:$0xff] %v2921_v26   ;;  %v1588_v33 = vadd.f32 %v1587_v28, %v1259_v27  ;;  %v1430_v34 = vpop.f32.mrf.mxu1  ;;  %v1102_v38 = vadd.f32 %v3485_v61, %v1101_v30  ;;  %v2854_v26 = vld [vmem:[%s3399_s18 + $0x2d4] sm:$0xf]  ;;  %v2549_v27 = vld [vmem:[%s3399_s18 + $0x2d8] sm:$0xf0] }
  0xdb   : > { %v1804_v36 = vmax.f32 %v1588_v33, 0.0  ;;  %1140 = vmatmul.bf16.gmra.mxu0 %v2276_v24  ;;  %1300 = vmatmul.bf16.gmra.mxu2 %v2532_v29  ;;  %v1431_v42 = vadd.f32 %v1430_v34, %v1102_v38  ;;  %v2292_v29 = vor.u32 %v2791_v19, %v2291_v18  ;;  %v2548_v34 = vor.u32 %v2855_v21, %v2547_v20 }
  0xdc   : > { %1469 = vmatmul.bf16.gmra.mxu1 %v2280_v31  ;;  %1629 = vmatmul.bf16.gmra.mxu3 %v2536_v32 }
  0xdd   : > { %v3081_v37 = vpack.c.bf16 %v1804_v36, %v1803_v35  ;;  %v1741_v53 = vmax.f32 %v1431_v42, 0.0  ;;  %v2296_v36 = vor.u32 %v2790_v22, %v2293_v23  ;;  %v2307_v23 = vld [vmem:[%s3399_s18 + $0xf0] sm:$0xf] }
  0xde   : > { %v1261_v39 = vpop.f32.mrf.mxu2 }
  0xdf   : > { %3261 = vst [vmem:[%s3502_s4 + $0x110] sm:$0xff] %v3081_v37   ;;  %v1590_v40 = vpop.f32.mrf.mxu3  ;;  %v1262_v45 = vadd.f32 %v3485_v61, %v1261_v39  ;;  %v2552_v37 = vor.u32 %v2854_v26, %v2549_v27  ;;  %v2859_v26 = vld [vmem:[%s3399_s18 + $0x2f4] sm:$0xf0]  ;;  %v2794_v27 = vld [vmem:[%s3399_s18 + $0xf4] sm:$0xf] }
  0xe0   : > { %v1103_v41 = vpop.f32.mrf.mxu0 }
  0xe1   : > { %v1104_v43 = vadd.f32 %v3485_v61, %v1103_v41  ;;  %v1432_v44 = vpop.f32.mrf.mxu1  ;;  %v1591_v59 = vadd.f32 %v1590_v40, %v1262_v45 }
  0xe3   : > { %v1433_v46 = vadd.f32 %v1432_v44, %v1104_v43  ;;  %v1805_v6 = vmax.f32 %v1591_v59, 0.0 }
  0xe5   : > { %v1742_v54 = vmax.f32 %v1433_v46, 0.0 }
  0xe6   : > { %v1263_v57 = vpop.f32.mrf.mxu2 }
  0xe7   : > { %v2926_v60 = vpack.c.bf16 %v1742_v54, %v1741_v53  ;;  %v1264_v62 = vadd.f32 %v3485_v61, %v1263_v57  ;;  %v1592_v63 = vpop.f32.mrf.mxu3  ;;  %v2793_v53 = vld [vmem:[%s3399_s18 + $0xe4] sm:$0xf0]  ;;  %v2555_v54 = vld [vmem:[%s3399_s18 + $0x2e0] sm:$0xf]  ;;  %v2301_v57 = vld [vmem:[%s3399_s18 + $0xe8] sm:$0xf0] }
  0xe8   : > { %v1106_v1 = vpop.f32.mrf.mxu0 }
  0xe9   : > { %3230 = vst [vmem:[%s3502_s4 + $0x18] sm:$0xff] %v2926_v60   ;;  %v1593_v4 = vadd.f32 %v1592_v63, %v1264_v62  ;;  %v1435_v5 = vpop.f32.mrf.mxu1  ;;  %v1107_v9 = vadd.f32 %v3485_v61, %v1106_v1  ;;  %v2856_v60 = vld [vmem:[%s3399_s18 + $0x2e4] sm:$0xf]  ;;  %v2557_v62 = vld [vmem:[%s3399_s18 + $0x2e8] sm:$0xf0] }
  0xeb   : > { %v1806_v7 = vmax.f32 %v1593_v4, 0.0  ;;  %1145 = vmatmul.bf16.gmra.mxu0 %v2284_v58  ;;  %1305 = vmatmul.bf16.gmra.mxu2 %v2540_v0  ;;  %v1436_v13 = vadd.f32 %v1435_v5, %v1107_v9  ;;  %v2300_v0 = vor.u32 %v2793_v53, %v2299_v52  ;;  %v2556_v5 = vor.u32 %v2857_v55, %v2555_v54 }
  0xec   : > { %1474 = vmatmul.bf16.gmra.mxu1 %v2288_v2  ;;  %1634 = vmatmul.bf16.gmra.mxu3 %v2544_v3 }
  0xed   : > { %v3086_v8 = vpack.c.bf16 %v1806_v7, %v1805_v6  ;;  %v1743_v24 = vmax.f32 %v1436_v13, 0.0  ;;  %v2304_v7 = vor.u32 %v2792_v56, %v2301_v57  ;;  %v2315_v57 = vld [vmem:[%s3399_s18 + $0x100] sm:$0xf] }
  0xee   : > { %v1266_v10 = vpop.f32.mrf.mxu2 }
  0xef   : > { %3262 = vst [vmem:[%s3502_s4 + $0x118] sm:$0xff] %v3086_v8   ;;  %v1595_v11 = vpop.f32.mrf.mxu3  ;;  %v1267_v16 = vadd.f32 %v3485_v61, %v1266_v10  ;;  %v2560_v8 = vor.u32 %v2856_v60, %v2557_v62  ;;  %v2861_v60 = vld [vmem:[%s3399_s18 + $0x304] sm:$0xf0]  ;;  %v2796_v62 = vld [vmem:[%s3399_s18 + $0x104] sm:$0xf] }
  0xf0   : > { %v1108_v12 = vpop.f32.mrf.mxu0 }
  0xf1   : > { %v1109_v14 = vadd.f32 %v3485_v61, %v1108_v12  ;;  %v1437_v15 = vpop.f32.mrf.mxu1  ;;  %v1596_v30 = vadd.f32 %v1595_v11, %v1267_v16 }
  0xf3   : > { %v1438_v17 = vadd.f32 %v1437_v15, %v1109_v14  ;;  %v1807_v40 = vmax.f32 %v1596_v30, 0.0 }
  0xf5   : > { %v1744_v25 = vmax.f32 %v1438_v17, 0.0 }
  0xf6   : > { %v1268_v28 = vpop.f32.mrf.mxu2 }
  0xf7   : > { %v2931_v31 = vpack.c.bf16 %v1744_v25, %v1743_v24  ;;  %v1269_v32 = vadd.f32 %v3485_v61, %v1268_v28  ;;  %v1597_v33 = vpop.f32.mrf.mxu3  ;;  %v2795_v24 = vld [vmem:[%s3399_s18 + $0xf4] sm:$0xf0]  ;;  %v2563_v25 = vld [vmem:[%s3399_s18 + $0x2f0] sm:$0xf]  ;;  %v2309_v28 = vld [vmem:[%s3399_s18 + $0xf8] sm:$0xf0] }
  0xf8   : > { %v1111_v35 = vpop.f32.mrf.mxu0 }
  0xf9   : > { %3231 = vst [vmem:[%s3502_s4 + $0x20] sm:$0xff] %v2931_v31   ;;  %v1598_v38 = vadd.f32 %v1597_v33, %v1269_v32  ;;  %v1440_v39 = vpop.f32.mrf.mxu1  ;;  %v1112_v43 = vadd.f32 %v3485_v61, %v1111_v35  ;;  %v2858_v31 = vld [vmem:[%s3399_s18 + $0x2f4] sm:$0xf]  ;;  %v2565_v32 = vld [vmem:[%s3399_s18 + $0x2f8] sm:$0xf0] }
  0xfb   : > { %v1808_v41 = vmax.f32 %v1598_v38, 0.0  ;;  %1150 = vmatmul.bf16.gmra.mxu0 %v2292_v29  ;;  %1310 = vmatmul.bf16.gmra.mxu2 %v2548_v34  ;;  %v1441_v47 = vadd.f32 %v1440_v39, %v1112_v43  ;;  %v2308_v34 = vor.u32 %v2795_v24, %v2307_v23  ;;  %v2564_v39 = vor.u32 %v2859_v26, %v2563_v25 }
  0xfc   : > { %1479 = vmatmul.bf16.gmra.mxu1 %v2296_v36  ;;  %1639 = vmatmul.bf16.gmra.mxu3 %v2552_v37 }
  0xfd   : > { %v3091_v42 = vpack.c.bf16 %v1808_v41, %v1807_v40  ;;  %v1745_v58 = vmax.f32 %v1441_v47, 0.0  ;;  %v2312_v41 = vor.u32 %v2794_v27, %v2309_v28  ;;  %v2323_v28 = vld [vmem:[%s3399_s18 + $0x110] sm:$0xf] }
  0xfe   : > { %v1271_v44 = vpop.f32.mrf.mxu2 }
  0xff   : > { %3263 = vst [vmem:[%s3502_s4 + $0x120] sm:$0xff] %v3091_v42   ;;  %v1600_v45 = vpop.f32.mrf.mxu3  ;;  %v1272_v50 = vadd.f32 %v3485_v61, %v1271_v44  ;;  %v2568_v42 = vor.u32 %v2858_v31, %v2565_v32  ;;  %v2863_v31 = vld [vmem:[%s3399_s18 + $0x314] sm:$0xf0]  ;;  %v2798_v32 = vld [vmem:[%s3399_s18 + $0x114] sm:$0xf] }
 0x100   : > { %v1113_v46 = vpop.f32.mrf.mxu0 }
 0x101   : > { %v1114_v48 = vadd.f32 %v3485_v61, %v1113_v46  ;;  %v1442_v49 = vpop.f32.mrf.mxu1  ;;  %v1601_v1 = vadd.f32 %v1600_v45, %v1272_v50 }
 0x103   : > { %v1443_v51 = vadd.f32 %v1442_v49, %v1114_v48  ;;  %v1809_v11 = vmax.f32 %v1601_v1, 0.0 }
 0x105   : > { %v1746_v59 = vmax.f32 %v1443_v51, 0.0 }
 0x106   : > { %v1273_v63 = vpop.f32.mrf.mxu2 }
 0x107   : > { %v2936_v2 = vpack.c.bf16 %v1746_v59, %v1745_v58  ;;  %v1274_v3 = vadd.f32 %v3485_v61, %v1273_v63  ;;  %v1602_v4 = vpop.f32.mrf.mxu3  ;;  %v2797_v58 = vld [vmem:[%s3399_s18 + $0x104] sm:$0xf0]  ;;  %v2571_v59 = vld [vmem:[%s3399_s18 + $0x300] sm:$0xf]  ;;  %v2317_v63 = vld [vmem:[%s3399_s18 + $0x108] sm:$0xf0] }
 0x108   : > { %v1116_v6 = vpop.f32.mrf.mxu0 }
 0x109   : > { %3232 = vst [vmem:[%s3502_s4 + $0x28] sm:$0xff] %v2936_v2   ;;  %v1603_v9 = vadd.f32 %v1602_v4, %v1274_v3  ;;  %v1445_v10 = vpop.f32.mrf.mxu1  ;;  %v1117_v14 = vadd.f32 %v3485_v61, %v1116_v6  ;;  %v2860_v2 = vld [vmem:[%s3399_s18 + $0x304] sm:$0xf]  ;;  %v2573_v3 = vld [vmem:[%s3399_s18 + $0x308] sm:$0xf0] }
 0x10b   : > { %v1810_v12 = vmax.f32 %v1603_v9, 0.0  ;;  %1155 = vmatmul.bf16.gmra.mxu0 %v2300_v0  ;;  %1315 = vmatmul.bf16.gmra.mxu2 %v2556_v5  ;;  %v1446_v18 = vadd.f32 %v1445_v10, %v1117_v14  ;;  %v2316_v5 = vor.u32 %v2797_v58, %v2315_v57  ;;  %v2572_v10 = vor.u32 %v2861_v60, %v2571_v59 }
 0x10c   : > { %1484 = vmatmul.bf16.gmra.mxu1 %v2304_v7  ;;  %1644 = vmatmul.bf16.gmra.mxu3 %v2560_v8 }
 0x10d   : > { %v3096_v13 = vpack.c.bf16 %v1810_v12, %v1809_v11  ;;  %v1747_v29 = vmax.f32 %v1446_v18, 0.0  ;;  %v2320_v12 = vor.u32 %v2796_v62, %v2317_v63  ;;  %v2331_v63 = vld [vmem:[%s3399_s18 + $0x120] sm:$0xf] }
 0x10e   : > { %v1276_v15 = vpop.f32.mrf.mxu2 }
 0x10f   : > { %3264 = vst [vmem:[%s3502_s4 + $0x128] sm:$0xff] %v3096_v13   ;;  %v1605_v16 = vpop.f32.mrf.mxu3  ;;  %v1277_v21 = vadd.f32 %v3485_v61, %v1276_v15  ;;  %v2576_v13 = vor.u32 %v2860_v2, %v2573_v3  ;;  %v2865_v2 = vld [vmem:[%s3399_s18 + $0x324] sm:$0xf0]  ;;  %v2800_v3 = vld [vmem:[%s3399_s18 + $0x124] sm:$0xf] }
 0x110   : > { %v1118_v17 = vpop.f32.mrf.mxu0 }
 0x111   : > { %v1119_v19 = vadd.f32 %v3485_v61, %v1118_v17  ;;  %v1447_v20 = vpop.f32.mrf.mxu1  ;;  %v1606_v35 = vadd.f32 %v1605_v16, %v1277_v21 }
 0x113   : > { %v1448_v22 = vadd.f32 %v1447_v20, %v1119_v19  ;;  %v1811_v45 = vmax.f32 %v1606_v35, 0.0 }
 0x115   : > { %v1748_v30 = vmax.f32 %v1448_v22, 0.0 }
 0x116   : > { %v1278_v33 = vpop.f32.mrf.mxu2 }
 0x117   : > { %v2941_v36 = vpack.c.bf16 %v1748_v30, %v1747_v29  ;;  %v1279_v37 = vadd.f32 %v3485_v61, %v1278_v33  ;;  %v1607_v38 = vpop.f32.mrf.mxu3  ;;  %v2799_v29 = vld [vmem:[%s3399_s18 + $0x114] sm:$0xf0]  ;;  %v2579_v30 = vld [vmem:[%s3399_s18 + $0x310] sm:$0xf]  ;;  %v2325_v33 = vld [vmem:[%s3399_s18 + $0x118] sm:$0xf0] }
 0x118   : > { %v1121_v40 = vpop.f32.mrf.mxu0 }
 0x119   : > { %3233 = vst [vmem:[%s3502_s4 + $0x30] sm:$0xff] %v2941_v36   ;;  %v1608_v43 = vadd.f32 %v1607_v38, %v1279_v37  ;;  %v1450_v44 = vpop.f32.mrf.mxu1  ;;  %v1122_v48 = vadd.f32 %v3485_v61, %v1121_v40  ;;  %v2862_v36 = vld [vmem:[%s3399_s18 + $0x314] sm:$0xf]  ;;  %v2581_v37 = vld [vmem:[%s3399_s18 + $0x318] sm:$0xf0] }
 0x11b   : > { %v1812_v46 = vmax.f32 %v1608_v43, 0.0  ;;  %1160 = vmatmul.bf16.gmra.mxu0 %v2308_v34  ;;  %1320 = vmatmul.bf16.gmra.mxu2 %v2564_v39  ;;  %v1451_v52 = vadd.f32 %v1450_v44, %v1122_v48  ;;  %v2324_v39 = vor.u32 %v2799_v29, %v2323_v28  ;;  %v2580_v44 = vor.u32 %v2863_v31, %v2579_v30 }
 0x11c   : > { %1489 = vmatmul.bf16.gmra.mxu1 %v2312_v41  ;;  %1649 = vmatmul.bf16.gmra.mxu3 %v2568_v42 }
 0x11d   : > { %v3101_v47 = vpack.c.bf16 %v1812_v46, %v1811_v45  ;;  %v1749_v0 = vmax.f32 %v1451_v52, 0.0  ;;  %v2328_v46 = vor.u32 %v2798_v32, %v2325_v33  ;;  %v2339_v33 = vld [vmem:[%s3399_s18 + $0x130] sm:$0xf] }
 0x11e   : > { %v1281_v49 = vpop.f32.mrf.mxu2 }
 0x11f   : > { %3265 = vst [vmem:[%s3502_s4 + $0x130] sm:$0xff] %v3101_v47   ;;  %v1610_v50 = vpop.f32.mrf.mxu3  ;;  %v1282_v55 = vadd.f32 %v3485_v61, %v1281_v49  ;;  %v2584_v47 = vor.u32 %v2862_v36, %v2581_v37  ;;  %v2867_v36 = vld [vmem:[%s3399_s18 + $0x334] sm:$0xf0]  ;;  %v2802_v37 = vld [vmem:[%s3399_s18 + $0x134] sm:$0xf] }
 0x120   : > { %v1123_v51 = vpop.f32.mrf.mxu0 }
 0x121   : > { %v1124_v53 = vadd.f32 %v3485_v61, %v1123_v51  ;;  %v1452_v54 = vpop.f32.mrf.mxu1  ;;  %v1611_v6 = vadd.f32 %v1610_v50, %v1282_v55 }
 0x123   : > { %v1453_v56 = vadd.f32 %v1452_v54, %v1124_v53  ;;  %v1813_v16 = vmax.f32 %v1611_v6, 0.0 }
 0x125   : > { %v1750_v1 = vmax.f32 %v1453_v56, 0.0 }
 0x126   : > { %v1283_v4 = vpop.f32.mrf.mxu2 }
 0x127   : > { %v2946_v7 = vpack.c.bf16 %v1750_v1, %v1749_v0  ;;  %v1284_v8 = vadd.f32 %v3485_v61, %v1283_v4  ;;  %v1612_v9 = vpop.f32.mrf.mxu3  ;;  %v2801_v0 = vld [vmem:[%s3399_s18 + $0x124] sm:$0xf0]  ;;  %v2587_v1 = vld [vmem:[%s3399_s18 + $0x320] sm:$0xf]  ;;  %v2333_v4 = vld [vmem:[%s3399_s18 + $0x128] sm:$0xf0] }
 0x128   : > { %v1126_v11 = vpop.f32.mrf.mxu0 }
 0x129   : > { %3234 = vst [vmem:[%s3502_s4 + $0x38] sm:$0xff] %v2946_v7   ;;  %v1613_v14 = vadd.f32 %v1612_v9, %v1284_v8  ;;  %v1455_v15 = vpop.f32.mrf.mxu1  ;;  %v1127_v19 = vadd.f32 %v3485_v61, %v1126_v11  ;;  %v2864_v7 = vld [vmem:[%s3399_s18 + $0x324] sm:$0xf]  ;;  %v2589_v8 = vld [vmem:[%s3399_s18 + $0x328] sm:$0xf0] }
 0x12b   : > { %v1814_v17 = vmax.f32 %v1613_v14, 0.0  ;;  %1165 = vmatmul.bf16.gmra.mxu0 %v2316_v5  ;;  %1325 = vmatmul.bf16.gmra.mxu2 %v2572_v10  ;;  %v1456_v23 = vadd.f32 %v1455_v15, %v1127_v19  ;;  %v2332_v10 = vor.u32 %v2801_v0, %v2331_v63  ;;  %v2588_v15 = vor.u32 %v2865_v2, %v2587_v1 }
 0x12c   : > { %1494 = vmatmul.bf16.gmra.mxu1 %v2320_v12  ;;  %1654 = vmatmul.bf16.gmra.mxu3 %v2576_v13 }
 0x12d   : > { %v3106_v18 = vpack.c.bf16 %v1814_v17, %v1813_v16  ;;  %v1751_v34 = vmax.f32 %v1456_v23, 0.0  ;;  %v2336_v17 = vor.u32 %v2800_v3, %v2333_v4  ;;  %v2347_v4 = vld [vmem:[%s3399_s18 + $0x140] sm:$0xf] }
 0x12e   : > { %v1286_v20 = vpop.f32.mrf.mxu2 }
 0x12f   : > { %3266 = vst [vmem:[%s3502_s4 + $0x138] sm:$0xff] %v3106_v18   ;;  %v1615_v21 = vpop.f32.mrf.mxu3  ;;  %v1287_v26 = vadd.f32 %v3485_v61, %v1286_v20  ;;  %v2592_v18 = vor.u32 %v2864_v7, %v2589_v8  ;;  %v2869_v7 = vld [vmem:[%s3399_s18 + $0x344] sm:$0xf0]  ;;  %v2804_v8 = vld [vmem:[%s3399_s18 + $0x144] sm:$0xf] }
 0x130   : > { %v1128_v22 = vpop.f32.mrf.mxu0 }
 0x131   : > { %v1129_v24 = vadd.f32 %v3485_v61, %v1128_v22  ;;  %v1457_v25 = vpop.f32.mrf.mxu1  ;;  %v1616_v40 = vadd.f32 %v1615_v21, %v1287_v26 }
 0x133   : > { %v1458_v27 = vadd.f32 %v1457_v25, %v1129_v24  ;;  %v1815_v50 = vmax.f32 %v1616_v40, 0.0 }
 0x135   : > { %v1752_v35 = vmax.f32 %v1458_v27, 0.0 }
 0x136   : > { %v1288_v38 = vpop.f32.mrf.mxu2 }
 0x137   : > { %v2951_v41 = vpack.c.bf16 %v1752_v35, %v1751_v34  ;;  %v1289_v42 = vadd.f32 %v3485_v61, %v1288_v38  ;;  %v1617_v43 = vpop.f32.mrf.mxu3  ;;  %v2803_v34 = vld [vmem:[%s3399_s18 + $0x134] sm:$0xf0]  ;;  %v2595_v35 = vld [vmem:[%s3399_s18 + $0x330] sm:$0xf]  ;;  %v2341_v38 = vld [vmem:[%s3399_s18 + $0x138] sm:$0xf0] }
 0x138   : > { %v1131_v45 = vpop.f32.mrf.mxu0 }
 0x139   : > { %3235 = vst [vmem:[%s3502_s4 + $0x40] sm:$0xff] %v2951_v41   ;;  %v1618_v48 = vadd.f32 %v1617_v43, %v1289_v42  ;;  %v1460_v49 = vpop.f32.mrf.mxu1  ;;  %v1132_v53 = vadd.f32 %v3485_v61, %v1131_v45  ;;  %v2866_v41 = vld [vmem:[%s3399_s18 + $0x334] sm:$0xf]  ;;  %v2597_v42 = vld [vmem:[%s3399_s18 + $0x338] sm:$0xf0] }
 0x13b   : > { %v1816_v51 = vmax.f32 %v1618_v48, 0.0  ;;  %1170 = vmatmul.bf16.gmra.mxu0 %v2324_v39  ;;  %1330 = vmatmul.bf16.gmra.mxu2 %v2580_v44  ;;  %v1461_v57 = vadd.f32 %v1460_v49, %v1132_v53  ;;  %v2340_v44 = vor.u32 %v2803_v34, %v2339_v33  ;;  %v2596_v49 = vor.u32 %v2867_v36, %v2595_v35 }
 0x13c   : > { %1499 = vmatmul.bf16.gmra.mxu1 %v2328_v46  ;;  %1659 = vmatmul.bf16.gmra.mxu3 %v2584_v47 }
 0x13d   : > { %v3111_v52 = vpack.c.bf16 %v1816_v51, %v1815_v50  ;;  %v1753_v5 = vmax.f32 %v1461_v57, 0.0  ;;  %v2344_v51 = vor.u32 %v2802_v37, %v2341_v38  ;;  %v2355_v38 = vld [vmem:[%s3399_s18 + $0x150] sm:$0xf] }
 0x13e   : > { %v1291_v54 = vpop.f32.mrf.mxu2 }
 0x13f   : > { %3267 = vst [vmem:[%s3502_s4 + $0x140] sm:$0xff] %v3111_v52   ;;  %v1620_v55 = vpop.f32.mrf.mxu3  ;;  %v1292_v60 = vadd.f32 %v3485_v61, %v1291_v54  ;;  %v2600_v52 = vor.u32 %v2866_v41, %v2597_v42  ;;  %v2871_v41 = vld [vmem:[%s3399_s18 + $0x354] sm:$0xf0]  ;;  %v2806_v42 = vld [vmem:[%s3399_s18 + $0x154] sm:$0xf] }
 0x140   : > { %v1133_v56 = vpop.f32.mrf.mxu0 }
 0x141   : > { %v1134_v58 = vadd.f32 %v3485_v61, %v1133_v56  ;;  %v1462_v59 = vpop.f32.mrf.mxu1  ;;  %v1621_v11 = vadd.f32 %v1620_v55, %v1292_v60 }
 0x143   : > { %v1463_v62 = vadd.f32 %v1462_v59, %v1134_v58  ;;  %v1817_v21 = vmax.f32 %v1621_v11, 0.0 }
 0x145   : > { %v1754_v6 = vmax.f32 %v1463_v62, 0.0 }
 0x146   : > { %v1293_v9 = vpop.f32.mrf.mxu2 }
 0x147   : > { %v2956_v12 = vpack.c.bf16 %v1754_v6, %v1753_v5  ;;  %v1294_v13 = vadd.f32 %v3485_v61, %v1293_v9  ;;  %v1622_v14 = vpop.f32.mrf.mxu3  ;;  %v2805_v5 = vld [vmem:[%s3399_s18 + $0x144] sm:$0xf0]  ;;  %v2603_v6 = vld [vmem:[%s3399_s18 + $0x340] sm:$0xf]  ;;  %v2349_v9 = vld [vmem:[%s3399_s18 + $0x148] sm:$0xf0] }
 0x148   : > { %v1136_v16 = vpop.f32.mrf.mxu0 }
 0x149   : > { %3236 = vst [vmem:[%s3502_s4 + $0x48] sm:$0xff] %v2956_v12   ;;  %v1623_v19 = vadd.f32 %v1622_v14, %v1294_v13  ;;  %v1465_v20 = vpop.f32.mrf.mxu1  ;;  %v1137_v24 = vadd.f32 %v3485_v61, %v1136_v16  ;;  %v2868_v12 = vld [vmem:[%s3399_s18 + $0x344] sm:$0xf]  ;;  %v2605_v13 = vld [vmem:[%s3399_s18 + $0x348] sm:$0xf0] }
 0x14b   : > { %v1818_v22 = vmax.f32 %v1623_v19, 0.0  ;;  %1175 = vmatmul.bf16.gmra.mxu0 %v2332_v10  ;;  %1335 = vmatmul.bf16.gmra.mxu2 %v2588_v15  ;;  %v1466_v28 = vadd.f32 %v1465_v20, %v1137_v24  ;;  %v2348_v15 = vor.u32 %v2805_v5, %v2347_v4  ;;  %v2604_v20 = vor.u32 %v2869_v7, %v2603_v6 }
 0x14c   : > { %1504 = vmatmul.bf16.gmra.mxu1 %v2336_v17  ;;  %1664 = vmatmul.bf16.gmra.mxu3 %v2592_v18 }
 0x14d   : > { %v3116_v23 = vpack.c.bf16 %v1818_v22, %v1817_v21  ;;  %v1755_v39 = vmax.f32 %v1466_v28, 0.0  ;;  %v2352_v22 = vor.u32 %v2804_v8, %v2349_v9  ;;  %v2363_v9 = vld [vmem:[%s3399_s18 + $0x160] sm:$0xf] }
 0x14e   : > { %v1296_v25 = vpop.f32.mrf.mxu2 }
 0x14f   : > { %3268 = vst [vmem:[%s3502_s4 + $0x148] sm:$0xff] %v3116_v23   ;;  %v1625_v26 = vpop.f32.mrf.mxu3  ;;  %v1297_v31 = vadd.f32 %v3485_v61, %v1296_v25  ;;  %v2608_v23 = vor.u32 %v2868_v12, %v2605_v13  ;;  %v2873_v12 = vld [vmem:[%s3399_s18 + $0x364] sm:$0xf0]  ;;  %v2808_v13 = vld [vmem:[%s3399_s18 + $0x164] sm:$0xf] }
 0x150   : > { %v1138_v27 = vpop.f32.mrf.mxu0 }
 0x151   : > { %v1139_v29 = vadd.f32 %v3485_v61, %v1138_v27  ;;  %v1467_v30 = vpop.f32.mrf.mxu1  ;;  %v1626_v45 = vadd.f32 %v1625_v26, %v1297_v31 }
 0x153   : > { %v1468_v32 = vadd.f32 %v1467_v30, %v1139_v29  ;;  %v1819_v55 = vmax.f32 %v1626_v45, 0.0 }
 0x155   : > { %v1756_v40 = vmax.f32 %v1468_v32, 0.0 }
 0x156   : > { %v1298_v43 = vpop.f32.mrf.mxu2 }
 0x157   : > { %v2961_v46 = vpack.c.bf16 %v1756_v40, %v1755_v39  ;;  %v1299_v47 = vadd.f32 %v3485_v61, %v1298_v43  ;;  %v1627_v48 = vpop.f32.mrf.mxu3  ;;  %v2807_v39 = vld [vmem:[%s3399_s18 + $0x154] sm:$0xf0]  ;;  %v2611_v40 = vld [vmem:[%s3399_s18 + $0x350] sm:$0xf]  ;;  %v2357_v43 = vld [vmem:[%s3399_s18 + $0x158] sm:$0xf0] }
 0x158   : > { %v1141_v50 = vpop.f32.mrf.mxu0 }
 0x159   : > { %3237 = vst [vmem:[%s3502_s4 + $0x50] sm:$0xff] %v2961_v46   ;;  %v1628_v53 = vadd.f32 %v1627_v48, %v1299_v47  ;;  %v1470_v54 = vpop.f32.mrf.mxu1  ;;  %v1142_v58 = vadd.f32 %v3485_v61, %v1141_v50  ;;  %v2870_v46 = vld [vmem:[%s3399_s18 + $0x354] sm:$0xf]  ;;  %v2613_v47 = vld [vmem:[%s3399_s18 + $0x358] sm:$0xf0] }
 0x15b   : > { %v1820_v56 = vmax.f32 %v1628_v53, 0.0  ;;  %1180 = vmatmul.bf16.gmra.mxu0 %v2340_v44  ;;  %1340 = vmatmul.bf16.gmra.mxu2 %v2596_v49  ;;  %v1471_v63 = vadd.f32 %v1470_v54, %v1142_v58  ;;  %v2356_v49 = vor.u32 %v2807_v39, %v2355_v38  ;;  %v2612_v54 = vor.u32 %v2871_v41, %v2611_v40 }
 0x15c   : > { %1509 = vmatmul.bf16.gmra.mxu1 %v2344_v51  ;;  %1669 = vmatmul.bf16.gmra.mxu3 %v2600_v52 }
 0x15d   : > { %v3121_v57 = vpack.c.bf16 %v1820_v56, %v1819_v55  ;;  %v1757_v10 = vmax.f32 %v1471_v63, 0.0  ;;  %v2360_v56 = vor.u32 %v2806_v42, %v2357_v43  ;;  %v3677_v63 = vld [vmem:[%s3884_s2] ss:$0 sm:$0xff]  ;;  %v2371_v43 = vld [vmem:[%s3399_s18 + $0x170] sm:$0xf] }
 0x15e   : > { %v1301_v59 = vpop.f32.mrf.mxu2 }
 0x15f   : > { %3269 = vst [vmem:[%s3502_s4 + $0x150] sm:$0xff] %v3121_v57   ;;  %v1630_v60 = vpop.f32.mrf.mxu3  ;;  %v1302_v2 = vadd.f32 %v3485_v61, %v1301_v59  ;;  %v2616_v57 = vor.u32 %v2870_v46, %v2613_v47  ;;  %v2875_v46 = vld [vmem:[%s3399_s18 + $0x374] sm:$0xf0]  ;;  %v2810_v47 = vld [vmem:[%s3399_s18 + $0x174] sm:$0xf] }
 0x160   : > { %v1143_v62 = vpop.f32.mrf.mxu0 }
 0x161   : > { %v1144_v0 = vadd.f32 %v3485_v61, %v1143_v62  ;;  %v1472_v1 = vpop.f32.mrf.mxu1  ;;  %v1631_v16 = vadd.f32 %v1630_v60, %v1302_v2 }
 0x163   : > { %v1473_v3 = vadd.f32 %v1472_v1, %v1144_v0  ;;  %v1821_v26 = vmax.f32 %v1631_v16, 0.0 }
 0x165   : > { %v1758_v11 = vmax.f32 %v1473_v3, 0.0 }
 0x166   : > { %v1303_v14 = vpop.f32.mrf.mxu2 }
 0x167   : > { %v2966_v17 = vpack.c.bf16 %v1758_v11, %v1757_v10  ;;  %v1304_v18 = vadd.f32 %v3485_v61, %v1303_v14  ;;  %v1632_v19 = vpop.f32.mrf.mxu3  ;;  %v2809_v10 = vld [vmem:[%s3399_s18 + $0x164] sm:$0xf0]  ;;  %v2619_v11 = vld [vmem:[%s3399_s18 + $0x360] sm:$0xf]  ;;  %v2365_v14 = vld [vmem:[%s3399_s18 + $0x168] sm:$0xf0] }
 0x168   : > { %v1146_v21 = vpop.f32.mrf.mxu0 }
 0x169   : > { %3238 = vst [vmem:[%s3502_s4 + $0x58] sm:$0xff] %v2966_v17   ;;  %v1633_v24 = vadd.f32 %v1632_v19, %v1304_v18  ;;  %v1475_v25 = vpop.f32.mrf.mxu1  ;;  %v1147_v29 = vadd.f32 %v3485_v61, %v1146_v21  ;;  %v2872_v17 = vld [vmem:[%s3399_s18 + $0x364] sm:$0xf]  ;;  %v2621_v18 = vld [vmem:[%s3399_s18 + $0x368] sm:$0xf0] }
 0x16b   : > { %v1822_v27 = vmax.f32 %v1633_v24, 0.0  ;;  %1185 = vmatmul.bf16.gmra.mxu0 %v2348_v15  ;;  %1345 = vmatmul.bf16.gmra.mxu2 %v2604_v20  ;;  %v1476_v33 = vadd.f32 %v1475_v25, %v1147_v29  ;;  %v2364_v20 = vor.u32 %v2809_v10, %v2363_v9  ;;  %v2620_v25 = vor.u32 %v2873_v12, %v2619_v11 }
 0x16c   : > { %1514 = vmatmul.bf16.gmra.mxu1 %v2352_v22  ;;  %1674 = vmatmul.bf16.gmra.mxu3 %v2608_v23 }
 0x16d   : > { %v3126_v28 = vpack.c.bf16 %v1822_v27, %v1821_v26  ;;  %v1759_v44 = vmax.f32 %v1476_v33, 0.0  ;;  %v2368_v27 = vor.u32 %v2808_v13, %v2365_v14  ;;  %v2379_v14 = vld [vmem:[%s3399_s18 + $0x180] sm:$0xf] }
 0x16e   : > { %v1306_v30 = vpop.f32.mrf.mxu2 }
 0x16f   : > { %3270 = vst [vmem:[%s3502_s4 + $0x158] sm:$0xff] %v3126_v28   ;;  %v1635_v31 = vpop.f32.mrf.mxu3  ;;  %v1307_v36 = vadd.f32 %v3485_v61, %v1306_v30  ;;  %v2624_v28 = vor.u32 %v2872_v17, %v2621_v18  ;;  %v2877_v17 = vld [vmem:[%s3399_s18 + $0x384] sm:$0xf0]  ;;  %v2812_v18 = vld [vmem:[%s3399_s18 + $0x184] sm:$0xf] }
 0x170   : > { %v1148_v32 = vpop.f32.mrf.mxu0 }
 0x171   : > { %v1149_v34 = vadd.f32 %v3485_v61, %v1148_v32  ;;  %v1477_v35 = vpop.f32.mrf.mxu1  ;;  %v1636_v50 = vadd.f32 %v1635_v31, %v1307_v36 }
 0x173   : > { %v1478_v37 = vadd.f32 %v1477_v35, %v1149_v34  ;;  %v1823_v60 = vmax.f32 %v1636_v50, 0.0 }
 0x175   : > { %v1760_v45 = vmax.f32 %v1478_v37, 0.0 }
 0x176   : > { %v1308_v48 = vpop.f32.mrf.mxu2 }
 0x177   : > { %v2971_v51 = vpack.c.bf16 %v1760_v45, %v1759_v44  ;;  %v1309_v52 = vadd.f32 %v3485_v61, %v1308_v48  ;;  %v1637_v53 = vpop.f32.mrf.mxu3  ;;  %v2811_v44 = vld [vmem:[%s3399_s18 + $0x174] sm:$0xf0]  ;;  %v2627_v45 = vld [vmem:[%s3399_s18 + $0x370] sm:$0xf]  ;;  %v2373_v48 = vld [vmem:[%s3399_s18 + $0x178] sm:$0xf0] }
 0x178   : > { %v1151_v55 = vpop.f32.mrf.mxu0 }
 0x179   : > { %3239 = vst [vmem:[%s3502_s4 + $0x60] sm:$0xff] %v2971_v51   ;;  %v1638_v58 = vadd.f32 %v1637_v53, %v1309_v52  ;;  %v1480_v59 = vpop.f32.mrf.mxu1  ;;  %v1152_v0 = vadd.f32 %v3677_v63, %v1151_v55  ;;  %v2874_v51 = vld [vmem:[%s3399_s18 + $0x374] sm:$0xf]  ;;  %v2629_v52 = vld [vmem:[%s3399_s18 + $0x378] sm:$0xf0] }
 0x17b   : > { %v1824_v62 = vmax.f32 %v1638_v58, 0.0  ;;  %1190 = vmatmul.bf16.gmra.mxu0 %v2356_v49  ;;  %1350 = vmatmul.bf16.gmra.mxu2 %v2612_v54  ;;  %v1481_v4 = vadd.f32 %v1480_v59, %v1152_v0  ;;  %v2372_v54 = vor.u32 %v2811_v44, %v2371_v43  ;;  %v2628_v59 = vor.u32 %v2875_v46, %v2627_v45 }
 0x17c   : > { %1519 = vmatmul.bf16.gmra.mxu1 %v2360_v56  ;;  %1679 = vmatmul.bf16.gmra.mxu3 %v2616_v57 }
 0x17d   : > { %v3131_v61 = vpack.c.bf16 %v1824_v62, %v1823_v60  ;;  %v1761_v15 = vmax.f32 %v1481_v4, 0.0  ;;  %v2376_v62 = vor.u32 %v2810_v47, %v2373_v48  ;;  %v2387_v48 = vld [vmem:[%s3399_s18 + $0x190] sm:$0xf] }
 0x17e   : > { %v1311_v1 = vpop.f32.mrf.mxu2 }
 0x17f   : > { %3271 = vst [vmem:[%s3502_s4 + $0x160] sm:$0xff] %v3131_v61   ;;  %v1640_v2 = vpop.f32.mrf.mxu3  ;;  %v1312_v7 = vadd.f32 %v3677_v63, %v1311_v1  ;;  %v2632_v61 = vor.u32 %v2874_v51, %v2629_v52  ;;  %v2879_v51 = vld [vmem:[%s3399_s18 + $0x394] sm:$0xf0]  ;;  %v2814_v52 = vld [vmem:[%s3399_s18 + $0x194] sm:$0xf] }
 0x180   : > { %v1153_v3 = vpop.f32.mrf.mxu0 }
 0x181   : > { %v1154_v5 = vadd.f32 %v3677_v63, %v1153_v3  ;;  %v1482_v6 = vpop.f32.mrf.mxu1  ;;  %v1641_v21 = vadd.f32 %v1640_v2, %v1312_v7 }
 0x183   : > { %v1483_v8 = vadd.f32 %v1482_v6, %v1154_v5  ;;  %v1825_v31 = vmax.f32 %v1641_v21, 0.0 }
 0x185   : > { %v1762_v16 = vmax.f32 %v1483_v8, 0.0 }
 0x186   : > { %v1313_v19 = vpop.f32.mrf.mxu2 }
 0x187   : > { %v2976_v22 = vpack.c.bf16 %v1762_v16, %v1761_v15  ;;  %v1314_v23 = vadd.f32 %v3677_v63, %v1313_v19  ;;  %v1642_v24 = vpop.f32.mrf.mxu3  ;;  %v2813_v15 = vld [vmem:[%s3399_s18 + $0x184] sm:$0xf0]  ;;  %v2635_v16 = vld [vmem:[%s3399_s18 + $0x380] sm:$0xf]  ;;  %v2381_v19 = vld [vmem:[%s3399_s18 + $0x188] sm:$0xf0] }
 0x188   : > { %v1156_v26 = vpop.f32.mrf.mxu0 }
 0x189   : > { %3240 = vst [vmem:[%s3502_s4 + $0x68] sm:$0xff] %v2976_v22   ;;  %v1643_v29 = vadd.f32 %v1642_v24, %v1314_v23  ;;  %v1485_v30 = vpop.f32.mrf.mxu1  ;;  %v1157_v34 = vadd.f32 %v3677_v63, %v1156_v26  ;;  %v2876_v22 = vld [vmem:[%s3399_s18 + $0x384] sm:$0xf]  ;;  %v2637_v23 = vld [vmem:[%s3399_s18 + $0x388] sm:$0xf0] }
 0x18b   : > { %v1826_v32 = vmax.f32 %v1643_v29, 0.0  ;;  %1195 = vmatmul.bf16.gmra.mxu0 %v2364_v20  ;;  %1355 = vmatmul.bf16.gmra.mxu2 %v2620_v25  ;;  %v1486_v38 = vadd.f32 %v1485_v30, %v1157_v34  ;;  %v2380_v25 = vor.u32 %v2813_v15, %v2379_v14  ;;  %v2636_v30 = vor.u32 %v2877_v17, %v2635_v16 }
 0x18c   : > { %1524 = vmatmul.bf16.gmra.mxu1 %v2368_v27  ;;  %1684 = vmatmul.bf16.gmra.mxu3 %v2624_v28 }
 0x18d   : > { %v3136_v33 = vpack.c.bf16 %v1826_v32, %v1825_v31  ;;  %v1763_v49 = vmax.f32 %v1486_v38, 0.0  ;;  %v2384_v32 = vor.u32 %v2812_v18, %v2381_v19  ;;  %v2395_v19 = vld [vmem:[%s3399_s18 + $0x1a0] sm:$0xf] }
 0x18e   : > { %v1316_v35 = vpop.f32.mrf.mxu2 }
 0x18f   : > { %3272 = vst [vmem:[%s3502_s4 + $0x168] sm:$0xff] %v3136_v33   ;;  %v1645_v36 = vpop.f32.mrf.mxu3  ;;  %v1317_v41 = vadd.f32 %v3677_v63, %v1316_v35  ;;  %v2640_v33 = vor.u32 %v2876_v22, %v2637_v23  ;;  %v2881_v22 = vld [vmem:[%s3399_s18 + $0x3a4] sm:$0xf0]  ;;  %v2816_v23 = vld [vmem:[%s3399_s18 + $0x1a4] sm:$0xf] }
 0x190   : > { %v1158_v37 = vpop.f32.mrf.mxu0 }
 0x191   : > { %v1159_v39 = vadd.f32 %v3677_v63, %v1158_v37  ;;  %v1487_v40 = vpop.f32.mrf.mxu1  ;;  %v1646_v55 = vadd.f32 %v1645_v36, %v1317_v41 }
 0x193   : > { %v1488_v42 = vadd.f32 %v1487_v40, %v1159_v39  ;;  %v1827_v2 = vmax.f32 %v1646_v55, 0.0 }
 0x195   : > { %v1764_v50 = vmax.f32 %v1488_v42, 0.0 }
 0x196   : > { %v1318_v53 = vpop.f32.mrf.mxu2 }
 0x197   : > { %v2981_v56 = vpack.c.bf16 %v1764_v50, %v1763_v49  ;;  %v1319_v57 = vadd.f32 %v3677_v63, %v1318_v53  ;;  %v1647_v58 = vpop.f32.mrf.mxu3  ;;  %v2815_v49 = vld [vmem:[%s3399_s18 + $0x194] sm:$0xf0]  ;;  %v2643_v50 = vld [vmem:[%s3399_s18 + $0x390] sm:$0xf]  ;;  %v2389_v53 = vld [vmem:[%s3399_s18 + $0x198] sm:$0xf0] }
 0x198   : > { %v1161_v60 = vpop.f32.mrf.mxu0 }
 0x199   : > { %3241 = vst [vmem:[%s3502_s4 + $0x70] sm:$0xff] %v2981_v56   ;;  %v1648_v0 = vadd.f32 %v1647_v58, %v1319_v57  ;;  %v1490_v1 = vpop.f32.mrf.mxu1  ;;  %v1162_v5 = vadd.f32 %v3677_v63, %v1161_v60  ;;  %v2878_v56 = vld [vmem:[%s3399_s18 + $0x394] sm:$0xf]  ;;  %v2645_v57 = vld [vmem:[%s3399_s18 + $0x398] sm:$0xf0] }
 0x19b   : > { %v1828_v3 = vmax.f32 %v1648_v0, 0.0  ;;  %1200 = vmatmul.bf16.gmra.mxu0 %v2372_v54  ;;  %1360 = vmatmul.bf16.gmra.mxu2 %v2628_v59  ;;  %v1491_v9 = vadd.f32 %v1490_v1, %v1162_v5  ;;  %v2388_v59 = vor.u32 %v2815_v49, %v2387_v48  ;;  %v2644_v1 = vor.u32 %v2879_v51, %v2643_v50 }
 0x19c   : > { %1529 = vmatmul.bf16.gmra.mxu1 %v2376_v62  ;;  %1689 = vmatmul.bf16.gmra.mxu3 %v2632_v61 }
 0x19d   : > { %v3141_v4 = vpack.c.bf16 %v1828_v3, %v1827_v2  ;;  %v1765_v20 = vmax.f32 %v1491_v9, 0.0  ;;  %v2392_v3 = vor.u32 %v2814_v52, %v2389_v53  ;;  %v2403_v53 = vld [vmem:[%s3399_s18 + $0x1b0] sm:$0xf] }
 0x19e   : > { %v1321_v6 = vpop.f32.mrf.mxu2 }
 0x19f   : > { %3273 = vst [vmem:[%s3502_s4 + $0x170] sm:$0xff] %v3141_v4   ;;  %v1650_v7 = vpop.f32.mrf.mxu3  ;;  %v1322_v12 = vadd.f32 %v3677_v63, %v1321_v6  ;;  %v2648_v4 = vor.u32 %v2878_v56, %v2645_v57  ;;  %v2883_v56 = vld [vmem:[%s3399_s18 + $0x3b4] sm:$0xf0]  ;;  %v2818_v57 = vld [vmem:[%s3399_s18 + $0x1b4] sm:$0xf] }
 0x1a0   : > { %v1163_v8 = vpop.f32.mrf.mxu0 }
 0x1a1   : > { %v1164_v10 = vadd.f32 %v3677_v63, %v1163_v8  ;;  %v1492_v11 = vpop.f32.mrf.mxu1  ;;  %v1651_v26 = vadd.f32 %v1650_v7, %v1322_v12 }
 0x1a3   : > { %v1493_v13 = vadd.f32 %v1492_v11, %v1164_v10  ;;  %v1829_v36 = vmax.f32 %v1651_v26, 0.0 }
 0x1a5   : > { %v1766_v21 = vmax.f32 %v1493_v13, 0.0 }
 0x1a6   : > { %v1323_v24 = vpop.f32.mrf.mxu2 }
 0x1a7   : > { %v2986_v27 = vpack.c.bf16 %v1766_v21, %v1765_v20  ;;  %v1324_v28 = vadd.f32 %v3677_v63, %v1323_v24  ;;  %v1652_v29 = vpop.f32.mrf.mxu3  ;;  %v2817_v20 = vld [vmem:[%s3399_s18 + $0x1a4] sm:$0xf0]  ;;  %v2651_v21 = vld [vmem:[%s3399_s18 + $0x3a0] sm:$0xf]  ;;  %v2397_v24 = vld [vmem:[%s3399_s18 + $0x1a8] sm:$0xf0] }
 0x1a8   : > { %v1166_v31 = vpop.f32.mrf.mxu0 }
 0x1a9   : > { %3242 = vst [vmem:[%s3502_s4 + $0x78] sm:$0xff] %v2986_v27   ;;  %v1653_v34 = vadd.f32 %v1652_v29, %v1324_v28  ;;  %v1495_v35 = vpop.f32.mrf.mxu1  ;;  %v1167_v39 = vadd.f32 %v3677_v63, %v1166_v31  ;;  %v2880_v27 = vld [vmem:[%s3399_s18 + $0x3a4] sm:$0xf]  ;;  %v2653_v28 = vld [vmem:[%s3399_s18 + $0x3a8] sm:$0xf0] }
 0x1ab   : > { %v1830_v37 = vmax.f32 %v1653_v34, 0.0  ;;  %1205 = vmatmul.bf16.gmra.mxu0 %v2380_v25  ;;  %1365 = vmatmul.bf16.gmra.mxu2 %v2636_v30  ;;  %v1496_v43 = vadd.f32 %v1495_v35, %v1167_v39  ;;  %v2396_v30 = vor.u32 %v2817_v20, %v2395_v19  ;;  %v2652_v35 = vor.u32 %v2881_v22, %v2651_v21 }
 0x1ac   : > { %1534 = vmatmul.bf16.gmra.mxu1 %v2384_v32  ;;  %1694 = vmatmul.bf16.gmra.mxu3 %v2640_v33 }
 0x1ad   : > { %v3146_v38 = vpack.c.bf16 %v1830_v37, %v1829_v36  ;;  %v1767_v54 = vmax.f32 %v1496_v43, 0.0  ;;  %v2400_v37 = vor.u32 %v2816_v23, %v2397_v24  ;;  %v2411_v24 = vld [vmem:[%s3399_s18 + $0x1c0] sm:$0xf] }
 0x1ae   : > { %v1326_v40 = vpop.f32.mrf.mxu2 }
 0x1af   : > { %3274 = vst [vmem:[%s3502_s4 + $0x178] sm:$0xff] %v3146_v38   ;;  %v1655_v41 = vpop.f32.mrf.mxu3  ;;  %v1327_v46 = vadd.f32 %v3677_v63, %v1326_v40  ;;  %v2656_v38 = vor.u32 %v2880_v27, %v2653_v28  ;;  %v2885_v27 = vld [vmem:[%s3399_s18 + $0x3c4] sm:$0xf0]  ;;  %v2820_v28 = vld [vmem:[%s3399_s18 + $0x1c4] sm:$0xf] }
 0x1b0   : > { %v1168_v42 = vpop.f32.mrf.mxu0 }
 0x1b1   : > { %v1169_v44 = vadd.f32 %v3677_v63, %v1168_v42  ;;  %v1497_v45 = vpop.f32.mrf.mxu1  ;;  %v1656_v60 = vadd.f32 %v1655_v41, %v1327_v46 }
 0x1b3   : > { %v1498_v47 = vadd.f32 %v1497_v45, %v1169_v44  ;;  %v1831_v7 = vmax.f32 %v1656_v60, 0.0 }
 0x1b5   : > { %v1768_v55 = vmax.f32 %v1498_v47, 0.0 }
 0x1b6   : > { %v1328_v58 = vpop.f32.mrf.mxu2 }
 0x1b7   : > { %v2991_v62 = vpack.c.bf16 %v1768_v55, %v1767_v54  ;;  %v1329_v61 = vadd.f32 %v3677_v63, %v1328_v58  ;;  %v1657_v0 = vpop.f32.mrf.mxu3  ;;  %v2819_v54 = vld [vmem:[%s3399_s18 + $0x1b4] sm:$0xf0]  ;;  %v2659_v55 = vld [vmem:[%s3399_s18 + $0x3b0] sm:$0xf]  ;;  %v2405_v58 = vld [vmem:[%s3399_s18 + $0x1b8] sm:$0xf0] }
 0x1b8   : > { %v1171_v2 = vpop.f32.mrf.mxu0 }
 0x1b9   : > { %3243 = vst [vmem:[%s3502_s4 + $0x80] sm:$0xff] %v2991_v62   ;;  %v1658_v5 = vadd.f32 %v1657_v0, %v1329_v61  ;;  %v1500_v6 = vpop.f32.mrf.mxu1  ;;  %v1172_v10 = vadd.f32 %v3677_v63, %v1171_v2  ;;  %v2882_v62 = vld [vmem:[%s3399_s18 + $0x3b4] sm:$0xf]  ;;  %v2661_v61 = vld [vmem:[%s3399_s18 + $0x3b8] sm:$0xf0] }
 0x1bb   : > { %v1832_v8 = vmax.f32 %v1658_v5, 0.0  ;;  %1210 = vmatmul.bf16.gmra.mxu0 %v2388_v59  ;;  %1370 = vmatmul.bf16.gmra.mxu2 %v2644_v1  ;;  %v1501_v14 = vadd.f32 %v1500_v6, %v1172_v10  ;;  %v2404_v1 = vor.u32 %v2819_v54, %v2403_v53  ;;  %v2660_v6 = vor.u32 %v2883_v56, %v2659_v55 }
 0x1bc   : > { %1539 = vmatmul.bf16.gmra.mxu1 %v2392_v3  ;;  %1699 = vmatmul.bf16.gmra.mxu3 %v2648_v4 }
 0x1bd   : > { %v3151_v9 = vpack.c.bf16 %v1832_v8, %v1831_v7  ;;  %v1769_v25 = vmax.f32 %v1501_v14, 0.0  ;;  %v2408_v8 = vor.u32 %v2818_v57, %v2405_v58  ;;  %v2419_v58 = vld [vmem:[%s3399_s18 + $0x1d0] sm:$0xf] }
 0x1be   : > { %v1331_v11 = vpop.f32.mrf.mxu2 }
 0x1bf   : > { %3275 = vst [vmem:[%s3502_s4 + $0x180] sm:$0xff] %v3151_v9   ;;  %v1660_v12 = vpop.f32.mrf.mxu3  ;;  %v1332_v17 = vadd.f32 %v3677_v63, %v1331_v11  ;;  %v2664_v9 = vor.u32 %v2882_v62, %v2661_v61  ;;  %v2887_v62 = vld [vmem:[%s3399_s18 + $0x3d4] sm:$0xf0]  ;;  %v2822_v61 = vld [vmem:[%s3399_s18 + $0x1d4] sm:$0xf] }
 0x1c0   : > { %v1173_v13 = vpop.f32.mrf.mxu0 }
 0x1c1   : > { %v1174_v15 = vadd.f32 %v3677_v63, %v1173_v13  ;;  %v1502_v16 = vpop.f32.mrf.mxu1  ;;  %v1661_v31 = vadd.f32 %v1660_v12, %v1332_v17 }
 0x1c3   : > { %v1503_v18 = vadd.f32 %v1502_v16, %v1174_v15  ;;  %v1833_v41 = vmax.f32 %v1661_v31, 0.0 }
 0x1c5   : > { %v1770_v26 = vmax.f32 %v1503_v18, 0.0 }
 0x1c6   : > { %v1333_v29 = vpop.f32.mrf.mxu2 }
 0x1c7   : > { %v2996_v32 = vpack.c.bf16 %v1770_v26, %v1769_v25  ;;  %v1334_v33 = vadd.f32 %v3677_v63, %v1333_v29  ;;  %v1662_v34 = vpop.f32.mrf.mxu3  ;;  %v2821_v25 = vld [vmem:[%s3399_s18 + $0x1c4] sm:$0xf0]  ;;  %v2667_v26 = vld [vmem:[%s3399_s18 + $0x3c0] sm:$0xf]  ;;  %v2413_v29 = vld [vmem:[%s3399_s18 + $0x1c8] sm:$0xf0] }
 0x1c8   : > { %v1176_v36 = vpop.f32.mrf.mxu0 }
 0x1c9   : > { %3244 = vst [vmem:[%s3502_s4 + $0x88] sm:$0xff] %v2996_v32   ;;  %v1663_v39 = vadd.f32 %v1662_v34, %v1334_v33  ;;  %v1505_v40 = vpop.f32.mrf.mxu1  ;;  %v1177_v44 = vadd.f32 %v3677_v63, %v1176_v36  ;;  %v2884_v32 = vld [vmem:[%s3399_s18 + $0x3c4] sm:$0xf]  ;;  %v2669_v33 = vld [vmem:[%s3399_s18 + $0x3c8] sm:$0xf0] }
 0x1cb   : > { %v1834_v42 = vmax.f32 %v1663_v39, 0.0  ;;  %1215 = vmatmul.bf16.gmra.mxu0 %v2396_v30  ;;  %1375 = vmatmul.bf16.gmra.mxu2 %v2652_v35  ;;  %v1506_v48 = vadd.f32 %v1505_v40, %v1177_v44  ;;  %v2412_v35 = vor.u32 %v2821_v25, %v2411_v24  ;;  %v2668_v40 = vor.u32 %v2885_v27, %v2667_v26 }
 0x1cc   : > { %1544 = vmatmul.bf16.gmra.mxu1 %v2400_v37  ;;  %1704 = vmatmul.bf16.gmra.mxu3 %v2656_v38 }
 0x1cd   : > { %v3156_v43 = vpack.c.bf16 %v1834_v42, %v1833_v41  ;;  %v1771_v59 = vmax.f32 %v1506_v48, 0.0  ;;  %v2416_v42 = vor.u32 %v2820_v28, %v2413_v29  ;;  %v2427_v29 = vld [vmem:[%s3399_s18 + $0x1e0] sm:$0xf] }
 0x1ce   : > { %v1336_v45 = vpop.f32.mrf.mxu2 }
 0x1cf   : > { %3276 = vst [vmem:[%s3502_s4 + $0x188] sm:$0xff] %v3156_v43   ;;  %v1665_v46 = vpop.f32.mrf.mxu3  ;;  %v1337_v51 = vadd.f32 %v3677_v63, %v1336_v45  ;;  %v2672_v43 = vor.u32 %v2884_v32, %v2669_v33  ;;  %v2889_v32 = vld [vmem:[%s3399_s18 + $0x3e4] sm:$0xf0]  ;;  %v2824_v33 = vld [vmem:[%s3399_s18 + $0x1e4] sm:$0xf] }
 0x1d0   : > { %v1178_v47 = vpop.f32.mrf.mxu0 }
 0x1d1   : > { %v1179_v49 = vadd.f32 %v3677_v63, %v1178_v47  ;;  %v1507_v50 = vpop.f32.mrf.mxu1  ;;  %v1666_v2 = vadd.f32 %v1665_v46, %v1337_v51 }
 0x1d3   : > { %v1508_v52 = vadd.f32 %v1507_v50, %v1179_v49  ;;  %v1835_v12 = vmax.f32 %v1666_v2, 0.0 }
 0x1d5   : > { %v1772_v60 = vmax.f32 %v1508_v52, 0.0 }
 0x1d6   : > { %v1338_v0 = vpop.f32.mrf.mxu2 }
 0x1d7   : > { %v3001_v3 = vpack.c.bf16 %v1772_v60, %v1771_v59  ;;  %v1339_v4 = vadd.f32 %v3677_v63, %v1338_v0  ;;  %v1667_v5 = vpop.f32.mrf.mxu3  ;;  %v2823_v59 = vld [vmem:[%s3399_s18 + $0x1d4] sm:$0xf0]  ;;  %v2675_v60 = vld [vmem:[%s3399_s18 + $0x3d0] sm:$0xf]  ;;  %v2421_v0 = vld [vmem:[%s3399_s18 + $0x1d8] sm:$0xf0] }
 0x1d8   : > { %v1181_v7 = vpop.f32.mrf.mxu0 }
 0x1d9   : > { %3245 = vst [vmem:[%s3502_s4 + $0x90] sm:$0xff] %v3001_v3   ;;  %v1668_v10 = vadd.f32 %v1667_v5, %v1339_v4  ;;  %v1510_v11 = vpop.f32.mrf.mxu1  ;;  %v1182_v15 = vadd.f32 %v3677_v63, %v1181_v7  ;;  %v2886_v3 = vld [vmem:[%s3399_s18 + $0x3d4] sm:$0xf]  ;;  %v2677_v4 = vld [vmem:[%s3399_s18 + $0x3d8] sm:$0xf0] }
 0x1db   : > { %v1836_v13 = vmax.f32 %v1668_v10, 0.0  ;;  %1220 = vmatmul.bf16.gmra.mxu0 %v2404_v1  ;;  %1380 = vmatmul.bf16.gmra.mxu2 %v2660_v6  ;;  %v1511_v19 = vadd.f32 %v1510_v11, %v1182_v15  ;;  %v2420_v6 = vor.u32 %v2823_v59, %v2419_v58  ;;  %v2676_v11 = vor.u32 %v2887_v62, %v2675_v60 }
 0x1dc   : > { %1549 = vmatmul.bf16.gmra.mxu1 %v2408_v8  ;;  %1709 = vmatmul.bf16.gmra.mxu3 %v2664_v9 }
 0x1dd   : > { %v3161_v14 = vpack.c.bf16 %v1836_v13, %v1835_v12  ;;  %v1773_v30 = vmax.f32 %v1511_v19, 0.0  ;;  %v2424_v13 = vor.u32 %v2822_v61, %v2421_v0  ;;  %v2435_v0 = vld [vmem:[%s3399_s18 + $0x1f0] sm:$0xf] }
 0x1de   : > { %v1341_v16 = vpop.f32.mrf.mxu2 }
 0x1df   : > { %3277 = vst [vmem:[%s3502_s4 + $0x190] sm:$0xff] %v3161_v14   ;;  %v1670_v17 = vpop.f32.mrf.mxu3  ;;  %v1342_v22 = vadd.f32 %v3677_v63, %v1341_v16  ;;  %v2680_v14 = vor.u32 %v2886_v3, %v2677_v4  ;;  %v2891_v3 = vld [vmem:[%s3399_s18 + $0x3f4] sm:$0xf0]  ;;  %v2826_v4 = vld [vmem:[%s3399_s18 + $0x1f4] sm:$0xf] }
 0x1e0   : > { %v1183_v18 = vpop.f32.mrf.mxu0 }
 0x1e1   : > { %v1184_v20 = vadd.f32 %v3677_v63, %v1183_v18  ;;  %v1512_v21 = vpop.f32.mrf.mxu1  ;;  %v1671_v36 = vadd.f32 %v1670_v17, %v1342_v22 }
 0x1e3   : > { %v1513_v23 = vadd.f32 %v1512_v21, %v1184_v20  ;;  %v1837_v46 = vmax.f32 %v1671_v36, 0.0 }
 0x1e5   : > { %v1774_v31 = vmax.f32 %v1513_v23, 0.0 }
 0x1e6   : > { %v1343_v34 = vpop.f32.mrf.mxu2 }
 0x1e7   : > { %v3006_v37 = vpack.c.bf16 %v1774_v31, %v1773_v30  ;;  %v1344_v38 = vadd.f32 %v3677_v63, %v1343_v34  ;;  %v1672_v39 = vpop.f32.mrf.mxu3  ;;  %v2825_v30 = vld [vmem:[%s3399_s18 + $0x1e4] sm:$0xf0]  ;;  %v2683_v31 = vld [vmem:[%s3399_s18 + $0x3e0] sm:$0xf]  ;;  %v2429_v34 = vld [vmem:[%s3399_s18 + $0x1e8] sm:$0xf0] }
 0x1e8   : > { %v1186_v41 = vpop.f32.mrf.mxu0 }
 0x1e9   : > { %3246 = vst [vmem:[%s3502_s4 + $0x98] sm:$0xff] %v3006_v37   ;;  %v1673_v44 = vadd.f32 %v1672_v39, %v1344_v38  ;;  %v1515_v45 = vpop.f32.mrf.mxu1  ;;  %v1187_v49 = vadd.f32 %v3677_v63, %v1186_v41  ;;  %v2888_v37 = vld [vmem:[%s3399_s18 + $0x3e4] sm:$0xf]  ;;  %v2685_v38 = vld [vmem:[%s3399_s18 + $0x3e8] sm:$0xf0] }
 0x1eb   : > { %v1838_v47 = vmax.f32 %v1673_v44, 0.0  ;;  %1225 = vmatmul.bf16.gmra.mxu0 %v2412_v35  ;;  %1385 = vmatmul.bf16.gmra.mxu2 %v2668_v40  ;;  %v1516_v53 = vadd.f32 %v1515_v45, %v1187_v49  ;;  %v2428_v40 = vor.u32 %v2825_v30, %v2427_v29  ;;  %v2684_v45 = vor.u32 %v2889_v32, %v2683_v31 }
 0x1ec   : > { %1554 = vmatmul.bf16.gmra.mxu1 %v2416_v42  ;;  %1714 = vmatmul.bf16.gmra.mxu3 %v2672_v43 }
 0x1ed   : > { %v3166_v48 = vpack.c.bf16 %v1838_v47, %v1837_v46  ;;  %v1775_v1 = vmax.f32 %v1516_v53, 0.0  ;;  %v2432_v47 = vor.u32 %v2824_v33, %v2429_v34 }
 0x1ee   : > { %v1346_v50 = vpop.f32.mrf.mxu2 }
 0x1ef   : > { %3278 = vst [vmem:[%s3502_s4 + $0x198] sm:$0xff] %v3166_v48   ;;  %v1675_v51 = vpop.f32.mrf.mxu3  ;;  %v1347_v56 = vadd.f32 %v3677_v63, %v1346_v50  ;;  %v2688_v48 = vor.u32 %v2888_v37, %v2685_v38 }
 0x1f0   : > { %v1188_v52 = vpop.f32.mrf.mxu0 }
 0x1f1   : > { %v1189_v54 = vadd.f32 %v3677_v63, %v1188_v52  ;;  %v1517_v55 = vpop.f32.mrf.mxu1  ;;  %v1676_v7 = vadd.f32 %v1675_v51, %v1347_v56 }
 0x1f3   : > { %v1518_v57 = vadd.f32 %v1517_v55, %v1189_v54  ;;  %v1839_v17 = vmax.f32 %v1676_v7, 0.0 }
 0x1f5   : > { %v1776_v2 = vmax.f32 %v1518_v57, 0.0 }
 0x1f6   : > { %v1348_v5 = vpop.f32.mrf.mxu2 }
 0x1f7   : > { %v3011_v8 = vpack.c.bf16 %v1776_v2, %v1775_v1  ;;  %v1349_v9 = vadd.f32 %v3677_v63, %v1348_v5  ;;  %v1677_v10 = vpop.f32.mrf.mxu3  ;;  %v2827_v1 = vld [vmem:[%s3399_s18 + $0x1f4] sm:$0xf0]  ;;  %v2691_v2 = vld [vmem:[%s3399_s18 + $0x3f0] sm:$0xf]  ;;  %v2437_v5 = vld [vmem:[%s3399_s18 + $0x1f8] sm:$0xf0] }
 0x1f8   : > { %v1191_v12 = vpop.f32.mrf.mxu0 }
 0x1f9   : > { %3247 = vst [vmem:[%s3502_s4 + $0xa0] sm:$0xff] %v3011_v8   ;;  %v1678_v15 = vadd.f32 %v1677_v10, %v1349_v9  ;;  %v1520_v16 = vpop.f32.mrf.mxu1  ;;  %v1192_v20 = vadd.f32 %v3677_v63, %v1191_v12  ;;  %v2890_v8 = vld [vmem:[%s3399_s18 + $0x3f4] sm:$0xf]  ;;  %v2693_v9 = vld [vmem:[%s3399_s18 + $0x3f8] sm:$0xf0] }
 0x1fb   : > { %v1840_v18 = vmax.f32 %v1678_v15, 0.0  ;;  %1230 = vmatmul.bf16.gmra.mxu0 %v2420_v6  ;;  %1390 = vmatmul.bf16.gmra.mxu2 %v2676_v11  ;;  %v1521_v24 = vadd.f32 %v1520_v16, %v1192_v20  ;;  %v2436_v11 = vor.u32 %v2827_v1, %v2435_v0  ;;  %v2692_v16 = vor.u32 %v2891_v3, %v2691_v2 }
 0x1fc   : > { %1559 = vmatmul.bf16.gmra.mxu1 %v2424_v13  ;;  %1719 = vmatmul.bf16.gmra.mxu3 %v2680_v14 }
 0x1fd   : > { %v3171_v19 = vpack.c.bf16 %v1840_v18, %v1839_v17  ;;  %v1777_v35 = vmax.f32 %v1521_v24, 0.0  ;;  %v2440_v18 = vor.u32 %v2826_v4, %v2437_v5 }
 0x1fe   : > { %v1351_v21 = vpop.f32.mrf.mxu2 }
 0x1ff   : > { %3279 = vst [vmem:[%s3502_s4 + $0x1a0] sm:$0xff] %v3171_v19   ;;  %v1680_v22 = vpop.f32.mrf.mxu3  ;;  %v1352_v27 = vadd.f32 %v3677_v63, %v1351_v21  ;;  %v2696_v19 = vor.u32 %v2890_v8, %v2693_v9 }
 0x200   : > { %v1193_v23 = vpop.f32.mrf.mxu0 }
 0x201   : > { %v1194_v25 = vadd.f32 %v3677_v63, %v1193_v23  ;;  %v1522_v26 = vpop.f32.mrf.mxu1  ;;  %v1681_v41 = vadd.f32 %v1680_v22, %v1352_v27 }
 0x203   : > { %v1523_v28 = vadd.f32 %v1522_v26, %v1194_v25  ;;  %v1841_v51 = vmax.f32 %v1681_v41, 0.0 }
 0x205   : > { %v1778_v36 = vmax.f32 %v1523_v28, 0.0 }
 0x206   : > { %v1353_v39 = vpop.f32.mrf.mxu2 }
 0x207   : > { %v3016_v42 = vpack.c.bf16 %v1778_v36, %v1777_v35  ;;  %v1354_v43 = vadd.f32 %v3677_v63, %v1353_v39  ;;  %v1682_v44 = vpop.f32.mrf.mxu3 }
 0x208   : > { %v1196_v46 = vpop.f32.mrf.mxu0 }
 0x209   : > { %3248 = vst [vmem:[%s3502_s4 + $0xa8] sm:$0xff] %v3016_v42   ;;  %v1683_v49 = vadd.f32 %v1682_v44, %v1354_v43  ;;  %v1525_v50 = vpop.f32.mrf.mxu1  ;;  %v1197_v54 = vadd.f32 %v3677_v63, %v1196_v46 }
 0x20b   : > { %v1842_v52 = vmax.f32 %v1683_v49, 0.0  ;;  %1235 = vmatmul.bf16.gmra.mxu0 %v2428_v40  ;;  %1395 = vmatmul.bf16.gmra.mxu2 %v2684_v45  ;;  %v1526_v58 = vadd.f32 %v1525_v50, %v1197_v54 }
 0x20c   : > { %1564 = vmatmul.bf16.gmra.mxu1 %v2432_v47  ;;  %1724 = vmatmul.bf16.gmra.mxu3 %v2688_v48 }
 0x20d   : > { %v3176_v53 = vpack.c.bf16 %v1842_v52, %v1841_v51  ;;  %v1779_v6 = vmax.f32 %v1526_v58, 0.0 }
 0x20e   : > { %v1356_v55 = vpop.f32.mrf.mxu2 }
 0x20f   : > { %3280 = vst [vmem:[%s3502_s4 + $0x1a8] sm:$0xff] %v3176_v53   ;;  %v1685_v56 = vpop.f32.mrf.mxu3  ;;  %v1357_v62 = vadd.f32 %v3677_v63, %v1356_v55 }
 0x210   : > { %v1198_v57 = vpop.f32.mrf.mxu0 }
 0x211   : > { %v1199_v59 = vadd.f32 %v3677_v63, %v1198_v57  ;;  %v1527_v60 = vpop.f32.mrf.mxu1  ;;  %v1686_v12 = vadd.f32 %v1685_v56, %v1357_v62 }
 0x213   : > { %v1528_v61 = vadd.f32 %v1527_v60, %v1199_v59  ;;  %v1843_v22 = vmax.f32 %v1686_v12, 0.0 }
 0x215   : > { %v1780_v7 = vmax.f32 %v1528_v61, 0.0 }
 0x216   : > { %v1358_v10 = vpop.f32.mrf.mxu2 }
 0x217   : > { %v3021_v13 = vpack.c.bf16 %v1780_v7, %v1779_v6  ;;  %v1359_v14 = vadd.f32 %v3677_v63, %v1358_v10  ;;  %v1687_v15 = vpop.f32.mrf.mxu3 }
 0x218   : > { %v1201_v17 = vpop.f32.mrf.mxu0 }
 0x219   : > { %3249 = vst [vmem:[%s3502_s4 + $0xb0] sm:$0xff] %v3021_v13   ;;  %v1688_v20 = vadd.f32 %v1687_v15, %v1359_v14  ;;  %v1530_v21 = vpop.f32.mrf.mxu1  ;;  %v1202_v25 = vadd.f32 %v3677_v63, %v1201_v17 }
 0x21b   : > { %v1844_v23 = vmax.f32 %v1688_v20, 0.0  ;;  %1240 = vmatmul.bf16.gmra.mxu0 %v2436_v11  ;;  %1400 = vmatmul.bf16.gmra.mxu2 %v2692_v16  ;;  %v1531_v29 = vadd.f32 %v1530_v21, %v1202_v25 }
 0x21c   : > { %1569 = vmatmul.bf16.gmra.mxu1 %v2440_v18  ;;  %1729 = vmatmul.bf16.gmra.mxu3 %v2696_v19 }
 0x21d   : > { %v3181_v24 = vpack.c.bf16 %v1844_v23, %v1843_v22  ;;  %v1781_v34 = vmax.f32 %v1531_v29, 0.0 }
 0x21e   : > { %v1361_v26 = vpop.f32.mrf.mxu2 }
 0x21f   : > { %3281 = vst [vmem:[%s3502_s4 + $0x1b0] sm:$0xff] %v3181_v24   ;;  %v1690_v27 = vpop.f32.mrf.mxu3  ;;  %v1362_v32 = vadd.f32 %v3677_v63, %v1361_v26 }
 0x220   : > { %v1203_v28 = vpop.f32.mrf.mxu0 }
 0x221   : > { %v1204_v30 = vadd.f32 %v3677_v63, %v1203_v28  ;;  %v1532_v31 = vpop.f32.mrf.mxu1  ;;  %v1691_v37 = vadd.f32 %v1690_v27, %v1362_v32 }
 0x223   : > { %v1533_v33 = vadd.f32 %v1532_v31, %v1204_v30  ;;  %v1845_v44 = vmax.f32 %v1691_v37, 0.0 }
 0x225   : > { %v1782_v35 = vmax.f32 %v1533_v33, 0.0 }
 0x226   : > { %v1363_v36 = vpop.f32.mrf.mxu2 }
 0x227   : > { %v3026_v38 = vpack.c.bf16 %v1782_v35, %v1781_v34  ;;  %v1364_v39 = vadd.f32 %v3677_v63, %v1363_v36  ;;  %v1692_v40 = vpop.f32.mrf.mxu3 }
 0x228   : > { %v1206_v41 = vpop.f32.mrf.mxu0 }
 0x229   : > { %3250 = vst [vmem:[%s3502_s4 + $0xb8] sm:$0xff] %v3026_v38   ;;  %v1693_v42 = vadd.f32 %v1692_v40, %v1364_v39  ;;  %v1535_v43 = vpop.f32.mrf.mxu1  ;;  %v1207_v47 = vadd.f32 %v3677_v63, %v1206_v41 }
 0x22b   : > { %v1846_v45 = vmax.f32 %v1693_v42, 0.0  ;;  %v1536_v51 = vadd.f32 %v1535_v43, %v1207_v47 }
 0x22d   : > { %v3186_v46 = vpack.c.bf16 %v1846_v45, %v1845_v44  ;;  %v1783_v56 = vmax.f32 %v1536_v51, 0.0 }
 0x22e   : > { %v1366_v48 = vpop.f32.mrf.mxu2 }
 0x22f   : > { %3282 = vst [vmem:[%s3502_s4 + $0x1b8] sm:$0xff] %v3186_v46   ;;  %v1695_v49 = vpop.f32.mrf.mxu3  ;;  %v1367_v54 = vadd.f32 %v3677_v63, %v1366_v48 }
 0x230   : > { %v1208_v50 = vpop.f32.mrf.mxu0 }
 0x231   : > { %v1209_v52 = vadd.f32 %v3677_v63, %v1208_v50  ;;  %v1537_v53 = vpop.f32.mrf.mxu1  ;;  %v1696_v59 = vadd.f32 %v1695_v49, %v1367_v54 }
 0x233   : > { %v1538_v55 = vadd.f32 %v1537_v53, %v1209_v52  ;;  %v1847_v3 = vmax.f32 %v1696_v59, 0.0 }
 0x235   : > { %v1784_v57 = vmax.f32 %v1538_v55, 0.0 }
 0x236   : > { %v1368_v58 = vpop.f32.mrf.mxu2 }
 0x237   : > { %v3031_v60 = vpack.c.bf16 %v1784_v57, %v1783_v56  ;;  %v1369_v62 = vadd.f32 %v3677_v63, %v1368_v58  ;;  %v1697_v61 = vpop.f32.mrf.mxu3 }
 0x238   : > { %v1211_v0 = vpop.f32.mrf.mxu0 }
 0x239   : > { %3251 = vst [vmem:[%s3502_s4 + $0xc0] sm:$0xff] %v3031_v60   ;;  %v1698_v1 = vadd.f32 %v1697_v61, %v1369_v62  ;;  %v1540_v2 = vpop.f32.mrf.mxu1  ;;  %v1212_v6 = vadd.f32 %v3677_v63, %v1211_v0 }
 0x23b   : > { %v1848_v4 = vmax.f32 %v1698_v1, 0.0  ;;  %v1541_v10 = vadd.f32 %v1540_v2, %v1212_v6 }
 0x23d   : > { %v3191_v5 = vpack.c.bf16 %v1848_v4, %v1847_v3  ;;  %v1785_v15 = vmax.f32 %v1541_v10, 0.0 }
 0x23e   : > { %v1371_v7 = vpop.f32.mrf.mxu2 }
 0x23f   : > { %3283 = vst [vmem:[%s3502_s4 + $0x1c0] sm:$0xff] %v3191_v5   ;;  %v1700_v8 = vpop.f32.mrf.mxu3  ;;  %v1372_v13 = vadd.f32 %v3677_v63, %v1371_v7 }
 0x240   : > { %v1213_v9 = vpop.f32.mrf.mxu0 }
 0x241   : > { %v1214_v11 = vadd.f32 %v3677_v63, %v1213_v9  ;;  %v1542_v12 = vpop.f32.mrf.mxu1  ;;  %v1701_v18 = vadd.f32 %v1700_v8, %v1372_v13  ;;  %v3852_v9 = vld [vmem:[%s3884_s2] ss:$0 sm:$0xff] }
 0x243   : > { %v1543_v14 = vadd.f32 %v1542_v12, %v1214_v11  ;;  %v1849_v25 = vmax.f32 %v1701_v18, 0.0 }
 0x245   : > { %v1786_v16 = vmax.f32 %v1543_v14, 0.0 }
 0x246   : > { %v1373_v17 = vpop.f32.mrf.mxu2 }
 0x247   : > { %v3036_v19 = vpack.c.bf16 %v1786_v16, %v1785_v15  ;;  %v1374_v20 = vadd.f32 %v3677_v63, %v1373_v17  ;;  %v1702_v21 = vpop.f32.mrf.mxu3 }
 0x248   : > { %v1216_v22 = vpop.f32.mrf.mxu0 }
 0x249   : > { %3252 = vst [vmem:[%s3502_s4 + $0xc8] sm:$0xff] %v3036_v19   ;;  %v1703_v23 = vadd.f32 %v1702_v21, %v1374_v20  ;;  %v1545_v24 = vpop.f32.mrf.mxu1  ;;  %v1217_v28 = vadd.f32 %v3677_v63, %v1216_v22 }
 0x24b   : > { %v1850_v26 = vmax.f32 %v1703_v23, 0.0  ;;  %v1546_v32 = vadd.f32 %v1545_v24, %v1217_v28 }
 0x24d   : > { %v3196_v27 = vpack.c.bf16 %v1850_v26, %v1849_v25  ;;  %v1787_v37 = vmax.f32 %v1546_v32, 0.0 }
 0x24e   : > { %v1376_v29 = vpop.f32.mrf.mxu2 }
 0x24f   : > { %3284 = vst [vmem:[%s3502_s4 + $0x1c8] sm:$0xff] %v3196_v27   ;;  %v1705_v30 = vpop.f32.mrf.mxu3  ;;  %v1377_v35 = vadd.f32 %v3677_v63, %v1376_v29 }
 0x250   : > { %v1218_v31 = vpop.f32.mrf.mxu0 }
 0x251   : > { %v1219_v33 = vadd.f32 %v3677_v63, %v1218_v31  ;;  %v1547_v34 = vpop.f32.mrf.mxu1  ;;  %v1706_v40 = vadd.f32 %v1705_v30, %v1377_v35 }
 0x253   : > { %v1548_v36 = vadd.f32 %v1547_v34, %v1219_v33  ;;  %v1851_v47 = vmax.f32 %v1706_v40, 0.0 }
 0x255   : > { %v1788_v38 = vmax.f32 %v1548_v36, 0.0 }
 0x256   : > { %v1378_v39 = vpop.f32.mrf.mxu2 }
 0x257   : > { %v3041_v41 = vpack.c.bf16 %v1788_v38, %v1787_v37  ;;  %v1379_v42 = vadd.f32 %v3677_v63, %v1378_v39  ;;  %v1707_v43 = vpop.f32.mrf.mxu3 }
 0x258   : > { %v1221_v44 = vpop.f32.mrf.mxu0 }
 0x259   : > { %3253 = vst [vmem:[%s3502_s4 + $0xd0] sm:$0xff] %v3041_v41   ;;  %v1708_v45 = vadd.f32 %v1707_v43, %v1379_v42  ;;  %v1550_v46 = vpop.f32.mrf.mxu1  ;;  %v1222_v50 = vadd.f32 %v3677_v63, %v1221_v44 }
 0x25b   : > { %v1852_v48 = vmax.f32 %v1708_v45, 0.0  ;;  %v1551_v54 = vadd.f32 %v1550_v46, %v1222_v50 }
 0x25d   : > { %v3201_v49 = vpack.c.bf16 %v1852_v48, %v1851_v47  ;;  %v1789_v59 = vmax.f32 %v1551_v54, 0.0 }
 0x25e   : > { %v1381_v51 = vpop.f32.mrf.mxu2 }
 0x25f   : > { %3285 = vst [vmem:[%s3502_s4 + $0x1d0] sm:$0xff] %v3201_v49   ;;  %v1710_v52 = vpop.f32.mrf.mxu3  ;;  %v1382_v57 = vadd.f32 %v3677_v63, %v1381_v51 }
 0x260   : > { %v1223_v53 = vpop.f32.mrf.mxu0 }
 0x261   : > { %v1224_v55 = vadd.f32 %v3677_v63, %v1223_v53  ;;  %v1552_v56 = vpop.f32.mrf.mxu1  ;;  %v1711_v61 = vadd.f32 %v1710_v52, %v1382_v57 }
 0x263   : > { %v1553_v58 = vadd.f32 %v1552_v56, %v1224_v55  ;;  %v1853_v6 = vmax.f32 %v1711_v61, 0.0 }
 0x265   : > { %v1790_v60 = vmax.f32 %v1553_v58, 0.0 }
 0x266   : > { %v1383_v62 = vpop.f32.mrf.mxu2 }
 0x267   : > { %v3046_v0 = vpack.c.bf16 %v1790_v60, %v1789_v59  ;;  %v1384_v1 = vadd.f32 %v3677_v63, %v1383_v62  ;;  %v1712_v2 = vpop.f32.mrf.mxu3 }
 0x268   : > { %v1226_v3 = vpop.f32.mrf.mxu0 }
 0x269   : > { %3254 = vst [vmem:[%s3502_s4 + $0xd8] sm:$0xff] %v3046_v0   ;;  %v1713_v4 = vadd.f32 %v1712_v2, %v1384_v1  ;;  %v1555_v5 = vpop.f32.mrf.mxu1  ;;  %v1227_v10 = vadd.f32 %v3852_v9, %v1226_v3 }
 0x26b   : > { %v1854_v7 = vmax.f32 %v1713_v4, 0.0  ;;  %v1556_v13 = vadd.f32 %v1555_v5, %v1227_v10 }
 0x26d   : > { %v3206_v8 = vpack.c.bf16 %v1854_v7, %v1853_v6  ;;  %v1791_v18 = vmax.f32 %v1556_v13, 0.0 }
 0x26e   : > { %v1386_v11 = vpop.f32.mrf.mxu2 }
 0x26f   : > { %3286 = vst [vmem:[%s3502_s4 + $0x1d8] sm:$0xff] %v3206_v8   ;;  %v1715_v12 = vpop.f32.mrf.mxu3  ;;  %v1387_v16 = vadd.f32 %v3852_v9, %v1386_v11 }
 0x270   : > { %v1228_v63 = vpop.f32.mrf.mxu0 }
 0x271   : > { %v1229_v14 = vadd.f32 %v3852_v9, %v1228_v63  ;;  %v1557_v15 = vpop.f32.mrf.mxu1  ;;  %v1716_v21 = vadd.f32 %v1715_v12, %v1387_v16 }
 0x273   : > { %v1558_v17 = vadd.f32 %v1557_v15, %v1229_v14  ;;  %v1855_v28 = vmax.f32 %v1716_v21, 0.0 }
 0x275   : > { %v1792_v19 = vmax.f32 %v1558_v17, 0.0 }
 0x276   : > { %v1388_v20 = vpop.f32.mrf.mxu2 }
 0x277   : > { %v3051_v22 = vpack.c.bf16 %v1792_v19, %v1791_v18  ;;  %v1389_v23 = vadd.f32 %v3852_v9, %v1388_v20  ;;  %v1717_v24 = vpop.f32.mrf.mxu3 }
 0x278   : > { %v1231_v25 = vpop.f32.mrf.mxu0 }
 0x279   : > { %3255 = vst [vmem:[%s3502_s4 + $0xe0] sm:$0xff] %v3051_v22   ;;  %v1718_v26 = vadd.f32 %v1717_v24, %v1389_v23  ;;  %v1560_v27 = vpop.f32.mrf.mxu1  ;;  %v1232_v31 = vadd.f32 %v3852_v9, %v1231_v25 }
 0x27b   : > { %v1856_v29 = vmax.f32 %v1718_v26, 0.0  ;;  %v1561_v35 = vadd.f32 %v1560_v27, %v1232_v31 }
 0x27d   : > { %v3211_v30 = vpack.c.bf16 %v1856_v29, %v1855_v28  ;;  %v1793_v40 = vmax.f32 %v1561_v35, 0.0 }
 0x27e   : > { %v1391_v32 = vpop.f32.mrf.mxu2 }
 0x27f   : > { %3287 = vst [vmem:[%s3502_s4 + $0x1e0] sm:$0xff] %v3211_v30   ;;  %v1720_v33 = vpop.f32.mrf.mxu3  ;;  %v1392_v38 = vadd.f32 %v3852_v9, %v1391_v32 }
 0x280   : > { %v1233_v34 = vpop.f32.mrf.mxu0 }
 0x281   : > { %v1234_v36 = vadd.f32 %v3852_v9, %v1233_v34  ;;  %v1562_v37 = vpop.f32.mrf.mxu1  ;;  %v1721_v43 = vadd.f32 %v1720_v33, %v1392_v38 }
 0x283   : > { %v1563_v39 = vadd.f32 %v1562_v37, %v1234_v36  ;;  %v1857_v50 = vmax.f32 %v1721_v43, 0.0 }
 0x285   : > { %v1794_v41 = vmax.f32 %v1563_v39, 0.0 }
 0x286   : > { %v1393_v42 = vpop.f32.mrf.mxu2 }
 0x287   : > { %v3056_v44 = vpack.c.bf16 %v1794_v41, %v1793_v40  ;;  %v1394_v45 = vadd.f32 %v3852_v9, %v1393_v42  ;;  %v1722_v46 = vpop.f32.mrf.mxu3 }
 0x288   : > { %v1236_v47 = vpop.f32.mrf.mxu0 }
 0x289   : > { %3256 = vst [vmem:[%s3502_s4 + $0xe8] sm:$0xff] %v3056_v44   ;;  %v1723_v48 = vadd.f32 %v1722_v46, %v1394_v45  ;;  %v1565_v49 = vpop.f32.mrf.mxu1  ;;  %v1237_v53 = vadd.f32 %v3852_v9, %v1236_v47 }
 0x28b   : > { %v1858_v51 = vmax.f32 %v1723_v48, 0.0  ;;  %v1566_v57 = vadd.f32 %v1565_v49, %v1237_v53 }
 0x28d   : > { %v3216_v52 = vpack.c.bf16 %v1858_v51, %v1857_v50  ;;  %v1795_v61 = vmax.f32 %v1566_v57, 0.0 }
 0x28e   : > { %v1396_v54 = vpop.f32.mrf.mxu2 }
 0x28f   : > { %3288 = vst [vmem:[%s3502_s4 + $0x1e8] sm:$0xff] %v3216_v52   ;;  %v1725_v55 = vpop.f32.mrf.mxu3  ;;  %v1397_v60 = vadd.f32 %v3852_v9, %v1396_v54 }
 0x290   : > { %v1238_v56 = vpop.f32.mrf.mxu0 }
 0x291   : > { %v1239_v58 = vadd.f32 %v3852_v9, %v1238_v56  ;;  %v1567_v59 = vpop.f32.mrf.mxu1  ;;  %v1726_v2 = vadd.f32 %v1725_v55, %v1397_v60 }
 0x293   : > { %v1568_v62 = vadd.f32 %v1567_v59, %v1239_v58  ;;  %v1859_v10 = vmax.f32 %v1726_v2, 0.0 }
 0x295   : > { %v1796_v0 = vmax.f32 %v1568_v62, 0.0 }
 0x296   : > { %v1398_v1 = vpop.f32.mrf.mxu2 }
 0x297   : > { %v3061_v3 = vpack.c.bf16 %v1796_v0, %v1795_v61  ;;  %v1399_v4 = vadd.f32 %v3852_v9, %v1398_v1  ;;  %v1727_v5 = vpop.f32.mrf.mxu3 }
 0x298   : > { %v1241_v6 = vpop.f32.mrf.mxu0 }
 0x299   : > { %3257 = vst [vmem:[%s3502_s4 + $0xf0] sm:$0xff] %v3061_v3   ;;  %v1728_v7 = vadd.f32 %v1727_v5, %v1399_v4  ;;  %v1570_v8 = vpop.f32.mrf.mxu1  ;;  %v1242_v63 = vadd.f32 %v3852_v9, %v1241_v6 }
 0x29b   : > { %v1860_v11 = vmax.f32 %v1728_v7, 0.0  ;;  %v1571_v16 = vadd.f32 %v1570_v8, %v1242_v63 }
 0x29d   : > { %v3221_v12 = vpack.c.bf16 %v1860_v11, %v1859_v10  ;;  %v1797_v21 = vmax.f32 %v1571_v16, 0.0 }
 0x29e   : > { %v1401_v13 = vpop.f32.mrf.mxu2 }
 0x29f   : > { %3289 = vst [vmem:[%s3502_s4 + $0x1f0] sm:$0xff] %v3221_v12   ;;  %v1730_v14 = vpop.f32.mrf.mxu3  ;;  %v1402_v19 = vadd.f32 %v3852_v9, %v1401_v13 }
 0x2a0   : > { %v1243_v15 = vpop.f32.mrf.mxu0 }
 0x2a1   : > { %v1244_v17 = vadd.f32 %v3852_v9, %v1243_v15  ;;  %v1572_v18 = vpop.f32.mrf.mxu1  ;;  %v1731_v24 = vadd.f32 %v1730_v14, %v1402_v19 }
 0x2a3   : > { %v1573_v20 = vadd.f32 %v1572_v18, %v1244_v17  ;;  %v1861_v29 = vmax.f32 %v1731_v24, 0.0 }
 0x2a5   : > { %v1798_v22 = vmax.f32 %v1573_v20, 0.0 }
 0x2a6   : > { %v1403_v23 = vpop.f32.mrf.mxu2 }
 0x2a7   : > { %v3066_v25 = vpack.c.bf16 %v1798_v22, %v1797_v21  ;;  %v1404_v26 = vadd.f32 %v3852_v9, %v1403_v23  ;;  %v1732_v27 = vpop.f32.mrf.mxu3 }
 0x2a9   : > { %3258 = vst [vmem:[%s3502_s4 + $0xf8] sm:$0xff] %v3066_v25   ;;  %v1733_v28 = vadd.f32 %v1732_v27, %v1404_v26 }
 0x2ab   : > { %v1862_v30 = vmax.f32 %v1733_v28, 0.0 }
 0x2ad   : > { %v3226_v31 = vpack.c.bf16 %v1862_v30, %v1861_v29 }
 0x2af   : > { %3290 = vst [vmem:[%s3502_s4 + $0x1f8] sm:$0xff] %v3226_v31  }
 0x2b0 PF: > { %s13_s12 = sadd.s32 1, %s3324_s12  }
 0x2b1   : > { %p10_p4 = scmp.ge.s32.totalorder %s13_s12, 4  }
 0x2b3   :  { %12 = sbr.rel (!%p10_p4) target bundleno = 1 (0x1), region = 62 }

// kernel: resnet20_forward.23
= control target key start
LH: loop header
LB: loop body
LE: loop exit
PB: predicated region body
PF: predicated region fallthrough
CT: control target
= control target key end

     0   :  { %s4117_s15 = smov 0   ;;  %s4726_s0 = inlined_call_operand.vmem [shape: bf16[2048,256], index: 0, kind: input, shape index: {}]   ;;  %s4727_s1 = inlined_call_operand.vmem [shape: bf16[256,128], index: 1, kind: input, shape index: {}]   ;;  %s4728_s2 = inlined_call_operand.vmem [shape: f32[1,128], index: 2, kind: input, shape index: {}]   ;;  %s4729_s3 = inlined_call_operand.vmem [shape: bf16[2048,128], index: 3, kind: input, shape index: {}]   ;;  %s4730_s4 = inlined_call_operand.vmem [shape: bf16[2048,128], index: 4, kind: output, shape index: {}]  }
   0x1 LB: > { %s2620_s16 = sadd.s32 4294967295, %s4090_s15   ;;  %p2624_p0 = scmp.ge.s32.totalorder %s4090_s15, 1  ;;  %s4090_s15 = sphi %s4117_s15, %s14_s15  }
   0x2   : > { %p175_p1 = scmp.lt.s32.totalorder %s4090_s15, 3 }
   0x4   : > { %p176_p2 = pnand %p2624_p0, %p175_p1 }
   0x5   : > { %s2625_s29 = sshll.u32 (!%p176_p2), %s2620_s16, 7 }
   0x6   : > { %179 = sbr.rel (%p176_p2) target bundleno = 690 (0x2b2), region = 36  ;;  %p208_p3 = scmp.lt.s32.totalorder (!%p176_p2), %s2625_s29, 255 }
   0xb   : > { %v3346_v0 = vld [vmem:[%s4727_s1 + $0x38] sm:$0xff]  ;;  %v3345_v2 = vld [vmem:[%s4727_s1 + $0x30] sm:$0xff]  ;;  %v3344_v4 = vld [vmem:[%s4727_s1 + $0x28] sm:$0xff]  ;;  %s4732_s29 = smov (!%p208_p3, %s2625_s29), 255 }
   0xc   : > { %v3354_v1 = vld [vmem:[%s4727_s1 + $0x78] sm:$0xff]  ;;  %1126 = vmatpush.bf16.msra.mxu0 %v3346_v0  ;;  %4057 = vmatpush.bf16.msra.mxu2 %v3346_v0  ;;  %v3353_v3 = vld [vmem:[%s4727_s1 + $0x70] sm:$0xff]  ;;  %v3352_v5 = vld [vmem:[%s4727_s1 + $0x68] sm:$0xff]  ;;  %s3210_s17 = sshll.u32 %s4732_s29, 3  ;;  %s2629_s30 = sshll.u32 %s4732_s29, 2 }
   0xd   : > { %1455 = vmatpush.bf16.msra.mxu1 %v3354_v1  ;;  %4065 = vmatpush.bf16.msra.mxu3 %v3354_v1  ;;  %v3343_v6 = vld [vmem:[%s4727_s1 + $0x20] sm:$0xff]  ;;  %v3342_v8 = vld [vmem:[%s4727_s1 + $0x18] sm:$0xff]  ;;  %v3341_v10 = vld [vmem:[%s4727_s1 + $0x10] sm:$0xff]  ;;  %s4170_s22 = scalar_lea.vmem %s4726_s0, %s3210_s17  ;;  %s4264_s9 = scalar_lea.vmem %s4729_s3, %s2629_s30 }
   0xe   : > { %v3351_v7 = vld [vmem:[%s4727_s1 + $0x60] sm:$0xff]  ;;  %v3350_v9 = vld [vmem:[%s4727_s1 + $0x58] sm:$0xff]  ;;  %v3349_v11 = vld [vmem:[%s4727_s1 + $0x50] sm:$0xff]  ;;  %s4285_s12 = scalar_lea.vmem %s4730_s4, %s2629_s30 }
   0xf   : > { %v3340_v12 = vld [vmem:[%s4727_s1 + $0x8] sm:$0xff]  ;;  %v3339_v14 = vld [vmem:[%s4727_s1] sm:$0xff]  ;;  %v2642_v28 = vld [vmem:[%s4170_s22 + $0x10] sm:$0xf] }
  0x10   : > { %1127 = vmatpush.bf16.msra.mxu0 %v3345_v2  ;;  %4058 = vmatpush.bf16.msra.mxu2 %v3345_v2  ;;  %v3348_v13 = vld [vmem:[%s4727_s1 + $0x48] sm:$0xff]  ;;  %v3347_v15 = vld [vmem:[%s4727_s1 + $0x40] sm:$0xff]  ;;  %v3214_v29 = vld [vmem:[%s4170_s22 + $0x14] sm:$0xf0] }
  0x11   : > { %1456 = vmatpush.bf16.msra.mxu1 %v3353_v3  ;;  %4066 = vmatpush.bf16.msra.mxu3 %v3353_v3  ;;  %v2634_v16 = vld [vmem:[%s4170_s22] sm:$0xf]  ;;  %v3212_v17 = vld [vmem:[%s4170_s22 + $0x4] sm:$0xf0]  ;;  %v3211_v20 = vld [vmem:[%s4170_s22 + $0x4] sm:$0xf]  ;;  %v2643_v36 = vor.u32 %v3214_v29, %v2642_v28 }
  0x12   : > { %v2890_v18 = vld [vmem:[%s4170_s22 + $0x200] sm:$0xf]  ;;  %v3276_v19 = vld [vmem:[%s4170_s22 + $0x204] sm:$0xf0]  ;;  %v2636_v21 = vld [vmem:[%s4170_s22 + $0x8] sm:$0xf0]  ;;  %v2635_v24 = vor.u32 %v3212_v17, %v2634_v16 }
  0x13   : > { %v3275_v22 = vld [vmem:[%s4170_s22 + $0x204] sm:$0xf]  ;;  %v2892_v23 = vld [vmem:[%s4170_s22 + $0x208] sm:$0xf0]  ;;  %v2891_v25 = vor.u32 %v3276_v19, %v2890_v18  ;;  %v2639_v26 = vor.u32 %v3211_v20, %v2636_v21  ;;  %v2898_v30 = vld [vmem:[%s4170_s22 + $0x210] sm:$0xf] }
  0x14   : > { %1128 = vmatpush.bf16.msra.mxu0 %v3344_v4  ;;  %4059 = vmatpush.bf16.msra.mxu2 %v3344_v4  ;;  %v2895_v27 = vor.u32 %v3275_v22, %v2892_v23  ;;  %v3278_v31 = vld [vmem:[%s4170_s22 + $0x214] sm:$0xf0]  ;;  %v3213_v32 = vld [vmem:[%s4170_s22 + $0x14] sm:$0xf]  ;;  %v2644_v33 = vld [vmem:[%s4170_s22 + $0x18] sm:$0xf0] }
  0x15   : > { %1457 = vmatpush.bf16.msra.mxu1 %v3352_v5  ;;  %4067 = vmatpush.bf16.msra.mxu3 %v3352_v5  ;;  %v3277_v34 = vld [vmem:[%s4170_s22 + $0x214] sm:$0xf]  ;;  %v2900_v35 = vld [vmem:[%s4170_s22 + $0x218] sm:$0xf0]  ;;  %v2899_v37 = vor.u32 %v3278_v31, %v2898_v30  ;;  %v2647_v38 = vor.u32 %v3213_v32, %v2644_v33  ;;  %v2650_v40 = vld [vmem:[%s4170_s22 + $0x20] sm:$0xf] }
  0x16   : > { %v2903_v39 = vor.u32 %v3277_v34, %v2900_v35  ;;  %v3216_v41 = vld [vmem:[%s4170_s22 + $0x24] sm:$0xf0]  ;;  %v2906_v42 = vld [vmem:[%s4170_s22 + $0x220] sm:$0xf]  ;;  %v3215_v44 = vld [vmem:[%s4170_s22 + $0x24] sm:$0xf] }
  0x17   : > { %v3280_v43 = vld [vmem:[%s4170_s22 + $0x224] sm:$0xf0]  ;;  %v2652_v45 = vld [vmem:[%s4170_s22 + $0x28] sm:$0xf0]  ;;  %v3279_v46 = vld [vmem:[%s4170_s22 + $0x224] sm:$0xf]  ;;  %v2651_v48 = vor.u32 %v3216_v41, %v2650_v40 }
  0x18   : > { %1129 = vmatpush.bf16.msra.mxu0 %v3343_v6  ;;  %4060 = vmatpush.bf16.msra.mxu2 %v3343_v6  ;;  %v2908_v47 = vld [vmem:[%s4170_s22 + $0x228] sm:$0xf0]  ;;  %v2907_v49 = vor.u32 %v3280_v43, %v2906_v42  ;;  %v2655_v50 = vor.u32 %v3215_v44, %v2652_v45  ;;  %v2658_v52 = vld [vmem:[%s4170_s22 + $0x30] sm:$0xf]  ;;  %v3218_v53 = vld [vmem:[%s4170_s22 + $0x34] sm:$0xf0] }
  0x19   : > { %1458 = vmatpush.bf16.msra.mxu1 %v3351_v7  ;;  %4068 = vmatpush.bf16.msra.mxu3 %v3351_v7  ;;  %v2911_v51 = vor.u32 %v3279_v46, %v2908_v47  ;;  %v2914_v54 = vld [vmem:[%s4170_s22 + $0x230] sm:$0xf]  ;;  %v3282_v55 = vld [vmem:[%s4170_s22 + $0x234] sm:$0xf0]  ;;  %v3217_v56 = vld [vmem:[%s4170_s22 + $0x34] sm:$0xf]  ;;  %v2659_v60 = vor.u32 %v3218_v53, %v2658_v52 }
  0x1a   : > { %v2660_v57 = vld [vmem:[%s4170_s22 + $0x38] sm:$0xf0]  ;;  %v3281_v58 = vld [vmem:[%s4170_s22 + $0x234] sm:$0xf]  ;;  %v2915_v61 = vor.u32 %v3282_v55, %v2914_v54  ;;  %v2666_v0 = vld [vmem:[%s4170_s22 + $0x40] sm:$0xf] }
  0x1b   : > { %v2916_v59 = vld [vmem:[%s4170_s22 + $0x238] sm:$0xf0]  ;;  %v2663_v62 = vor.u32 %v3217_v56, %v2660_v57  ;;  %v3220_v1 = vld [vmem:[%s4170_s22 + $0x44] sm:$0xf0]  ;;  %v2922_v2 = vld [vmem:[%s4170_s22 + $0x240] sm:$0xf] }
  0x1c   : > { %1130 = vmatpush.bf16.msra.mxu0 %v3342_v8  ;;  %4061 = vmatpush.bf16.msra.mxu2 %v3342_v8  ;;  %v2919_v63 = vor.u32 %v3281_v58, %v2916_v59  ;;  %v3284_v3 = vld [vmem:[%s4170_s22 + $0x244] sm:$0xf0]  ;;  %v3219_v4 = vld [vmem:[%s4170_s22 + $0x44] sm:$0xf]  ;;  %v2668_v5 = vld [vmem:[%s4170_s22 + $0x48] sm:$0xf0]  ;;  %v2667_v8 = vor.u32 %v3220_v1, %v2666_v0 }
  0x1d   : > { %1459 = vmatpush.bf16.msra.mxu1 %v3350_v9  ;;  %4069 = vmatpush.bf16.msra.mxu3 %v3350_v9  ;;  %v3283_v6 = vld [vmem:[%s4170_s22 + $0x244] sm:$0xf]  ;;  %v2924_v7 = vld [vmem:[%s4170_s22 + $0x248] sm:$0xf0]  ;;  %v2923_v9 = vor.u32 %v3284_v3, %v2922_v2  ;;  %v3221_v16 = vld [vmem:[%s4170_s22 + $0x54] sm:$0xf] }
  0x1e   : > { %v2676_v17 = vld [vmem:[%s4170_s22 + $0x58] sm:$0xf0]  ;;  %v3285_v18 = vld [vmem:[%s4170_s22 + $0x254] sm:$0xf]  ;;  %v3223_v28 = vld [vmem:[%s4170_s22 + $0x64] sm:$0xf] }
  0x1f   : > { %v2932_v19 = vld [vmem:[%s4170_s22 + $0x258] sm:$0xf0]  ;;  %v2679_v22 = vor.u32 %v3221_v16, %v2676_v17  ;;  %v2684_v29 = vld [vmem:[%s4170_s22 + $0x68] sm:$0xf0]  ;;  %v3287_v30 = vld [vmem:[%s4170_s22 + $0x264] sm:$0xf] }
  0x20   : > { %1131 = vmatpush.bf16.msra.mxu0 %v3341_v10  ;;  %4062 = vmatpush.bf16.msra.mxu2 %v3341_v10  ;;  %v2671_v10 = vor.u32 %v3219_v4, %v2668_v5  ;;  %v2935_v23 = vor.u32 %v3285_v18, %v2932_v19  ;;  %v2940_v31 = vld [vmem:[%s4170_s22 + $0x268] sm:$0xf0]  ;;  %v2687_v34 = vor.u32 %v3223_v28, %v2684_v29  ;;  %v3225_v40 = vld [vmem:[%s4170_s22 + $0x74] sm:$0xf]  ;;  %v2692_v41 = vld [vmem:[%s4170_s22 + $0x78] sm:$0xf0] }
  0x21   : > { %1460 = vmatpush.bf16.msra.mxu1 %v3349_v11  ;;  %4070 = vmatpush.bf16.msra.mxu3 %v3349_v11  ;;  %v2927_v11 = vor.u32 %v3283_v6, %v2924_v7  ;;  %v2943_v35 = vor.u32 %v3287_v30, %v2940_v31  ;;  %v3289_v42 = vld [vmem:[%s4170_s22 + $0x274] sm:$0xf]  ;;  %v2948_v43 = vld [vmem:[%s4170_s22 + $0x278] sm:$0xf0]  ;;  %v2695_v46 = vor.u32 %v3225_v40, %v2692_v41  ;;  %v3227_v52 = vld [vmem:[%s4170_s22 + $0x84] sm:$0xf] }
  0x22   : > { %v2951_v47 = vor.u32 %v3289_v42, %v2948_v43  ;;  %v2700_v53 = vld [vmem:[%s4170_s22 + $0x88] sm:$0xf0]  ;;  %v3291_v54 = vld [vmem:[%s4170_s22 + $0x284] sm:$0xf]  ;;  %v4257_v56 = vld [vmem:[%s4728_s2] ss:$0 sm:$0xff] }
  0x23   : > { %v2956_v55 = vld [vmem:[%s4170_s22 + $0x288] sm:$0xf0]  ;;  %v3356_v0 = vld [vmem:[%s4264_s9] sm:$0xff]   ;;  %v3294_v16 = vld [vmem:[%s4170_s22 + $0x294] sm:$0xf0] }
  0x24   : > { %1132 = vmatpush.bf16.msra.mxu0 %v3340_v12  ;;  %4063 = vmatpush.bf16.msra.mxu2 %v3340_v12  ;;  %v2674_v12 = vld [vmem:[%s4170_s22 + $0x50] sm:$0xf]  ;;  %v3357_v3 = vunpack.c.l.bf16 %v3356_v0  ;;  %v3229_v17 = vld [vmem:[%s4170_s22 + $0x94] sm:$0xf]  ;;  %v3931_v41 = vld [vmem:[%s4264_s9 + $0x8] sm:$0xff]  }
  0x25   : > { %1461 = vmatpush.bf16.msra.mxu1 %v3348_v13  ;;  %4071 = vmatpush.bf16.msra.mxu3 %v3348_v13  ;;  %v3222_v13 = vld [vmem:[%s4170_s22 + $0x54] sm:$0xf0] }
  0x26   : > { %v2675_v20 = vor.u32 %v3222_v13, %v2674_v12  ;;  %v2706_v13 = vld [vmem:[%s4170_s22 + $0x90] sm:$0xf] }
  0x28   : > { %1133 = vmatpush.bf16.msra.mxu0 %v3339_v14  ;;  %4064 = vmatpush.bf16.msra.mxu2 %v3339_v14  ;;  %v2930_v14 = vld [vmem:[%s4170_s22 + $0x250] sm:$0xf] }
  0x29   : > { %1462 = vmatpush.bf16.msra.mxu1 %v3347_v15  ;;  %4072 = vmatpush.bf16.msra.mxu3 %v3347_v15  ;;  %v3286_v15 = vld [vmem:[%s4170_s22 + $0x254] sm:$0xf0] }
  0x2a   : > { %v2931_v21 = vor.u32 %v3286_v15, %v2930_v14  ;;  %v3230_v14 = vld [vmem:[%s4170_s22 + $0x94] sm:$0xf0]  ;;  %v2962_v15 = vld [vmem:[%s4170_s22 + $0x290] sm:$0xf] }
  0x2b   : > { %1134 = vmatmul.bf16.vlgmr.msra.gmra.mxu0 %v2635_v24  ;;  %1294 = vmatmul.bf16.vlgmr.msra.gmra.mxu2 %v2891_v25  ;;  %v2682_v24 = vld [vmem:[%s4170_s22 + $0x60] sm:$0xf]  ;;  %v3224_v25 = vld [vmem:[%s4170_s22 + $0x64] sm:$0xf0]  ;;  %v2963_v31 = vor.u32 %v3294_v16, %v2962_v15 }
  0x2c   : > { %1463 = vmatmul.bf16.vlgmr.msra.gmra.mxu1 %v2639_v26  ;;  %1623 = vmatmul.bf16.vlgmr.msra.gmra.mxu3 %v2895_v27  ;;  %v2938_v26 = vld [vmem:[%s4170_s22 + $0x260] sm:$0xf]  ;;  %v3288_v27 = vld [vmem:[%s4170_s22 + $0x264] sm:$0xf0]  ;;  %v2683_v32 = vor.u32 %v3224_v25, %v2682_v24 }
  0x2d   : > { %v2939_v33 = vor.u32 %v3288_v27, %v2938_v26  ;;  %v2707_v26 = vor.u32 %v3230_v14, %v2706_v13 }
  0x3b   : > { %1139 = vmatmul.bf16.gmra.mxu0 %v2643_v36  ;;  %1299 = vmatmul.bf16.gmra.mxu2 %v2899_v37  ;;  %v2690_v36 = vld [vmem:[%s4170_s22 + $0x70] sm:$0xf]  ;;  %v3226_v37 = vld [vmem:[%s4170_s22 + $0x74] sm:$0xf0] }
  0x3c   : > { %1468 = vmatmul.bf16.gmra.mxu1 %v2647_v38  ;;  %1628 = vmatmul.bf16.gmra.mxu3 %v2903_v39  ;;  %v2946_v38 = vld [vmem:[%s4170_s22 + $0x270] sm:$0xf]  ;;  %v3290_v39 = vld [vmem:[%s4170_s22 + $0x274] sm:$0xf0]  ;;  %v2691_v44 = vor.u32 %v3226_v37, %v2690_v36 }
  0x3d   : > { %v2947_v45 = vor.u32 %v3290_v39, %v2946_v38 }
  0x4b   : > { %1144 = vmatmul.bf16.gmra.mxu0 %v2651_v48  ;;  %1304 = vmatmul.bf16.gmra.mxu2 %v2907_v49  ;;  %v2698_v48 = vld [vmem:[%s4170_s22 + $0x80] sm:$0xf]  ;;  %v3228_v49 = vld [vmem:[%s4170_s22 + $0x84] sm:$0xf0] }
  0x4c   : > { %1473 = vmatmul.bf16.gmra.mxu1 %v2655_v50  ;;  %1633 = vmatmul.bf16.gmra.mxu3 %v2911_v51  ;;  %v2954_v50 = vld [vmem:[%s4170_s22 + $0x280] sm:$0xf]  ;;  %v3292_v51 = vld [vmem:[%s4170_s22 + $0x284] sm:$0xf0]  ;;  %v2699_v57 = vor.u32 %v3228_v49, %v2698_v48 }
  0x4d   : > { %v2955_v58 = vor.u32 %v3292_v51, %v2954_v50 }
  0x5b   : > { %1149 = vmatmul.bf16.gmra.mxu0 %v2659_v60  ;;  %1309 = vmatmul.bf16.gmra.mxu2 %v2915_v61  ;;  %v2703_v60 = vor.u32 %v3227_v52, %v2700_v53  ;;  %v2959_v61 = vor.u32 %v3291_v54, %v2956_v55  ;;  %v3362_v53 = vunpack.c.h.bf16 %v3931_v41  ;;  %v3963_v54 = vld [vmem:[%s4264_s9 + $0x108] sm:$0xff]  }
  0x5c   : > { %1478 = vmatmul.bf16.gmra.mxu1 %v2663_v62  ;;  %1638 = vmatmul.bf16.gmra.mxu3 %v2919_v63 }
  0x6b   : > { %1154 = vmatmul.bf16.gmra.mxu0 %v2667_v8  ;;  %1314 = vmatmul.bf16.gmra.mxu2 %v2923_v9  ;;  %v3358_v9 = vunpack.c.h.bf16 %v3356_v0  ;;  %v3489_v0 = vunpack.c.l.bf16 %v3963_v54 }
  0x6c   : > { %1483 = vmatmul.bf16.gmra.mxu1 %v2671_v10  ;;  %1643 = vmatmul.bf16.gmra.mxu3 %v2927_v11  ;;  %v3962_v10 = vld [vmem:[%s4264_s9 + $0x100] sm:$0xff]  }
  0x6d   : > { %v3485_v19 = vunpack.c.l.bf16 %v3962_v10  ;;  %v3486_v25 = vunpack.c.h.bf16 %v3962_v10 }
  0x7b   : > { %1159 = vmatmul.bf16.gmra.mxu0 %v2675_v20  ;;  %1319 = vmatmul.bf16.gmra.mxu2 %v2931_v21  ;;  %v2708_v21 = vld [vmem:[%s4170_s22 + $0x98] sm:$0xf0] }
  0x7c   : > { %1488 = vmatmul.bf16.gmra.mxu1 %v2679_v22  ;;  %1648 = vmatmul.bf16.gmra.mxu3 %v2935_v23  ;;  %v3293_v22 = vld [vmem:[%s4170_s22 + $0x294] sm:$0xf]  ;;  %v2964_v23 = vld [vmem:[%s4170_s22 + $0x298] sm:$0xf0] }
  0x8b   : > { %1164 = vmatmul.bf16.gmra.mxu0 %v2683_v32  ;;  %1324 = vmatmul.bf16.gmra.mxu2 %v2939_v33  ;;  %v2711_v33 = vor.u32 %v3229_v17, %v2708_v21 }
  0x8c   : > { %1493 = vmatmul.bf16.gmra.mxu1 %v2687_v34  ;;  %1653 = vmatmul.bf16.gmra.mxu3 %v2943_v35  ;;  %v2967_v34 = vor.u32 %v3293_v22, %v2964_v23  ;;  %v3932_v22 = vld [vmem:[%s4264_s9 + $0x10] sm:$0xff]  }
  0x9b   : > { %1169 = vmatmul.bf16.gmra.mxu0 %v2691_v44  ;;  %1329 = vmatmul.bf16.gmra.mxu2 %v2947_v45 }
  0x9c   : > { %1498 = vmatmul.bf16.gmra.mxu1 %v2695_v46  ;;  %1658 = vmatmul.bf16.gmra.mxu3 %v2951_v47  ;;  %v3361_v47 = vunpack.c.l.bf16 %v3931_v41  ;;  %v3298_v41 = vld [vmem:[%s4170_s22 + $0x2b4] sm:$0xf0] }
  0xa8   : > { %v1135_v59 = vpop.f32.mrf.mxu0 }
  0xa9   : > { %v1464_v62 = vpop.f32.mrf.mxu1  ;;  %v1136_v63 = vadd.f32 %v4257_v56, %v1135_v59  ;;  %v3232_v59 = vld [vmem:[%s4170_s22 + $0xa4] sm:$0xf0] }
  0xab   : > { %1174 = vmatmul.bf16.gmra.mxu0 %v2699_v57  ;;  %1334 = vmatmul.bf16.gmra.mxu2 %v2955_v58  ;;  %v1465_v2 = vadd.f32 %v1464_v62, %v1136_v63  ;;  %v2714_v58 = vld [vmem:[%s4170_s22 + $0xa0] sm:$0xf]  ;;  %v3231_v62 = vld [vmem:[%s4170_s22 + $0xa4] sm:$0xf] }
  0xac   : > { %1503 = vmatmul.bf16.gmra.mxu1 %v2703_v60  ;;  %1663 = vmatmul.bf16.gmra.mxu3 %v2959_v61  ;;  %v2970_v60 = vld [vmem:[%s4170_s22 + $0x2a0] sm:$0xf]  ;;  %v3296_v61 = vld [vmem:[%s4170_s22 + $0x2a4] sm:$0xf0] }
  0xad   : > { %v2040_v11 = vadd.f32 %v3357_v3, %v1465_v2  ;;  %v2716_v2 = vld [vmem:[%s4170_s22 + $0xa8] sm:$0xf0]  ;;  %v3295_v3 = vld [vmem:[%s4170_s22 + $0x2a4] sm:$0xf] }
  0xae   : > { %v1295_v1 = vpop.f32.mrf.mxu2  ;;  %v2719_v14 = vor.u32 %v3231_v62, %v2716_v2 }
  0xaf   : > { %v1624_v4 = vpop.f32.mrf.mxu3  ;;  %v1296_v6 = vadd.f32 %v4257_v56, %v1295_v1  ;;  %v2168_v27 = vmax.f32 %v2040_v11, 0.0 }
  0xb0   : > { %v1137_v5 = vpop.f32.mrf.mxu0 }
  0xb1   : > { %v1138_v7 = vadd.f32 %v4257_v56, %v1137_v5  ;;  %v1466_v8 = vpop.f32.mrf.mxu1  ;;  %v1625_v18 = vadd.f32 %v1624_v4, %v1296_v6  ;;  %v2972_v4 = vld [vmem:[%s4170_s22 + $0x2a8] sm:$0xf0]  ;;  %v3490_v6 = vunpack.c.h.bf16 %v3963_v54 }
  0xb2   : > { %v2975_v15 = vor.u32 %v3295_v3, %v2972_v4  ;;  %v3933_v3 = vld [vmem:[%s4264_s9 + $0x18] sm:$0xff]  }
  0xb3   : > { %v1467_v12 = vadd.f32 %v1466_v8, %v1138_v7  ;;  %v2104_v35 = vadd.f32 %v3485_v19, %v1625_v18  ;;  %v2715_v7 = vor.u32 %v3232_v59, %v2714_v58 }
  0xb5   : > { %v2041_v20 = vadd.f32 %v3358_v9, %v1467_v12  ;;  %v2232_v42 = vmax.f32 %v2104_v35, 0.0  ;;  %v2971_v12 = vor.u32 %v3296_v61, %v2970_v60  ;;  %v3964_v35 = vld [vmem:[%s4264_s9 + $0x110] sm:$0xff]  }
  0xb6   : > { %v1297_v24 = vpop.f32.mrf.mxu2 }
  0xb7   : > { %v2169_v28 = vmax.f32 %v2041_v20, 0.0  ;;  %v1298_v29 = vadd.f32 %v4257_v56, %v1297_v24  ;;  %v1626_v30 = vpop.f32.mrf.mxu3 }
  0xb8   : > { %v1140_v32 = vpop.f32.mrf.mxu0 }
  0xb9   : > { %v3614_v36 = vpack.c.bf16 %v2169_v28, %v2168_v27  ;;  %v1627_v37 = vadd.f32 %v1626_v30, %v1298_v29  ;;  %v1469_v38 = vpop.f32.mrf.mxu1  ;;  %v1141_v40 = vadd.f32 %v4257_v56, %v1140_v32  ;;  %v3365_v28 = vunpack.c.l.bf16 %v3932_v22 }
  0xbb   : > { %3615 = vst [vmem:[%s4285_s12] sm:$0xff] %v3614_v36   ;;  %v2105_v39 = vadd.f32 %v3486_v25, %v1627_v37  ;;  %1179 = vmatmul.bf16.gmra.mxu0 %v2707_v26  ;;  %1339 = vmatmul.bf16.gmra.mxu2 %v2963_v31  ;;  %v1470_v46 = vadd.f32 %v1469_v38, %v1141_v40  ;;  %v2722_v38 = vld [vmem:[%s4170_s22 + $0xb0] sm:$0xf] }
  0xbc   : > { %1508 = vmatmul.bf16.gmra.mxu1 %v2711_v33  ;;  %1668 = vmatmul.bf16.gmra.mxu3 %v2967_v34  ;;  %v3366_v34 = vunpack.c.h.bf16 %v3932_v22  ;;  %v2978_v40 = vld [vmem:[%s4170_s22 + $0x2b0] sm:$0xf]  ;;  %v3300_v22 = vld [vmem:[%s4170_s22 + $0x2c4] sm:$0xf0] }
  0xbd   : > { %v2233_v43 = vmax.f32 %v2105_v39, 0.0  ;;  %v2042_v55 = vadd.f32 %v3361_v47, %v1470_v46  ;;  %v3234_v39 = vld [vmem:[%s4170_s22 + $0xb4] sm:$0xf0]  ;;  %v2724_v46 = vld [vmem:[%s4170_s22 + $0xb8] sm:$0xf0] }
  0xbe   : > { %v1300_v44 = vpop.f32.mrf.mxu2  ;;  %v3297_v47 = vld [vmem:[%s4170_s22 + $0x2b4] sm:$0xf] }
  0xbf   : > { %v3774_v45 = vpack.c.bf16 %v2233_v43, %v2232_v42  ;;  %v1629_v48 = vpop.f32.mrf.mxu3  ;;  %v1301_v50 = vadd.f32 %v4257_v56, %v1300_v44  ;;  %v2170_v8 = vmax.f32 %v2042_v55, 0.0  ;;  %v3233_v42 = vld [vmem:[%s4170_s22 + $0xb4] sm:$0xf]  ;;  %v3493_v44 = vunpack.c.l.bf16 %v3964_v35 }
  0xc0   : > { %v1142_v49 = vpop.f32.mrf.mxu0  ;;  %v2727_v59 = vor.u32 %v3233_v42, %v2724_v46 }
  0xc1   : > { %4025 = vst [vmem:[%s4285_s12 + $0x100] sm:$0xff] %v3774_v45   ;;  %v1143_v51 = vadd.f32 %v4257_v56, %v1142_v49  ;;  %v1471_v52 = vpop.f32.mrf.mxu1  ;;  %v1630_v63 = vadd.f32 %v1629_v48, %v1301_v50  ;;  %v2980_v48 = vld [vmem:[%s4170_s22 + $0x2b8] sm:$0xf0]  ;;  %v3494_v50 = vunpack.c.h.bf16 %v3964_v35 }
  0xc2   : > { %v2983_v60 = vor.u32 %v3297_v47, %v2980_v48  ;;  %v3934_v47 = vld [vmem:[%s4264_s9 + $0x20] sm:$0xff]  }
  0xc3   : > { %v1472_v57 = vadd.f32 %v1471_v52, %v1143_v51  ;;  %v2106_v16 = vadd.f32 %v3489_v0, %v1630_v63  ;;  %v2723_v51 = vor.u32 %v3234_v39, %v2722_v38 }
  0xc5   : > { %v2043_v1 = vadd.f32 %v3362_v53, %v1472_v57  ;;  %v2234_v23 = vmax.f32 %v2106_v16, 0.0  ;;  %v2979_v57 = vor.u32 %v3298_v41, %v2978_v40  ;;  %v3965_v16 = vld [vmem:[%s4264_s9 + $0x118] sm:$0xff]  }
  0xc6   : > { %v1302_v5 = vpop.f32.mrf.mxu2 }
  0xc7   : > { %v2171_v9 = vmax.f32 %v2043_v1, 0.0  ;;  %v1303_v10 = vadd.f32 %v4257_v56, %v1302_v5  ;;  %v1631_v11 = vpop.f32.mrf.mxu3 }
  0xc8   : > { %v1145_v13 = vpop.f32.mrf.mxu0 }
  0xc9   : > { %v3619_v17 = vpack.c.bf16 %v2171_v9, %v2170_v8  ;;  %v1632_v18 = vadd.f32 %v1631_v11, %v1303_v10  ;;  %v1474_v19 = vpop.f32.mrf.mxu1  ;;  %v1146_v21 = vadd.f32 %v4257_v56, %v1145_v13  ;;  %v3369_v9 = vunpack.c.l.bf16 %v3933_v3 }
  0xcb   : > { %3994 = vst [vmem:[%s4285_s12 + $0x8] sm:$0xff] %v3619_v17   ;;  %v2107_v20 = vadd.f32 %v3490_v6, %v1632_v18  ;;  %1184 = vmatmul.bf16.gmra.mxu0 %v2715_v7  ;;  %1344 = vmatmul.bf16.gmra.mxu2 %v2971_v12  ;;  %v1475_v27 = vadd.f32 %v1474_v19, %v1146_v21  ;;  %v2730_v19 = vld [vmem:[%s4170_s22 + $0xc0] sm:$0xf] }
  0xcc   : > { %1513 = vmatmul.bf16.gmra.mxu1 %v2719_v14  ;;  %1673 = vmatmul.bf16.gmra.mxu3 %v2975_v15  ;;  %v3370_v15 = vunpack.c.h.bf16 %v3933_v3  ;;  %v2986_v21 = vld [vmem:[%s4170_s22 + $0x2c0] sm:$0xf]  ;;  %v3302_v3 = vld [vmem:[%s4170_s22 + $0x2d4] sm:$0xf0] }
  0xcd   : > { %v2235_v24 = vmax.f32 %v2107_v20, 0.0  ;;  %v2044_v36 = vadd.f32 %v3365_v28, %v1475_v27  ;;  %v3236_v20 = vld [vmem:[%s4170_s22 + $0xc4] sm:$0xf0]  ;;  %v2732_v27 = vld [vmem:[%s4170_s22 + $0xc8] sm:$0xf0] }
  0xce   : > { %v1305_v25 = vpop.f32.mrf.mxu2  ;;  %v3299_v28 = vld [vmem:[%s4170_s22 + $0x2c4] sm:$0xf] }
  0xcf   : > { %v3779_v26 = vpack.c.bf16 %v2235_v24, %v2234_v23  ;;  %v1634_v29 = vpop.f32.mrf.mxu3  ;;  %v1306_v31 = vadd.f32 %v4257_v56, %v1305_v25  ;;  %v2172_v52 = vmax.f32 %v2044_v36, 0.0  ;;  %v3235_v23 = vld [vmem:[%s4170_s22 + $0xc4] sm:$0xf]  ;;  %v3497_v25 = vunpack.c.l.bf16 %v3965_v16 }
  0xd0   : > { %v1147_v30 = vpop.f32.mrf.mxu0  ;;  %v2735_v39 = vor.u32 %v3235_v23, %v2732_v27 }
  0xd1   : > { %4026 = vst [vmem:[%s4285_s12 + $0x108] sm:$0xff] %v3779_v26   ;;  %v1148_v32 = vadd.f32 %v4257_v56, %v1147_v30  ;;  %v1476_v33 = vpop.f32.mrf.mxu1  ;;  %v1635_v43 = vadd.f32 %v1634_v29, %v1306_v31  ;;  %v2988_v29 = vld [vmem:[%s4170_s22 + $0x2c8] sm:$0xf0]  ;;  %v3498_v31 = vunpack.c.h.bf16 %v3965_v16 }
  0xd2   : > { %v2991_v40 = vor.u32 %v3299_v28, %v2988_v29  ;;  %v3935_v28 = vld [vmem:[%s4264_s9 + $0x28] sm:$0xff]  }
  0xd3   : > { %v1477_v37 = vadd.f32 %v1476_v33, %v1148_v32  ;;  %v2108_v61 = vadd.f32 %v3493_v44, %v1635_v43  ;;  %v2731_v32 = vor.u32 %v3236_v20, %v2730_v19 }
  0xd5   : > { %v2045_v45 = vadd.f32 %v3366_v34, %v1477_v37  ;;  %v2236_v4 = vmax.f32 %v2108_v61, 0.0  ;;  %v2987_v37 = vor.u32 %v3300_v22, %v2986_v21  ;;  %v3966_v61 = vld [vmem:[%s4264_s9 + $0x120] sm:$0xff]  }
  0xd6   : > { %v1307_v49 = vpop.f32.mrf.mxu2 }
  0xd7   : > { %v2173_v53 = vmax.f32 %v2045_v45, 0.0  ;;  %v1308_v54 = vadd.f32 %v4257_v56, %v1307_v49  ;;  %v1636_v55 = vpop.f32.mrf.mxu3 }
  0xd8   : > { %v1150_v58 = vpop.f32.mrf.mxu0 }
  0xd9   : > { %v3624_v62 = vpack.c.bf16 %v2173_v53, %v2172_v52  ;;  %v1637_v63 = vadd.f32 %v1636_v55, %v1308_v54  ;;  %v1479_v0 = vpop.f32.mrf.mxu1  ;;  %v1151_v2 = vadd.f32 %v4257_v56, %v1150_v58  ;;  %v3373_v53 = vunpack.c.l.bf16 %v3934_v47 }
  0xdb   : > { %3995 = vst [vmem:[%s4285_s12 + $0x10] sm:$0xff] %v3624_v62   ;;  %v2109_v1 = vadd.f32 %v3494_v50, %v1637_v63  ;;  %1189 = vmatmul.bf16.gmra.mxu0 %v2723_v51  ;;  %1349 = vmatmul.bf16.gmra.mxu2 %v2979_v57  ;;  %v1480_v8 = vadd.f32 %v1479_v0, %v1151_v2  ;;  %v2738_v0 = vld [vmem:[%s4170_s22 + $0xd0] sm:$0xf] }
  0xdc   : > { %1518 = vmatmul.bf16.gmra.mxu1 %v2727_v59  ;;  %1678 = vmatmul.bf16.gmra.mxu3 %v2983_v60  ;;  %v3374_v60 = vunpack.c.h.bf16 %v3934_v47  ;;  %v2994_v2 = vld [vmem:[%s4170_s22 + $0x2d0] sm:$0xf]  ;;  %v3304_v47 = vld [vmem:[%s4170_s22 + $0x2e4] sm:$0xf0] }
  0xdd   : > { %v2237_v5 = vmax.f32 %v2109_v1, 0.0  ;;  %v2046_v17 = vadd.f32 %v3369_v9, %v1480_v8  ;;  %v3238_v1 = vld [vmem:[%s4170_s22 + $0xd4] sm:$0xf0]  ;;  %v2740_v8 = vld [vmem:[%s4170_s22 + $0xd8] sm:$0xf0] }
  0xde   : > { %v1310_v6 = vpop.f32.mrf.mxu2  ;;  %v3301_v9 = vld [vmem:[%s4170_s22 + $0x2d4] sm:$0xf] }
  0xdf   : > { %v3784_v7 = vpack.c.bf16 %v2237_v5, %v2236_v4  ;;  %v1639_v10 = vpop.f32.mrf.mxu3  ;;  %v1311_v12 = vadd.f32 %v4257_v56, %v1310_v6  ;;  %v2174_v33 = vmax.f32 %v2046_v17, 0.0  ;;  %v3237_v4 = vld [vmem:[%s4170_s22 + $0xd4] sm:$0xf]  ;;  %v3501_v6 = vunpack.c.l.bf16 %v3966_v61 }
  0xe0   : > { %v1152_v11 = vpop.f32.mrf.mxu0  ;;  %v2743_v20 = vor.u32 %v3237_v4, %v2740_v8 }
  0xe1   : > { %4027 = vst [vmem:[%s4285_s12 + $0x110] sm:$0xff] %v3784_v7   ;;  %v1153_v13 = vadd.f32 %v4257_v56, %v1152_v11  ;;  %v1481_v14 = vpop.f32.mrf.mxu1  ;;  %v1640_v24 = vadd.f32 %v1639_v10, %v1311_v12  ;;  %v2996_v10 = vld [vmem:[%s4170_s22 + $0x2d8] sm:$0xf0]  ;;  %v3502_v12 = vunpack.c.h.bf16 %v3966_v61 }
  0xe2   : > { %v2999_v21 = vor.u32 %v3301_v9, %v2996_v10  ;;  %v3936_v9 = vld [vmem:[%s4264_s9 + $0x30] sm:$0xff]  }
  0xe3   : > { %v1482_v18 = vadd.f32 %v1481_v14, %v1153_v13  ;;  %v2110_v41 = vadd.f32 %v3497_v25, %v1640_v24  ;;  %v2739_v13 = vor.u32 %v3238_v1, %v2738_v0 }
  0xe5   : > { %v2047_v26 = vadd.f32 %v3370_v15, %v1482_v18  ;;  %v2238_v48 = vmax.f32 %v2110_v41, 0.0  ;;  %v2995_v18 = vor.u32 %v3302_v3, %v2994_v2  ;;  %v3967_v41 = vld [vmem:[%s4264_s9 + $0x128] sm:$0xff]  }
  0xe6   : > { %v1312_v30 = vpop.f32.mrf.mxu2 }
  0xe7   : > { %v2175_v34 = vmax.f32 %v2047_v26, 0.0  ;;  %v1313_v35 = vadd.f32 %v4257_v56, %v1312_v30  ;;  %v1641_v36 = vpop.f32.mrf.mxu3 }
  0xe8   : > { %v1155_v38 = vpop.f32.mrf.mxu0 }
  0xe9   : > { %v3629_v42 = vpack.c.bf16 %v2175_v34, %v2174_v33  ;;  %v1642_v43 = vadd.f32 %v1641_v36, %v1313_v35  ;;  %v1484_v44 = vpop.f32.mrf.mxu1  ;;  %v1156_v46 = vadd.f32 %v4257_v56, %v1155_v38  ;;  %v3377_v34 = vunpack.c.l.bf16 %v3935_v28 }
  0xeb   : > { %3996 = vst [vmem:[%s4285_s12 + $0x18] sm:$0xff] %v3629_v42   ;;  %v2111_v45 = vadd.f32 %v3498_v31, %v1642_v43  ;;  %1194 = vmatmul.bf16.gmra.mxu0 %v2731_v32  ;;  %1354 = vmatmul.bf16.gmra.mxu2 %v2987_v37  ;;  %v1485_v52 = vadd.f32 %v1484_v44, %v1156_v46  ;;  %v2746_v44 = vld [vmem:[%s4170_s22 + $0xe0] sm:$0xf] }
  0xec   : > { %1523 = vmatmul.bf16.gmra.mxu1 %v2735_v39  ;;  %1683 = vmatmul.bf16.gmra.mxu3 %v2991_v40  ;;  %v3378_v40 = vunpack.c.h.bf16 %v3935_v28  ;;  %v3002_v46 = vld [vmem:[%s4170_s22 + $0x2e0] sm:$0xf]  ;;  %v3306_v28 = vld [vmem:[%s4170_s22 + $0x2f4] sm:$0xf0] }
  0xed   : > { %v2239_v49 = vmax.f32 %v2111_v45, 0.0  ;;  %v2048_v62 = vadd.f32 %v3373_v53, %v1485_v52  ;;  %v3240_v45 = vld [vmem:[%s4170_s22 + $0xe4] sm:$0xf0]  ;;  %v2748_v52 = vld [vmem:[%s4170_s22 + $0xe8] sm:$0xf0] }
  0xee   : > { %v1315_v50 = vpop.f32.mrf.mxu2  ;;  %v3303_v53 = vld [vmem:[%s4170_s22 + $0x2e4] sm:$0xf] }
  0xef   : > { %v3789_v51 = vpack.c.bf16 %v2239_v49, %v2238_v48  ;;  %v1644_v54 = vpop.f32.mrf.mxu3  ;;  %v1316_v57 = vadd.f32 %v4257_v56, %v1315_v50  ;;  %v2176_v14 = vmax.f32 %v2048_v62, 0.0  ;;  %v3239_v48 = vld [vmem:[%s4170_s22 + $0xe4] sm:$0xf]  ;;  %v3505_v50 = vunpack.c.l.bf16 %v3967_v41 }
  0xf0   : > { %v1157_v55 = vpop.f32.mrf.mxu0  ;;  %v2751_v1 = vor.u32 %v3239_v48, %v2748_v52 }
  0xf1   : > { %4028 = vst [vmem:[%s4285_s12 + $0x118] sm:$0xff] %v3789_v51   ;;  %v1158_v58 = vadd.f32 %v4257_v56, %v1157_v55  ;;  %v1486_v59 = vpop.f32.mrf.mxu1  ;;  %v1645_v5 = vadd.f32 %v1644_v54, %v1316_v57  ;;  %v3004_v54 = vld [vmem:[%s4170_s22 + $0x2e8] sm:$0xf0]  ;;  %v3506_v57 = vunpack.c.h.bf16 %v3967_v41 }
  0xf2   : > { %v3007_v2 = vor.u32 %v3303_v53, %v3004_v54  ;;  %v3937_v53 = vld [vmem:[%s4264_s9 + $0x38] sm:$0xff]  }
  0xf3   : > { %v1487_v63 = vadd.f32 %v1486_v59, %v1158_v58  ;;  %v2112_v22 = vadd.f32 %v3501_v6, %v1645_v5  ;;  %v2747_v58 = vor.u32 %v3240_v45, %v2746_v44 }
  0xf5   : > { %v2049_v7 = vadd.f32 %v3374_v60, %v1487_v63  ;;  %v2240_v29 = vmax.f32 %v2112_v22, 0.0  ;;  %v3003_v63 = vor.u32 %v3304_v47, %v3002_v46  ;;  %v3968_v22 = vld [vmem:[%s4264_s9 + $0x130] sm:$0xff]  }
  0xf6   : > { %v1317_v11 = vpop.f32.mrf.mxu2 }
  0xf7   : > { %v2177_v15 = vmax.f32 %v2049_v7, 0.0  ;;  %v1318_v16 = vadd.f32 %v4257_v56, %v1317_v11  ;;  %v1646_v17 = vpop.f32.mrf.mxu3 }
  0xf8   : > { %v1160_v19 = vpop.f32.mrf.mxu0 }
  0xf9   : > { %v3634_v23 = vpack.c.bf16 %v2177_v15, %v2176_v14  ;;  %v1647_v24 = vadd.f32 %v1646_v17, %v1318_v16  ;;  %v1489_v25 = vpop.f32.mrf.mxu1  ;;  %v1161_v27 = vadd.f32 %v4257_v56, %v1160_v19  ;;  %v3381_v15 = vunpack.c.l.bf16 %v3936_v9 }
  0xfb   : > { %3997 = vst [vmem:[%s4285_s12 + $0x20] sm:$0xff] %v3634_v23   ;;  %v2113_v26 = vadd.f32 %v3502_v12, %v1647_v24  ;;  %1199 = vmatmul.bf16.gmra.mxu0 %v2739_v13  ;;  %1359 = vmatmul.bf16.gmra.mxu2 %v2995_v18  ;;  %v1490_v33 = vadd.f32 %v1489_v25, %v1161_v27  ;;  %v2754_v25 = vld [vmem:[%s4170_s22 + $0xf0] sm:$0xf] }
  0xfc   : > { %1528 = vmatmul.bf16.gmra.mxu1 %v2743_v20  ;;  %1688 = vmatmul.bf16.gmra.mxu3 %v2999_v21  ;;  %v3382_v21 = vunpack.c.h.bf16 %v3936_v9  ;;  %v3010_v27 = vld [vmem:[%s4170_s22 + $0x2f0] sm:$0xf]  ;;  %v3308_v9 = vld [vmem:[%s4170_s22 + $0x304] sm:$0xf0] }
  0xfd   : > { %v2241_v30 = vmax.f32 %v2113_v26, 0.0  ;;  %v2050_v42 = vadd.f32 %v3377_v34, %v1490_v33  ;;  %v3242_v26 = vld [vmem:[%s4170_s22 + $0xf4] sm:$0xf0]  ;;  %v2756_v33 = vld [vmem:[%s4170_s22 + $0xf8] sm:$0xf0] }
  0xfe   : > { %v1320_v31 = vpop.f32.mrf.mxu2  ;;  %v3305_v34 = vld [vmem:[%s4170_s22 + $0x2f4] sm:$0xf] }
  0xff   : > { %v3794_v32 = vpack.c.bf16 %v2241_v30, %v2240_v29  ;;  %v1649_v35 = vpop.f32.mrf.mxu3  ;;  %v1321_v37 = vadd.f32 %v4257_v56, %v1320_v31  ;;  %v2178_v59 = vmax.f32 %v2050_v42, 0.0  ;;  %v3241_v29 = vld [vmem:[%s4170_s22 + $0xf4] sm:$0xf]  ;;  %v3509_v31 = vunpack.c.l.bf16 %v3968_v22 }
 0x100   : > { %v1162_v36 = vpop.f32.mrf.mxu0  ;;  %v2759_v45 = vor.u32 %v3241_v29, %v2756_v33 }
 0x101   : > { %4029 = vst [vmem:[%s4285_s12 + $0x120] sm:$0xff] %v3794_v32   ;;  %v1163_v38 = vadd.f32 %v4257_v56, %v1162_v36  ;;  %v1491_v39 = vpop.f32.mrf.mxu1  ;;  %v1650_v49 = vadd.f32 %v1649_v35, %v1321_v37  ;;  %v3012_v35 = vld [vmem:[%s4170_s22 + $0x2f8] sm:$0xf0]  ;;  %v3510_v37 = vunpack.c.h.bf16 %v3968_v22 }
 0x102   : > { %v3015_v46 = vor.u32 %v3305_v34, %v3012_v35  ;;  %v3938_v34 = vld [vmem:[%s4264_s9 + $0x40] sm:$0xff]  }
 0x103   : > { %v1492_v43 = vadd.f32 %v1491_v39, %v1163_v38  ;;  %v2114_v3 = vadd.f32 %v3505_v50, %v1650_v49  ;;  %v2755_v38 = vor.u32 %v3242_v26, %v2754_v25 }
 0x105   : > { %v2051_v51 = vadd.f32 %v3378_v40, %v1492_v43  ;;  %v2242_v10 = vmax.f32 %v2114_v3, 0.0  ;;  %v3011_v43 = vor.u32 %v3306_v28, %v3010_v27  ;;  %v3969_v3 = vld [vmem:[%s4264_s9 + $0x138] sm:$0xff]  }
 0x106   : > { %v1322_v55 = vpop.f32.mrf.mxu2 }
 0x107   : > { %v2179_v60 = vmax.f32 %v2051_v51, 0.0  ;;  %v1323_v61 = vadd.f32 %v4257_v56, %v1322_v55  ;;  %v1651_v62 = vpop.f32.mrf.mxu3 }
 0x108   : > { %v1165_v0 = vpop.f32.mrf.mxu0 }
 0x109   : > { %v3639_v4 = vpack.c.bf16 %v2179_v60, %v2178_v59  ;;  %v1652_v5 = vadd.f32 %v1651_v62, %v1323_v61  ;;  %v1494_v6 = vpop.f32.mrf.mxu1  ;;  %v1166_v8 = vadd.f32 %v4257_v56, %v1165_v0  ;;  %v3385_v60 = vunpack.c.l.bf16 %v3937_v53 }
 0x10b   : > { %3998 = vst [vmem:[%s4285_s12 + $0x28] sm:$0xff] %v3639_v4   ;;  %v2115_v7 = vadd.f32 %v3506_v57, %v1652_v5  ;;  %1204 = vmatmul.bf16.gmra.mxu0 %v2747_v58  ;;  %1364 = vmatmul.bf16.gmra.mxu2 %v3003_v63  ;;  %v1495_v14 = vadd.f32 %v1494_v6, %v1166_v8  ;;  %v2762_v6 = vld [vmem:[%s4170_s22 + $0x100] sm:$0xf] }
 0x10c   : > { %1533 = vmatmul.bf16.gmra.mxu1 %v2751_v1  ;;  %1693 = vmatmul.bf16.gmra.mxu3 %v3007_v2  ;;  %v3386_v2 = vunpack.c.h.bf16 %v3937_v53  ;;  %v3018_v8 = vld [vmem:[%s4170_s22 + $0x300] sm:$0xf]  ;;  %v3310_v53 = vld [vmem:[%s4170_s22 + $0x314] sm:$0xf0] }
 0x10d   : > { %v2243_v11 = vmax.f32 %v2115_v7, 0.0  ;;  %v2052_v23 = vadd.f32 %v3381_v15, %v1495_v14  ;;  %v3244_v7 = vld [vmem:[%s4170_s22 + $0x104] sm:$0xf0]  ;;  %v2764_v14 = vld [vmem:[%s4170_s22 + $0x108] sm:$0xf0] }
 0x10e   : > { %v1325_v12 = vpop.f32.mrf.mxu2  ;;  %v3307_v15 = vld [vmem:[%s4170_s22 + $0x304] sm:$0xf] }
 0x10f   : > { %v3799_v13 = vpack.c.bf16 %v2243_v11, %v2242_v10  ;;  %v1654_v16 = vpop.f32.mrf.mxu3  ;;  %v1326_v18 = vadd.f32 %v4257_v56, %v1325_v12  ;;  %v2180_v39 = vmax.f32 %v2052_v23, 0.0  ;;  %v3243_v10 = vld [vmem:[%s4170_s22 + $0x104] sm:$0xf]  ;;  %v3513_v12 = vunpack.c.l.bf16 %v3969_v3 }
 0x110   : > { %v1167_v17 = vpop.f32.mrf.mxu0  ;;  %v2767_v26 = vor.u32 %v3243_v10, %v2764_v14 }
 0x111   : > { %4030 = vst [vmem:[%s4285_s12 + $0x128] sm:$0xff] %v3799_v13   ;;  %v1168_v19 = vadd.f32 %v4257_v56, %v1167_v17  ;;  %v1496_v20 = vpop.f32.mrf.mxu1  ;;  %v1655_v30 = vadd.f32 %v1654_v16, %v1326_v18  ;;  %v3020_v16 = vld [vmem:[%s4170_s22 + $0x308] sm:$0xf0]  ;;  %v3514_v18 = vunpack.c.h.bf16 %v3969_v3 }
 0x112   : > { %v3023_v27 = vor.u32 %v3307_v15, %v3020_v16  ;;  %v3939_v15 = vld [vmem:[%s4264_s9 + $0x48] sm:$0xff]  }
 0x113   : > { %v1497_v24 = vadd.f32 %v1496_v20, %v1168_v19  ;;  %v2116_v47 = vadd.f32 %v3509_v31, %v1655_v30  ;;  %v2763_v19 = vor.u32 %v3244_v7, %v2762_v6 }
 0x115   : > { %v2053_v32 = vadd.f32 %v3382_v21, %v1497_v24  ;;  %v2244_v54 = vmax.f32 %v2116_v47, 0.0  ;;  %v3019_v24 = vor.u32 %v3308_v9, %v3018_v8  ;;  %v3970_v47 = vld [vmem:[%s4264_s9 + $0x140] sm:$0xff]  }
 0x116   : > { %v1327_v36 = vpop.f32.mrf.mxu2 }
 0x117   : > { %v2181_v40 = vmax.f32 %v2053_v32, 0.0  ;;  %v1328_v41 = vadd.f32 %v4257_v56, %v1327_v36  ;;  %v1656_v42 = vpop.f32.mrf.mxu3 }
 0x118   : > { %v1170_v44 = vpop.f32.mrf.mxu0 }
 0x119   : > { %v3644_v48 = vpack.c.bf16 %v2181_v40, %v2180_v39  ;;  %v1657_v49 = vadd.f32 %v1656_v42, %v1328_v41  ;;  %v1499_v50 = vpop.f32.mrf.mxu1  ;;  %v1171_v52 = vadd.f32 %v4257_v56, %v1170_v44  ;;  %v3389_v40 = vunpack.c.l.bf16 %v3938_v34 }
 0x11b   : > { %3999 = vst [vmem:[%s4285_s12 + $0x30] sm:$0xff] %v3644_v48   ;;  %v2117_v51 = vadd.f32 %v3510_v37, %v1657_v49  ;;  %1209 = vmatmul.bf16.gmra.mxu0 %v2755_v38  ;;  %1369 = vmatmul.bf16.gmra.mxu2 %v3011_v43  ;;  %v1500_v59 = vadd.f32 %v1499_v50, %v1171_v52  ;;  %v2770_v50 = vld [vmem:[%s4170_s22 + $0x110] sm:$0xf] }
 0x11c   : > { %1538 = vmatmul.bf16.gmra.mxu1 %v2759_v45  ;;  %1698 = vmatmul.bf16.gmra.mxu3 %v3015_v46  ;;  %v3390_v46 = vunpack.c.h.bf16 %v3938_v34  ;;  %v3026_v52 = vld [vmem:[%s4170_s22 + $0x310] sm:$0xf]  ;;  %v3312_v34 = vld [vmem:[%s4170_s22 + $0x324] sm:$0xf0] }
 0x11d   : > { %v2245_v55 = vmax.f32 %v2117_v51, 0.0  ;;  %v2054_v4 = vadd.f32 %v3385_v60, %v1500_v59  ;;  %v3246_v51 = vld [vmem:[%s4170_s22 + $0x114] sm:$0xf0]  ;;  %v2772_v59 = vld [vmem:[%s4170_s22 + $0x118] sm:$0xf0] }
 0x11e   : > { %v1330_v57 = vpop.f32.mrf.mxu2  ;;  %v3309_v60 = vld [vmem:[%s4170_s22 + $0x314] sm:$0xf] }
 0x11f   : > { %v3804_v58 = vpack.c.bf16 %v2245_v55, %v2244_v54  ;;  %v1659_v61 = vpop.f32.mrf.mxu3  ;;  %v1331_v63 = vadd.f32 %v4257_v56, %v1330_v57  ;;  %v2182_v20 = vmax.f32 %v2054_v4, 0.0  ;;  %v3245_v54 = vld [vmem:[%s4170_s22 + $0x114] sm:$0xf]  ;;  %v3517_v57 = vunpack.c.l.bf16 %v3970_v47 }
 0x120   : > { %v1172_v62 = vpop.f32.mrf.mxu0  ;;  %v2775_v7 = vor.u32 %v3245_v54, %v2772_v59 }
 0x121   : > { %4031 = vst [vmem:[%s4285_s12 + $0x130] sm:$0xff] %v3804_v58   ;;  %v1173_v0 = vadd.f32 %v4257_v56, %v1172_v62  ;;  %v1501_v1 = vpop.f32.mrf.mxu1  ;;  %v1660_v11 = vadd.f32 %v1659_v61, %v1331_v63  ;;  %v3028_v61 = vld [vmem:[%s4170_s22 + $0x318] sm:$0xf0]  ;;  %v3518_v63 = vunpack.c.h.bf16 %v3970_v47 }
 0x122   : > { %v3031_v8 = vor.u32 %v3309_v60, %v3028_v61  ;;  %v3940_v60 = vld [vmem:[%s4264_s9 + $0x50] sm:$0xff]  }
 0x123   : > { %v1502_v5 = vadd.f32 %v1501_v1, %v1173_v0  ;;  %v2118_v28 = vadd.f32 %v3513_v12, %v1660_v11  ;;  %v2771_v0 = vor.u32 %v3246_v51, %v2770_v50 }
 0x125   : > { %v2055_v13 = vadd.f32 %v3386_v2, %v1502_v5  ;;  %v2246_v35 = vmax.f32 %v2118_v28, 0.0  ;;  %v3027_v5 = vor.u32 %v3310_v53, %v3026_v52  ;;  %v3971_v28 = vld [vmem:[%s4264_s9 + $0x148] sm:$0xff]  }
 0x126   : > { %v1332_v17 = vpop.f32.mrf.mxu2 }
 0x127   : > { %v2183_v21 = vmax.f32 %v2055_v13, 0.0  ;;  %v1333_v22 = vadd.f32 %v4257_v56, %v1332_v17  ;;  %v1661_v23 = vpop.f32.mrf.mxu3 }
 0x128   : > { %v1175_v25 = vpop.f32.mrf.mxu0 }
 0x129   : > { %v3649_v29 = vpack.c.bf16 %v2183_v21, %v2182_v20  ;;  %v1662_v30 = vadd.f32 %v1661_v23, %v1333_v22  ;;  %v1504_v31 = vpop.f32.mrf.mxu1  ;;  %v1176_v33 = vadd.f32 %v4257_v56, %v1175_v25  ;;  %v3393_v21 = vunpack.c.l.bf16 %v3939_v15 }
 0x12b   : > { %4000 = vst [vmem:[%s4285_s12 + $0x38] sm:$0xff] %v3649_v29   ;;  %v2119_v32 = vadd.f32 %v3514_v18, %v1662_v30  ;;  %1214 = vmatmul.bf16.gmra.mxu0 %v2763_v19  ;;  %1374 = vmatmul.bf16.gmra.mxu2 %v3019_v24  ;;  %v1505_v39 = vadd.f32 %v1504_v31, %v1176_v33  ;;  %v2778_v31 = vld [vmem:[%s4170_s22 + $0x120] sm:$0xf] }
 0x12c   : > { %1543 = vmatmul.bf16.gmra.mxu1 %v2767_v26  ;;  %1703 = vmatmul.bf16.gmra.mxu3 %v3023_v27  ;;  %v3394_v27 = vunpack.c.h.bf16 %v3939_v15  ;;  %v3034_v33 = vld [vmem:[%s4170_s22 + $0x320] sm:$0xf]  ;;  %v3314_v15 = vld [vmem:[%s4170_s22 + $0x334] sm:$0xf0] }
 0x12d   : > { %v2247_v36 = vmax.f32 %v2119_v32, 0.0  ;;  %v2056_v48 = vadd.f32 %v3389_v40, %v1505_v39  ;;  %v3248_v32 = vld [vmem:[%s4170_s22 + $0x124] sm:$0xf0]  ;;  %v2780_v39 = vld [vmem:[%s4170_s22 + $0x128] sm:$0xf0] }
 0x12e   : > { %v1335_v37 = vpop.f32.mrf.mxu2  ;;  %v3311_v40 = vld [vmem:[%s4170_s22 + $0x324] sm:$0xf] }
 0x12f   : > { %v3809_v38 = vpack.c.bf16 %v2247_v36, %v2246_v35  ;;  %v1664_v41 = vpop.f32.mrf.mxu3  ;;  %v1336_v43 = vadd.f32 %v4257_v56, %v1335_v37  ;;  %v2184_v1 = vmax.f32 %v2056_v48, 0.0  ;;  %v3247_v35 = vld [vmem:[%s4170_s22 + $0x124] sm:$0xf]  ;;  %v3521_v37 = vunpack.c.l.bf16 %v3971_v28 }
 0x130   : > { %v1177_v42 = vpop.f32.mrf.mxu0  ;;  %v2783_v51 = vor.u32 %v3247_v35, %v2780_v39 }
 0x131   : > { %4032 = vst [vmem:[%s4285_s12 + $0x138] sm:$0xff] %v3809_v38   ;;  %v1178_v44 = vadd.f32 %v4257_v56, %v1177_v42  ;;  %v1506_v45 = vpop.f32.mrf.mxu1  ;;  %v1665_v55 = vadd.f32 %v1664_v41, %v1336_v43  ;;  %v3036_v41 = vld [vmem:[%s4170_s22 + $0x328] sm:$0xf0]  ;;  %v3522_v43 = vunpack.c.h.bf16 %v3971_v28 }
 0x132   : > { %v3039_v52 = vor.u32 %v3311_v40, %v3036_v41  ;;  %v3941_v40 = vld [vmem:[%s4264_s9 + $0x58] sm:$0xff]  }
 0x133   : > { %v1507_v49 = vadd.f32 %v1506_v45, %v1178_v44  ;;  %v2120_v9 = vadd.f32 %v3517_v57, %v1665_v55  ;;  %v2779_v44 = vor.u32 %v3248_v32, %v2778_v31 }
 0x135   : > { %v2057_v58 = vadd.f32 %v3390_v46, %v1507_v49  ;;  %v2248_v16 = vmax.f32 %v2120_v9, 0.0  ;;  %v3035_v49 = vor.u32 %v3312_v34, %v3034_v33  ;;  %v3972_v9 = vld [vmem:[%s4264_s9 + $0x150] sm:$0xff]  }
 0x136   : > { %v1337_v62 = vpop.f32.mrf.mxu2 }
 0x137   : > { %v2185_v2 = vmax.f32 %v2057_v58, 0.0  ;;  %v1338_v3 = vadd.f32 %v4257_v56, %v1337_v62  ;;  %v1666_v4 = vpop.f32.mrf.mxu3 }
 0x138   : > { %v1180_v6 = vpop.f32.mrf.mxu0 }
 0x139   : > { %v3654_v10 = vpack.c.bf16 %v2185_v2, %v2184_v1  ;;  %v1667_v11 = vadd.f32 %v1666_v4, %v1338_v3  ;;  %v1509_v12 = vpop.f32.mrf.mxu1  ;;  %v1181_v14 = vadd.f32 %v4257_v56, %v1180_v6  ;;  %v3397_v2 = vunpack.c.l.bf16 %v3940_v60 }
 0x13b   : > { %4001 = vst [vmem:[%s4285_s12 + $0x40] sm:$0xff] %v3654_v10   ;;  %v2121_v13 = vadd.f32 %v3518_v63, %v1667_v11  ;;  %1219 = vmatmul.bf16.gmra.mxu0 %v2771_v0  ;;  %1379 = vmatmul.bf16.gmra.mxu2 %v3027_v5  ;;  %v1510_v20 = vadd.f32 %v1509_v12, %v1181_v14  ;;  %v2786_v12 = vld [vmem:[%s4170_s22 + $0x130] sm:$0xf] }
 0x13c   : > { %1548 = vmatmul.bf16.gmra.mxu1 %v2775_v7  ;;  %1708 = vmatmul.bf16.gmra.mxu3 %v3031_v8  ;;  %v3398_v8 = vunpack.c.h.bf16 %v3940_v60  ;;  %v3042_v14 = vld [vmem:[%s4170_s22 + $0x330] sm:$0xf]  ;;  %v3316_v60 = vld [vmem:[%s4170_s22 + $0x344] sm:$0xf0] }
 0x13d   : > { %v2249_v17 = vmax.f32 %v2121_v13, 0.0  ;;  %v2058_v29 = vadd.f32 %v3393_v21, %v1510_v20  ;;  %v3250_v13 = vld [vmem:[%s4170_s22 + $0x134] sm:$0xf0]  ;;  %v2788_v20 = vld [vmem:[%s4170_s22 + $0x138] sm:$0xf0] }
 0x13e   : > { %v1340_v18 = vpop.f32.mrf.mxu2  ;;  %v3313_v21 = vld [vmem:[%s4170_s22 + $0x334] sm:$0xf] }
 0x13f   : > { %v3814_v19 = vpack.c.bf16 %v2249_v17, %v2248_v16  ;;  %v1669_v22 = vpop.f32.mrf.mxu3  ;;  %v1341_v24 = vadd.f32 %v4257_v56, %v1340_v18  ;;  %v2186_v45 = vmax.f32 %v2058_v29, 0.0  ;;  %v3249_v16 = vld [vmem:[%s4170_s22 + $0x134] sm:$0xf]  ;;  %v3525_v18 = vunpack.c.l.bf16 %v3972_v9 }
 0x140   : > { %v1182_v23 = vpop.f32.mrf.mxu0  ;;  %v2791_v32 = vor.u32 %v3249_v16, %v2788_v20 }
 0x141   : > { %4033 = vst [vmem:[%s4285_s12 + $0x140] sm:$0xff] %v3814_v19   ;;  %v1183_v25 = vadd.f32 %v4257_v56, %v1182_v23  ;;  %v1511_v26 = vpop.f32.mrf.mxu1  ;;  %v1670_v36 = vadd.f32 %v1669_v22, %v1341_v24  ;;  %v3044_v22 = vld [vmem:[%s4170_s22 + $0x338] sm:$0xf0]  ;;  %v3526_v24 = vunpack.c.h.bf16 %v3972_v9 }
 0x142   : > { %v3047_v33 = vor.u32 %v3313_v21, %v3044_v22  ;;  %v3942_v21 = vld [vmem:[%s4264_s9 + $0x60] sm:$0xff]  }
 0x143   : > { %v1512_v30 = vadd.f32 %v1511_v26, %v1183_v25  ;;  %v2122_v53 = vadd.f32 %v3521_v37, %v1670_v36  ;;  %v2787_v25 = vor.u32 %v3250_v13, %v2786_v12 }
 0x145   : > { %v2059_v38 = vadd.f32 %v3394_v27, %v1512_v30  ;;  %v2250_v61 = vmax.f32 %v2122_v53, 0.0  ;;  %v3043_v30 = vor.u32 %v3314_v15, %v3042_v14  ;;  %v3973_v53 = vld [vmem:[%s4264_s9 + $0x158] sm:$0xff]  }
 0x146   : > { %v1342_v42 = vpop.f32.mrf.mxu2 }
 0x147   : > { %v2187_v46 = vmax.f32 %v2059_v38, 0.0  ;;  %v1343_v47 = vadd.f32 %v4257_v56, %v1342_v42  ;;  %v1671_v48 = vpop.f32.mrf.mxu3 }
 0x148   : > { %v1185_v50 = vpop.f32.mrf.mxu0 }
 0x149   : > { %v3659_v54 = vpack.c.bf16 %v2187_v46, %v2186_v45  ;;  %v1672_v55 = vadd.f32 %v1671_v48, %v1343_v47  ;;  %v1514_v57 = vpop.f32.mrf.mxu1  ;;  %v1186_v59 = vadd.f32 %v4257_v56, %v1185_v50  ;;  %v4438_v56 = vld [vmem:[%s4728_s2] ss:$0 sm:$0xff]  ;;  %v3401_v46 = vunpack.c.l.bf16 %v3941_v40 }
 0x14b   : > { %4002 = vst [vmem:[%s4285_s12 + $0x48] sm:$0xff] %v3659_v54   ;;  %v2123_v58 = vadd.f32 %v3522_v43, %v1672_v55  ;;  %1224 = vmatmul.bf16.gmra.mxu0 %v2779_v44  ;;  %1384 = vmatmul.bf16.gmra.mxu2 %v3035_v49  ;;  %v1515_v1 = vadd.f32 %v1514_v57, %v1186_v59  ;;  %v2794_v57 = vld [vmem:[%s4170_s22 + $0x140] sm:$0xf] }
 0x14c   : > { %1553 = vmatmul.bf16.gmra.mxu1 %v2783_v51  ;;  %1713 = vmatmul.bf16.gmra.mxu3 %v3039_v52  ;;  %v3402_v52 = vunpack.c.h.bf16 %v3941_v40  ;;  %v3050_v59 = vld [vmem:[%s4170_s22 + $0x340] sm:$0xf]  ;;  %v3318_v40 = vld [vmem:[%s4170_s22 + $0x354] sm:$0xf0] }
 0x14d   : > { %v2251_v62 = vmax.f32 %v2123_v58, 0.0  ;;  %v2060_v10 = vadd.f32 %v3397_v2, %v1515_v1  ;;  %v3252_v58 = vld [vmem:[%s4170_s22 + $0x144] sm:$0xf0]  ;;  %v2796_v1 = vld [vmem:[%s4170_s22 + $0x148] sm:$0xf0] }
 0x14e   : > { %v1345_v63 = vpop.f32.mrf.mxu2  ;;  %v3315_v2 = vld [vmem:[%s4170_s22 + $0x344] sm:$0xf] }
 0x14f   : > { %v3819_v0 = vpack.c.bf16 %v2251_v62, %v2250_v61  ;;  %v1674_v3 = vpop.f32.mrf.mxu3  ;;  %v1346_v5 = vadd.f32 %v4438_v56, %v1345_v63  ;;  %v2188_v26 = vmax.f32 %v2060_v10, 0.0  ;;  %v3251_v61 = vld [vmem:[%s4170_s22 + $0x144] sm:$0xf]  ;;  %v3529_v63 = vunpack.c.l.bf16 %v3973_v53 }
 0x150   : > { %v1187_v4 = vpop.f32.mrf.mxu0  ;;  %v2799_v13 = vor.u32 %v3251_v61, %v2796_v1 }
 0x151   : > { %4034 = vst [vmem:[%s4285_s12 + $0x148] sm:$0xff] %v3819_v0   ;;  %v1188_v6 = vadd.f32 %v4438_v56, %v1187_v4  ;;  %v1516_v7 = vpop.f32.mrf.mxu1  ;;  %v1675_v17 = vadd.f32 %v1674_v3, %v1346_v5  ;;  %v3052_v3 = vld [vmem:[%s4170_s22 + $0x348] sm:$0xf0]  ;;  %v3530_v5 = vunpack.c.h.bf16 %v3973_v53 }
 0x152   : > { %v3055_v14 = vor.u32 %v3315_v2, %v3052_v3  ;;  %v3943_v2 = vld [vmem:[%s4264_s9 + $0x68] sm:$0xff]  }
 0x153   : > { %v1517_v11 = vadd.f32 %v1516_v7, %v1188_v6  ;;  %v2124_v34 = vadd.f32 %v3525_v18, %v1675_v17  ;;  %v2795_v6 = vor.u32 %v3252_v58, %v2794_v57 }
 0x155   : > { %v2061_v19 = vadd.f32 %v3398_v8, %v1517_v11  ;;  %v2252_v41 = vmax.f32 %v2124_v34, 0.0  ;;  %v3051_v11 = vor.u32 %v3316_v60, %v3050_v59  ;;  %v3974_v34 = vld [vmem:[%s4264_s9 + $0x160] sm:$0xff]  }
 0x156   : > { %v1347_v23 = vpop.f32.mrf.mxu2 }
 0x157   : > { %v2189_v27 = vmax.f32 %v2061_v19, 0.0  ;;  %v1348_v28 = vadd.f32 %v4438_v56, %v1347_v23  ;;  %v1676_v29 = vpop.f32.mrf.mxu3 }
 0x158   : > { %v1190_v31 = vpop.f32.mrf.mxu0 }
 0x159   : > { %v3664_v35 = vpack.c.bf16 %v2189_v27, %v2188_v26  ;;  %v1677_v36 = vadd.f32 %v1676_v29, %v1348_v28  ;;  %v1519_v37 = vpop.f32.mrf.mxu1  ;;  %v1191_v39 = vadd.f32 %v4438_v56, %v1190_v31  ;;  %v3405_v27 = vunpack.c.l.bf16 %v3942_v21 }
 0x15b   : > { %4003 = vst [vmem:[%s4285_s12 + $0x50] sm:$0xff] %v3664_v35   ;;  %v2125_v38 = vadd.f32 %v3526_v24, %v1677_v36  ;;  %1229 = vmatmul.bf16.gmra.mxu0 %v2787_v25  ;;  %1389 = vmatmul.bf16.gmra.mxu2 %v3043_v30  ;;  %v1520_v45 = vadd.f32 %v1519_v37, %v1191_v39  ;;  %v2802_v37 = vld [vmem:[%s4170_s22 + $0x150] sm:$0xf] }
 0x15c   : > { %1558 = vmatmul.bf16.gmra.mxu1 %v2791_v32  ;;  %1718 = vmatmul.bf16.gmra.mxu3 %v3047_v33  ;;  %v3406_v33 = vunpack.c.h.bf16 %v3942_v21  ;;  %v3058_v39 = vld [vmem:[%s4170_s22 + $0x350] sm:$0xf]  ;;  %v3320_v21 = vld [vmem:[%s4170_s22 + $0x364] sm:$0xf0] }
 0x15d   : > { %v2253_v42 = vmax.f32 %v2125_v38, 0.0  ;;  %v2062_v54 = vadd.f32 %v3401_v46, %v1520_v45  ;;  %v3254_v38 = vld [vmem:[%s4170_s22 + $0x154] sm:$0xf0]  ;;  %v2804_v45 = vld [vmem:[%s4170_s22 + $0x158] sm:$0xf0] }
 0x15e   : > { %v1350_v43 = vpop.f32.mrf.mxu2  ;;  %v3317_v46 = vld [vmem:[%s4170_s22 + $0x354] sm:$0xf] }
 0x15f   : > { %v3824_v44 = vpack.c.bf16 %v2253_v42, %v2252_v41  ;;  %v1679_v47 = vpop.f32.mrf.mxu3  ;;  %v1351_v49 = vadd.f32 %v4438_v56, %v1350_v43  ;;  %v2190_v7 = vmax.f32 %v2062_v54, 0.0  ;;  %v3253_v41 = vld [vmem:[%s4170_s22 + $0x154] sm:$0xf]  ;;  %v3533_v43 = vunpack.c.l.bf16 %v3974_v34 }
 0x160   : > { %v1192_v48 = vpop.f32.mrf.mxu0  ;;  %v2807_v58 = vor.u32 %v3253_v41, %v2804_v45 }
 0x161   : > { %4035 = vst [vmem:[%s4285_s12 + $0x150] sm:$0xff] %v3824_v44   ;;  %v1193_v50 = vadd.f32 %v4438_v56, %v1192_v48  ;;  %v1521_v51 = vpop.f32.mrf.mxu1  ;;  %v1680_v62 = vadd.f32 %v1679_v47, %v1351_v49  ;;  %v3060_v47 = vld [vmem:[%s4170_s22 + $0x358] sm:$0xf0]  ;;  %v3534_v49 = vunpack.c.h.bf16 %v3974_v34 }
 0x162   : > { %v3063_v59 = vor.u32 %v3317_v46, %v3060_v47  ;;  %v3944_v46 = vld [vmem:[%s4264_s9 + $0x70] sm:$0xff]  }
 0x163   : > { %v1522_v55 = vadd.f32 %v1521_v51, %v1193_v50  ;;  %v2126_v15 = vadd.f32 %v3529_v63, %v1680_v62  ;;  %v2803_v50 = vor.u32 %v3254_v38, %v2802_v37 }
 0x165   : > { %v2063_v0 = vadd.f32 %v3402_v52, %v1522_v55  ;;  %v2254_v22 = vmax.f32 %v2126_v15, 0.0  ;;  %v3059_v55 = vor.u32 %v3318_v40, %v3058_v39  ;;  %v3975_v15 = vld [vmem:[%s4264_s9 + $0x168] sm:$0xff]  }
 0x166   : > { %v1352_v4 = vpop.f32.mrf.mxu2 }
 0x167   : > { %v2191_v8 = vmax.f32 %v2063_v0, 0.0  ;;  %v1353_v9 = vadd.f32 %v4438_v56, %v1352_v4  ;;  %v1681_v10 = vpop.f32.mrf.mxu3 }
 0x168   : > { %v1195_v12 = vpop.f32.mrf.mxu0 }
 0x169   : > { %v3669_v16 = vpack.c.bf16 %v2191_v8, %v2190_v7  ;;  %v1682_v17 = vadd.f32 %v1681_v10, %v1353_v9  ;;  %v1524_v18 = vpop.f32.mrf.mxu1  ;;  %v1196_v20 = vadd.f32 %v4438_v56, %v1195_v12  ;;  %v3409_v8 = vunpack.c.l.bf16 %v3943_v2 }
 0x16b   : > { %4004 = vst [vmem:[%s4285_s12 + $0x58] sm:$0xff] %v3669_v16   ;;  %v2127_v19 = vadd.f32 %v3530_v5, %v1682_v17  ;;  %1234 = vmatmul.bf16.gmra.mxu0 %v2795_v6  ;;  %1394 = vmatmul.bf16.gmra.mxu2 %v3051_v11  ;;  %v1525_v26 = vadd.f32 %v1524_v18, %v1196_v20  ;;  %v2810_v18 = vld [vmem:[%s4170_s22 + $0x160] sm:$0xf] }
 0x16c   : > { %1563 = vmatmul.bf16.gmra.mxu1 %v2799_v13  ;;  %1723 = vmatmul.bf16.gmra.mxu3 %v3055_v14  ;;  %v3410_v14 = vunpack.c.h.bf16 %v3943_v2  ;;  %v3066_v20 = vld [vmem:[%s4170_s22 + $0x360] sm:$0xf]  ;;  %v3322_v2 = vld [vmem:[%s4170_s22 + $0x374] sm:$0xf0] }
 0x16d   : > { %v2255_v23 = vmax.f32 %v2127_v19, 0.0  ;;  %v2064_v35 = vadd.f32 %v3405_v27, %v1525_v26  ;;  %v3256_v19 = vld [vmem:[%s4170_s22 + $0x164] sm:$0xf0]  ;;  %v2812_v26 = vld [vmem:[%s4170_s22 + $0x168] sm:$0xf0] }
 0x16e   : > { %v1355_v24 = vpop.f32.mrf.mxu2  ;;  %v3319_v27 = vld [vmem:[%s4170_s22 + $0x364] sm:$0xf] }
 0x16f   : > { %v3829_v25 = vpack.c.bf16 %v2255_v23, %v2254_v22  ;;  %v1684_v28 = vpop.f32.mrf.mxu3  ;;  %v1356_v30 = vadd.f32 %v4438_v56, %v1355_v24  ;;  %v2192_v51 = vmax.f32 %v2064_v35, 0.0  ;;  %v3255_v22 = vld [vmem:[%s4170_s22 + $0x164] sm:$0xf]  ;;  %v3537_v24 = vunpack.c.l.bf16 %v3975_v15 }
 0x170   : > { %v1197_v29 = vpop.f32.mrf.mxu0  ;;  %v2815_v38 = vor.u32 %v3255_v22, %v2812_v26 }
 0x171   : > { %4036 = vst [vmem:[%s4285_s12 + $0x158] sm:$0xff] %v3829_v25   ;;  %v1198_v31 = vadd.f32 %v4438_v56, %v1197_v29  ;;  %v1526_v32 = vpop.f32.mrf.mxu1  ;;  %v1685_v42 = vadd.f32 %v1684_v28, %v1356_v30  ;;  %v3068_v28 = vld [vmem:[%s4170_s22 + $0x368] sm:$0xf0]  ;;  %v3538_v30 = vunpack.c.h.bf16 %v3975_v15 }
 0x172   : > { %v3071_v39 = vor.u32 %v3319_v27, %v3068_v28  ;;  %v3945_v27 = vld [vmem:[%s4264_s9 + $0x78] sm:$0xff]  }
 0x173   : > { %v1527_v36 = vadd.f32 %v1526_v32, %v1198_v31  ;;  %v2128_v60 = vadd.f32 %v3533_v43, %v1685_v42  ;;  %v2811_v31 = vor.u32 %v3256_v19, %v2810_v18 }
 0x175   : > { %v2065_v44 = vadd.f32 %v3406_v33, %v1527_v36  ;;  %v2256_v3 = vmax.f32 %v2128_v60, 0.0  ;;  %v3067_v36 = vor.u32 %v3320_v21, %v3066_v20  ;;  %v3976_v60 = vld [vmem:[%s4264_s9 + $0x170] sm:$0xff]  }
 0x176   : > { %v1357_v48 = vpop.f32.mrf.mxu2 }
 0x177   : > { %v2193_v52 = vmax.f32 %v2065_v44, 0.0  ;;  %v1358_v53 = vadd.f32 %v4438_v56, %v1357_v48  ;;  %v1686_v54 = vpop.f32.mrf.mxu3 }
 0x178   : > { %v1200_v57 = vpop.f32.mrf.mxu0 }
 0x179   : > { %v3674_v61 = vpack.c.bf16 %v2193_v52, %v2192_v51  ;;  %v1687_v62 = vadd.f32 %v1686_v54, %v1358_v53  ;;  %v1529_v63 = vpop.f32.mrf.mxu1  ;;  %v1201_v1 = vadd.f32 %v4438_v56, %v1200_v57  ;;  %v3413_v52 = vunpack.c.l.bf16 %v3944_v46 }
 0x17b   : > { %4005 = vst [vmem:[%s4285_s12 + $0x60] sm:$0xff] %v3674_v61   ;;  %v2129_v0 = vadd.f32 %v3534_v49, %v1687_v62  ;;  %1239 = vmatmul.bf16.gmra.mxu0 %v2803_v50  ;;  %1399 = vmatmul.bf16.gmra.mxu2 %v3059_v55  ;;  %v1530_v7 = vadd.f32 %v1529_v63, %v1201_v1  ;;  %v2818_v63 = vld [vmem:[%s4170_s22 + $0x170] sm:$0xf] }
 0x17c   : > { %1568 = vmatmul.bf16.gmra.mxu1 %v2807_v58  ;;  %1728 = vmatmul.bf16.gmra.mxu3 %v3063_v59  ;;  %v3414_v59 = vunpack.c.h.bf16 %v3944_v46  ;;  %v3074_v1 = vld [vmem:[%s4170_s22 + $0x370] sm:$0xf]  ;;  %v3324_v46 = vld [vmem:[%s4170_s22 + $0x384] sm:$0xf0] }
 0x17d   : > { %v2257_v4 = vmax.f32 %v2129_v0, 0.0  ;;  %v2066_v16 = vadd.f32 %v3409_v8, %v1530_v7  ;;  %v3258_v0 = vld [vmem:[%s4170_s22 + $0x174] sm:$0xf0]  ;;  %v2820_v7 = vld [vmem:[%s4170_s22 + $0x178] sm:$0xf0] }
 0x17e   : > { %v1360_v5 = vpop.f32.mrf.mxu2  ;;  %v3321_v8 = vld [vmem:[%s4170_s22 + $0x374] sm:$0xf] }
 0x17f   : > { %v3834_v6 = vpack.c.bf16 %v2257_v4, %v2256_v3  ;;  %v1689_v9 = vpop.f32.mrf.mxu3  ;;  %v1361_v11 = vadd.f32 %v4438_v56, %v1360_v5  ;;  %v2194_v32 = vmax.f32 %v2066_v16, 0.0  ;;  %v3257_v3 = vld [vmem:[%s4170_s22 + $0x174] sm:$0xf]  ;;  %v3541_v5 = vunpack.c.l.bf16 %v3976_v60 }
 0x180   : > { %v1202_v10 = vpop.f32.mrf.mxu0  ;;  %v2823_v19 = vor.u32 %v3257_v3, %v2820_v7 }
 0x181   : > { %4037 = vst [vmem:[%s4285_s12 + $0x160] sm:$0xff] %v3834_v6   ;;  %v1203_v12 = vadd.f32 %v4438_v56, %v1202_v10  ;;  %v1531_v13 = vpop.f32.mrf.mxu1  ;;  %v1690_v23 = vadd.f32 %v1689_v9, %v1361_v11  ;;  %v3076_v9 = vld [vmem:[%s4170_s22 + $0x378] sm:$0xf0]  ;;  %v3542_v11 = vunpack.c.h.bf16 %v3976_v60 }
 0x182   : > { %v3079_v20 = vor.u32 %v3321_v8, %v3076_v9  ;;  %v3946_v8 = vld [vmem:[%s4264_s9 + $0x80] sm:$0xff]  }
 0x183   : > { %v1532_v17 = vadd.f32 %v1531_v13, %v1203_v12  ;;  %v2130_v40 = vadd.f32 %v3537_v24, %v1690_v23  ;;  %v2819_v12 = vor.u32 %v3258_v0, %v2818_v63 }
 0x185   : > { %v2067_v25 = vadd.f32 %v3410_v14, %v1532_v17  ;;  %v2258_v47 = vmax.f32 %v2130_v40, 0.0  ;;  %v3075_v17 = vor.u32 %v3322_v2, %v3074_v1  ;;  %v3977_v40 = vld [vmem:[%s4264_s9 + $0x178] sm:$0xff]  }
 0x186   : > { %v1362_v29 = vpop.f32.mrf.mxu2 }
 0x187   : > { %v2195_v33 = vmax.f32 %v2067_v25, 0.0  ;;  %v1363_v34 = vadd.f32 %v4438_v56, %v1362_v29  ;;  %v1691_v35 = vpop.f32.mrf.mxu3 }
 0x188   : > { %v1205_v37 = vpop.f32.mrf.mxu0 }
 0x189   : > { %v3679_v41 = vpack.c.bf16 %v2195_v33, %v2194_v32  ;;  %v1692_v42 = vadd.f32 %v1691_v35, %v1363_v34  ;;  %v1534_v43 = vpop.f32.mrf.mxu1  ;;  %v1206_v45 = vadd.f32 %v4438_v56, %v1205_v37  ;;  %v3417_v33 = vunpack.c.l.bf16 %v3945_v27 }
 0x18b   : > { %4006 = vst [vmem:[%s4285_s12 + $0x68] sm:$0xff] %v3679_v41   ;;  %v2131_v44 = vadd.f32 %v3538_v30, %v1692_v42  ;;  %1244 = vmatmul.bf16.gmra.mxu0 %v2811_v31  ;;  %1404 = vmatmul.bf16.gmra.mxu2 %v3067_v36  ;;  %v1535_v51 = vadd.f32 %v1534_v43, %v1206_v45  ;;  %v2826_v43 = vld [vmem:[%s4170_s22 + $0x180] sm:$0xf] }
 0x18c   : > { %1573 = vmatmul.bf16.gmra.mxu1 %v2815_v38  ;;  %1733 = vmatmul.bf16.gmra.mxu3 %v3071_v39  ;;  %v3418_v39 = vunpack.c.h.bf16 %v3945_v27  ;;  %v3082_v45 = vld [vmem:[%s4170_s22 + $0x380] sm:$0xf]  ;;  %v3326_v27 = vld [vmem:[%s4170_s22 + $0x394] sm:$0xf0] }
 0x18d   : > { %v2259_v48 = vmax.f32 %v2131_v44, 0.0  ;;  %v2068_v61 = vadd.f32 %v3413_v52, %v1535_v51  ;;  %v3260_v44 = vld [vmem:[%s4170_s22 + $0x184] sm:$0xf0]  ;;  %v2828_v51 = vld [vmem:[%s4170_s22 + $0x188] sm:$0xf0] }
 0x18e   : > { %v1365_v49 = vpop.f32.mrf.mxu2  ;;  %v3323_v52 = vld [vmem:[%s4170_s22 + $0x384] sm:$0xf] }
 0x18f   : > { %v3839_v50 = vpack.c.bf16 %v2259_v48, %v2258_v47  ;;  %v1694_v53 = vpop.f32.mrf.mxu3  ;;  %v1366_v55 = vadd.f32 %v4438_v56, %v1365_v49  ;;  %v2196_v13 = vmax.f32 %v2068_v61, 0.0  ;;  %v3259_v47 = vld [vmem:[%s4170_s22 + $0x184] sm:$0xf]  ;;  %v3545_v49 = vunpack.c.l.bf16 %v3977_v40 }
 0x190   : > { %v1207_v54 = vpop.f32.mrf.mxu0  ;;  %v2831_v0 = vor.u32 %v3259_v47, %v2828_v51 }
 0x191   : > { %4038 = vst [vmem:[%s4285_s12 + $0x168] sm:$0xff] %v3839_v50   ;;  %v1208_v57 = vadd.f32 %v4438_v56, %v1207_v54  ;;  %v1536_v58 = vpop.f32.mrf.mxu1  ;;  %v1695_v4 = vadd.f32 %v1694_v53, %v1366_v55  ;;  %v3084_v53 = vld [vmem:[%s4170_s22 + $0x388] sm:$0xf0]  ;;  %v3546_v55 = vunpack.c.h.bf16 %v3977_v40 }
 0x192   : > { %v3087_v1 = vor.u32 %v3323_v52, %v3084_v53  ;;  %v3947_v52 = vld [vmem:[%s4264_s9 + $0x88] sm:$0xff]  }
 0x193   : > { %v1537_v62 = vadd.f32 %v1536_v58, %v1208_v57  ;;  %v2132_v21 = vadd.f32 %v3541_v5, %v1695_v4  ;;  %v2827_v57 = vor.u32 %v3260_v44, %v2826_v43 }
 0x195   : > { %v2069_v6 = vadd.f32 %v3414_v59, %v1537_v62  ;;  %v2260_v28 = vmax.f32 %v2132_v21, 0.0  ;;  %v3083_v62 = vor.u32 %v3324_v46, %v3082_v45  ;;  %v3978_v21 = vld [vmem:[%s4264_s9 + $0x180] sm:$0xff]  }
 0x196   : > { %v1367_v10 = vpop.f32.mrf.mxu2 }
 0x197   : > { %v2197_v14 = vmax.f32 %v2069_v6, 0.0  ;;  %v1368_v15 = vadd.f32 %v4438_v56, %v1367_v10  ;;  %v1696_v16 = vpop.f32.mrf.mxu3 }
 0x198   : > { %v1210_v18 = vpop.f32.mrf.mxu0 }
 0x199   : > { %v3684_v22 = vpack.c.bf16 %v2197_v14, %v2196_v13  ;;  %v1697_v23 = vadd.f32 %v1696_v16, %v1368_v15  ;;  %v1539_v24 = vpop.f32.mrf.mxu1  ;;  %v1211_v26 = vadd.f32 %v4438_v56, %v1210_v18  ;;  %v3421_v14 = vunpack.c.l.bf16 %v3946_v8 }
 0x19b   : > { %4007 = vst [vmem:[%s4285_s12 + $0x70] sm:$0xff] %v3684_v22   ;;  %v2133_v25 = vadd.f32 %v3542_v11, %v1697_v23  ;;  %1249 = vmatmul.bf16.gmra.mxu0 %v2819_v12  ;;  %1409 = vmatmul.bf16.gmra.mxu2 %v3075_v17  ;;  %v1540_v32 = vadd.f32 %v1539_v24, %v1211_v26  ;;  %v2834_v24 = vld [vmem:[%s4170_s22 + $0x190] sm:$0xf] }
 0x19c   : > { %1578 = vmatmul.bf16.gmra.mxu1 %v2823_v19  ;;  %1738 = vmatmul.bf16.gmra.mxu3 %v3079_v20  ;;  %v3422_v20 = vunpack.c.h.bf16 %v3946_v8  ;;  %v3090_v26 = vld [vmem:[%s4170_s22 + $0x390] sm:$0xf]  ;;  %v3328_v8 = vld [vmem:[%s4170_s22 + $0x3a4] sm:$0xf0] }
 0x19d   : > { %v2261_v29 = vmax.f32 %v2133_v25, 0.0  ;;  %v2070_v41 = vadd.f32 %v3417_v33, %v1540_v32  ;;  %v3262_v25 = vld [vmem:[%s4170_s22 + $0x194] sm:$0xf0]  ;;  %v2836_v32 = vld [vmem:[%s4170_s22 + $0x198] sm:$0xf0] }
 0x19e   : > { %v1370_v30 = vpop.f32.mrf.mxu2  ;;  %v3325_v33 = vld [vmem:[%s4170_s22 + $0x394] sm:$0xf] }
 0x19f   : > { %v3844_v31 = vpack.c.bf16 %v2261_v29, %v2260_v28  ;;  %v1699_v34 = vpop.f32.mrf.mxu3  ;;  %v1371_v36 = vadd.f32 %v4438_v56, %v1370_v30  ;;  %v2198_v58 = vmax.f32 %v2070_v41, 0.0  ;;  %v3261_v28 = vld [vmem:[%s4170_s22 + $0x194] sm:$0xf]  ;;  %v3549_v30 = vunpack.c.l.bf16 %v3978_v21 }
 0x1a0   : > { %v1212_v35 = vpop.f32.mrf.mxu0  ;;  %v2839_v44 = vor.u32 %v3261_v28, %v2836_v32 }
 0x1a1   : > { %4039 = vst [vmem:[%s4285_s12 + $0x170] sm:$0xff] %v3844_v31   ;;  %v1213_v37 = vadd.f32 %v4438_v56, %v1212_v35  ;;  %v1541_v38 = vpop.f32.mrf.mxu1  ;;  %v1700_v48 = vadd.f32 %v1699_v34, %v1371_v36  ;;  %v3092_v34 = vld [vmem:[%s4170_s22 + $0x398] sm:$0xf0]  ;;  %v3550_v36 = vunpack.c.h.bf16 %v3978_v21 }
 0x1a2   : > { %v3095_v45 = vor.u32 %v3325_v33, %v3092_v34  ;;  %v3948_v33 = vld [vmem:[%s4264_s9 + $0x90] sm:$0xff]  }
 0x1a3   : > { %v1542_v42 = vadd.f32 %v1541_v38, %v1213_v37  ;;  %v2134_v2 = vadd.f32 %v3545_v49, %v1700_v48  ;;  %v2835_v37 = vor.u32 %v3262_v25, %v2834_v24 }
 0x1a5   : > { %v2071_v50 = vadd.f32 %v3418_v39, %v1542_v42  ;;  %v2262_v9 = vmax.f32 %v2134_v2, 0.0  ;;  %v3091_v42 = vor.u32 %v3326_v27, %v3090_v26  ;;  %v3979_v2 = vld [vmem:[%s4264_s9 + $0x188] sm:$0xff]  }
 0x1a6   : > { %v1372_v54 = vpop.f32.mrf.mxu2 }
 0x1a7   : > { %v2199_v59 = vmax.f32 %v2071_v50, 0.0  ;;  %v1373_v60 = vadd.f32 %v4438_v56, %v1372_v54  ;;  %v1701_v61 = vpop.f32.mrf.mxu3 }
 0x1a8   : > { %v1215_v63 = vpop.f32.mrf.mxu0 }
 0x1a9   : > { %v3689_v3 = vpack.c.bf16 %v2199_v59, %v2198_v58  ;;  %v1702_v4 = vadd.f32 %v1701_v61, %v1373_v60  ;;  %v1544_v5 = vpop.f32.mrf.mxu1  ;;  %v1216_v7 = vadd.f32 %v4438_v56, %v1215_v63  ;;  %v3425_v59 = vunpack.c.l.bf16 %v3947_v52 }
 0x1ab   : > { %4008 = vst [vmem:[%s4285_s12 + $0x78] sm:$0xff] %v3689_v3   ;;  %v2135_v6 = vadd.f32 %v3546_v55, %v1702_v4  ;;  %1254 = vmatmul.bf16.gmra.mxu0 %v2827_v57  ;;  %1414 = vmatmul.bf16.gmra.mxu2 %v3083_v62  ;;  %v1545_v13 = vadd.f32 %v1544_v5, %v1216_v7  ;;  %v2842_v5 = vld [vmem:[%s4170_s22 + $0x1a0] sm:$0xf] }
 0x1ac   : > { %1583 = vmatmul.bf16.gmra.mxu1 %v2831_v0  ;;  %1743 = vmatmul.bf16.gmra.mxu3 %v3087_v1  ;;  %v3426_v1 = vunpack.c.h.bf16 %v3947_v52  ;;  %v3098_v7 = vld [vmem:[%s4170_s22 + $0x3a0] sm:$0xf]  ;;  %v3330_v52 = vld [vmem:[%s4170_s22 + $0x3b4] sm:$0xf0] }
 0x1ad   : > { %v2263_v10 = vmax.f32 %v2135_v6, 0.0  ;;  %v2072_v22 = vadd.f32 %v3421_v14, %v1545_v13  ;;  %v3264_v6 = vld [vmem:[%s4170_s22 + $0x1a4] sm:$0xf0]  ;;  %v2844_v13 = vld [vmem:[%s4170_s22 + $0x1a8] sm:$0xf0] }
 0x1ae   : > { %v1375_v11 = vpop.f32.mrf.mxu2  ;;  %v3327_v14 = vld [vmem:[%s4170_s22 + $0x3a4] sm:$0xf] }
 0x1af   : > { %v3849_v12 = vpack.c.bf16 %v2263_v10, %v2262_v9  ;;  %v1704_v15 = vpop.f32.mrf.mxu3  ;;  %v1376_v17 = vadd.f32 %v4438_v56, %v1375_v11  ;;  %v2200_v38 = vmax.f32 %v2072_v22, 0.0  ;;  %v3263_v9 = vld [vmem:[%s4170_s22 + $0x1a4] sm:$0xf]  ;;  %v3553_v11 = vunpack.c.l.bf16 %v3979_v2 }
 0x1b0   : > { %v1217_v16 = vpop.f32.mrf.mxu0  ;;  %v2847_v25 = vor.u32 %v3263_v9, %v2844_v13 }
 0x1b1   : > { %4040 = vst [vmem:[%s4285_s12 + $0x178] sm:$0xff] %v3849_v12   ;;  %v1218_v18 = vadd.f32 %v4438_v56, %v1217_v16  ;;  %v1546_v19 = vpop.f32.mrf.mxu1  ;;  %v1705_v29 = vadd.f32 %v1704_v15, %v1376_v17  ;;  %v3100_v15 = vld [vmem:[%s4170_s22 + $0x3a8] sm:$0xf0]  ;;  %v3554_v17 = vunpack.c.h.bf16 %v3979_v2 }
 0x1b2   : > { %v3103_v26 = vor.u32 %v3327_v14, %v3100_v15  ;;  %v3949_v14 = vld [vmem:[%s4264_s9 + $0x98] sm:$0xff]  }
 0x1b3   : > { %v1547_v23 = vadd.f32 %v1546_v19, %v1218_v18  ;;  %v2136_v46 = vadd.f32 %v3549_v30, %v1705_v29  ;;  %v2843_v18 = vor.u32 %v3264_v6, %v2842_v5 }
 0x1b5   : > { %v2073_v31 = vadd.f32 %v3422_v20, %v1547_v23  ;;  %v2264_v53 = vmax.f32 %v2136_v46, 0.0  ;;  %v3099_v23 = vor.u32 %v3328_v8, %v3098_v7  ;;  %v3980_v46 = vld [vmem:[%s4264_s9 + $0x190] sm:$0xff]  }
 0x1b6   : > { %v1377_v35 = vpop.f32.mrf.mxu2 }
 0x1b7   : > { %v2201_v39 = vmax.f32 %v2073_v31, 0.0  ;;  %v1378_v40 = vadd.f32 %v4438_v56, %v1377_v35  ;;  %v1706_v41 = vpop.f32.mrf.mxu3 }
 0x1b8   : > { %v1220_v43 = vpop.f32.mrf.mxu0 }
 0x1b9   : > { %v3694_v47 = vpack.c.bf16 %v2201_v39, %v2200_v38  ;;  %v1707_v48 = vadd.f32 %v1706_v41, %v1378_v40  ;;  %v1549_v49 = vpop.f32.mrf.mxu1  ;;  %v1221_v51 = vadd.f32 %v4438_v56, %v1220_v43  ;;  %v3429_v39 = vunpack.c.l.bf16 %v3948_v33 }
 0x1bb   : > { %4009 = vst [vmem:[%s4285_s12 + $0x80] sm:$0xff] %v3694_v47   ;;  %v2137_v50 = vadd.f32 %v3550_v36, %v1707_v48  ;;  %1259 = vmatmul.bf16.gmra.mxu0 %v2835_v37  ;;  %1419 = vmatmul.bf16.gmra.mxu2 %v3091_v42  ;;  %v1550_v58 = vadd.f32 %v1549_v49, %v1221_v51  ;;  %v2850_v49 = vld [vmem:[%s4170_s22 + $0x1b0] sm:$0xf] }
 0x1bc   : > { %1588 = vmatmul.bf16.gmra.mxu1 %v2839_v44  ;;  %1748 = vmatmul.bf16.gmra.mxu3 %v3095_v45  ;;  %v3430_v45 = vunpack.c.h.bf16 %v3948_v33  ;;  %v3106_v51 = vld [vmem:[%s4170_s22 + $0x3b0] sm:$0xf]  ;;  %v3332_v33 = vld [vmem:[%s4170_s22 + $0x3c4] sm:$0xf0] }
 0x1bd   : > { %v2265_v54 = vmax.f32 %v2137_v50, 0.0  ;;  %v2074_v3 = vadd.f32 %v3425_v59, %v1550_v58  ;;  %v3266_v50 = vld [vmem:[%s4170_s22 + $0x1b4] sm:$0xf0]  ;;  %v2852_v58 = vld [vmem:[%s4170_s22 + $0x1b8] sm:$0xf0] }
 0x1be   : > { %v1380_v55 = vpop.f32.mrf.mxu2  ;;  %v3329_v59 = vld [vmem:[%s4170_s22 + $0x3b4] sm:$0xf] }
 0x1bf   : > { %v3854_v57 = vpack.c.bf16 %v2265_v54, %v2264_v53  ;;  %v1709_v60 = vpop.f32.mrf.mxu3  ;;  %v1381_v62 = vadd.f32 %v4438_v56, %v1380_v55  ;;  %v2202_v19 = vmax.f32 %v2074_v3, 0.0  ;;  %v3265_v53 = vld [vmem:[%s4170_s22 + $0x1b4] sm:$0xf]  ;;  %v3557_v55 = vunpack.c.l.bf16 %v3980_v46 }
 0x1c0   : > { %v1222_v61 = vpop.f32.mrf.mxu0  ;;  %v2855_v6 = vor.u32 %v3265_v53, %v2852_v58 }
 0x1c1   : > { %4041 = vst [vmem:[%s4285_s12 + $0x180] sm:$0xff] %v3854_v57   ;;  %v1223_v63 = vadd.f32 %v4438_v56, %v1222_v61  ;;  %v1551_v0 = vpop.f32.mrf.mxu1  ;;  %v1710_v10 = vadd.f32 %v1709_v60, %v1381_v62  ;;  %v3108_v60 = vld [vmem:[%s4170_s22 + $0x3b8] sm:$0xf0]  ;;  %v3558_v62 = vunpack.c.h.bf16 %v3980_v46 }
 0x1c2   : > { %v3111_v7 = vor.u32 %v3329_v59, %v3108_v60  ;;  %v3950_v59 = vld [vmem:[%s4264_s9 + $0xa0] sm:$0xff]  }
 0x1c3   : > { %v1552_v4 = vadd.f32 %v1551_v0, %v1223_v63  ;;  %v2138_v27 = vadd.f32 %v3553_v11, %v1710_v10  ;;  %v2851_v63 = vor.u32 %v3266_v50, %v2850_v49 }
 0x1c5   : > { %v2075_v12 = vadd.f32 %v3426_v1, %v1552_v4  ;;  %v2266_v34 = vmax.f32 %v2138_v27, 0.0  ;;  %v3107_v4 = vor.u32 %v3330_v52, %v3106_v51  ;;  %v3981_v27 = vld [vmem:[%s4264_s9 + $0x198] sm:$0xff]  }
 0x1c6   : > { %v1382_v16 = vpop.f32.mrf.mxu2 }
 0x1c7   : > { %v2203_v20 = vmax.f32 %v2075_v12, 0.0  ;;  %v1383_v21 = vadd.f32 %v4438_v56, %v1382_v16  ;;  %v1711_v22 = vpop.f32.mrf.mxu3 }
 0x1c8   : > { %v1225_v24 = vpop.f32.mrf.mxu0 }
 0x1c9   : > { %v3699_v28 = vpack.c.bf16 %v2203_v20, %v2202_v19  ;;  %v1712_v29 = vadd.f32 %v1711_v22, %v1383_v21  ;;  %v1554_v30 = vpop.f32.mrf.mxu1  ;;  %v1226_v32 = vadd.f32 %v4438_v56, %v1225_v24  ;;  %v3433_v20 = vunpack.c.l.bf16 %v3949_v14 }
 0x1cb   : > { %4010 = vst [vmem:[%s4285_s12 + $0x88] sm:$0xff] %v3699_v28   ;;  %v2139_v31 = vadd.f32 %v3554_v17, %v1712_v29  ;;  %1264 = vmatmul.bf16.gmra.mxu0 %v2843_v18  ;;  %1424 = vmatmul.bf16.gmra.mxu2 %v3099_v23  ;;  %v1555_v38 = vadd.f32 %v1554_v30, %v1226_v32  ;;  %v2858_v30 = vld [vmem:[%s4170_s22 + $0x1c0] sm:$0xf] }
 0x1cc   : > { %1593 = vmatmul.bf16.gmra.mxu1 %v2847_v25  ;;  %1753 = vmatmul.bf16.gmra.mxu3 %v3103_v26  ;;  %v3434_v26 = vunpack.c.h.bf16 %v3949_v14  ;;  %v3114_v32 = vld [vmem:[%s4170_s22 + $0x3c0] sm:$0xf]  ;;  %v3334_v14 = vld [vmem:[%s4170_s22 + $0x3d4] sm:$0xf0] }
 0x1cd   : > { %v2267_v35 = vmax.f32 %v2139_v31, 0.0  ;;  %v2076_v47 = vadd.f32 %v3429_v39, %v1555_v38  ;;  %v3268_v31 = vld [vmem:[%s4170_s22 + $0x1c4] sm:$0xf0]  ;;  %v2860_v38 = vld [vmem:[%s4170_s22 + $0x1c8] sm:$0xf0] }
 0x1ce   : > { %v1385_v36 = vpop.f32.mrf.mxu2  ;;  %v3331_v39 = vld [vmem:[%s4170_s22 + $0x3c4] sm:$0xf] }
 0x1cf   : > { %v3859_v37 = vpack.c.bf16 %v2267_v35, %v2266_v34  ;;  %v1714_v40 = vpop.f32.mrf.mxu3  ;;  %v1386_v42 = vadd.f32 %v4438_v56, %v1385_v36  ;;  %v2204_v0 = vmax.f32 %v2076_v47, 0.0  ;;  %v3267_v34 = vld [vmem:[%s4170_s22 + $0x1c4] sm:$0xf]  ;;  %v3561_v36 = vunpack.c.l.bf16 %v3981_v27 }
 0x1d0   : > { %v1227_v41 = vpop.f32.mrf.mxu0  ;;  %v2863_v50 = vor.u32 %v3267_v34, %v2860_v38 }
 0x1d1   : > { %4042 = vst [vmem:[%s4285_s12 + $0x188] sm:$0xff] %v3859_v37   ;;  %v1228_v43 = vadd.f32 %v4438_v56, %v1227_v41  ;;  %v1556_v44 = vpop.f32.mrf.mxu1  ;;  %v1715_v54 = vadd.f32 %v1714_v40, %v1386_v42  ;;  %v3116_v40 = vld [vmem:[%s4170_s22 + $0x3c8] sm:$0xf0]  ;;  %v3562_v42 = vunpack.c.h.bf16 %v3981_v27 }
 0x1d2   : > { %v3119_v51 = vor.u32 %v3331_v39, %v3116_v40  ;;  %v3951_v39 = vld [vmem:[%s4264_s9 + $0xa8] sm:$0xff]  }
 0x1d3   : > { %v1557_v48 = vadd.f32 %v1556_v44, %v1228_v43  ;;  %v2140_v8 = vadd.f32 %v3557_v55, %v1715_v54  ;;  %v2859_v43 = vor.u32 %v3268_v31, %v2858_v30 }
 0x1d5   : > { %v2077_v57 = vadd.f32 %v3430_v45, %v1557_v48  ;;  %v2268_v15 = vmax.f32 %v2140_v8, 0.0  ;;  %v3115_v48 = vor.u32 %v3332_v33, %v3114_v32  ;;  %v3982_v8 = vld [vmem:[%s4264_s9 + $0x1a0] sm:$0xff]  }
 0x1d6   : > { %v1387_v61 = vpop.f32.mrf.mxu2 }
 0x1d7   : > { %v2205_v1 = vmax.f32 %v2077_v57, 0.0  ;;  %v1388_v2 = vadd.f32 %v4438_v56, %v1387_v61  ;;  %v1716_v3 = vpop.f32.mrf.mxu3 }
 0x1d8   : > { %v1230_v5 = vpop.f32.mrf.mxu0 }
 0x1d9   : > { %v3704_v9 = vpack.c.bf16 %v2205_v1, %v2204_v0  ;;  %v1717_v10 = vadd.f32 %v1716_v3, %v1388_v2  ;;  %v1559_v11 = vpop.f32.mrf.mxu1  ;;  %v1231_v13 = vadd.f32 %v4438_v56, %v1230_v5  ;;  %v3437_v1 = vunpack.c.l.bf16 %v3950_v59 }
 0x1db   : > { %4011 = vst [vmem:[%s4285_s12 + $0x90] sm:$0xff] %v3704_v9   ;;  %v2141_v12 = vadd.f32 %v3558_v62, %v1717_v10  ;;  %1269 = vmatmul.bf16.gmra.mxu0 %v2851_v63  ;;  %1429 = vmatmul.bf16.gmra.mxu2 %v3107_v4  ;;  %v1560_v19 = vadd.f32 %v1559_v11, %v1231_v13  ;;  %v2866_v11 = vld [vmem:[%s4170_s22 + $0x1d0] sm:$0xf] }
 0x1dc   : > { %1598 = vmatmul.bf16.gmra.mxu1 %v2855_v6  ;;  %1758 = vmatmul.bf16.gmra.mxu3 %v3111_v7  ;;  %v3438_v7 = vunpack.c.h.bf16 %v3950_v59  ;;  %v3122_v13 = vld [vmem:[%s4170_s22 + $0x3d0] sm:$0xf]  ;;  %v3336_v59 = vld [vmem:[%s4170_s22 + $0x3e4] sm:$0xf0] }
 0x1dd   : > { %v2269_v16 = vmax.f32 %v2141_v12, 0.0  ;;  %v2078_v28 = vadd.f32 %v3433_v20, %v1560_v19  ;;  %v3270_v12 = vld [vmem:[%s4170_s22 + $0x1d4] sm:$0xf0]  ;;  %v2868_v19 = vld [vmem:[%s4170_s22 + $0x1d8] sm:$0xf0] }
 0x1de   : > { %v1390_v17 = vpop.f32.mrf.mxu2  ;;  %v3333_v20 = vld [vmem:[%s4170_s22 + $0x3d4] sm:$0xf] }
 0x1df   : > { %v3864_v18 = vpack.c.bf16 %v2269_v16, %v2268_v15  ;;  %v1719_v21 = vpop.f32.mrf.mxu3  ;;  %v1391_v23 = vadd.f32 %v4438_v56, %v1390_v17  ;;  %v2206_v44 = vmax.f32 %v2078_v28, 0.0  ;;  %v3269_v15 = vld [vmem:[%s4170_s22 + $0x1d4] sm:$0xf]  ;;  %v3565_v17 = vunpack.c.l.bf16 %v3982_v8 }
 0x1e0   : > { %v1232_v22 = vpop.f32.mrf.mxu0  ;;  %v2871_v31 = vor.u32 %v3269_v15, %v2868_v19 }
 0x1e1   : > { %4043 = vst [vmem:[%s4285_s12 + $0x190] sm:$0xff] %v3864_v18   ;;  %v1233_v24 = vadd.f32 %v4438_v56, %v1232_v22  ;;  %v1561_v25 = vpop.f32.mrf.mxu1  ;;  %v1720_v35 = vadd.f32 %v1719_v21, %v1391_v23  ;;  %v3124_v21 = vld [vmem:[%s4170_s22 + $0x3d8] sm:$0xf0]  ;;  %v2867_v23 = vor.u32 %v3270_v12, %v2866_v11 }
 0x1e2   : > { %v3127_v32 = vor.u32 %v3333_v20, %v3124_v21  ;;  %v3952_v20 = vld [vmem:[%s4264_s9 + $0xb0] sm:$0xff]  }
 0x1e3   : > { %v1562_v29 = vadd.f32 %v1561_v25, %v1233_v24  ;;  %v2142_v52 = vadd.f32 %v3561_v36, %v1720_v35 }
 0x1e5   : > { %v2079_v37 = vadd.f32 %v3434_v26, %v1562_v29  ;;  %v2270_v60 = vmax.f32 %v2142_v52, 0.0  ;;  %v4614_v26 = vld [vmem:[%s4728_s2] ss:$0 sm:$0xff]  ;;  %v3123_v29 = vor.u32 %v3334_v14, %v3122_v13  ;;  %v3983_v52 = vld [vmem:[%s4264_s9 + $0x1a8] sm:$0xff]  }
 0x1e6   : > { %v1392_v41 = vpop.f32.mrf.mxu2 }
 0x1e7   : > { %v2207_v45 = vmax.f32 %v2079_v37, 0.0  ;;  %v1393_v46 = vadd.f32 %v4438_v56, %v1392_v41  ;;  %v1721_v47 = vpop.f32.mrf.mxu3 }
 0x1e8   : > { %v1235_v49 = vpop.f32.mrf.mxu0 }
 0x1e9   : > { %v3709_v53 = vpack.c.bf16 %v2207_v45, %v2206_v44  ;;  %v1722_v54 = vadd.f32 %v1721_v47, %v1393_v46  ;;  %v1564_v55 = vpop.f32.mrf.mxu1  ;;  %v1236_v58 = vadd.f32 %v4438_v56, %v1235_v49  ;;  %v3441_v45 = vunpack.c.l.bf16 %v3951_v39 }
 0x1eb   : > { %4012 = vst [vmem:[%s4285_s12 + $0x98] sm:$0xff] %v3709_v53   ;;  %v2143_v57 = vadd.f32 %v3562_v42, %v1722_v54  ;;  %1274 = vmatmul.bf16.gmra.mxu0 %v2859_v43  ;;  %1434 = vmatmul.bf16.gmra.mxu2 %v3115_v48  ;;  %v1565_v0 = vadd.f32 %v1564_v55, %v1236_v58  ;;  %v2874_v55 = vld [vmem:[%s4170_s22 + $0x1e0] sm:$0xf] }
 0x1ec   : > { %1603 = vmatmul.bf16.gmra.mxu1 %v2863_v50  ;;  %1763 = vmatmul.bf16.gmra.mxu3 %v3119_v51  ;;  %v3442_v51 = vunpack.c.h.bf16 %v3951_v39  ;;  %v3130_v58 = vld [vmem:[%s4170_s22 + $0x3e0] sm:$0xf]  ;;  %v3338_v39 = vld [vmem:[%s4170_s22 + $0x3f4] sm:$0xf0] }
 0x1ed   : > { %v2271_v61 = vmax.f32 %v2143_v57, 0.0  ;;  %v2080_v9 = vadd.f32 %v3437_v1, %v1565_v0  ;;  %v3272_v57 = vld [vmem:[%s4170_s22 + $0x1e4] sm:$0xf0]  ;;  %v2876_v0 = vld [vmem:[%s4170_s22 + $0x1e8] sm:$0xf0] }
 0x1ee   : > { %v1395_v62 = vpop.f32.mrf.mxu2  ;;  %v3335_v1 = vld [vmem:[%s4170_s22 + $0x3e4] sm:$0xf] }
 0x1ef   : > { %v3869_v63 = vpack.c.bf16 %v2271_v61, %v2270_v60  ;;  %v1724_v2 = vpop.f32.mrf.mxu3  ;;  %v1396_v4 = vadd.f32 %v4438_v56, %v1395_v62  ;;  %v2208_v24 = vmax.f32 %v2080_v9, 0.0  ;;  %v3271_v60 = vld [vmem:[%s4170_s22 + $0x1e4] sm:$0xf]  ;;  %v3569_v62 = vunpack.c.l.bf16 %v3983_v52 }
 0x1f0   : > { %v1237_v3 = vpop.f32.mrf.mxu0  ;;  %v2879_v12 = vor.u32 %v3271_v60, %v2876_v0 }
 0x1f1   : > { %4044 = vst [vmem:[%s4285_s12 + $0x198] sm:$0xff] %v3869_v63   ;;  %v1238_v5 = vadd.f32 %v4438_v56, %v1237_v3  ;;  %v1566_v6 = vpop.f32.mrf.mxu1  ;;  %v1725_v16 = vadd.f32 %v1724_v2, %v1396_v4  ;;  %v3566_v56 = vunpack.c.h.bf16 %v3982_v8  ;;  %v3132_v2 = vld [vmem:[%s4170_s22 + $0x3e8] sm:$0xf0]  ;;  %v3570_v4 = vunpack.c.h.bf16 %v3983_v52 }
 0x1f2   : > { %v3135_v13 = vor.u32 %v3335_v1, %v3132_v2  ;;  %v3953_v1 = vld [vmem:[%s4264_s9 + $0xb8] sm:$0xff]  }
 0x1f3   : > { %v1567_v10 = vadd.f32 %v1566_v6, %v1238_v5  ;;  %v2144_v33 = vadd.f32 %v3565_v17, %v1725_v16  ;;  %v2875_v5 = vor.u32 %v3272_v57, %v2874_v55 }
 0x1f5   : > { %v2081_v18 = vadd.f32 %v3438_v7, %v1567_v10  ;;  %v2272_v40 = vmax.f32 %v2144_v33, 0.0  ;;  %v3131_v10 = vor.u32 %v3336_v59, %v3130_v58  ;;  %v3984_v33 = vld [vmem:[%s4264_s9 + $0x1b0] sm:$0xff]  }
 0x1f6   : > { %v1397_v22 = vpop.f32.mrf.mxu2 }
 0x1f7   : > { %v2209_v25 = vmax.f32 %v2081_v18, 0.0  ;;  %v1398_v27 = vadd.f32 %v4614_v26, %v1397_v22  ;;  %v1726_v28 = vpop.f32.mrf.mxu3 }
 0x1f8   : > { %v1240_v30 = vpop.f32.mrf.mxu0 }
 0x1f9   : > { %v3714_v34 = vpack.c.bf16 %v2209_v25, %v2208_v24  ;;  %v1727_v35 = vadd.f32 %v1726_v28, %v1398_v27  ;;  %v1569_v36 = vpop.f32.mrf.mxu1  ;;  %v1241_v38 = vadd.f32 %v4614_v26, %v1240_v30  ;;  %v3445_v25 = vunpack.c.l.bf16 %v3952_v20 }
 0x1fb   : > { %4013 = vst [vmem:[%s4285_s12 + $0xa0] sm:$0xff] %v3714_v34   ;;  %v2145_v37 = vadd.f32 %v3566_v56, %v1727_v35  ;;  %1279 = vmatmul.bf16.gmra.mxu0 %v2867_v23  ;;  %1439 = vmatmul.bf16.gmra.mxu2 %v3123_v29  ;;  %v1570_v44 = vadd.f32 %v1569_v36, %v1241_v38  ;;  %v2882_v36 = vld [vmem:[%s4170_s22 + $0x1f0] sm:$0xf] }
 0x1fc   : > { %1608 = vmatmul.bf16.gmra.mxu1 %v2871_v31  ;;  %1768 = vmatmul.bf16.gmra.mxu3 %v3127_v32  ;;  %v3446_v32 = vunpack.c.h.bf16 %v3952_v20  ;;  %v3138_v38 = vld [vmem:[%s4170_s22 + $0x3f0] sm:$0xf] }
 0x1fd   : > { %v2273_v41 = vmax.f32 %v2145_v37, 0.0  ;;  %v2082_v53 = vadd.f32 %v3441_v45, %v1570_v44  ;;  %v3274_v37 = vld [vmem:[%s4170_s22 + $0x1f4] sm:$0xf0]  ;;  %v2884_v44 = vld [vmem:[%s4170_s22 + $0x1f8] sm:$0xf0] }
 0x1fe   : > { %v1400_v42 = vpop.f32.mrf.mxu2  ;;  %v3337_v45 = vld [vmem:[%s4170_s22 + $0x3f4] sm:$0xf] }
 0x1ff   : > { %v3874_v43 = vpack.c.bf16 %v2273_v41, %v2272_v40  ;;  %v1729_v46 = vpop.f32.mrf.mxu3  ;;  %v1401_v48 = vadd.f32 %v4614_v26, %v1400_v42  ;;  %v2210_v6 = vmax.f32 %v2082_v53, 0.0  ;;  %v3273_v40 = vld [vmem:[%s4170_s22 + $0x1f4] sm:$0xf]  ;;  %v3573_v42 = vunpack.c.l.bf16 %v3984_v33 }
 0x200   : > { %v1242_v47 = vpop.f32.mrf.mxu0  ;;  %v2887_v57 = vor.u32 %v3273_v40, %v2884_v44 }
 0x201   : > { %4045 = vst [vmem:[%s4285_s12 + $0x1a0] sm:$0xff] %v3874_v43   ;;  %v1243_v49 = vadd.f32 %v4614_v26, %v1242_v47  ;;  %v1571_v50 = vpop.f32.mrf.mxu1  ;;  %v1730_v61 = vadd.f32 %v1729_v46, %v1401_v48  ;;  %v3140_v46 = vld [vmem:[%s4170_s22 + $0x3f8] sm:$0xf0]  ;;  %v3574_v48 = vunpack.c.h.bf16 %v3984_v33  ;;  %v3954_v33 = vld [vmem:[%s4264_s9 + $0xc0] sm:$0xff]  }
 0x202   : > { %v3143_v58 = vor.u32 %v3337_v45, %v3140_v46  ;;  %v3454_v45 = vunpack.c.h.bf16 %v3954_v33  ;;  %v3986_v46 = vld [vmem:[%s4264_s9 + $0x1c0] sm:$0xff]  }
 0x203   : > { %v1572_v54 = vadd.f32 %v1571_v50, %v1243_v49  ;;  %v2146_v14 = vadd.f32 %v3569_v62, %v1730_v61  ;;  %v2883_v49 = vor.u32 %v3274_v37, %v2882_v36 }
 0x205   : > { %v2083_v63 = vadd.f32 %v3442_v51, %v1572_v54  ;;  %v2274_v21 = vmax.f32 %v2146_v14, 0.0  ;;  %v3139_v54 = vor.u32 %v3338_v39, %v3138_v38  ;;  %v3985_v14 = vld [vmem:[%s4264_s9 + $0x1b8] sm:$0xff]   ;;  %v3453_v39 = vunpack.c.l.bf16 %v3954_v33 }
 0x206   : > { %v1402_v3 = vpop.f32.mrf.mxu2 }
 0x207   : > { %v2211_v7 = vmax.f32 %v2083_v63, 0.0  ;;  %v1403_v8 = vadd.f32 %v4614_v26, %v1402_v3  ;;  %v1731_v9 = vpop.f32.mrf.mxu3 }
 0x208   : > { %v1245_v11 = vpop.f32.mrf.mxu0 }
 0x209   : > { %v3719_v15 = vpack.c.bf16 %v2211_v7, %v2210_v6  ;;  %v1732_v16 = vadd.f32 %v1731_v9, %v1403_v8  ;;  %v1574_v17 = vpop.f32.mrf.mxu1  ;;  %v1246_v19 = vadd.f32 %v4614_v26, %v1245_v11  ;;  %v3449_v7 = vunpack.c.l.bf16 %v3953_v1 }
 0x20b   : > { %4014 = vst [vmem:[%s4285_s12 + $0xa8] sm:$0xff] %v3719_v15   ;;  %v2147_v18 = vadd.f32 %v3570_v4, %v1732_v16  ;;  %1284 = vmatmul.bf16.gmra.mxu0 %v2875_v5  ;;  %1444 = vmatmul.bf16.gmra.mxu2 %v3131_v10  ;;  %v1575_v24 = vadd.f32 %v1574_v17, %v1246_v19 }
 0x20c   : > { %1613 = vmatmul.bf16.gmra.mxu1 %v2879_v12  ;;  %1773 = vmatmul.bf16.gmra.mxu3 %v3135_v13  ;;  %v3450_v13 = vunpack.c.h.bf16 %v3953_v1 }
 0x20d   : > { %v2275_v22 = vmax.f32 %v2147_v18, 0.0  ;;  %v2084_v34 = vadd.f32 %v3445_v25, %v1575_v24  ;;  %v3577_v18 = vunpack.c.l.bf16 %v3985_v14  ;;  %v3578_v24 = vunpack.c.h.bf16 %v3985_v14 }
 0x20e   : > { %v1405_v56 = vpop.f32.mrf.mxu2 }
 0x20f   : > { %v3879_v23 = vpack.c.bf16 %v2275_v22, %v2274_v21  ;;  %v1734_v27 = vpop.f32.mrf.mxu3  ;;  %v1406_v29 = vadd.f32 %v4614_v26, %v1405_v56  ;;  %v2212_v50 = vmax.f32 %v2084_v34, 0.0 }
 0x210   : > { %v1247_v28 = vpop.f32.mrf.mxu0 }
 0x211   : > { %4046 = vst [vmem:[%s4285_s12 + $0x1a8] sm:$0xff] %v3879_v23   ;;  %v1248_v30 = vadd.f32 %v4614_v26, %v1247_v28  ;;  %v1576_v31 = vpop.f32.mrf.mxu1  ;;  %v1735_v41 = vadd.f32 %v1734_v27, %v1406_v29 }
 0x213   : > { %v1577_v35 = vadd.f32 %v1576_v31, %v1248_v30  ;;  %v2148_v59 = vadd.f32 %v3573_v42, %v1735_v41 }
 0x215   : > { %v2085_v43 = vadd.f32 %v3446_v32, %v1577_v35  ;;  %v2276_v2 = vmax.f32 %v2148_v59, 0.0 }
 0x216   : > { %v1407_v47 = vpop.f32.mrf.mxu2 }
 0x217   : > { %v2213_v51 = vmax.f32 %v2085_v43, 0.0  ;;  %v1408_v52 = vadd.f32 %v4614_v26, %v1407_v47  ;;  %v1736_v53 = vpop.f32.mrf.mxu3 }
 0x218   : > { %v1250_v55 = vpop.f32.mrf.mxu0 }
 0x219   : > { %v3724_v60 = vpack.c.bf16 %v2213_v51, %v2212_v50  ;;  %v1737_v61 = vadd.f32 %v1736_v53, %v1408_v52  ;;  %v1579_v62 = vpop.f32.mrf.mxu1  ;;  %v1251_v0 = vadd.f32 %v4614_v26, %v1250_v55  ;;  %v3581_v50 = vunpack.c.l.bf16 %v3986_v46 }
 0x21b   : > { %4015 = vst [vmem:[%s4285_s12 + $0xb0] sm:$0xff] %v3724_v60   ;;  %v2149_v63 = vadd.f32 %v3574_v48, %v1737_v61  ;;  %1289 = vmatmul.bf16.gmra.mxu0 %v2883_v49  ;;  %1449 = vmatmul.bf16.gmra.mxu2 %v3139_v54  ;;  %v1580_v6 = vadd.f32 %v1579_v62, %v1251_v0 }
 0x21c   : > { %1618 = vmatmul.bf16.gmra.mxu1 %v2887_v57  ;;  %1778 = vmatmul.bf16.gmra.mxu3 %v3143_v58  ;;  %v3582_v58 = vunpack.c.h.bf16 %v3986_v46 }
 0x21d   : > { %v2277_v3 = vmax.f32 %v2149_v63, 0.0  ;;  %v2086_v15 = vadd.f32 %v3449_v7, %v1580_v6 }
 0x21e   : > { %v1410_v4 = vpop.f32.mrf.mxu2 }
 0x21f   : > { %v3884_v5 = vpack.c.bf16 %v2277_v3, %v2276_v2  ;;  %v1739_v8 = vpop.f32.mrf.mxu3  ;;  %v1411_v10 = vadd.f32 %v4614_v26, %v1410_v4  ;;  %v2214_v21 = vmax.f32 %v2086_v15, 0.0  ;;  %v3955_v2 = vld [vmem:[%s4264_s9 + $0xc8] sm:$0xff]  }
 0x220   : > { %v1252_v9 = vpop.f32.mrf.mxu0  ;;  %v3458_v14 = vunpack.c.h.bf16 %v3955_v2  ;;  %v3987_v15 = vld [vmem:[%s4264_s9 + $0x1c8] sm:$0xff]  }
 0x221   : > { %4047 = vst [vmem:[%s4285_s12 + $0x1b0] sm:$0xff] %v3884_v5   ;;  %v1253_v11 = vadd.f32 %v4614_v26, %v1252_v9  ;;  %v1581_v12 = vpop.f32.mrf.mxu1  ;;  %v1740_v17 = vadd.f32 %v1739_v8, %v1411_v10  ;;  %v3457_v8 = vunpack.c.l.bf16 %v3955_v2 }
 0x223   : > { %v1582_v16 = vadd.f32 %v1581_v12, %v1253_v11  ;;  %v2150_v27 = vadd.f32 %v3577_v18, %v1740_v17 }
 0x225   : > { %v2087_v19 = vadd.f32 %v3450_v13, %v1582_v16  ;;  %v2278_v34 = vmax.f32 %v2150_v27, 0.0 }
 0x226   : > { %v1412_v20 = vpop.f32.mrf.mxu2 }
 0x227   : > { %v2215_v22 = vmax.f32 %v2087_v19, 0.0  ;;  %v1413_v56 = vadd.f32 %v4614_v26, %v1412_v20  ;;  %v1741_v23 = vpop.f32.mrf.mxu3  ;;  %v3585_v19 = vunpack.c.l.bf16 %v3987_v15 }
 0x228   : > { %v1255_v25 = vpop.f32.mrf.mxu0 }
 0x229   : > { %v3729_v28 = vpack.c.bf16 %v2215_v22, %v2214_v21  ;;  %v1742_v29 = vadd.f32 %v1741_v23, %v1413_v56  ;;  %v1584_v30 = vpop.f32.mrf.mxu1  ;;  %v1256_v32 = vadd.f32 %v4614_v26, %v1255_v25  ;;  %v3586_v25 = vunpack.c.h.bf16 %v3987_v15 }
 0x22b   : > { %4016 = vst [vmem:[%s4285_s12 + $0xb8] sm:$0xff] %v3729_v28   ;;  %v2151_v31 = vadd.f32 %v3578_v24, %v1742_v29  ;;  %v1585_v38 = vadd.f32 %v1584_v30, %v1256_v32 }
 0x22d   : > { %v2279_v35 = vmax.f32 %v2151_v31, 0.0  ;;  %v2088_v47 = vadd.f32 %v3453_v39, %v1585_v38 }
 0x22e   : > { %v1415_v36 = vpop.f32.mrf.mxu2 }
 0x22f   : > { %v3889_v37 = vpack.c.bf16 %v2279_v35, %v2278_v34  ;;  %v1744_v40 = vpop.f32.mrf.mxu3  ;;  %v1416_v42 = vadd.f32 %v4614_v26, %v1415_v36  ;;  %v2216_v53 = vmax.f32 %v2088_v47, 0.0  ;;  %v3956_v34 = vld [vmem:[%s4264_s9 + $0xd0] sm:$0xff]  }
 0x230   : > { %v1257_v41 = vpop.f32.mrf.mxu0  ;;  %v3462_v46 = vunpack.c.h.bf16 %v3956_v34  ;;  %v3988_v47 = vld [vmem:[%s4264_s9 + $0x1d0] sm:$0xff]  }
 0x231   : > { %4048 = vst [vmem:[%s4285_s12 + $0x1b8] sm:$0xff] %v3889_v37   ;;  %v1258_v43 = vadd.f32 %v4614_v26, %v1257_v41  ;;  %v1586_v44 = vpop.f32.mrf.mxu1  ;;  %v1745_v49 = vadd.f32 %v1744_v40, %v1416_v42  ;;  %v3461_v40 = vunpack.c.l.bf16 %v3956_v34 }
 0x233   : > { %v1587_v48 = vadd.f32 %v1586_v44, %v1258_v43  ;;  %v2152_v60 = vadd.f32 %v3581_v50, %v1745_v49 }
 0x235   : > { %v2089_v51 = vadd.f32 %v3454_v45, %v1587_v48  ;;  %v2280_v3 = vmax.f32 %v2152_v60, 0.0 }
 0x236   : > { %v1417_v52 = vpop.f32.mrf.mxu2 }
 0x237   : > { %v2217_v54 = vmax.f32 %v2089_v51, 0.0  ;;  %v1418_v55 = vadd.f32 %v4614_v26, %v1417_v52  ;;  %v1746_v57 = vpop.f32.mrf.mxu3  ;;  %v3589_v51 = vunpack.c.l.bf16 %v3988_v47 }
 0x238   : > { %v1260_v59 = vpop.f32.mrf.mxu0 }
 0x239   : > { %v3734_v61 = vpack.c.bf16 %v2217_v54, %v2216_v53  ;;  %v1747_v62 = vadd.f32 %v1746_v57, %v1418_v55  ;;  %v1589_v63 = vpop.f32.mrf.mxu1  ;;  %v1261_v1 = vadd.f32 %v4614_v26, %v1260_v59  ;;  %v3590_v59 = vunpack.c.h.bf16 %v3988_v47 }
 0x23b   : > { %4017 = vst [vmem:[%s4285_s12 + $0xc0] sm:$0xff] %v3734_v61   ;;  %v2153_v0 = vadd.f32 %v3582_v58, %v1747_v62  ;;  %v1590_v7 = vadd.f32 %v1589_v63, %v1261_v1 }
 0x23d   : > { %v2281_v4 = vmax.f32 %v2153_v0, 0.0  ;;  %v2090_v16 = vadd.f32 %v3457_v8, %v1590_v7 }
 0x23e   : > { %v1420_v5 = vpop.f32.mrf.mxu2 }
 0x23f   : > { %v3894_v6 = vpack.c.bf16 %v2281_v4, %v2280_v3  ;;  %v1749_v9 = vpop.f32.mrf.mxu3  ;;  %v1421_v11 = vadd.f32 %v4614_v26, %v1420_v5  ;;  %v2218_v22 = vmax.f32 %v2090_v16, 0.0  ;;  %v3957_v3 = vld [vmem:[%s4264_s9 + $0xd8] sm:$0xff]  }
 0x240   : > { %v1262_v10 = vpop.f32.mrf.mxu0  ;;  %v3466_v15 = vunpack.c.h.bf16 %v3957_v3  ;;  %v3989_v16 = vld [vmem:[%s4264_s9 + $0x1d8] sm:$0xff]  }
 0x241   : > { %4049 = vst [vmem:[%s4285_s12 + $0x1c0] sm:$0xff] %v3894_v6   ;;  %v1263_v12 = vadd.f32 %v4614_v26, %v1262_v10  ;;  %v1591_v13 = vpop.f32.mrf.mxu1  ;;  %v1750_v18 = vadd.f32 %v1749_v9, %v1421_v11  ;;  %v3465_v9 = vunpack.c.l.bf16 %v3957_v3 }
 0x243   : > { %v1592_v17 = vadd.f32 %v1591_v13, %v1263_v12  ;;  %v2154_v28 = vadd.f32 %v3585_v19, %v1750_v18 }
 0x245   : > { %v2091_v20 = vadd.f32 %v3458_v14, %v1592_v17  ;;  %v2282_v35 = vmax.f32 %v2154_v28, 0.0 }
 0x246   : > { %v1422_v21 = vpop.f32.mrf.mxu2 }
 0x247   : > { %v2219_v56 = vmax.f32 %v2091_v20, 0.0  ;;  %v1423_v23 = vadd.f32 %v4614_v26, %v1422_v21  ;;  %v1751_v24 = vpop.f32.mrf.mxu3  ;;  %v3593_v20 = vunpack.c.l.bf16 %v3989_v16 }
 0x248   : > { %v1265_v27 = vpop.f32.mrf.mxu0 }
 0x249   : > { %v3739_v29 = vpack.c.bf16 %v2219_v56, %v2218_v22  ;;  %v1752_v30 = vadd.f32 %v1751_v24, %v1423_v23  ;;  %v1594_v31 = vpop.f32.mrf.mxu1  ;;  %v1266_v33 = vadd.f32 %v4614_v26, %v1265_v27  ;;  %v3594_v27 = vunpack.c.h.bf16 %v3989_v16 }
 0x24b   : > { %4018 = vst [vmem:[%s4285_s12 + $0xc8] sm:$0xff] %v3739_v29   ;;  %v2155_v32 = vadd.f32 %v3586_v25, %v1752_v30  ;;  %v1595_v39 = vadd.f32 %v1594_v31, %v1266_v33 }
 0x24d   : > { %v2283_v36 = vmax.f32 %v2155_v32, 0.0  ;;  %v2092_v48 = vadd.f32 %v3461_v40, %v1595_v39 }
 0x24e   : > { %v1425_v37 = vpop.f32.mrf.mxu2 }
 0x24f   : > { %v3899_v38 = vpack.c.bf16 %v2283_v36, %v2282_v35  ;;  %v1754_v41 = vpop.f32.mrf.mxu3  ;;  %v1426_v43 = vadd.f32 %v4614_v26, %v1425_v37  ;;  %v2220_v54 = vmax.f32 %v2092_v48, 0.0  ;;  %v3958_v35 = vld [vmem:[%s4264_s9 + $0xe0] sm:$0xff]  }
 0x250   : > { %v1267_v42 = vpop.f32.mrf.mxu0  ;;  %v3470_v47 = vunpack.c.h.bf16 %v3958_v35  ;;  %v3990_v48 = vld [vmem:[%s4264_s9 + $0x1e0] sm:$0xff]  }
 0x251   : > { %4050 = vst [vmem:[%s4285_s12 + $0x1c8] sm:$0xff] %v3899_v38   ;;  %v1268_v44 = vadd.f32 %v4614_v26, %v1267_v42  ;;  %v1596_v45 = vpop.f32.mrf.mxu1  ;;  %v1755_v50 = vadd.f32 %v1754_v41, %v1426_v43  ;;  %v3469_v41 = vunpack.c.l.bf16 %v3958_v35 }
 0x253   : > { %v1597_v49 = vadd.f32 %v1596_v45, %v1268_v44  ;;  %v2156_v61 = vadd.f32 %v3589_v51, %v1755_v50 }
 0x255   : > { %v2093_v52 = vadd.f32 %v3462_v46, %v1597_v49  ;;  %v2284_v4 = vmax.f32 %v2156_v61, 0.0 }
 0x256   : > { %v1427_v53 = vpop.f32.mrf.mxu2 }
 0x257   : > { %v2221_v55 = vmax.f32 %v2093_v52, 0.0  ;;  %v1428_v57 = vadd.f32 %v4614_v26, %v1427_v53  ;;  %v1756_v58 = vpop.f32.mrf.mxu3  ;;  %v3597_v52 = vunpack.c.l.bf16 %v3990_v48 }
 0x258   : > { %v1270_v60 = vpop.f32.mrf.mxu0 }
 0x259   : > { %v3744_v62 = vpack.c.bf16 %v2221_v55, %v2220_v54  ;;  %v1757_v63 = vadd.f32 %v1756_v58, %v1428_v57  ;;  %v1599_v0 = vpop.f32.mrf.mxu1  ;;  %v1271_v2 = vadd.f32 %v4614_v26, %v1270_v60  ;;  %v3598_v60 = vunpack.c.h.bf16 %v3990_v48 }
 0x25b   : > { %4019 = vst [vmem:[%s4285_s12 + $0xd0] sm:$0xff] %v3744_v62   ;;  %v2157_v1 = vadd.f32 %v3590_v59, %v1757_v63  ;;  %v1600_v8 = vadd.f32 %v1599_v0, %v1271_v2 }
 0x25d   : > { %v2285_v5 = vmax.f32 %v2157_v1, 0.0  ;;  %v2094_v17 = vadd.f32 %v3465_v9, %v1600_v8 }
 0x25e   : > { %v1430_v6 = vpop.f32.mrf.mxu2 }
 0x25f   : > { %v3904_v7 = vpack.c.bf16 %v2285_v5, %v2284_v4  ;;  %v1759_v10 = vpop.f32.mrf.mxu3  ;;  %v1431_v12 = vadd.f32 %v4614_v26, %v1430_v6  ;;  %v2222_v56 = vmax.f32 %v2094_v17, 0.0  ;;  %v3959_v4 = vld [vmem:[%s4264_s9 + $0xe8] sm:$0xff]  }
 0x260   : > { %v1272_v11 = vpop.f32.mrf.mxu0  ;;  %v3474_v16 = vunpack.c.h.bf16 %v3959_v4  ;;  %v3991_v17 = vld [vmem:[%s4264_s9 + $0x1e8] sm:$0xff]  }
 0x261   : > { %4051 = vst [vmem:[%s4285_s12 + $0x1d0] sm:$0xff] %v3904_v7   ;;  %v1273_v13 = vadd.f32 %v4614_v26, %v1272_v11  ;;  %v1601_v14 = vpop.f32.mrf.mxu1  ;;  %v1760_v19 = vadd.f32 %v1759_v10, %v1431_v12  ;;  %v3473_v10 = vunpack.c.l.bf16 %v3959_v4 }
 0x263   : > { %v1602_v18 = vadd.f32 %v1601_v14, %v1273_v13  ;;  %v2158_v29 = vadd.f32 %v3593_v20, %v1760_v19 }
 0x265   : > { %v2095_v21 = vadd.f32 %v3466_v15, %v1602_v18  ;;  %v2286_v36 = vmax.f32 %v2158_v29, 0.0 }
 0x266   : > { %v1432_v22 = vpop.f32.mrf.mxu2 }
 0x267   : > { %v2223_v23 = vmax.f32 %v2095_v21, 0.0  ;;  %v1433_v24 = vadd.f32 %v4614_v26, %v1432_v22  ;;  %v1761_v25 = vpop.f32.mrf.mxu3  ;;  %v3601_v21 = vunpack.c.l.bf16 %v3991_v17 }
 0x268   : > { %v1275_v28 = vpop.f32.mrf.mxu0 }
 0x269   : > { %v3749_v30 = vpack.c.bf16 %v2223_v23, %v2222_v56  ;;  %v1762_v31 = vadd.f32 %v1761_v25, %v1433_v24  ;;  %v1604_v32 = vpop.f32.mrf.mxu1  ;;  %v1276_v34 = vadd.f32 %v4614_v26, %v1275_v28  ;;  %v3602_v28 = vunpack.c.h.bf16 %v3991_v17  ;;  %v3993_v17 = vld [vmem:[%s4264_s9 + $0x1f8] sm:$0xff]  }
 0x26b   : > { %4020 = vst [vmem:[%s4285_s12 + $0xd8] sm:$0xff] %v3749_v30   ;;  %v2159_v33 = vadd.f32 %v3594_v27, %v1762_v31  ;;  %v1605_v40 = vadd.f32 %v1604_v32, %v1276_v34 }
 0x26d   : > { %v2287_v37 = vmax.f32 %v2159_v33, 0.0  ;;  %v2096_v49 = vadd.f32 %v3469_v41, %v1605_v40 }
 0x26e   : > { %v1435_v38 = vpop.f32.mrf.mxu2 }
 0x26f   : > { %v3909_v39 = vpack.c.bf16 %v2287_v37, %v2286_v36  ;;  %v1764_v42 = vpop.f32.mrf.mxu3  ;;  %v1436_v44 = vadd.f32 %v4614_v26, %v1435_v38  ;;  %v2224_v55 = vmax.f32 %v2096_v49, 0.0  ;;  %v3960_v36 = vld [vmem:[%s4264_s9 + $0xf0] sm:$0xff]  }
 0x270   : > { %v1277_v43 = vpop.f32.mrf.mxu0  ;;  %v3478_v48 = vunpack.c.h.bf16 %v3960_v36  ;;  %v3992_v49 = vld [vmem:[%s4264_s9 + $0x1f0] sm:$0xff]  }
 0x271   : > { %4052 = vst [vmem:[%s4285_s12 + $0x1d8] sm:$0xff] %v3909_v39   ;;  %v1278_v45 = vadd.f32 %v4614_v26, %v1277_v43  ;;  %v1606_v46 = vpop.f32.mrf.mxu1  ;;  %v1765_v51 = vadd.f32 %v1764_v42, %v1436_v44  ;;  %v3477_v42 = vunpack.c.l.bf16 %v3960_v36 }
 0x273   : > { %v1607_v50 = vadd.f32 %v1606_v46, %v1278_v45  ;;  %v2160_v62 = vadd.f32 %v3597_v52, %v1765_v51 }
 0x275   : > { %v2097_v53 = vadd.f32 %v3470_v47, %v1607_v50  ;;  %v2288_v5 = vmax.f32 %v2160_v62, 0.0 }
 0x276   : > { %v1437_v54 = vpop.f32.mrf.mxu2 }
 0x277   : > { %v2225_v57 = vmax.f32 %v2097_v53, 0.0  ;;  %v1438_v58 = vadd.f32 %v4614_v26, %v1437_v54  ;;  %v1766_v59 = vpop.f32.mrf.mxu3  ;;  %v3605_v53 = vunpack.c.l.bf16 %v3992_v49 }
 0x278   : > { %v1280_v61 = vpop.f32.mrf.mxu0 }
 0x279   : > { %v3754_v63 = vpack.c.bf16 %v2225_v57, %v2224_v55  ;;  %v1767_v0 = vadd.f32 %v1766_v59, %v1438_v58  ;;  %v1609_v1 = vpop.f32.mrf.mxu1  ;;  %v1281_v3 = vadd.f32 %v4614_v26, %v1280_v61  ;;  %v3606_v61 = vunpack.c.h.bf16 %v3992_v49 }
 0x27b   : > { %4021 = vst [vmem:[%s4285_s12 + $0xe0] sm:$0xff] %v3754_v63   ;;  %v2161_v2 = vadd.f32 %v3598_v60, %v1767_v0  ;;  %v1610_v9 = vadd.f32 %v1609_v1, %v1281_v3 }
 0x27d   : > { %v2289_v6 = vmax.f32 %v2161_v2, 0.0  ;;  %v2098_v18 = vadd.f32 %v3473_v10, %v1610_v9 }
 0x27e   : > { %v1440_v7 = vpop.f32.mrf.mxu2 }
 0x27f   : > { %v3914_v8 = vpack.c.bf16 %v2289_v6, %v2288_v5  ;;  %v1769_v11 = vpop.f32.mrf.mxu3  ;;  %v1441_v13 = vadd.f32 %v4614_v26, %v1440_v7  ;;  %v2226_v23 = vmax.f32 %v2098_v18, 0.0  ;;  %v3961_v5 = vld [vmem:[%s4264_s9 + $0xf8] sm:$0xff]  }
 0x280   : > { %v1282_v12 = vpop.f32.mrf.mxu0 }
 0x281   : > { %4053 = vst [vmem:[%s4285_s12 + $0x1e0] sm:$0xff] %v3914_v8   ;;  %v1283_v14 = vadd.f32 %v4614_v26, %v1282_v12  ;;  %v1611_v15 = vpop.f32.mrf.mxu1  ;;  %v1770_v20 = vadd.f32 %v1769_v11, %v1441_v13  ;;  %v3481_v11 = vunpack.c.l.bf16 %v3961_v5 }
 0x283   : > { %v1612_v19 = vadd.f32 %v1611_v15, %v1283_v14  ;;  %v2162_v30 = vadd.f32 %v3601_v21, %v1770_v20 }
 0x285   : > { %v2099_v22 = vadd.f32 %v3474_v16, %v1612_v19  ;;  %v2290_v37 = vmax.f32 %v2162_v30, 0.0  ;;  %v3482_v16 = vunpack.c.h.bf16 %v3961_v5 }
 0x286   : > { %v1442_v56 = vpop.f32.mrf.mxu2 }
 0x287   : > { %v2227_v24 = vmax.f32 %v2099_v22, 0.0  ;;  %v1443_v25 = vadd.f32 %v4614_v26, %v1442_v56  ;;  %v1771_v27 = vpop.f32.mrf.mxu3  ;;  %v3609_v22 = vunpack.c.l.bf16 %v3993_v17 }
 0x288   : > { %v1285_v29 = vpop.f32.mrf.mxu0 }
 0x289   : > { %v3759_v31 = vpack.c.bf16 %v2227_v24, %v2226_v23  ;;  %v1772_v32 = vadd.f32 %v1771_v27, %v1443_v25  ;;  %v1614_v33 = vpop.f32.mrf.mxu1  ;;  %v1286_v35 = vadd.f32 %v4614_v26, %v1285_v29 }
 0x28b   : > { %4022 = vst [vmem:[%s4285_s12 + $0xe8] sm:$0xff] %v3759_v31   ;;  %v2163_v34 = vadd.f32 %v3602_v28, %v1772_v32  ;;  %v1615_v41 = vadd.f32 %v1614_v33, %v1286_v35  ;;  %v3610_v28 = vunpack.c.h.bf16 %v3993_v17 }
 0x28d   : > { %v2291_v38 = vmax.f32 %v2163_v34, 0.0  ;;  %v2100_v50 = vadd.f32 %v3477_v42, %v1615_v41 }
 0x28e   : > { %v1445_v39 = vpop.f32.mrf.mxu2 }
 0x28f   : > { %v3919_v40 = vpack.c.bf16 %v2291_v38, %v2290_v37  ;;  %v1774_v43 = vpop.f32.mrf.mxu3  ;;  %v1446_v45 = vadd.f32 %v4614_v26, %v1445_v39  ;;  %v2228_v57 = vmax.f32 %v2100_v50, 0.0 }
 0x290   : > { %v1287_v44 = vpop.f32.mrf.mxu0 }
 0x291   : > { %4054 = vst [vmem:[%s4285_s12 + $0x1e8] sm:$0xff] %v3919_v40   ;;  %v1288_v46 = vadd.f32 %v4614_v26, %v1287_v44  ;;  %v1616_v47 = vpop.f32.mrf.mxu1  ;;  %v1775_v52 = vadd.f32 %v1774_v43, %v1446_v45 }
 0x293   : > { %v1617_v51 = vadd.f32 %v1616_v47, %v1288_v46  ;;  %v2164_v63 = vadd.f32 %v3605_v53, %v1775_v52 }
 0x295   : > { %v2101_v54 = vadd.f32 %v3478_v48, %v1617_v51  ;;  %v2292_v6 = vmax.f32 %v2164_v63, 0.0 }
 0x296   : > { %v1447_v55 = vpop.f32.mrf.mxu2 }
 0x297   : > { %v2229_v58 = vmax.f32 %v2101_v54, 0.0  ;;  %v1448_v59 = vadd.f32 %v4614_v26, %v1447_v55  ;;  %v1776_v60 = vpop.f32.mrf.mxu3 }
 0x298   : > { %v1290_v62 = vpop.f32.mrf.mxu0 }
 0x299   : > { %v3764_v0 = vpack.c.bf16 %v2229_v58, %v2228_v57  ;;  %v1777_v1 = vadd.f32 %v1776_v60, %v1448_v59  ;;  %v1619_v2 = vpop.f32.mrf.mxu1  ;;  %v1291_v4 = vadd.f32 %v4614_v26, %v1290_v62 }
 0x29b   : > { %4023 = vst [vmem:[%s4285_s12 + $0xf0] sm:$0xff] %v3764_v0   ;;  %v2165_v3 = vadd.f32 %v3606_v61, %v1777_v1  ;;  %v1620_v10 = vadd.f32 %v1619_v2, %v1291_v4 }
 0x29d   : > { %v2293_v7 = vmax.f32 %v2165_v3, 0.0  ;;  %v2102_v19 = vadd.f32 %v3481_v11, %v1620_v10 }
 0x29e   : > { %v1450_v8 = vpop.f32.mrf.mxu2 }
 0x29f   : > { %v3924_v9 = vpack.c.bf16 %v2293_v7, %v2292_v6  ;;  %v1779_v12 = vpop.f32.mrf.mxu3  ;;  %v1451_v14 = vadd.f32 %v4614_v26, %v1450_v8  ;;  %v2230_v24 = vmax.f32 %v2102_v19, 0.0 }
 0x2a0   : > { %v1292_v13 = vpop.f32.mrf.mxu0 }
 0x2a1   : > { %4055 = vst [vmem:[%s4285_s12 + $0x1f0] sm:$0xff] %v3924_v9   ;;  %v1293_v15 = vadd.f32 %v4614_v26, %v1292_v13  ;;  %v1621_v18 = vpop.f32.mrf.mxu1  ;;  %v1780_v21 = vadd.f32 %v1779_v12, %v1451_v14 }
 0x2a3   : > { %v1622_v20 = vadd.f32 %v1621_v18, %v1293_v15  ;;  %v2166_v30 = vadd.f32 %v3609_v22, %v1780_v21 }
 0x2a5   : > { %v2103_v56 = vadd.f32 %v3482_v16, %v1622_v20  ;;  %v2294_v34 = vmax.f32 %v2166_v30, 0.0 }
 0x2a6   : > { %v1452_v23 = vpop.f32.mrf.mxu2 }
 0x2a7   : > { %v2231_v25 = vmax.f32 %v2103_v56, 0.0  ;;  %v1453_v27 = vadd.f32 %v4614_v26, %v1452_v23  ;;  %v1781_v29 = vpop.f32.mrf.mxu3 }
 0x2a9   : > { %v3769_v31 = vpack.c.bf16 %v2231_v25, %v2230_v24  ;;  %v1782_v32 = vadd.f32 %v1781_v29, %v1453_v27 }
 0x2ab   : > { %4024 = vst [vmem:[%s4285_s12 + $0xf8] sm:$0xff] %v3769_v31   ;;  %v2167_v33 = vadd.f32 %v3610_v28, %v1782_v32 }
 0x2ad   : > { %v2295_v35 = vmax.f32 %v2167_v33, 0.0 }
 0x2af   : > { %v3929_v36 = vpack.c.bf16 %v2295_v35, %v2294_v34 }
 0x2b1   : > { %4056 = vst [vmem:[%s4285_s12 + $0x1f8] sm:$0xff] %v3929_v36  }
 0x2b2 PF: > { %s14_s15 = sadd.s32 1, %s4090_s15  }
 0x2b3   : > { %p11_p4 = scmp.ge.s32.totalorder %s14_s15, 4  }
 0x2b5   :  { %13 = sbr.rel (!%p11_p4) target bundleno = 1 (0x1), region = 69 }

// kernel: resnet20_forward.28
= control target key start
LH: loop header
LB: loop body
LE: loop exit
PB: predicated region body
PF: predicated region fallthrough
CT: control target
= control target key end

     0   :  { %s1232_s12 = smov 0   ;;  %s1422_s0 = inlined_call_operand.vmem [shape: bf16[512,256], index: 0, kind: input, shape index: {}]   ;;  %s1423_s1 = inlined_call_operand.vmem [shape: bf16[256,128], index: 1, kind: input, shape index: {}]   ;;  %s1424_s2 = inlined_call_operand.vmem [shape: f32[1,128], index: 2, kind: input, shape index: {}]   ;;  %s1425_s3 = inlined_call_operand.vmem [shape: bf16[512,128], index: 3, kind: output, shape index: {}]  }
   0x1 LB: > { %s831_s13 = sadd.s32 4294967295, %s1210_s12   ;;  %p835_p0 = scmp.ge.s32.totalorder %s1210_s12, 1  ;;  %s1210_s12 = sphi %s1232_s12, %s13_s12  }
   0x2   : > { %p139_p1 = scmp.lt.s32.totalorder %s1210_s12, 3 }
   0x4   : > { %p140_p2 = pnand %p835_p0, %p139_p1 }
   0x5   : > { %s836_s26 = sshll.u32 (!%p140_p2), %s831_s13, 5 }
   0x6   : > { %143 = sbr.rel (%p140_p2) target bundleno = 304 (0x130), region = 32  ;;  %p165_p3 = scmp.lt.s32.totalorder (!%p140_p2), %s836_s26, 63 }
   0xb   : > { %v1075_v0 = vld [vmem:[%s1423_s1 + $0x38] sm:$0xff]  ;;  %v1074_v2 = vld [vmem:[%s1423_s1 + $0x30] sm:$0xff]  ;;  %v1073_v4 = vld [vmem:[%s1423_s1 + $0x28] sm:$0xff]  ;;  %s1427_s26 = smov (!%p165_p3, %s836_s26), 63 }
   0xc   : > { %v1083_v1 = vld [vmem:[%s1423_s1 + $0x78] sm:$0xff]  ;;  %501 = vmatpush.bf16.msra.mxu0 %v1075_v0  ;;  %1179 = vmatpush.bf16.msra.mxu2 %v1075_v0  ;;  %v1082_v3 = vld [vmem:[%s1423_s1 + $0x70] sm:$0xff]  ;;  %v1081_v5 = vld [vmem:[%s1423_s1 + $0x68] sm:$0xff]  ;;  %s1035_s13 = sshll.u32 %s1427_s26, 3  ;;  %s840_s28 = sshll.u32 %s1427_s26, 2 }
   0xd   : > { %590 = vmatpush.bf16.msra.mxu1 %v1083_v1  ;;  %1187 = vmatpush.bf16.msra.mxu3 %v1083_v1  ;;  %v1072_v6 = vld [vmem:[%s1423_s1 + $0x20] sm:$0xff]  ;;  %v1071_v8 = vld [vmem:[%s1423_s1 + $0x18] sm:$0xff]  ;;  %v1070_v10 = vld [vmem:[%s1423_s1 + $0x10] sm:$0xff]  ;;  %s1285_s18 = scalar_lea.vmem %s1422_s0, %s1035_s13  ;;  %s1372_s4 = scalar_lea.vmem %s1425_s3, %s840_s28 }
   0xe   : > { %v1080_v7 = vld [vmem:[%s1423_s1 + $0x60] sm:$0xff]  ;;  %v1079_v9 = vld [vmem:[%s1423_s1 + $0x58] sm:$0xff]  ;;  %v1078_v11 = vld [vmem:[%s1423_s1 + $0x50] sm:$0xff] }
   0xf   : > { %v1069_v12 = vld [vmem:[%s1423_s1 + $0x8] sm:$0xff]  ;;  %v1068_v14 = vld [vmem:[%s1423_s1] sm:$0xff]  ;;  %v851_v28 = vld [vmem:[%s1285_s18 + $0x10] sm:$0xf] }
  0x10   : > { %502 = vmatpush.bf16.msra.mxu0 %v1074_v2  ;;  %1180 = vmatpush.bf16.msra.mxu2 %v1074_v2  ;;  %v1077_v13 = vld [vmem:[%s1423_s1 + $0x48] sm:$0xff]  ;;  %v1076_v15 = vld [vmem:[%s1423_s1 + $0x40] sm:$0xff]  ;;  %v1039_v29 = vld [vmem:[%s1285_s18 + $0x14] sm:$0xf0] }
  0x11   : > { %591 = vmatpush.bf16.msra.mxu1 %v1082_v3  ;;  %1188 = vmatpush.bf16.msra.mxu3 %v1082_v3  ;;  %v843_v16 = vld [vmem:[%s1285_s18] sm:$0xf]  ;;  %v1037_v17 = vld [vmem:[%s1285_s18 + $0x4] sm:$0xf0]  ;;  %v1036_v20 = vld [vmem:[%s1285_s18 + $0x4] sm:$0xf]  ;;  %v852_v36 = vor.u32 %v1039_v29, %v851_v28 }
  0x12   : > { %v907_v18 = vld [vmem:[%s1285_s18 + $0x80] sm:$0xf]  ;;  %v1053_v19 = vld [vmem:[%s1285_s18 + $0x84] sm:$0xf0]  ;;  %v845_v21 = vld [vmem:[%s1285_s18 + $0x8] sm:$0xf0]  ;;  %v844_v24 = vor.u32 %v1037_v17, %v843_v16 }
  0x13   : > { %v1052_v22 = vld [vmem:[%s1285_s18 + $0x84] sm:$0xf]  ;;  %v909_v23 = vld [vmem:[%s1285_s18 + $0x88] sm:$0xf0]  ;;  %v908_v25 = vor.u32 %v1053_v19, %v907_v18  ;;  %v848_v26 = vor.u32 %v1036_v20, %v845_v21  ;;  %v915_v30 = vld [vmem:[%s1285_s18 + $0x90] sm:$0xf] }
  0x14   : > { %503 = vmatpush.bf16.msra.mxu0 %v1073_v4  ;;  %1181 = vmatpush.bf16.msra.mxu2 %v1073_v4  ;;  %v912_v27 = vor.u32 %v1052_v22, %v909_v23  ;;  %v1055_v31 = vld [vmem:[%s1285_s18 + $0x94] sm:$0xf0]  ;;  %v1038_v32 = vld [vmem:[%s1285_s18 + $0x14] sm:$0xf]  ;;  %v853_v33 = vld [vmem:[%s1285_s18 + $0x18] sm:$0xf0] }
  0x15   : > { %592 = vmatpush.bf16.msra.mxu1 %v1081_v5  ;;  %1189 = vmatpush.bf16.msra.mxu3 %v1081_v5  ;;  %v1054_v34 = vld [vmem:[%s1285_s18 + $0x94] sm:$0xf]  ;;  %v917_v35 = vld [vmem:[%s1285_s18 + $0x98] sm:$0xf0]  ;;  %v916_v37 = vor.u32 %v1055_v31, %v915_v30  ;;  %v856_v38 = vor.u32 %v1038_v32, %v853_v33  ;;  %v859_v40 = vld [vmem:[%s1285_s18 + $0x20] sm:$0xf] }
  0x16   : > { %v920_v39 = vor.u32 %v1054_v34, %v917_v35  ;;  %v1041_v41 = vld [vmem:[%s1285_s18 + $0x24] sm:$0xf0]  ;;  %v923_v42 = vld [vmem:[%s1285_s18 + $0xa0] sm:$0xf]  ;;  %v1040_v44 = vld [vmem:[%s1285_s18 + $0x24] sm:$0xf] }
  0x17   : > { %v1057_v43 = vld [vmem:[%s1285_s18 + $0xa4] sm:$0xf0]  ;;  %v861_v45 = vld [vmem:[%s1285_s18 + $0x28] sm:$0xf0]  ;;  %v1056_v46 = vld [vmem:[%s1285_s18 + $0xa4] sm:$0xf]  ;;  %v860_v48 = vor.u32 %v1041_v41, %v859_v40 }
  0x18   : > { %504 = vmatpush.bf16.msra.mxu0 %v1072_v6  ;;  %1182 = vmatpush.bf16.msra.mxu2 %v1072_v6  ;;  %v925_v47 = vld [vmem:[%s1285_s18 + $0xa8] sm:$0xf0]  ;;  %v924_v49 = vor.u32 %v1057_v43, %v923_v42  ;;  %v864_v50 = vor.u32 %v1040_v44, %v861_v45  ;;  %v867_v52 = vld [vmem:[%s1285_s18 + $0x30] sm:$0xf]  ;;  %v1043_v53 = vld [vmem:[%s1285_s18 + $0x34] sm:$0xf0] }
  0x19   : > { %593 = vmatpush.bf16.msra.mxu1 %v1080_v7  ;;  %1190 = vmatpush.bf16.msra.mxu3 %v1080_v7  ;;  %v928_v51 = vor.u32 %v1056_v46, %v925_v47  ;;  %v931_v54 = vld [vmem:[%s1285_s18 + $0xb0] sm:$0xf]  ;;  %v1059_v55 = vld [vmem:[%s1285_s18 + $0xb4] sm:$0xf0]  ;;  %v1042_v56 = vld [vmem:[%s1285_s18 + $0x34] sm:$0xf]  ;;  %v868_v60 = vor.u32 %v1043_v53, %v867_v52 }
  0x1a   : > { %v869_v57 = vld [vmem:[%s1285_s18 + $0x38] sm:$0xf0]  ;;  %v1058_v58 = vld [vmem:[%s1285_s18 + $0xb4] sm:$0xf]  ;;  %v932_v61 = vor.u32 %v1059_v55, %v931_v54  ;;  %v875_v0 = vld [vmem:[%s1285_s18 + $0x40] sm:$0xf] }
  0x1b   : > { %v933_v59 = vld [vmem:[%s1285_s18 + $0xb8] sm:$0xf0]  ;;  %v872_v62 = vor.u32 %v1042_v56, %v869_v57  ;;  %v1045_v1 = vld [vmem:[%s1285_s18 + $0x44] sm:$0xf0]  ;;  %v939_v2 = vld [vmem:[%s1285_s18 + $0xc0] sm:$0xf] }
  0x1c   : > { %505 = vmatpush.bf16.msra.mxu0 %v1071_v8  ;;  %1183 = vmatpush.bf16.msra.mxu2 %v1071_v8  ;;  %v936_v63 = vor.u32 %v1058_v58, %v933_v59  ;;  %v1061_v3 = vld [vmem:[%s1285_s18 + $0xc4] sm:$0xf0]  ;;  %v1044_v4 = vld [vmem:[%s1285_s18 + $0x44] sm:$0xf]  ;;  %v877_v5 = vld [vmem:[%s1285_s18 + $0x48] sm:$0xf0]  ;;  %v876_v8 = vor.u32 %v1045_v1, %v875_v0 }
  0x1d   : > { %594 = vmatpush.bf16.msra.mxu1 %v1079_v9  ;;  %1191 = vmatpush.bf16.msra.mxu3 %v1079_v9  ;;  %v1060_v6 = vld [vmem:[%s1285_s18 + $0xc4] sm:$0xf]  ;;  %v941_v7 = vld [vmem:[%s1285_s18 + $0xc8] sm:$0xf0]  ;;  %v940_v9 = vor.u32 %v1061_v3, %v939_v2  ;;  %v1046_v16 = vld [vmem:[%s1285_s18 + $0x54] sm:$0xf] }
  0x1e   : > { %v885_v17 = vld [vmem:[%s1285_s18 + $0x58] sm:$0xf0]  ;;  %v1062_v18 = vld [vmem:[%s1285_s18 + $0xd4] sm:$0xf]  ;;  %v1048_v28 = vld [vmem:[%s1285_s18 + $0x64] sm:$0xf] }
  0x1f   : > { %v949_v19 = vld [vmem:[%s1285_s18 + $0xd8] sm:$0xf0]  ;;  %v888_v22 = vor.u32 %v1046_v16, %v885_v17  ;;  %v893_v29 = vld [vmem:[%s1285_s18 + $0x68] sm:$0xf0]  ;;  %v1064_v30 = vld [vmem:[%s1285_s18 + $0xe4] sm:$0xf] }
  0x20   : > { %506 = vmatpush.bf16.msra.mxu0 %v1070_v10  ;;  %1184 = vmatpush.bf16.msra.mxu2 %v1070_v10  ;;  %v880_v10 = vor.u32 %v1044_v4, %v877_v5  ;;  %v952_v23 = vor.u32 %v1062_v18, %v949_v19  ;;  %v957_v31 = vld [vmem:[%s1285_s18 + $0xe8] sm:$0xf0]  ;;  %v896_v34 = vor.u32 %v1048_v28, %v893_v29  ;;  %v1050_v40 = vld [vmem:[%s1285_s18 + $0x74] sm:$0xf]  ;;  %v901_v41 = vld [vmem:[%s1285_s18 + $0x78] sm:$0xf0] }
  0x21   : > { %595 = vmatpush.bf16.msra.mxu1 %v1078_v11  ;;  %1192 = vmatpush.bf16.msra.mxu3 %v1078_v11  ;;  %v944_v11 = vor.u32 %v1060_v6, %v941_v7  ;;  %v960_v35 = vor.u32 %v1064_v30, %v957_v31  ;;  %v1066_v42 = vld [vmem:[%s1285_s18 + $0xf4] sm:$0xf]  ;;  %v965_v43 = vld [vmem:[%s1285_s18 + $0xf8] sm:$0xf0]  ;;  %v904_v46 = vor.u32 %v1050_v40, %v901_v41 }
  0x22   : > { %v968_v47 = vor.u32 %v1066_v42, %v965_v43 }
  0x24   : > { %507 = vmatpush.bf16.msra.mxu0 %v1069_v12  ;;  %1185 = vmatpush.bf16.msra.mxu2 %v1069_v12  ;;  %v883_v12 = vld [vmem:[%s1285_s18 + $0x50] sm:$0xf] }
  0x25   : > { %596 = vmatpush.bf16.msra.mxu1 %v1077_v13  ;;  %1193 = vmatpush.bf16.msra.mxu3 %v1077_v13  ;;  %v1047_v13 = vld [vmem:[%s1285_s18 + $0x54] sm:$0xf0] }
  0x26   : > { %v884_v20 = vor.u32 %v1047_v13, %v883_v12 }
  0x28   : > { %508 = vmatpush.bf16.msra.mxu0 %v1068_v14  ;;  %1186 = vmatpush.bf16.msra.mxu2 %v1068_v14  ;;  %v947_v14 = vld [vmem:[%s1285_s18 + $0xd0] sm:$0xf] }
  0x29   : > { %597 = vmatpush.bf16.msra.mxu1 %v1076_v15  ;;  %1194 = vmatpush.bf16.msra.mxu3 %v1076_v15  ;;  %v1063_v15 = vld [vmem:[%s1285_s18 + $0xd4] sm:$0xf0] }
  0x2a   : > { %v948_v21 = vor.u32 %v1063_v15, %v947_v14 }
  0x2b   : > { %509 = vmatmul.bf16.vlgmr.msra.gmra.mxu0 %v844_v24  ;;  %549 = vmatmul.bf16.vlgmr.msra.gmra.mxu2 %v908_v25  ;;  %v891_v24 = vld [vmem:[%s1285_s18 + $0x60] sm:$0xf]  ;;  %v1049_v25 = vld [vmem:[%s1285_s18 + $0x64] sm:$0xf0] }
  0x2c   : > { %598 = vmatmul.bf16.vlgmr.msra.gmra.mxu1 %v848_v26  ;;  %638 = vmatmul.bf16.vlgmr.msra.gmra.mxu3 %v912_v27  ;;  %v955_v26 = vld [vmem:[%s1285_s18 + $0xe0] sm:$0xf]  ;;  %v1065_v27 = vld [vmem:[%s1285_s18 + $0xe4] sm:$0xf0]  ;;  %v892_v32 = vor.u32 %v1049_v25, %v891_v24 }
  0x2d   : > { %v956_v33 = vor.u32 %v1065_v27, %v955_v26 }
  0x3b   : > { %514 = vmatmul.bf16.gmra.mxu0 %v852_v36  ;;  %554 = vmatmul.bf16.gmra.mxu2 %v916_v37  ;;  %v899_v36 = vld [vmem:[%s1285_s18 + $0x70] sm:$0xf]  ;;  %v1051_v37 = vld [vmem:[%s1285_s18 + $0x74] sm:$0xf0] }
  0x3c   : > { %603 = vmatmul.bf16.gmra.mxu1 %v856_v38  ;;  %643 = vmatmul.bf16.gmra.mxu3 %v920_v39  ;;  %v963_v38 = vld [vmem:[%s1285_s18 + $0xf0] sm:$0xf]  ;;  %v1067_v39 = vld [vmem:[%s1285_s18 + $0xf4] sm:$0xf0]  ;;  %v900_v44 = vor.u32 %v1051_v37, %v899_v36 }
  0x3d   : > { %v964_v45 = vor.u32 %v1067_v39, %v963_v38 }
  0x4b   : > { %519 = vmatmul.bf16.gmra.mxu0 %v860_v48  ;;  %559 = vmatmul.bf16.gmra.mxu2 %v924_v49  ;;  %v1363_v49 = vld [vmem:[%s1424_s2] ss:$0 sm:$0xff] }
  0x4c   : > { %608 = vmatmul.bf16.gmra.mxu1 %v864_v50  ;;  %648 = vmatmul.bf16.gmra.mxu3 %v928_v51 }
  0x5b   : > { %524 = vmatmul.bf16.gmra.mxu0 %v868_v60  ;;  %564 = vmatmul.bf16.gmra.mxu2 %v932_v61 }
  0x5c   : > { %613 = vmatmul.bf16.gmra.mxu1 %v872_v62  ;;  %653 = vmatmul.bf16.gmra.mxu3 %v936_v63 }
  0x6b   : > { %529 = vmatmul.bf16.gmra.mxu0 %v876_v8  ;;  %569 = vmatmul.bf16.gmra.mxu2 %v940_v9 }
  0x6c   : > { %618 = vmatmul.bf16.gmra.mxu1 %v880_v10  ;;  %658 = vmatmul.bf16.gmra.mxu3 %v944_v11 }
  0x7b   : > { %534 = vmatmul.bf16.gmra.mxu0 %v884_v20  ;;  %574 = vmatmul.bf16.gmra.mxu2 %v948_v21 }
  0x7c   : > { %623 = vmatmul.bf16.gmra.mxu1 %v888_v22  ;;  %663 = vmatmul.bf16.gmra.mxu3 %v952_v23 }
  0x8b   : > { %539 = vmatmul.bf16.gmra.mxu0 %v892_v32  ;;  %579 = vmatmul.bf16.gmra.mxu2 %v956_v33 }
  0x8c   : > { %628 = vmatmul.bf16.gmra.mxu1 %v896_v34  ;;  %668 = vmatmul.bf16.gmra.mxu3 %v960_v35 }
  0x9b   : > { %544 = vmatmul.bf16.gmra.mxu0 %v900_v44  ;;  %584 = vmatmul.bf16.gmra.mxu2 %v964_v45 }
  0x9c   : > { %633 = vmatmul.bf16.gmra.mxu1 %v904_v46  ;;  %673 = vmatmul.bf16.gmra.mxu3 %v968_v47 }
  0xa8   : > { %v510_v48 = vpop.f32.mrf.mxu0 }
  0xa9   : > { %v599_v50 = vpop.f32.mrf.mxu1  ;;  %v511_v51 = vadd.f32 %v1363_v49, %v510_v48 }
  0xab   : > { %v600_v55 = vadd.f32 %v599_v50, %v511_v51 }
  0xad   : > { %v679_v60 = vmax.f32 %v600_v55, 0.0 }
  0xae   : > { %v550_v52 = vpop.f32.mrf.mxu2 }
  0xaf   : > { %v639_v53 = vpop.f32.mrf.mxu3  ;;  %v551_v58 = vadd.f32 %v1363_v49, %v550_v52 }
  0xb0   : > { %v512_v54 = vpop.f32.mrf.mxu0 }
  0xb1   : > { %v513_v56 = vadd.f32 %v1363_v49, %v512_v54  ;;  %v601_v57 = vpop.f32.mrf.mxu1  ;;  %v640_v63 = vadd.f32 %v639_v53, %v551_v58 }
  0xb3   : > { %v602_v59 = vadd.f32 %v601_v57, %v513_v56  ;;  %v695_v6 = vmax.f32 %v640_v63, 0.0 }
  0xb5   : > { %v680_v61 = vmax.f32 %v602_v59, 0.0 }
  0xb6   : > { %v552_v62 = vpop.f32.mrf.mxu2 }
  0xb7   : > { %v1087_v0 = vpack.c.bf16 %v680_v61, %v679_v60  ;;  %v553_v1 = vadd.f32 %v1363_v49, %v552_v62  ;;  %v641_v2 = vpop.f32.mrf.mxu3 }
  0xb8   : > { %v515_v3 = vpop.f32.mrf.mxu0 }
  0xb9   : > { %1088 = vst [vmem:[%s1372_s4] sm:$0xff] %v1087_v0   ;;  %v642_v4 = vadd.f32 %v641_v2, %v553_v1  ;;  %v604_v5 = vpop.f32.mrf.mxu1  ;;  %v516_v9 = vadd.f32 %v1363_v49, %v515_v3 }
  0xbb   : > { %v696_v7 = vmax.f32 %v642_v4, 0.0  ;;  %v605_v13 = vadd.f32 %v604_v5, %v516_v9 }
  0xbd   : > { %v1127_v8 = vpack.c.bf16 %v696_v7, %v695_v6  ;;  %v681_v18 = vmax.f32 %v605_v13, 0.0 }
  0xbe   : > { %v555_v10 = vpop.f32.mrf.mxu2 }
  0xbf   : > { %1171 = vst [vmem:[%s1372_s4 + $0x40] sm:$0xff] %v1127_v8   ;;  %v644_v11 = vpop.f32.mrf.mxu3  ;;  %v556_v16 = vadd.f32 %v1363_v49, %v555_v10 }
  0xc0   : > { %v517_v12 = vpop.f32.mrf.mxu0 }
  0xc1   : > { %v518_v14 = vadd.f32 %v1363_v49, %v517_v12  ;;  %v606_v15 = vpop.f32.mrf.mxu1  ;;  %v645_v21 = vadd.f32 %v644_v11, %v556_v16 }
  0xc3   : > { %v607_v17 = vadd.f32 %v606_v15, %v518_v14  ;;  %v697_v28 = vmax.f32 %v645_v21, 0.0 }
  0xc5   : > { %v682_v19 = vmax.f32 %v607_v17, 0.0 }
  0xc6   : > { %v557_v20 = vpop.f32.mrf.mxu2 }
  0xc7   : > { %v1092_v22 = vpack.c.bf16 %v682_v19, %v681_v18  ;;  %v558_v23 = vadd.f32 %v1363_v49, %v557_v20  ;;  %v646_v24 = vpop.f32.mrf.mxu3 }
  0xc8   : > { %v520_v25 = vpop.f32.mrf.mxu0 }
  0xc9   : > { %1164 = vst [vmem:[%s1372_s4 + $0x8] sm:$0xff] %v1092_v22   ;;  %v647_v26 = vadd.f32 %v646_v24, %v558_v23  ;;  %v609_v27 = vpop.f32.mrf.mxu1  ;;  %v521_v31 = vadd.f32 %v1363_v49, %v520_v25 }
  0xcb   : > { %v698_v29 = vmax.f32 %v647_v26, 0.0  ;;  %v610_v35 = vadd.f32 %v609_v27, %v521_v31 }
  0xcd   : > { %v1132_v30 = vpack.c.bf16 %v698_v29, %v697_v28  ;;  %v683_v40 = vmax.f32 %v610_v35, 0.0 }
  0xce   : > { %v560_v32 = vpop.f32.mrf.mxu2 }
  0xcf   : > { %1172 = vst [vmem:[%s1372_s4 + $0x48] sm:$0xff] %v1132_v30   ;;  %v649_v33 = vpop.f32.mrf.mxu3  ;;  %v561_v38 = vadd.f32 %v1363_v49, %v560_v32 }
  0xd0   : > { %v522_v34 = vpop.f32.mrf.mxu0 }
  0xd1   : > { %v523_v36 = vadd.f32 %v1363_v49, %v522_v34  ;;  %v611_v37 = vpop.f32.mrf.mxu1  ;;  %v650_v43 = vadd.f32 %v649_v33, %v561_v38 }
  0xd3   : > { %v612_v39 = vadd.f32 %v611_v37, %v523_v36  ;;  %v699_v51 = vmax.f32 %v650_v43, 0.0 }
  0xd5   : > { %v684_v41 = vmax.f32 %v612_v39, 0.0 }
  0xd6   : > { %v562_v42 = vpop.f32.mrf.mxu2 }
  0xd7   : > { %v1097_v44 = vpack.c.bf16 %v684_v41, %v683_v40  ;;  %v563_v45 = vadd.f32 %v1363_v49, %v562_v42  ;;  %v651_v46 = vpop.f32.mrf.mxu3 }
  0xd8   : > { %v525_v47 = vpop.f32.mrf.mxu0 }
  0xd9   : > { %1165 = vst [vmem:[%s1372_s4 + $0x10] sm:$0xff] %v1097_v44   ;;  %v652_v48 = vadd.f32 %v651_v46, %v563_v45  ;;  %v614_v50 = vpop.f32.mrf.mxu1  ;;  %v526_v54 = vadd.f32 %v1363_v49, %v525_v47 }
  0xdb   : > { %v700_v52 = vmax.f32 %v652_v48, 0.0  ;;  %v615_v58 = vadd.f32 %v614_v50, %v526_v54 }
  0xdd   : > { %v1137_v53 = vpack.c.bf16 %v700_v52, %v699_v51  ;;  %v685_v63 = vmax.f32 %v615_v58, 0.0 }
  0xde   : > { %v565_v55 = vpop.f32.mrf.mxu2 }
  0xdf   : > { %1173 = vst [vmem:[%s1372_s4 + $0x50] sm:$0xff] %v1137_v53   ;;  %v654_v56 = vpop.f32.mrf.mxu3  ;;  %v566_v61 = vadd.f32 %v1363_v49, %v565_v55 }
  0xe0   : > { %v527_v57 = vpop.f32.mrf.mxu0 }
  0xe1   : > { %v528_v59 = vadd.f32 %v1363_v49, %v527_v57  ;;  %v616_v60 = vpop.f32.mrf.mxu1  ;;  %v655_v2 = vadd.f32 %v654_v56, %v566_v61 }
  0xe3   : > { %v617_v62 = vadd.f32 %v616_v60, %v528_v59  ;;  %v701_v9 = vmax.f32 %v655_v2, 0.0 }
  0xe5   : > { %v686_v0 = vmax.f32 %v617_v62, 0.0 }
  0xe6   : > { %v567_v1 = vpop.f32.mrf.mxu2 }
  0xe7   : > { %v1102_v3 = vpack.c.bf16 %v686_v0, %v685_v63  ;;  %v568_v4 = vadd.f32 %v1363_v49, %v567_v1  ;;  %v656_v5 = vpop.f32.mrf.mxu3 }
  0xe8   : > { %v530_v6 = vpop.f32.mrf.mxu0 }
  0xe9   : > { %1166 = vst [vmem:[%s1372_s4 + $0x18] sm:$0xff] %v1102_v3   ;;  %v657_v7 = vadd.f32 %v656_v5, %v568_v4  ;;  %v619_v8 = vpop.f32.mrf.mxu1  ;;  %v531_v12 = vadd.f32 %v1363_v49, %v530_v6 }
  0xeb   : > { %v702_v10 = vmax.f32 %v657_v7, 0.0  ;;  %v620_v16 = vadd.f32 %v619_v8, %v531_v12 }
  0xed   : > { %v1142_v11 = vpack.c.bf16 %v702_v10, %v701_v9  ;;  %v687_v21 = vmax.f32 %v620_v16, 0.0 }
  0xee   : > { %v570_v13 = vpop.f32.mrf.mxu2 }
  0xef   : > { %1174 = vst [vmem:[%s1372_s4 + $0x58] sm:$0xff] %v1142_v11   ;;  %v659_v14 = vpop.f32.mrf.mxu3  ;;  %v571_v19 = vadd.f32 %v1363_v49, %v570_v13 }
  0xf0   : > { %v532_v15 = vpop.f32.mrf.mxu0 }
  0xf1   : > { %v533_v17 = vadd.f32 %v1363_v49, %v532_v15  ;;  %v621_v18 = vpop.f32.mrf.mxu1  ;;  %v660_v24 = vadd.f32 %v659_v14, %v571_v19 }
  0xf3   : > { %v622_v20 = vadd.f32 %v621_v18, %v533_v17  ;;  %v703_v31 = vmax.f32 %v660_v24, 0.0 }
  0xf5   : > { %v688_v22 = vmax.f32 %v622_v20, 0.0 }
  0xf6   : > { %v572_v23 = vpop.f32.mrf.mxu2 }
  0xf7   : > { %v1107_v25 = vpack.c.bf16 %v688_v22, %v687_v21  ;;  %v573_v26 = vadd.f32 %v1363_v49, %v572_v23  ;;  %v661_v27 = vpop.f32.mrf.mxu3 }
  0xf8   : > { %v535_v28 = vpop.f32.mrf.mxu0 }
  0xf9   : > { %1167 = vst [vmem:[%s1372_s4 + $0x20] sm:$0xff] %v1107_v25   ;;  %v662_v29 = vadd.f32 %v661_v27, %v573_v26  ;;  %v624_v30 = vpop.f32.mrf.mxu1  ;;  %v536_v34 = vadd.f32 %v1363_v49, %v535_v28 }
  0xfb   : > { %v704_v32 = vmax.f32 %v662_v29, 0.0  ;;  %v625_v38 = vadd.f32 %v624_v30, %v536_v34 }
  0xfd   : > { %v1147_v33 = vpack.c.bf16 %v704_v32, %v703_v31  ;;  %v689_v43 = vmax.f32 %v625_v38, 0.0 }
  0xfe   : > { %v575_v35 = vpop.f32.mrf.mxu2 }
  0xff   : > { %1175 = vst [vmem:[%s1372_s4 + $0x60] sm:$0xff] %v1147_v33   ;;  %v664_v36 = vpop.f32.mrf.mxu3  ;;  %v576_v41 = vadd.f32 %v1363_v49, %v575_v35 }
 0x100   : > { %v537_v37 = vpop.f32.mrf.mxu0 }
 0x101   : > { %v538_v39 = vadd.f32 %v1363_v49, %v537_v37  ;;  %v626_v40 = vpop.f32.mrf.mxu1  ;;  %v665_v46 = vadd.f32 %v664_v36, %v576_v41 }
 0x103   : > { %v627_v42 = vadd.f32 %v626_v40, %v538_v39  ;;  %v705_v54 = vmax.f32 %v665_v46, 0.0 }
 0x105   : > { %v690_v44 = vmax.f32 %v627_v42, 0.0 }
 0x106   : > { %v577_v45 = vpop.f32.mrf.mxu2 }
 0x107   : > { %v1112_v47 = vpack.c.bf16 %v690_v44, %v689_v43  ;;  %v578_v48 = vadd.f32 %v1363_v49, %v577_v45  ;;  %v666_v50 = vpop.f32.mrf.mxu3 }
 0x108   : > { %v540_v51 = vpop.f32.mrf.mxu0 }
 0x109   : > { %1168 = vst [vmem:[%s1372_s4 + $0x28] sm:$0xff] %v1112_v47   ;;  %v667_v52 = vadd.f32 %v666_v50, %v578_v48  ;;  %v629_v53 = vpop.f32.mrf.mxu1  ;;  %v541_v57 = vadd.f32 %v1363_v49, %v540_v51 }
 0x10b   : > { %v706_v55 = vmax.f32 %v667_v52, 0.0  ;;  %v630_v61 = vadd.f32 %v629_v53, %v541_v57 }
 0x10d   : > { %v1152_v56 = vpack.c.bf16 %v706_v55, %v705_v54  ;;  %v691_v2 = vmax.f32 %v630_v61, 0.0 }
 0x10e   : > { %v580_v58 = vpop.f32.mrf.mxu2 }
 0x10f   : > { %1176 = vst [vmem:[%s1372_s4 + $0x68] sm:$0xff] %v1152_v56   ;;  %v669_v59 = vpop.f32.mrf.mxu3  ;;  %v581_v0 = vadd.f32 %v1363_v49, %v580_v58 }
 0x110   : > { %v542_v60 = vpop.f32.mrf.mxu0 }
 0x111   : > { %v543_v62 = vadd.f32 %v1363_v49, %v542_v60  ;;  %v631_v63 = vpop.f32.mrf.mxu1  ;;  %v670_v5 = vadd.f32 %v669_v59, %v581_v0 }
 0x113   : > { %v632_v1 = vadd.f32 %v631_v63, %v543_v62  ;;  %v707_v12 = vmax.f32 %v670_v5, 0.0 }
 0x115   : > { %v692_v3 = vmax.f32 %v632_v1, 0.0 }
 0x116   : > { %v582_v4 = vpop.f32.mrf.mxu2 }
 0x117   : > { %v1117_v6 = vpack.c.bf16 %v692_v3, %v691_v2  ;;  %v583_v7 = vadd.f32 %v1363_v49, %v582_v4  ;;  %v671_v8 = vpop.f32.mrf.mxu3 }
 0x118   : > { %v545_v9 = vpop.f32.mrf.mxu0 }
 0x119   : > { %1169 = vst [vmem:[%s1372_s4 + $0x30] sm:$0xff] %v1117_v6   ;;  %v672_v10 = vadd.f32 %v671_v8, %v583_v7  ;;  %v634_v11 = vpop.f32.mrf.mxu1  ;;  %v546_v15 = vadd.f32 %v1363_v49, %v545_v9 }
 0x11b   : > { %v708_v13 = vmax.f32 %v672_v10, 0.0  ;;  %v635_v19 = vadd.f32 %v634_v11, %v546_v15 }
 0x11d   : > { %v1157_v14 = vpack.c.bf16 %v708_v13, %v707_v12  ;;  %v693_v24 = vmax.f32 %v635_v19, 0.0 }
 0x11e   : > { %v585_v16 = vpop.f32.mrf.mxu2 }
 0x11f   : > { %1177 = vst [vmem:[%s1372_s4 + $0x70] sm:$0xff] %v1157_v14   ;;  %v674_v17 = vpop.f32.mrf.mxu3  ;;  %v586_v22 = vadd.f32 %v1363_v49, %v585_v16 }
 0x120   : > { %v547_v18 = vpop.f32.mrf.mxu0 }
 0x121   : > { %v548_v20 = vadd.f32 %v1363_v49, %v547_v18  ;;  %v636_v21 = vpop.f32.mrf.mxu1  ;;  %v675_v27 = vadd.f32 %v674_v17, %v586_v22 }
 0x123   : > { %v637_v23 = vadd.f32 %v636_v21, %v548_v20  ;;  %v709_v32 = vmax.f32 %v675_v27, 0.0 }
 0x125   : > { %v694_v25 = vmax.f32 %v637_v23, 0.0 }
 0x126   : > { %v587_v26 = vpop.f32.mrf.mxu2 }
 0x127   : > { %v1122_v28 = vpack.c.bf16 %v694_v25, %v693_v24  ;;  %v588_v29 = vadd.f32 %v1363_v49, %v587_v26  ;;  %v676_v30 = vpop.f32.mrf.mxu3 }
 0x129   : > { %1170 = vst [vmem:[%s1372_s4 + $0x38] sm:$0xff] %v1122_v28   ;;  %v677_v31 = vadd.f32 %v676_v30, %v588_v29 }
 0x12b   : > { %v710_v33 = vmax.f32 %v677_v31, 0.0 }
 0x12d   : > { %v1162_v34 = vpack.c.bf16 %v710_v33, %v709_v32 }
 0x12f   : > { %1178 = vst [vmem:[%s1372_s4 + $0x78] sm:$0xff] %v1162_v34  }
 0x130 PF: > { %s13_s12 = sadd.s32 1, %s1210_s12  }
 0x131   : > { %p10_p4 = scmp.ge.s32.totalorder %s13_s12, 4  }
 0x133   :  { %12 = sbr.rel (!%p10_p4) target bundleno = 1 (0x1), region = 62 }

// kernel: resnet20_forward.29
= control target key start
LH: loop header
LB: loop body
LE: loop exit
PB: predicated region body
PF: predicated region fallthrough
CT: control target
= control target key end

     0   :  { %s866_s12 = smov 0   ;;  %s987_s0 = inlined_call_operand.vmem [shape: bf16[512,128], index: 0, kind: input, shape index: {}]   ;;  %s988_s1 = inlined_call_operand.vmem [shape: bf16[128,128], index: 1, kind: input, shape index: {}]   ;;  %s989_s2 = inlined_call_operand.vmem [shape: f32[1,128], index: 2, kind: input, shape index: {}]   ;;  %s990_s3 = inlined_call_operand.vmem [shape: bf16[512,128], index: 3, kind: output, shape index: {}]  }
   0x1 LB: > { %s579_s13 = sadd.s32 4294967295, %s844_s12   ;;  %p583_p0 = scmp.ge.s32.totalorder %s844_s12, 1  ;;  %s844_s12 = sphi %s866_s12, %s13_s12  }
   0x2   : > { %p138_p1 = scmp.lt.s32.totalorder %s844_s12, 3 }
   0x4   : > { %p139_p2 = pnand %p583_p0, %p138_p1 }
   0x5   : > { %s584_s22 = sshll.u32 (!%p139_p2), %s579_s13, 5 }
   0x6   : > { %142 = sbr.rel (%p139_p2) target bundleno = 238 (0xee), region = 32  ;;  %p163_p3 = scmp.lt.s32.totalorder (!%p139_p2), %s584_s22, 63 }
   0xb   : > { %v709_v0 = vld [vmem:[%s988_s1 + $0x38] sm:$0xff]  ;;  %v708_v1 = vld [vmem:[%s988_s1 + $0x30] sm:$0xff]  ;;  %v707_v2 = vld [vmem:[%s988_s1 + $0x28] sm:$0xff]  ;;  %s992_s22 = smov (!%p163_p3, %s584_s22), 63 }
   0xc   : > { %370 = vmatpush.bf16.msra.mxu0 %v709_v0  ;;  %805 = vmatpush.bf16.msra.mxu1 %v709_v0  ;;  %v706_v3 = vld [vmem:[%s988_s1 + $0x20] sm:$0xff]  ;;  %v705_v4 = vld [vmem:[%s988_s1 + $0x18] sm:$0xff]  ;;  %v704_v5 = vld [vmem:[%s988_s1 + $0x10] sm:$0xff]  ;;  %s585_s29 = sshll.u32 %s992_s22, 2 }
   0xd   : > { %806 = vmatpush.bf16.msra.mxu2 %v709_v0  ;;  %807 = vmatpush.bf16.msra.mxu3 %v709_v0  ;;  %v703_v6 = vld [vmem:[%s988_s1 + $0x8] sm:$0xff]  ;;  %v702_v7 = vld [vmem:[%s988_s1] sm:$0xff]  ;;  %s906_s7 = scalar_lea.vmem %s987_s0, %s585_s29  ;;  %s938_s13 = scalar_lea.vmem %s990_s3, %s585_s29 }
   0xe   : > { %v686_v8 = vld [vmem:[%s906_s7] sm:$0xff]  ;;  %v687_v12 = vld [vmem:[%s906_s7 + $0x8] sm:$0xff]  ;;  %v688_v16 = vld [vmem:[%s906_s7 + $0x10] sm:$0xff] }
   0xf   : > { %v690_v9 = vld [vmem:[%s906_s7 + $0x20] sm:$0xff]  ;;  %v691_v13 = vld [vmem:[%s906_s7 + $0x28] sm:$0xff]  ;;  %v692_v17 = vld [vmem:[%s906_s7 + $0x30] sm:$0xff] }
  0x10   : > { %371 = vmatpush.bf16.msra.mxu0 %v708_v1  ;;  %808 = vmatpush.bf16.msra.mxu1 %v708_v1  ;;  %v694_v10 = vld [vmem:[%s906_s7 + $0x40] sm:$0xff]  ;;  %v695_v14 = vld [vmem:[%s906_s7 + $0x48] sm:$0xff]  ;;  %v696_v18 = vld [vmem:[%s906_s7 + $0x50] sm:$0xff] }
  0x11   : > { %809 = vmatpush.bf16.msra.mxu2 %v708_v1  ;;  %810 = vmatpush.bf16.msra.mxu3 %v708_v1  ;;  %v698_v11 = vld [vmem:[%s906_s7 + $0x60] sm:$0xff]  ;;  %v699_v15 = vld [vmem:[%s906_s7 + $0x68] sm:$0xff]  ;;  %v700_v19 = vld [vmem:[%s906_s7 + $0x70] sm:$0xff] }
  0x12   : > { %v689_v20 = vld [vmem:[%s906_s7 + $0x18] sm:$0xff]  ;;  %v927_v26 = vld [vmem:[%s989_s2] ss:$0 sm:$0xff] }
  0x13   : > { %v693_v21 = vld [vmem:[%s906_s7 + $0x38] sm:$0xff] }
  0x14   : > { %372 = vmatpush.bf16.msra.mxu0 %v707_v2  ;;  %811 = vmatpush.bf16.msra.mxu1 %v707_v2  ;;  %v697_v22 = vld [vmem:[%s906_s7 + $0x58] sm:$0xff] }
  0x15   : > { %812 = vmatpush.bf16.msra.mxu2 %v707_v2  ;;  %813 = vmatpush.bf16.msra.mxu3 %v707_v2  ;;  %v701_v23 = vld [vmem:[%s906_s7 + $0x78] sm:$0xff] }
  0x18   : > { %373 = vmatpush.bf16.msra.mxu0 %v706_v3  ;;  %814 = vmatpush.bf16.msra.mxu1 %v706_v3 }
  0x19   : > { %815 = vmatpush.bf16.msra.mxu2 %v706_v3  ;;  %816 = vmatpush.bf16.msra.mxu3 %v706_v3 }
  0x1c   : > { %374 = vmatpush.bf16.msra.mxu0 %v705_v4  ;;  %817 = vmatpush.bf16.msra.mxu1 %v705_v4 }
  0x1d   : > { %818 = vmatpush.bf16.msra.mxu2 %v705_v4  ;;  %819 = vmatpush.bf16.msra.mxu3 %v705_v4 }
  0x20   : > { %375 = vmatpush.bf16.msra.mxu0 %v704_v5  ;;  %820 = vmatpush.bf16.msra.mxu1 %v704_v5 }
  0x21   : > { %821 = vmatpush.bf16.msra.mxu2 %v704_v5  ;;  %822 = vmatpush.bf16.msra.mxu3 %v704_v5 }
  0x24   : > { %376 = vmatpush.bf16.msra.mxu0 %v703_v6  ;;  %823 = vmatpush.bf16.msra.mxu1 %v703_v6 }
  0x25   : > { %824 = vmatpush.bf16.msra.mxu2 %v703_v6  ;;  %825 = vmatpush.bf16.msra.mxu3 %v703_v6 }
  0x28   : > { %377 = vmatpush.bf16.msra.mxu0 %v702_v7  ;;  %826 = vmatpush.bf16.msra.mxu1 %v702_v7 }
  0x29   : > { %827 = vmatpush.bf16.msra.mxu2 %v702_v7  ;;  %828 = vmatpush.bf16.msra.mxu3 %v702_v7 }
  0x2b   : > { %378 = vmatmul.bf16.vlgmr.msra.gmra.mxu0 %v686_v8  ;;  %398 = vmatmul.bf16.vlgmr.msra.gmra.mxu1 %v690_v9 }
  0x2c   : > { %418 = vmatmul.bf16.vlgmr.msra.gmra.mxu2 %v694_v10  ;;  %438 = vmatmul.bf16.vlgmr.msra.gmra.mxu3 %v698_v11 }
  0x3b   : > { %383 = vmatmul.bf16.gmra.mxu0 %v687_v12  ;;  %403 = vmatmul.bf16.gmra.mxu1 %v691_v13 }
  0x3c   : > { %423 = vmatmul.bf16.gmra.mxu2 %v695_v14  ;;  %443 = vmatmul.bf16.gmra.mxu3 %v699_v15 }
  0x4b   : > { %388 = vmatmul.bf16.gmra.mxu0 %v688_v16  ;;  %408 = vmatmul.bf16.gmra.mxu1 %v692_v17 }
  0x4c   : > { %428 = vmatmul.bf16.gmra.mxu2 %v696_v18  ;;  %448 = vmatmul.bf16.gmra.mxu3 %v700_v19 }
  0x5b   : > { %393 = vmatmul.bf16.gmra.mxu0 %v689_v20  ;;  %413 = vmatmul.bf16.gmra.mxu1 %v693_v21 }
  0x5c   : > { %433 = vmatmul.bf16.gmra.mxu2 %v697_v22  ;;  %453 = vmatmul.bf16.gmra.mxu3 %v701_v23 }
  0xa8   : > { %v379_v24 = vpop.f32.mrf.mxu0  ;;  %v399_v25 = vpop.f32.mrf.mxu1 }
  0xa9   : > { %v380_v31 = vadd.f32 %v927_v26, %v379_v24  ;;  %v400_v32 = vadd.f32 %v927_v26, %v399_v25 }
  0xaf   : > { %v419_v27 = vpop.f32.mrf.mxu2  ;;  %v439_v28 = vpop.f32.mrf.mxu3 }
  0xb0   : > { %v381_v29 = vpop.f32.mrf.mxu0  ;;  %v401_v30 = vpop.f32.mrf.mxu1  ;;  %v420_v39 = vadd.f32 %v927_v26, %v419_v27  ;;  %v440_v40 = vadd.f32 %v927_v26, %v439_v28 }
  0xb1   : > { %v382_v33 = vadd.f32 %v927_v26, %v381_v29  ;;  %v402_v34 = vadd.f32 %v927_v26, %v401_v30 }
  0xb3   : > { %v713_v35 = vpack.c.bf16 %v382_v33, %v380_v31  ;;  %v733_v36 = vpack.c.bf16 %v402_v34, %v400_v32 }
  0xb5   : > { %714 = vst [vmem:[%s938_s13] sm:$0xff] %v713_v35  }
  0xb6   : > { %793 = vst [vmem:[%s938_s13 + $0x20] sm:$0xff] %v733_v36  }
  0xb7   : > { %v421_v37 = vpop.f32.mrf.mxu2  ;;  %v441_v38 = vpop.f32.mrf.mxu3 }
  0xb8   : > { %v422_v41 = vadd.f32 %v927_v26, %v421_v37  ;;  %v442_v42 = vadd.f32 %v927_v26, %v441_v38  ;;  %v384_v43 = vpop.f32.mrf.mxu0  ;;  %v404_v44 = vpop.f32.mrf.mxu1 }
  0xb9   : > { %v385_v51 = vadd.f32 %v927_v26, %v384_v43  ;;  %v405_v52 = vadd.f32 %v927_v26, %v404_v44 }
  0xba   : > { %v753_v45 = vpack.c.bf16 %v422_v41, %v420_v39  ;;  %v773_v46 = vpack.c.bf16 %v442_v42, %v440_v40 }
  0xbc   : > { %797 = vst [vmem:[%s938_s13 + $0x40] sm:$0xff] %v753_v45  }
  0xbd   : > { %801 = vst [vmem:[%s938_s13 + $0x60] sm:$0xff] %v773_v46  }
  0xbf   : > { %v424_v47 = vpop.f32.mrf.mxu2  ;;  %v444_v48 = vpop.f32.mrf.mxu3 }
  0xc0   : > { %v386_v49 = vpop.f32.mrf.mxu0  ;;  %v406_v50 = vpop.f32.mrf.mxu1  ;;  %v425_v59 = vadd.f32 %v927_v26, %v424_v47  ;;  %v445_v60 = vadd.f32 %v927_v26, %v444_v48 }
  0xc1   : > { %v387_v53 = vadd.f32 %v927_v26, %v386_v49  ;;  %v407_v54 = vadd.f32 %v927_v26, %v406_v50 }
  0xc3   : > { %v718_v55 = vpack.c.bf16 %v387_v53, %v385_v51  ;;  %v738_v56 = vpack.c.bf16 %v407_v54, %v405_v52 }
  0xc5   : > { %790 = vst [vmem:[%s938_s13 + $0x8] sm:$0xff] %v718_v55  }
  0xc6   : > { %794 = vst [vmem:[%s938_s13 + $0x28] sm:$0xff] %v738_v56  }
  0xc7   : > { %v426_v57 = vpop.f32.mrf.mxu2  ;;  %v446_v58 = vpop.f32.mrf.mxu3 }
  0xc8   : > { %v427_v61 = vadd.f32 %v927_v26, %v426_v57  ;;  %v447_v62 = vadd.f32 %v927_v26, %v446_v58  ;;  %v389_v63 = vpop.f32.mrf.mxu0  ;;  %v409_v0 = vpop.f32.mrf.mxu1 }
  0xc9   : > { %v390_v7 = vadd.f32 %v927_v26, %v389_v63  ;;  %v410_v8 = vadd.f32 %v927_v26, %v409_v0 }
  0xca   : > { %v758_v1 = vpack.c.bf16 %v427_v61, %v425_v59  ;;  %v778_v2 = vpack.c.bf16 %v447_v62, %v445_v60 }
  0xcc   : > { %798 = vst [vmem:[%s938_s13 + $0x48] sm:$0xff] %v758_v1  }
  0xcd   : > { %802 = vst [vmem:[%s938_s13 + $0x68] sm:$0xff] %v778_v2  }
  0xcf   : > { %v429_v3 = vpop.f32.mrf.mxu2  ;;  %v449_v4 = vpop.f32.mrf.mxu3 }
  0xd0   : > { %v391_v5 = vpop.f32.mrf.mxu0  ;;  %v411_v6 = vpop.f32.mrf.mxu1  ;;  %v430_v15 = vadd.f32 %v927_v26, %v429_v3  ;;  %v450_v16 = vadd.f32 %v927_v26, %v449_v4 }
  0xd1   : > { %v392_v9 = vadd.f32 %v927_v26, %v391_v5  ;;  %v412_v10 = vadd.f32 %v927_v26, %v411_v6 }
  0xd3   : > { %v723_v11 = vpack.c.bf16 %v392_v9, %v390_v7  ;;  %v743_v12 = vpack.c.bf16 %v412_v10, %v410_v8 }
  0xd5   : > { %791 = vst [vmem:[%s938_s13 + $0x10] sm:$0xff] %v723_v11  }
  0xd6   : > { %795 = vst [vmem:[%s938_s13 + $0x30] sm:$0xff] %v743_v12  }
  0xd7   : > { %v431_v13 = vpop.f32.mrf.mxu2  ;;  %v451_v14 = vpop.f32.mrf.mxu3 }
  0xd8   : > { %v432_v17 = vadd.f32 %v927_v26, %v431_v13  ;;  %v452_v18 = vadd.f32 %v927_v26, %v451_v14  ;;  %v394_v19 = vpop.f32.mrf.mxu0  ;;  %v414_v20 = vpop.f32.mrf.mxu1 }
  0xd9   : > { %v395_v28 = vadd.f32 %v927_v26, %v394_v19  ;;  %v415_v29 = vadd.f32 %v927_v26, %v414_v20 }
  0xda   : > { %v763_v21 = vpack.c.bf16 %v432_v17, %v430_v15  ;;  %v783_v22 = vpack.c.bf16 %v452_v18, %v450_v16 }
  0xdc   : > { %799 = vst [vmem:[%s938_s13 + $0x50] sm:$0xff] %v763_v21  }
  0xdd   : > { %803 = vst [vmem:[%s938_s13 + $0x70] sm:$0xff] %v783_v22  }
  0xdf   : > { %v434_v23 = vpop.f32.mrf.mxu2  ;;  %v454_v24 = vpop.f32.mrf.mxu3 }
  0xe0   : > { %v396_v25 = vpop.f32.mrf.mxu0  ;;  %v416_v27 = vpop.f32.mrf.mxu1  ;;  %v435_v36 = vadd.f32 %v927_v26, %v434_v23  ;;  %v455_v37 = vadd.f32 %v927_v26, %v454_v24 }
  0xe1   : > { %v397_v30 = vadd.f32 %v927_v26, %v396_v25  ;;  %v417_v31 = vadd.f32 %v927_v26, %v416_v27 }
  0xe3   : > { %v728_v32 = vpack.c.bf16 %v397_v30, %v395_v28  ;;  %v748_v33 = vpack.c.bf16 %v417_v31, %v415_v29 }
  0xe5   : > { %792 = vst [vmem:[%s938_s13 + $0x18] sm:$0xff] %v728_v32  }
  0xe6   : > { %796 = vst [vmem:[%s938_s13 + $0x38] sm:$0xff] %v748_v33  }
  0xe7   : > { %v436_v34 = vpop.f32.mrf.mxu2  ;;  %v456_v35 = vpop.f32.mrf.mxu3 }
  0xe8   : > { %v437_v38 = vadd.f32 %v927_v26, %v436_v34  ;;  %v457_v39 = vadd.f32 %v927_v26, %v456_v35 }
  0xea   : > { %v768_v40 = vpack.c.bf16 %v437_v38, %v435_v36  ;;  %v788_v41 = vpack.c.bf16 %v457_v39, %v455_v37 }
  0xec   : > { %800 = vst [vmem:[%s938_s13 + $0x58] sm:$0xff] %v768_v40  }
  0xed   : > { %804 = vst [vmem:[%s938_s13 + $0x78] sm:$0xff] %v788_v41  }
  0xee PF: > { %s13_s12 = sadd.s32 1, %s844_s12  }
  0xef   : > { %p10_p4 = scmp.ge.s32.totalorder %s13_s12, 4  }
  0xf1   :  { %12 = sbr.rel (!%p10_p4) target bundleno = 1 (0x1), region = 62 }

// kernel: resnet20_forward.30
= control target key start
LH: loop header
LB: loop body
LE: loop exit
PB: predicated region body
PF: predicated region fallthrough
CT: control target
= control target key end

     0   :  { %s1883_s15 = smov 0   ;;  %s2250_s0 = inlined_call_operand.vmem [shape: bf16[512,384], index: 0, kind: input, shape index: {}]   ;;  %s2251_s1 = inlined_call_operand.vmem [shape: bf16[384,128], index: 1, kind: input, shape index: {}]   ;;  %s2252_s2 = inlined_call_operand.vmem [shape: f32[1,128], index: 2, kind: input, shape index: {}]   ;;  %s2253_s3 = inlined_call_operand.vmem [shape: bf16[512,128], index: 3, kind: input, shape index: {}]   ;;  %s2254_s4 = inlined_call_operand.vmem [shape: bf16[512,128], index: 4, kind: output, shape index: {}]  }
   0x1 LB: > { %s1269_s16 = sadd.s32 4294967295, %s1856_s15   ;;  %p1273_p0 = scmp.ge.s32.totalorder %s1856_s15, 1  ;;  %s1856_s15 = sphi %s1883_s15, %s14_s15  }
   0x2   : > { %p175_p1 = scmp.lt.s32.totalorder %s1856_s15, 3 }
   0x4   : > { %p176_p2 = pnand %p1273_p0, %p175_p1 }
   0x5   : > { %s1274_s9 = sshll.u32 (!%p176_p2), %s1269_s16, 5 }
   0x6   : > { %179 = sbr.rel (%p176_p2) target bundleno = 370 (0x172), region = 36  ;;  %p208_p3 = scmp.lt.s32.totalorder (!%p176_p2), %s1274_s9, 63 }
   0xb   : > { %v1625_v0 = vld [vmem:[%s2251_s1 + $0x38] sm:$0xff]  ;;  %v1624_v3 = vld [vmem:[%s2251_s1 + $0x30] sm:$0xff]  ;;  %v1623_v6 = vld [vmem:[%s2251_s1 + $0x28] sm:$0xff]  ;;  %s2256_s9 = smov (!%p208_p3, %s1274_s9), 63 }
   0xc   : > { %v1897_v1 = vld [vmem:[%s2251_s1 + $0x78] sm:$0xff]  ;;  %742 = vmatpush.bf16.msra.mxu0 %v1625_v0  ;;  %1816 = vmatpush.bf16.msra.mxu3 %v1625_v0  ;;  %v1912_v4 = vld [vmem:[%s2251_s1 + $0x70] sm:$0xff]  ;;  %v1927_v7 = vld [vmem:[%s2251_s1 + $0x68] sm:$0xff]  ;;  %s1840_s25 = smul.u32 12, %s2256_s9  ;;  %s1277_s23 = sshll.u32 %s2256_s9, 2 }
   0xd   : > { %v1902_v2 = vld [vmem:[%s2251_s1 + $0xb8] sm:$0xff]  ;;  %831 = vmatpush.bf16.msra.mxu1 %v1897_v1  ;;  %v1917_v5 = vld [vmem:[%s2251_s1 + $0xb0] sm:$0xff]  ;;  %v1932_v8 = vld [vmem:[%s2251_s1 + $0xa8] sm:$0xff]  ;;  %s2105_s26 = scalar_lea.vmem %s2253_s3, %s1277_s23  ;;  %s2125_s29 = scalar_lea.vmem %s2254_s4, %s1277_s23 }
   0xe   : > { %920 = vmatpush.bf16.msra.mxu2 %v1902_v2  ;;  %v1622_v9 = vld [vmem:[%s2251_s1 + $0x20] sm:$0xff]  ;;  %v1621_v12 = vld [vmem:[%s2251_s1 + $0x18] sm:$0xff]  ;;  %v1620_v15 = vld [vmem:[%s2251_s1 + $0x10] sm:$0xff]  ;;  %s1983_s8 = scalar_lea.vmem %s2250_s0, %s1840_s25 }
   0xf   : > { %v1942_v10 = vld [vmem:[%s2251_s1 + $0x60] sm:$0xff]  ;;  %v1629_v13 = vld [vmem:[%s2251_s1 + $0x58] sm:$0xff]  ;;  %v1628_v16 = vld [vmem:[%s2251_s1 + $0x50] sm:$0xff] }
  0x10   : > { %743 = vmatpush.bf16.msra.mxu0 %v1624_v3  ;;  %1817 = vmatpush.bf16.msra.mxu3 %v1624_v3  ;;  %v1947_v11 = vld [vmem:[%s2251_s1 + $0xa0] sm:$0xff]  ;;  %v1962_v14 = vld [vmem:[%s2251_s1 + $0x98] sm:$0xff]  ;;  %v1975_v17 = vld [vmem:[%s2251_s1 + $0x90] sm:$0xff] }
  0x11   : > { %832 = vmatpush.bf16.msra.mxu1 %v1912_v4  ;;  %v1619_v18 = vld [vmem:[%s2251_s1 + $0x8] sm:$0xff]  ;;  %v1618_v21 = vld [vmem:[%s2251_s1] sm:$0xff]  ;;  %v1284_v29 = vld [vmem:[%s1983_s8 + $0xc] sm:$0xf0] }
  0x12   : > { %921 = vmatpush.bf16.msra.mxu2 %v1917_v5  ;;  %v1627_v19 = vld [vmem:[%s2251_s1 + $0x48] sm:$0xff]  ;;  %v1626_v22 = vld [vmem:[%s2251_s1 + $0x40] sm:$0xff]  ;;  %v1572_v31 = vld [vmem:[%s1983_s8 + $0x10] sm:$0xf0] }
  0x13   : > { %v1992_v20 = vld [vmem:[%s2251_s1 + $0x88] sm:$0xff]  ;;  %v2003_v23 = vld [vmem:[%s2251_s1 + $0x80] sm:$0xff]  ;;  %v1294_v36 = vld [vmem:[%s1983_s8 + $0x18] sm:$0xf] }
  0x14   : > { %744 = vmatpush.bf16.msra.mxu0 %v1623_v6  ;;  %1818 = vmatpush.bf16.msra.mxu3 %v1623_v6  ;;  %v1282_v24 = vld [vmem:[%s1983_s8] sm:$0xf]  ;;  %v1571_v25 = vld [vmem:[%s1983_s8 + $0x8] sm:$0xf0]  ;;  %v1570_v28 = vld [vmem:[%s1983_s8 + $0x4] sm:$0xf] }
  0x15   : > { %833 = vmatpush.bf16.msra.mxu1 %v1927_v7  ;;  %v1426_v26 = vld [vmem:[%s1983_s8 + $0x120] sm:$0xf]  ;;  %v1607_v27 = vld [vmem:[%s1983_s8 + $0x128] sm:$0xf0]  ;;  %v1290_v30 = vld [vmem:[%s1983_s8 + $0x8] sm:$0xf]  ;;  %v1283_v32 = vor.u32 %v1571_v25, %v1282_v24  ;;  %v1287_v34 = vor.u32 %v1570_v28, %v1284_v29 }
  0x16   : > { %922 = vmatpush.bf16.msra.mxu2 %v1932_v8  ;;  %v1427_v33 = vor.u32 %v1607_v27, %v1426_v26  ;;  %v1291_v35 = vor.u32 %v1572_v31, %v1290_v30  ;;  %v1574_v37 = vld [vmem:[%s1983_s8 + $0x20] sm:$0xf0]  ;;  %v1438_v38 = vld [vmem:[%s1983_s8 + $0x138] sm:$0xf]  ;;  %v1573_v40 = vld [vmem:[%s1983_s8 + $0x1c] sm:$0xf] }
  0x17   : > { %v1610_v39 = vld [vmem:[%s1983_s8 + $0x140] sm:$0xf0]  ;;  %v1296_v41 = vld [vmem:[%s1983_s8 + $0x24] sm:$0xf0]  ;;  %v1302_v42 = vld [vmem:[%s1983_s8 + $0x20] sm:$0xf]  ;;  %v1295_v44 = vor.u32 %v1574_v37, %v1294_v36 }
  0x18   : > { %745 = vmatpush.bf16.msra.mxu0 %v1622_v9  ;;  %1819 = vmatpush.bf16.msra.mxu3 %v1622_v9  ;;  %v1575_v43 = vld [vmem:[%s1983_s8 + $0x28] sm:$0xf0]  ;;  %v1439_v45 = vor.u32 %v1610_v39, %v1438_v38  ;;  %v1299_v46 = vor.u32 %v1573_v40, %v1296_v41  ;;  %v1306_v48 = vld [vmem:[%s1983_s8 + $0x30] sm:$0xf]  ;;  %v1577_v49 = vld [vmem:[%s1983_s8 + $0x38] sm:$0xf0] }
  0x19   : > { %834 = vmatpush.bf16.msra.mxu1 %v1942_v10  ;;  %v1303_v47 = vor.u32 %v1575_v43, %v1302_v42  ;;  %v1450_v50 = vld [vmem:[%s1983_s8 + $0x150] sm:$0xf]  ;;  %v1613_v51 = vld [vmem:[%s1983_s8 + $0x158] sm:$0xf0]  ;;  %v1576_v52 = vld [vmem:[%s1983_s8 + $0x34] sm:$0xf]  ;;  %v1307_v56 = vor.u32 %v1577_v49, %v1306_v48 }
  0x1a   : > { %923 = vmatpush.bf16.msra.mxu2 %v1947_v11  ;;  %v1308_v53 = vld [vmem:[%s1983_s8 + $0x3c] sm:$0xf0]  ;;  %v1314_v54 = vld [vmem:[%s1983_s8 + $0x38] sm:$0xf]  ;;  %v1578_v55 = vld [vmem:[%s1983_s8 + $0x40] sm:$0xf0]  ;;  %v1451_v57 = vor.u32 %v1613_v51, %v1450_v50 }
  0x1b   : > { %v1311_v58 = vor.u32 %v1576_v52, %v1308_v53  ;;  %v1315_v59 = vor.u32 %v1578_v55, %v1314_v54  ;;  %v1318_v60 = vld [vmem:[%s1983_s8 + $0x48] sm:$0xf]  ;;  %v1580_v61 = vld [vmem:[%s1983_s8 + $0x50] sm:$0xf0]  ;;  %v1579_v0 = vld [vmem:[%s1983_s8 + $0x4c] sm:$0xf] }
  0x1c   : > { %746 = vmatpush.bf16.msra.mxu0 %v1621_v12  ;;  %1820 = vmatpush.bf16.msra.mxu3 %v1621_v12  ;;  %v1462_v62 = vld [vmem:[%s1983_s8 + $0x168] sm:$0xf]  ;;  %v1616_v63 = vld [vmem:[%s1983_s8 + $0x170] sm:$0xf0]  ;;  %v1581_v3 = vld [vmem:[%s1983_s8 + $0x58] sm:$0xf0] }
  0x1d   : > { %835 = vmatpush.bf16.msra.mxu1 %v1629_v13  ;;  %v1583_v9 = vld [vmem:[%s1983_s8 + $0x68] sm:$0xf0]  ;;  %v1428_v12 = vld [vmem:[%s1983_s8 + $0x12c] sm:$0xf0]  ;;  %v1609_v24 = vld [vmem:[%s1983_s8 + $0x13c] sm:$0xf] }
  0x1e   : > { %924 = vmatpush.bf16.msra.mxu2 %v1962_v14  ;;  %v1440_v25 = vld [vmem:[%s1983_s8 + $0x144] sm:$0xf0]  ;;  %v1350_v26 = vld [vmem:[%s1983_s8 + $0x80] sm:$0xf]  ;;  %v1587_v27 = vld [vmem:[%s1983_s8 + $0x88] sm:$0xf0] }
  0x1f   : > { %v1443_v29 = vor.u32 %v1609_v24, %v1440_v25  ;;  %v1351_v31 = vor.u32 %v1587_v27, %v1350_v26  ;;  %v1452_v36 = vld [vmem:[%s1983_s8 + $0x15c] sm:$0xf0]  ;;  %v1362_v38 = vld [vmem:[%s1983_s8 + $0x98] sm:$0xf]  ;;  %v1590_v39 = vld [vmem:[%s1983_s8 + $0xa0] sm:$0xf0] }
  0x20   : > { %747 = vmatpush.bf16.msra.mxu0 %v1620_v15  ;;  %1821 = vmatpush.bf16.msra.mxu3 %v1620_v15  ;;  %v1584_v15 = vld [vmem:[%s1983_s8 + $0x70] sm:$0xf0]  ;;  %v1356_v37 = vld [vmem:[%s1983_s8 + $0x9c] sm:$0xf0]  ;;  %v1363_v43 = vor.u32 %v1590_v39, %v1362_v38  ;;  %v1464_v48 = vld [vmem:[%s1983_s8 + $0x174] sm:$0xf0] }
  0x21   : > { %836 = vmatpush.bf16.msra.mxu1 %v1628_v16  ;;  %v1368_v49 = vld [vmem:[%s1983_s8 + $0xb4] sm:$0xf0]  ;;  %v1374_v50 = vld [vmem:[%s1983_s8 + $0xb0] sm:$0xf]  ;;  %v1593_v51 = vld [vmem:[%s1983_s8 + $0xb8] sm:$0xf0] }
  0x22   : > { %925 = vmatpush.bf16.msra.mxu2 %v1975_v17  ;;  %v1375_v55 = vor.u32 %v1593_v51, %v1374_v50  ;;  %v1398_v24 = vld [vmem:[%s1983_s8 + $0xe0] sm:$0xf]  ;;  %v1599_v25 = vld [vmem:[%s1983_s8 + $0xe8] sm:$0xf0]  ;;  %v1601_v50 = vld [vmem:[%s1983_s8 + $0xf8] sm:$0xf0] }
  0x24   : > { %748 = vmatpush.bf16.msra.mxu0 %v1619_v18  ;;  %1822 = vmatpush.bf16.msra.mxu3 %v1619_v18 }
  0x25   : > { %837 = vmatpush.bf16.msra.mxu1 %v1627_v19 }
  0x26   : > { %926 = vmatpush.bf16.msra.mxu2 %v1992_v20 }
  0x28   : > { %749 = vmatpush.bf16.msra.mxu0 %v1618_v21  ;;  %1823 = vmatpush.bf16.msra.mxu3 %v1618_v21  ;;  %v1586_v21 = vld [vmem:[%s1983_s8 + $0x80] sm:$0xf0] }
  0x29   : > { %838 = vmatpush.bf16.msra.mxu1 %v1626_v22 }
  0x2a   : > { %927 = vmatpush.bf16.msra.mxu2 %v2003_v23 }
  0x2b   : > { %750 = vmatmul.bf16.vlgmr.msra.gmra.mxu0 %v1283_v32  ;;  %810 = vmatmul.bf16.vlgmr.msra.gmra.mxu3 %v1427_v33  ;;  %v1354_v32 = vld [vmem:[%s1983_s8 + $0x90] sm:$0xf]  ;;  %v1589_v33 = vld [vmem:[%s1983_s8 + $0x98] sm:$0xf0] }
  0x2c   : > { %1824 = vmatpush.bf16.msrb.mxu3 %v1897_v1  ;;  %839 = vmatmul.bf16.vlgmr.msra.gmra.mxu1 %v1287_v34  ;;  %v1320_v1 = vld [vmem:[%s1983_s8 + $0x54] sm:$0xf0]  ;;  %v1588_v34 = vld [vmem:[%s1983_s8 + $0x94] sm:$0xf]  ;;  %v1355_v40 = vor.u32 %v1589_v33, %v1354_v32 }
  0x2d   : > { %928 = vmatmul.bf16.vlgmr.msra.gmra.mxu2 %v1291_v35  ;;  %v1323_v6 = vor.u32 %v1579_v0, %v1320_v1  ;;  %v1612_v35 = vld [vmem:[%s1983_s8 + $0x154] sm:$0xf]  ;;  %v1359_v42 = vor.u32 %v1588_v34, %v1356_v37 }
  0x2e   : > { %v1455_v41 = vor.u32 %v1612_v35, %v1452_v36  ;;  %v1399_v35 = vor.u32 %v1599_v25, %v1398_v24 }
  0x30   : > { %1825 = vmatpush.bf16.msrb.mxu3 %v1912_v4  ;;  %v1319_v4 = vor.u32 %v1580_v61, %v1318_v60  ;;  %v1608_v60 = vld [vmem:[%s1983_s8 + $0x130] sm:$0xf0]  ;;  %v1380_v61 = vld [vmem:[%s1983_s8 + $0xcc] sm:$0xf0] }
  0x34   : > { %1826 = vmatpush.bf16.msrb.mxu3 %v1927_v7 }
  0x38   : > { %1827 = vmatpush.bf16.msrb.mxu3 %v1942_v10  ;;  %v1582_v10 = vld [vmem:[%s1983_s8 + $0x64] sm:$0xf] }
  0x3b   : > { %755 = vmatmul.bf16.gmra.mxu0 %v1295_v44  ;;  %815 = vmatmul.bf16.gmra.mxu3 %v1439_v45  ;;  %v1366_v44 = vld [vmem:[%s1983_s8 + $0xa8] sm:$0xf]  ;;  %v1592_v45 = vld [vmem:[%s1983_s8 + $0xb0] sm:$0xf0] }
  0x3c   : > { %1828 = vmatpush.bf16.msrb.mxu3 %v1629_v13  ;;  %844 = vmatmul.bf16.gmra.mxu1 %v1299_v46  ;;  %v1332_v13 = vld [vmem:[%s1983_s8 + $0x6c] sm:$0xf0]  ;;  %v1591_v46 = vld [vmem:[%s1983_s8 + $0xac] sm:$0xf]  ;;  %v1367_v52 = vor.u32 %v1592_v45, %v1366_v44 }
  0x3d   : > { %933 = vmatmul.bf16.gmra.mxu2 %v1303_v47  ;;  %v1335_v18 = vor.u32 %v1582_v10, %v1332_v13  ;;  %v1615_v47 = vld [vmem:[%s1983_s8 + $0x16c] sm:$0xf]  ;;  %v1371_v54 = vor.u32 %v1591_v46, %v1368_v49  ;;  %v1402_v49 = vld [vmem:[%s1983_s8 + $0xf0] sm:$0xf] }
  0x3e   : > { %v1467_v53 = vor.u32 %v1615_v47, %v1464_v48  ;;  %v1786_v46 = vld [vmem:[%s2105_s26 + $0x8] sm:$0xff]  }
  0x40   : > { %1829 = vmatpush.bf16.msrb.mxu3 %v1628_v16 }
  0x44   : > { %1830 = vmatpush.bf16.msrb.mxu3 %v1627_v19 }
  0x48   : > { %1831 = vmatpush.bf16.msrb.mxu3 %v1626_v22  ;;  %v1585_v22 = vld [vmem:[%s1983_s8 + $0x7c] sm:$0xf] }
  0x4b   : > { %760 = vmatmul.bf16.gmra.mxu0 %v1307_v56  ;;  %820 = vmatmul.bf16.gmra.mxu3 %v1451_v57  ;;  %v1378_v56 = vld [vmem:[%s1983_s8 + $0xc0] sm:$0xf]  ;;  %v1595_v57 = vld [vmem:[%s1983_s8 + $0xc8] sm:$0xf0] }
  0x4c   : > { %1832 = vmatpush.bf16.msra.mxu3 %v1902_v2  ;;  %849 = vmatmul.bf16.gmra.mxu1 %v1311_v58  ;;  %v1326_v2 = vld [vmem:[%s1983_s8 + $0x50] sm:$0xf]  ;;  %v1594_v58 = vld [vmem:[%s1983_s8 + $0xc4] sm:$0xf]  ;;  %v1379_v0 = vor.u32 %v1595_v57, %v1378_v56  ;;  %v1404_v56 = vld [vmem:[%s1983_s8 + $0xfc] sm:$0xf0] }
  0x4d   : > { %938 = vmatmul.bf16.gmra.mxu2 %v1315_v59  ;;  %v1327_v7 = vor.u32 %v1581_v3, %v1326_v2  ;;  %v1434_v59 = vld [vmem:[%s1983_s8 + $0x128] sm:$0xf]  ;;  %v2094_v2 = vld [vmem:[%s2252_s2] ss:$0 sm:$0xff]  ;;  %v1410_v57 = vld [vmem:[%s1983_s8 + $0xf8] sm:$0xf] }
  0x4e   : > { %v1435_v1 = vor.u32 %v1608_v60, %v1434_v59 }
  0x50   : > { %1833 = vmatpush.bf16.msra.mxu3 %v1917_v5  ;;  %v1463_v5 = vor.u32 %v1616_v63, %v1462_v62  ;;  %v1386_v62 = vld [vmem:[%s1983_s8 + $0xc8] sm:$0xf]  ;;  %v1596_v63 = vld [vmem:[%s1983_s8 + $0xd0] sm:$0xf0] }
  0x54   : > { %1834 = vmatpush.bf16.msra.mxu3 %v1932_v8  ;;  %v1330_v8 = vld [vmem:[%s1983_s8 + $0x60] sm:$0xf] }
  0x55   : > { %v1331_v16 = vor.u32 %v1583_v9, %v1330_v8 }
  0x58   : > { %1835 = vmatpush.bf16.msra.mxu3 %v1947_v11  ;;  %v1606_v11 = vld [vmem:[%s1983_s8 + $0x124] sm:$0xf] }
  0x5b   : > { %765 = vmatmul.bf16.gmra.mxu0 %v1319_v4  ;;  %825 = vmatmul.bf16.gmra.mxu3 %v1463_v5  ;;  %v1383_v4 = vor.u32 %v1594_v58, %v1380_v61  ;;  %v1387_v5 = vor.u32 %v1596_v63, %v1386_v62  ;;  %v1602_v58 = vld [vmem:[%s1983_s8 + $0x100] sm:$0xf0]  ;;  %v1649_v61 = vunpack.c.h.bf16 %v1786_v46  ;;  %v1403_v63 = vor.u32 %v1601_v50, %v1402_v49 }
  0x5c   : > { %1836 = vmatpush.bf16.msra.mxu3 %v1962_v14  ;;  %854 = vmatmul.bf16.gmra.mxu1 %v1323_v6  ;;  %v1338_v14 = vld [vmem:[%s1983_s8 + $0x68] sm:$0xf] }
  0x5d   : > { %943 = vmatmul.bf16.gmra.mxu2 %v1327_v7  ;;  %v1339_v19 = vor.u32 %v1584_v15, %v1338_v14  ;;  %v1390_v15 = vld [vmem:[%s1983_s8 + $0xd8] sm:$0xf] }
  0x60   : > { %1837 = vmatpush.bf16.msra.mxu3 %v1975_v17  ;;  %v1431_v17 = vor.u32 %v1606_v11, %v1428_v12  ;;  %v1643_v12 = vld [vmem:[%s2105_s26] sm:$0xff]  }
  0x61   : > { %v1645_v27 = vunpack.c.h.bf16 %v1643_v12 }
  0x64   : > { %1838 = vmatpush.bf16.msra.mxu3 %v1992_v20  ;;  %v1342_v20 = vld [vmem:[%s1983_s8 + $0x78] sm:$0xf] }
  0x65   : > { %v1343_v28 = vor.u32 %v1586_v21, %v1342_v20  ;;  %v1446_v20 = vld [vmem:[%s1983_s8 + $0x140] sm:$0xf]  ;;  %v1611_v21 = vld [vmem:[%s1983_s8 + $0x148] sm:$0xf0] }
  0x68   : > { %1839 = vmatpush.bf16.msra.mxu3 %v2003_v23  ;;  %v1344_v23 = vld [vmem:[%s1983_s8 + $0x84] sm:$0xf0] }
  0x69   : > { %v1347_v30 = vor.u32 %v1585_v22, %v1344_v23  ;;  %v1392_v22 = vld [vmem:[%s1983_s8 + $0xe4] sm:$0xf0] }
  0x6b   : > { %770 = vmatmul.bf16.gmra.mxu0 %v1331_v16  ;;  %899 = vmatmul.bf16.vlgmr.msrb.gmra.mxu3 %v1431_v17  ;;  %v1598_v16 = vld [vmem:[%s1983_s8 + $0xe0] sm:$0xf0] }
  0x6c   : > { %859 = vmatmul.bf16.gmra.mxu1 %v1335_v18  ;;  %v1644_v18 = vunpack.c.l.bf16 %v1643_v12 }
  0x6d   : > { %948 = vmatmul.bf16.gmra.mxu2 %v1339_v19  ;;  %v1597_v19 = vld [vmem:[%s1983_s8 + $0xdc] sm:$0xf] }
  0x6e   : > { %v1395_v34 = vor.u32 %v1597_v19, %v1392_v22  ;;  %v1604_v22 = vld [vmem:[%s1983_s8 + $0x110] sm:$0xf0] }
  0x7b   : > { %775 = vmatmul.bf16.gmra.mxu0 %v1343_v28  ;;  %904 = vmatmul.bf16.gmra.mxu3 %v1443_v29  ;;  %v1391_v29 = vor.u32 %v1598_v16, %v1390_v15 }
  0x7c   : > { %864 = vmatmul.bf16.gmra.mxu1 %v1347_v30  ;;  %v1447_v30 = vor.u32 %v1611_v21, %v1446_v20  ;;  %v1414_v21 = vld [vmem:[%s1983_s8 + $0x108] sm:$0xf] }
  0x7d   : > { %953 = vmatmul.bf16.gmra.mxu2 %v1351_v31 }
  0x8b   : > { %780 = vmatmul.bf16.gmra.mxu0 %v1355_v40  ;;  %909 = vmatmul.bf16.gmra.mxu3 %v1455_v41 }
  0x8c   : > { %869 = vmatmul.bf16.gmra.mxu1 %v1359_v42 }
  0x8d   : > { %958 = vmatmul.bf16.gmra.mxu2 %v1363_v43 }
  0x9b   : > { %785 = vmatmul.bf16.gmra.mxu0 %v1367_v52  ;;  %914 = vmatmul.bf16.gmra.mxu3 %v1467_v53  ;;  %v1648_v52 = vunpack.c.l.bf16 %v1786_v46  ;;  %v1600_v53 = vld [vmem:[%s1983_s8 + $0xf4] sm:$0xf] }
  0x9c   : > { %874 = vmatmul.bf16.gmra.mxu1 %v1371_v54  ;;  %v1458_v54 = vld [vmem:[%s1983_s8 + $0x158] sm:$0xf] }
  0x9d   : > { %963 = vmatmul.bf16.gmra.mxu2 %v1375_v55  ;;  %v1614_v55 = vld [vmem:[%s1983_s8 + $0x160] sm:$0xf0] }
  0xa8   : > { %v751_v3 = vpop.f32.mrf.mxu0 }
  0xa9   : > { %v840_v6 = vpop.f32.mrf.mxu1  ;;  %v752_v7 = vadd.f32 %v2094_v2, %v751_v3 }
  0xab   : > { %790 = vmatmul.bf16.gmra.mxu0 %v1379_v0  ;;  %988 = vmatmul.bf16.vlgmr.msra.gmra.mxu3 %v1435_v1  ;;  %v841_v10 = vadd.f32 %v840_v6, %v752_v7  ;;  %v1459_v0 = vor.u32 %v1614_v55, %v1458_v54  ;;  %v1411_v6 = vor.u32 %v1602_v58, %v1410_v57  ;;  %v1788_v54 = vld [vmem:[%s2105_s26 + $0x18] sm:$0xff]  }
  0xac   : > { %879 = vmatmul.bf16.gmra.mxu1 %v1383_v4  ;;  %v1656_v58 = vunpack.c.l.bf16 %v1788_v54 }
  0xad   : > { %968 = vmatmul.bf16.gmra.mxu2 %v1387_v5  ;;  %v1407_v5 = vor.u32 %v1600_v53, %v1404_v56 }
  0xae   : > { %v2098_v8 = vpop.f32.mrf.mxu3 }
  0xb0   : > { %v929_v9 = vpop.f32.mrf.mxu2  ;;  %v753_v11 = vpop.f32.mrf.mxu0 }
  0xb1   : > { %v842_v13 = vpop.f32.mrf.mxu1  ;;  %v754_v14 = vadd.f32 %v2094_v2, %v753_v11  ;;  %v930_v17 = vadd.f32 %v929_v9, %v841_v10 }
  0xb3   : > { %v843_v23 = vadd.f32 %v842_v13, %v754_v14  ;;  %v1073_v31 = vadd.f32 %v1644_v18, %v930_v17  ;;  %v1787_v18 = vld [vmem:[%s2105_s26 + $0x10] sm:$0xff]  }
  0xb4   : > { %v1652_v25 = vunpack.c.l.bf16 %v1787_v18 }
  0xb5   : > { %v1105_v38 = vmax.f32 %v1073_v31, 0.0  ;;  %v1605_v31 = vld [vmem:[%s1983_s8 + $0x118] sm:$0xf0] }
  0xb6   : > { %v2117_v26 = vpop.f32.mrf.mxu3 }
  0xb8   : > { %v931_v28 = vpop.f32.mrf.mxu2  ;;  %v756_v33 = vpop.f32.mrf.mxu0 }
  0xb9   : > { %v932_v32 = vadd.f32 %v931_v28, %v843_v23  ;;  %v845_v36 = vpop.f32.mrf.mxu1  ;;  %v757_v40 = vadd.f32 %v2094_v2, %v756_v33  ;;  %v1603_v23 = vld [vmem:[%s1983_s8 + $0x10c] sm:$0xf]  ;;  %v1617_v28 = vld [vmem:[%s1983_s8 + $0x178] sm:$0xf0] }
  0xbb   : > { %v1074_v37 = vadd.f32 %v1645_v27, %v932_v32  ;;  %795 = vmatmul.bf16.gmra.mxu0 %v1391_v29  ;;  %993 = vmatmul.bf16.gmra.mxu3 %v1447_v30  ;;  %v846_v44 = vadd.f32 %v845_v36, %v757_v40  ;;  %v1470_v27 = vld [vmem:[%s1983_s8 + $0x170] sm:$0xf]  ;;  %v1416_v29 = vld [vmem:[%s1983_s8 + $0x114] sm:$0xf0]  ;;  %v1415_v36 = vor.u32 %v1604_v22, %v1414_v21 }
  0xbc   : > { %884 = vmatmul.bf16.gmra.mxu1 %v1395_v34  ;;  %v1422_v30 = vld [vmem:[%s1983_s8 + $0x110] sm:$0xf]  ;;  %v1653_v34 = vunpack.c.h.bf16 %v1787_v18  ;;  %v1789_v18 = vld [vmem:[%s2105_s26 + $0x20] sm:$0xff]  }
  0xbd   : > { %v1106_v39 = vmax.f32 %v1074_v37, 0.0  ;;  %973 = vmatmul.bf16.gmra.mxu2 %v1399_v35  ;;  %v1471_v37 = vor.u32 %v1617_v28, %v1470_v27  ;;  %v1660_v22 = vunpack.c.l.bf16 %v1789_v18 }
  0xbe   : > { %v2127_v42 = vpop.f32.mrf.mxu3 }
  0xbf   : > { %v1709_v41 = vpack.c.bf16 %v1106_v39, %v1105_v38 }
  0xc0   : > { %v934_v43 = vpop.f32.mrf.mxu2  ;;  %v758_v45 = vpop.f32.mrf.mxu0 }
  0xc1   : > { %1710 = vst [vmem:[%s2125_s29] sm:$0xff] %v1709_v41   ;;  %v847_v47 = vpop.f32.mrf.mxu1  ;;  %v759_v48 = vadd.f32 %v2094_v2, %v758_v45  ;;  %v935_v51 = vadd.f32 %v934_v43, %v846_v44  ;;  %v1419_v41 = vor.u32 %v1603_v23, %v1416_v29  ;;  %v1423_v43 = vor.u32 %v1605_v31, %v1422_v30 }
  0xc2   : > { %v1661_v23 = vunpack.c.h.bf16 %v1789_v18 }
  0xc3   : > { %v848_v59 = vadd.f32 %v847_v47, %v759_v48  ;;  %v1075_v1 = vadd.f32 %v1648_v52, %v935_v51 }
  0xc5   : > { %v1107_v10 = vmax.f32 %v1075_v1, 0.0 }
  0xc6   : > { %v2140_v60 = vpop.f32.mrf.mxu3 }
  0xc8   : > { %v936_v62 = vpop.f32.mrf.mxu2  ;;  %v761_v4 = vpop.f32.mrf.mxu0 }
  0xc9   : > { %v937_v3 = vadd.f32 %v936_v62, %v848_v59  ;;  %v850_v7 = vpop.f32.mrf.mxu1  ;;  %v762_v12 = vadd.f32 %v2094_v2, %v761_v4  ;;  %v1657_v62 = vunpack.c.h.bf16 %v1788_v54 }
  0xcb   : > { %v1076_v9 = vadd.f32 %v1649_v61, %v937_v3  ;;  %800 = vmatmul.bf16.gmra.mxu0 %v1403_v63  ;;  %998 = vmatmul.bf16.gmra.mxu3 %v1459_v0  ;;  %v851_v16 = vadd.f32 %v850_v7, %v762_v12 }
  0xcc   : > { %889 = vmatmul.bf16.gmra.mxu1 %v1407_v5 }
  0xcd   : > { %v1108_v11 = vmax.f32 %v1076_v9, 0.0  ;;  %978 = vmatmul.bf16.gmra.mxu2 %v1411_v6 }
  0xce   : > { %v2143_v14 = vpop.f32.mrf.mxu3 }
  0xcf   : > { %v1714_v13 = vpack.c.bf16 %v1108_v11, %v1107_v10  ;;  %v812_v10 = vadd.f32 %v2094_v2, %v2098_v8 }
  0xd0   : > { %v939_v15 = vpop.f32.mrf.mxu2  ;;  %v763_v17 = vpop.f32.mrf.mxu0 }
  0xd1   : > { %1801 = vst [vmem:[%s2125_s29 + $0x8] sm:$0xff] %v1714_v13   ;;  %v852_v19 = vpop.f32.mrf.mxu1  ;;  %v764_v20 = vadd.f32 %v2094_v2, %v763_v17  ;;  %v940_v24 = vadd.f32 %v939_v15, %v851_v16 }
  0xd3   : > { %v853_v32 = vadd.f32 %v852_v19, %v764_v20  ;;  %v1077_v38 = vadd.f32 %v1652_v25, %v940_v24 }
  0xd5   : > { %v1109_v46 = vmax.f32 %v1077_v38, 0.0 }
  0xd6   : > { %v2156_v33 = vpop.f32.mrf.mxu3 }
  0xd8   : > { %v941_v35 = vpop.f32.mrf.mxu2  ;;  %v766_v40 = vpop.f32.mrf.mxu0 }
  0xd9   : > { %v942_v39 = vadd.f32 %v941_v35, %v853_v32  ;;  %v855_v44 = vpop.f32.mrf.mxu1  ;;  %v767_v48 = vadd.f32 %v2094_v2, %v766_v40 }
  0xdb   : > { %v1078_v45 = vadd.f32 %v1653_v34, %v942_v39  ;;  %805 = vmatmul.bf16.gmra.mxu0 %v1415_v36  ;;  %1003 = vmatmul.bf16.gmra.mxu3 %v1471_v37  ;;  %v856_v52 = vadd.f32 %v855_v44, %v767_v48  ;;  %v817_v36 = vadd.f32 %v2094_v2, %v2127_v42  ;;  %v1790_v44 = vld [vmem:[%s2105_s26 + $0x28] sm:$0xff]  }
  0xdc   : > { %894 = vmatmul.bf16.gmra.mxu1 %v1419_v41  ;;  %v1664_v48 = vunpack.c.l.bf16 %v1790_v44 }
  0xdd   : > { %v1110_v47 = vmax.f32 %v1078_v45, 0.0  ;;  %983 = vmatmul.bf16.gmra.mxu2 %v1423_v43 }
  0xde   : > { %v2159_v50 = vpop.f32.mrf.mxu3 }
  0xdf   : > { %v1719_v49 = vpack.c.bf16 %v1110_v47, %v1109_v46 }
  0xe0   : > { %v944_v51 = vpop.f32.mrf.mxu2  ;;  %v768_v53 = vpop.f32.mrf.mxu0 }
  0xe1   : > { %1802 = vst [vmem:[%s2125_s29 + $0x10] sm:$0xff] %v1719_v49   ;;  %v857_v55 = vpop.f32.mrf.mxu1  ;;  %v769_v56 = vadd.f32 %v2094_v2, %v768_v53  ;;  %v945_v57 = vadd.f32 %v944_v51, %v856_v52  ;;  %v1665_v52 = vunpack.c.h.bf16 %v1790_v44 }
  0xe3   : > { %v858_v59 = vadd.f32 %v857_v55, %v769_v56  ;;  %v1079_v0 = vadd.f32 %v1656_v58, %v945_v57 }
  0xe5   : > { %v1111_v6 = vmax.f32 %v1079_v0, 0.0 }
  0xe6   : > { %v2164_v61 = vpop.f32.mrf.mxu3 }
  0xe8   : > { %v946_v63 = vpop.f32.mrf.mxu2  ;;  %v771_v3 = vpop.f32.mrf.mxu0 }
  0xe9   : > { %v947_v1 = vadd.f32 %v946_v63, %v858_v59  ;;  %v860_v4 = vpop.f32.mrf.mxu1  ;;  %v772_v9 = vadd.f32 %v2094_v2, %v771_v3  ;;  %v822_v63 = vadd.f32 %v2094_v2, %v2143_v14 }
  0xeb   : > { %v1080_v5 = vadd.f32 %v1657_v62, %v947_v1  ;;  %v861_v16 = vadd.f32 %v860_v4, %v772_v9 }
  0xed   : > { %v1112_v7 = vmax.f32 %v1080_v5, 0.0 }
  0xee   : > { %v900_v12 = vpop.f32.mrf.mxu3 }
  0xef   : > { %v1724_v11 = vpack.c.bf16 %v1112_v7, %v1111_v6  ;;  %v2169_v13 = vadd.f32 %v900_v12, %v812_v10  ;;  %v1791_v7 = vld [vmem:[%s2105_s26 + $0x30] sm:$0xff]  }
  0xf0   : > { %v949_v15 = vpop.f32.mrf.mxu2  ;;  %v773_v17 = vpop.f32.mrf.mxu0  ;;  %v1668_v12 = vunpack.c.l.bf16 %v1791_v7 }
  0xf1   : > { %1803 = vst [vmem:[%s2125_s29 + $0x18] sm:$0xff] %v1724_v11   ;;  %v862_v19 = vpop.f32.mrf.mxu1  ;;  %v774_v20 = vadd.f32 %v2094_v2, %v773_v17  ;;  %v950_v21 = vadd.f32 %v949_v15, %v861_v16  ;;  %v1669_v17 = vunpack.c.h.bf16 %v1791_v7 }
  0xf3   : > { %v863_v24 = vadd.f32 %v862_v19, %v774_v20  ;;  %v1081_v27 = vadd.f32 %v1660_v22, %v950_v21 }
  0xf5   : > { %v1113_v32 = vmax.f32 %v1081_v27, 0.0  ;;  %v827_v27 = vadd.f32 %v2094_v2, %v2159_v50 }
  0xf6   : > { %v2174_v25 = vpop.f32.mrf.mxu3 }
  0xf8   : > { %v951_v8 = vpop.f32.mrf.mxu2  ;;  %v776_v29 = vpop.f32.mrf.mxu0 }
  0xf9   : > { %v952_v28 = vadd.f32 %v951_v8, %v863_v24  ;;  %v865_v30 = vpop.f32.mrf.mxu1  ;;  %v777_v35 = vadd.f32 %v2094_v2, %v776_v29 }
  0xfb   : > { %v1082_v31 = vadd.f32 %v1661_v23, %v952_v28  ;;  %v866_v41 = vadd.f32 %v865_v30, %v777_v35  ;;  %v1792_v35 = vld [vmem:[%s2105_s26 + $0x38] sm:$0xff]  }
  0xfc   : > { %v1673_v50 = vunpack.c.h.bf16 %v1792_v35 }
  0xfd   : > { %v1114_v34 = vmax.f32 %v1082_v31, 0.0 }
  0xfe   : > { %v905_v38 = vpop.f32.mrf.mxu3 }
  0xff   : > { %v1729_v37 = vpack.c.bf16 %v1114_v34, %v1113_v32  ;;  %v2179_v39 = vadd.f32 %v905_v38, %v817_v36 }
 0x100   : > { %v954_v40 = vpop.f32.mrf.mxu2  ;;  %v778_v43 = vpop.f32.mrf.mxu0 }
 0x101   : > { %1804 = vst [vmem:[%s2125_s29 + $0x20] sm:$0xff] %v1729_v37   ;;  %v867_v45 = vpop.f32.mrf.mxu1  ;;  %v779_v46 = vadd.f32 %v2094_v2, %v778_v43  ;;  %v955_v47 = vadd.f32 %v954_v40, %v866_v41  ;;  %v1672_v40 = vunpack.c.l.bf16 %v1792_v35  ;;  %v1798_v35 = vld [vmem:[%s2105_s26 + $0x68] sm:$0xff]  }
 0x103   : > { %v868_v49 = vadd.f32 %v867_v45, %v779_v46  ;;  %v1083_v53 = vadd.f32 %v1664_v48, %v955_v47 }
 0x105   : > { %v1115_v58 = vmax.f32 %v1083_v53, 0.0 }
 0x106   : > { %v2184_v51 = vpop.f32.mrf.mxu3 }
 0x108   : > { %v956_v42 = vpop.f32.mrf.mxu2  ;;  %v781_v55 = vpop.f32.mrf.mxu0 }
 0x109   : > { %v957_v54 = vadd.f32 %v956_v42, %v868_v49  ;;  %v870_v56 = vpop.f32.mrf.mxu1  ;;  %v782_v62 = vadd.f32 %v2094_v2, %v781_v55 }
 0x10b   : > { %v1084_v57 = vadd.f32 %v1665_v52, %v957_v54  ;;  %v871_v5 = vadd.f32 %v870_v56, %v782_v62  ;;  %v1793_v62 = vld [vmem:[%s2105_s26 + $0x40] sm:$0xff]  }
 0x10c   : > { %v1676_v7 = vunpack.c.l.bf16 %v1793_v62 }
 0x10d   : > { %v1116_v59 = vmax.f32 %v1084_v57, 0.0 }
 0x10e   : > { %v910_v1 = vpop.f32.mrf.mxu3 }
 0x10f   : > { %v1734_v0 = vpack.c.bf16 %v1116_v59, %v1115_v58  ;;  %v2189_v3 = vadd.f32 %v910_v1, %v822_v63  ;;  %v1797_v58 = vld [vmem:[%s2105_s26 + $0x60] sm:$0xff]   ;;  %v814_v1 = vadd.f32 %v2094_v2, %v2117_v26 }
 0x110   : > { %v959_v4 = vpop.f32.mrf.mxu2  ;;  %v783_v6 = vpop.f32.mrf.mxu0 }
 0x111   : > { %1805 = vst [vmem:[%s2125_s29 + $0x28] sm:$0xff] %v1734_v0   ;;  %v872_v9 = vpop.f32.mrf.mxu1  ;;  %v784_v10 = vadd.f32 %v2094_v2, %v783_v6  ;;  %v960_v11 = vadd.f32 %v959_v4, %v871_v5  ;;  %v1692_v5 = vunpack.c.l.bf16 %v1797_v58 }
 0x113   : > { %v873_v15 = vadd.f32 %v872_v9, %v784_v10  ;;  %v1085_v18 = vadd.f32 %v1668_v12, %v960_v11  ;;  %v903_v9 = vadd.f32 %v2174_v25, %v814_v1  ;;  %v1693_v10 = vunpack.c.h.bf16 %v1797_v58 }
 0x114   : > { %v1677_v12 = vunpack.c.h.bf16 %v1793_v62 }
 0x115   : > { %v1117_v24 = vmax.f32 %v1085_v18, 0.0 }
 0x116   : > { %v2194_v16 = vpop.f32.mrf.mxu3 }
 0x118   : > { %v961_v14 = vpop.f32.mrf.mxu2  ;;  %v786_v20 = vpop.f32.mrf.mxu0 }
 0x119   : > { %v962_v19 = vadd.f32 %v961_v14, %v873_v15  ;;  %v875_v21 = vpop.f32.mrf.mxu1  ;;  %v787_v8 = vadd.f32 %v2094_v2, %v786_v20 }
 0x11b   : > { %v1086_v22 = vadd.f32 %v1669_v17, %v962_v19  ;;  %v876_v32 = vadd.f32 %v875_v21, %v787_v8 }
 0x11d   : > { %v1118_v23 = vmax.f32 %v1086_v22, 0.0 }
 0x11e   : > { %v915_v29 = vpop.f32.mrf.mxu3 }
 0x11f   : > { %v1739_v28 = vpack.c.bf16 %v1118_v23, %v1117_v24  ;;  %v2199_v30 = vadd.f32 %v915_v29, %v827_v27 }
 0x120   : > { %v964_v31 = vpop.f32.mrf.mxu2  ;;  %v788_v34 = vpop.f32.mrf.mxu0 }
 0x121   : > { %1806 = vst [vmem:[%s2125_s29 + $0x30] sm:$0xff] %v1739_v28   ;;  %v877_v36 = vpop.f32.mrf.mxu1  ;;  %v789_v37 = vadd.f32 %v2094_v2, %v788_v34  ;;  %v965_v38 = vadd.f32 %v964_v31, %v876_v32 }
 0x123   : > { %v878_v41 = vadd.f32 %v877_v36, %v789_v37  ;;  %v1087_v45 = vadd.f32 %v1672_v40, %v965_v38  ;;  %v1794_v37 = vld [vmem:[%s2105_s26 + $0x48] sm:$0xff]  }
 0x125   : > { %v1119_v52 = vmax.f32 %v1087_v45, 0.0 }
 0x126   : > { %v2204_v43 = vpop.f32.mrf.mxu3 }
 0x128   : > { %v966_v44 = vpop.f32.mrf.mxu2  ;;  %v791_v47 = vpop.f32.mrf.mxu0 }
 0x129   : > { %v967_v46 = vadd.f32 %v966_v44, %v878_v41  ;;  %v880_v48 = vpop.f32.mrf.mxu1  ;;  %v792_v53 = vadd.f32 %v2094_v2, %v791_v47  ;;  %v819_v41 = vadd.f32 %v2094_v2, %v2140_v60  ;;  %v1696_v44 = vunpack.c.l.bf16 %v1798_v35 }
 0x12b   : > { %v1088_v49 = vadd.f32 %v1673_v50, %v967_v46  ;;  %v881_v57 = vadd.f32 %v880_v48, %v792_v53  ;;  %v1680_v46 = vunpack.c.l.bf16 %v1794_v37  ;;  %v908_v47 = vadd.f32 %v2184_v51, %v819_v41 }
 0x12c   : > { %v1697_v48 = vunpack.c.h.bf16 %v1798_v35 }
 0x12d   : > { %v1120_v42 = vmax.f32 %v1088_v49, 0.0 }
 0x12e   : > { %v989_v55 = vpop.f32.mrf.mxu3 }
 0x12f   : > { %v1744_v54 = vpack.c.bf16 %v1120_v42, %v1119_v52  ;;  %v990_v4 = vadd.f32 %v989_v55, %v2169_v13  ;;  %v1681_v52 = vunpack.c.h.bf16 %v1794_v37 }
 0x130   : > { %v969_v56 = vpop.f32.mrf.mxu2  ;;  %v793_v59 = vpop.f32.mrf.mxu0 }
 0x131   : > { %1807 = vst [vmem:[%s2125_s29 + $0x38] sm:$0xff] %v1744_v54   ;;  %v882_v63 = vpop.f32.mrf.mxu1  ;;  %v794_v0 = vadd.f32 %v2094_v2, %v793_v59  ;;  %v970_v6 = vadd.f32 %v969_v56, %v881_v57  ;;  %v1097_v17 = vadd.f32 %v1692_v5, %v990_v4 }
 0x133   : > { %v883_v11 = vadd.f32 %v882_v63, %v794_v0  ;;  %v1089_v19 = vadd.f32 %v1676_v7, %v970_v6  ;;  %v1129_v24 = vmax.f32 %v1097_v17, 0.0 }
 0x135   : > { %v1121_v25 = vmax.f32 %v1089_v19, 0.0 }
 0x136   : > { %v991_v15 = vpop.f32.mrf.mxu3 }
 0x137   : > { %v992_v18 = vadd.f32 %v991_v15, %v903_v9 }
 0x138   : > { %v971_v14 = vpop.f32.mrf.mxu2  ;;  %v796_v21 = vpop.f32.mrf.mxu0 }
 0x139   : > { %v972_v20 = vadd.f32 %v971_v14, %v883_v11  ;;  %v1098_v26 = vadd.f32 %v1693_v10, %v992_v18  ;;  %v885_v13 = vpop.f32.mrf.mxu1  ;;  %v797_v27 = vadd.f32 %v2094_v2, %v796_v21  ;;  %v1799_v10 = vld [vmem:[%s2105_s26 + $0x70] sm:$0xff]   ;;  %v824_v14 = vadd.f32 %v2094_v2, %v2156_v33 }
 0x13a   : > { %v1700_v19 = vunpack.c.l.bf16 %v1799_v10 }
 0x13b   : > { %v1090_v22 = vadd.f32 %v1677_v12, %v972_v20  ;;  %v1130_v23 = vmax.f32 %v1098_v26, 0.0  ;;  %v886_v34 = vadd.f32 %v885_v13, %v797_v27  ;;  %v1795_v12 = vld [vmem:[%s2105_s26 + $0x50] sm:$0xff]   ;;  %v913_v26 = vadd.f32 %v2194_v16, %v824_v14 }
 0x13c   : > { %v1684_v21 = vunpack.c.l.bf16 %v1795_v12  ;;  %v1701_v13 = vunpack.c.h.bf16 %v1799_v10 }
 0x13d   : > { %v1122_v8 = vmax.f32 %v1090_v22, 0.0  ;;  %v1769_v28 = vpack.c.bf16 %v1130_v23, %v1129_v24  ;;  %v1685_v24 = vunpack.c.h.bf16 %v1795_v12 }
 0x13e   : > { %v994_v31 = vpop.f32.mrf.mxu3 }
 0x13f   : > { %v1749_v29 = vpack.c.bf16 %v1122_v8, %v1121_v25  ;;  %1812 = vst [vmem:[%s2125_s29 + $0x60] sm:$0xff] %v1769_v28   ;;  %v995_v50 = vadd.f32 %v994_v31, %v2179_v39 }
 0x140   : > { %v974_v32 = vpop.f32.mrf.mxu2  ;;  %v798_v36 = vpop.f32.mrf.mxu0 }
 0x141   : > { %1808 = vst [vmem:[%s2125_s29 + $0x40] sm:$0xff] %v1749_v29   ;;  %v887_v38 = vpop.f32.mrf.mxu1  ;;  %v799_v40 = vadd.f32 %v2094_v2, %v798_v36  ;;  %v975_v45 = vadd.f32 %v974_v32, %v886_v34  ;;  %v1099_v53 = vadd.f32 %v1696_v44, %v995_v50 }
 0x143   : > { %v888_v49 = vadd.f32 %v887_v38, %v799_v40  ;;  %v1091_v56 = vadd.f32 %v1680_v46, %v975_v45  ;;  %v1131_v62 = vmax.f32 %v1099_v53, 0.0  ;;  %v1800_v45 = vld [vmem:[%s2105_s26 + $0x78] sm:$0xff]  }
 0x145   : > { %v1123_v51 = vmax.f32 %v1091_v56, 0.0 }
 0x146   : > { %v996_v42 = vpop.f32.mrf.mxu3 }
 0x147   : > { %v997_v55 = vadd.f32 %v996_v42, %v908_v47  ;;  %v1796_v47 = vld [vmem:[%s2105_s26 + $0x58] sm:$0xff]   ;;  %v1704_v42 = vunpack.c.l.bf16 %v1800_v45 }
 0x148   : > { %v976_v54 = vpop.f32.mrf.mxu2  ;;  %v801_v58 = vpop.f32.mrf.mxu0 }
 0x149   : > { %v977_v57 = vadd.f32 %v976_v54, %v888_v49  ;;  %v1100_v60 = vadd.f32 %v1697_v48, %v997_v55  ;;  %v890_v39 = vpop.f32.mrf.mxu1  ;;  %v802_v1 = vadd.f32 %v2094_v2, %v801_v58  ;;  %v829_v49 = vadd.f32 %v2094_v2, %v2164_v61 }
 0x14a   : > { %v1688_v54 = vunpack.c.l.bf16 %v1796_v47 }
 0x14b   : > { %v1092_v59 = vadd.f32 %v1681_v52, %v977_v57  ;;  %v1132_v63 = vmax.f32 %v1100_v60, 0.0  ;;  %v891_v9 = vadd.f32 %v890_v39, %v802_v1  ;;  %v918_v55 = vadd.f32 %v2204_v43, %v829_v49 }
 0x14c   : > { %v1705_v57 = vunpack.c.h.bf16 %v1800_v45  ;;  %v1689_v60 = vunpack.c.h.bf16 %v1796_v47 }
 0x14d   : > { %v1124_v0 = vmax.f32 %v1092_v59, 0.0  ;;  %v1774_v4 = vpack.c.bf16 %v1132_v63, %v1131_v62 }
 0x14e   : > { %v999_v6 = vpop.f32.mrf.mxu3 }
 0x14f   : > { %v1754_v5 = vpack.c.bf16 %v1124_v0, %v1123_v51  ;;  %1813 = vst [vmem:[%s2125_s29 + $0x68] sm:$0xff] %v1774_v4   ;;  %v1000_v18 = vadd.f32 %v999_v6, %v2189_v3 }
 0x150   : > { %v979_v7 = vpop.f32.mrf.mxu2  ;;  %v803_v11 = vpop.f32.mrf.mxu0 }
 0x151   : > { %1809 = vst [vmem:[%s2125_s29 + $0x48] sm:$0xff] %v1754_v5   ;;  %v892_v15 = vpop.f32.mrf.mxu1  ;;  %v804_v17 = vadd.f32 %v2094_v2, %v803_v11  ;;  %v980_v20 = vadd.f32 %v979_v7, %v891_v9  ;;  %v1101_v25 = vadd.f32 %v1700_v19, %v1000_v18 }
 0x153   : > { %v893_v22 = vadd.f32 %v892_v15, %v804_v17  ;;  %v1093_v28 = vadd.f32 %v1684_v21, %v980_v20  ;;  %v1133_v32 = vmax.f32 %v1101_v25, 0.0 }
 0x155   : > { %v1125_v16 = vmax.f32 %v1093_v28, 0.0 }
 0x156   : > { %v1001_v23 = vpop.f32.mrf.mxu3 }
 0x157   : > { %v1002_v27 = vadd.f32 %v1001_v23, %v913_v26 }
 0x158   : > { %v981_v8 = vpop.f32.mrf.mxu2  ;;  %v806_v31 = vpop.f32.mrf.mxu0 }
 0x159   : > { %v982_v29 = vadd.f32 %v981_v8, %v893_v22  ;;  %v1102_v33 = vadd.f32 %v1701_v13, %v1002_v27  ;;  %v895_v35 = vpop.f32.mrf.mxu1  ;;  %v807_v37 = vadd.f32 %v2094_v2, %v806_v31 }
 0x15b   : > { %v1094_v3 = vadd.f32 %v1685_v24, %v982_v29  ;;  %v1134_v34 = vmax.f32 %v1102_v33, 0.0  ;;  %v896_v44 = vadd.f32 %v895_v35, %v807_v37 }
 0x15d   : > { %v1126_v36 = vmax.f32 %v1094_v3, 0.0  ;;  %v1779_v38 = vpack.c.bf16 %v1134_v34, %v1133_v32 }
 0x15e   : > { %v1004_v41 = vpop.f32.mrf.mxu3 }
 0x15f   : > { %v1759_v40 = vpack.c.bf16 %v1126_v36, %v1125_v16  ;;  %1814 = vst [vmem:[%s2125_s29 + $0x70] sm:$0xff] %v1779_v38   ;;  %v1005_v52 = vadd.f32 %v1004_v41, %v2199_v30 }
 0x160   : > { %v984_v50 = vpop.f32.mrf.mxu2  ;;  %v808_v46 = vpop.f32.mrf.mxu0 }
 0x161   : > { %1810 = vst [vmem:[%s2125_s29 + $0x50] sm:$0xff] %v1759_v40   ;;  %v809_v48 = vadd.f32 %v2094_v2, %v808_v46  ;;  %v985_v53 = vadd.f32 %v984_v50, %v896_v44  ;;  %v897_v56 = vpop.f32.mrf.mxu1  ;;  %v1103_v59 = vadd.f32 %v1704_v42, %v1005_v52 }
 0x163   : > { %v898_v58 = vadd.f32 %v897_v56, %v809_v48  ;;  %v1095_v51 = vadd.f32 %v1688_v54, %v985_v53  ;;  %v1135_v30 = vmax.f32 %v1103_v59, 0.0 }
 0x165   : > { %v1127_v4 = vmax.f32 %v1095_v51, 0.0 }
 0x166   : > { %v1006_v39 = vpop.f32.mrf.mxu3 }
 0x167   : > { %v1007_v63 = vadd.f32 %v1006_v39, %v918_v55 }
 0x168   : > { %v986_v62 = vpop.f32.mrf.mxu2 }
 0x169   : > { %v987_v0 = vadd.f32 %v986_v62, %v898_v58  ;;  %v1104_v2 = vadd.f32 %v1705_v57, %v1007_v63 }
 0x16b   : > { %v1096_v61 = vadd.f32 %v1689_v60, %v987_v0  ;;  %v1136_v1 = vmax.f32 %v1104_v2, 0.0 }
 0x16d   : > { %v1128_v5 = vmax.f32 %v1096_v61, 0.0  ;;  %v1784_v6 = vpack.c.bf16 %v1136_v1, %v1135_v30 }
 0x16f   : > { %v1764_v43 = vpack.c.bf16 %v1128_v5, %v1127_v4  ;;  %1815 = vst [vmem:[%s2125_s29 + $0x78] sm:$0xff] %v1784_v6  }
 0x171   : > { %1811 = vst [vmem:[%s2125_s29 + $0x58] sm:$0xff] %v1764_v43  }
 0x172 PF: > { %s14_s15 = sadd.s32 1, %s1856_s15  }
 0x173   : > { %p11_p4 = scmp.ge.s32.totalorder %s14_s15, 4  }
 0x175   :  { %13 = sbr.rel (!%p11_p4) target bundleno = 1 (0x1), region = 69 }

// kernel: resnet20_forward.31
= control target key start
LH: loop header
LB: loop body
LE: loop exit
PB: predicated region body
PF: predicated region fallthrough
CT: control target
= control target key end

     0   :  { %s1640_s12 = smov 0   ;;  %s1982_s0 = inlined_call_operand.vmem [shape: bf16[512,384], index: 0, kind: input, shape index: {}]   ;;  %s1983_s1 = inlined_call_operand.vmem [shape: bf16[384,128], index: 1, kind: input, shape index: {}]   ;;  %s1984_s2 = inlined_call_operand.vmem [shape: f32[1,128], index: 2, kind: input, shape index: {}]   ;;  %s1985_s3 = inlined_call_operand.vmem [shape: bf16[512,128], index: 3, kind: output, shape index: {}]  }
   0x1 LB: > { %s1112_s13 = sadd.s32 4294967295, %s1618_s12   ;;  %p1116_p0 = scmp.ge.s32.totalorder %s1618_s12, 1  ;;  %s1618_s12 = sphi %s1640_s12, %s13_s12  }
   0x2   : > { %p139_p1 = scmp.lt.s32.totalorder %s1618_s12, 3 }
   0x4   : > { %p140_p2 = pnand %p1116_p0, %p139_p1 }
   0x5   : > { %s1117_s5 = sshll.u32 (!%p140_p2), %s1112_s13, 5 }
   0x6   : > { %143 = sbr.rel (%p140_p2) target bundleno = 368 (0x170), region = 32  ;;  %p165_p3 = scmp.lt.s32.totalorder (!%p140_p2), %s1117_s5, 63 }
   0xb   : > { %v1466_v0 = vld [vmem:[%s1983_s1 + $0x38] sm:$0xff]  ;;  %v1465_v3 = vld [vmem:[%s1983_s1 + $0x30] sm:$0xff]  ;;  %v1464_v6 = vld [vmem:[%s1983_s1 + $0x28] sm:$0xff]  ;;  %s1987_s5 = smov (!%p165_p3, %s1117_s5), 63 }
   0xc   : > { %v1654_v1 = vld [vmem:[%s1983_s1 + $0x78] sm:$0xff]  ;;  %693 = vmatpush.bf16.msra.mxu0 %v1466_v0  ;;  %1578 = vmatpush.bf16.msra.mxu3 %v1466_v0  ;;  %v1669_v4 = vld [vmem:[%s1983_s1 + $0x70] sm:$0xff]  ;;  %v1684_v7 = vld [vmem:[%s1983_s1 + $0x68] sm:$0xff]  ;;  %s1602_s21 = smul.u32 12, %s1987_s5  ;;  %s1120_s18 = sshll.u32 %s1987_s5, 2 }
   0xd   : > { %v1659_v2 = vld [vmem:[%s1983_s1 + $0xb8] sm:$0xff]  ;;  %782 = vmatpush.bf16.msra.mxu1 %v1654_v1  ;;  %v1674_v5 = vld [vmem:[%s1983_s1 + $0xb0] sm:$0xff]  ;;  %v1689_v8 = vld [vmem:[%s1983_s1 + $0xa8] sm:$0xff] }
   0xe   : > { %871 = vmatpush.bf16.msra.mxu2 %v1659_v2  ;;  %v1463_v9 = vld [vmem:[%s1983_s1 + $0x20] sm:$0xff]  ;;  %v1462_v12 = vld [vmem:[%s1983_s1 + $0x18] sm:$0xff]  ;;  %v1461_v15 = vld [vmem:[%s1983_s1 + $0x10] sm:$0xff]  ;;  %s1740_s30 = scalar_lea.vmem %s1982_s0, %s1602_s21  ;;  %s1871_s21 = scalar_lea.vmem %s1985_s3, %s1120_s18 }
   0xf   : > { %v1699_v10 = vld [vmem:[%s1983_s1 + $0x60] sm:$0xff]  ;;  %v1470_v13 = vld [vmem:[%s1983_s1 + $0x58] sm:$0xff]  ;;  %v1469_v16 = vld [vmem:[%s1983_s1 + $0x50] sm:$0xff] }
  0x10   : > { %694 = vmatpush.bf16.msra.mxu0 %v1465_v3  ;;  %1579 = vmatpush.bf16.msra.mxu3 %v1465_v3  ;;  %v1704_v11 = vld [vmem:[%s1983_s1 + $0xa0] sm:$0xff]  ;;  %v1719_v14 = vld [vmem:[%s1983_s1 + $0x98] sm:$0xff]  ;;  %v1732_v17 = vld [vmem:[%s1983_s1 + $0x90] sm:$0xff] }
  0x11   : > { %783 = vmatpush.bf16.msra.mxu1 %v1669_v4  ;;  %v1460_v18 = vld [vmem:[%s1983_s1 + $0x8] sm:$0xff]  ;;  %v1459_v21 = vld [vmem:[%s1983_s1] sm:$0xff]  ;;  %v1125_v29 = vld [vmem:[%s1740_s30 + $0xc] sm:$0xf0] }
  0x12   : > { %872 = vmatpush.bf16.msra.mxu2 %v1674_v5  ;;  %v1468_v19 = vld [vmem:[%s1983_s1 + $0x48] sm:$0xff]  ;;  %v1467_v22 = vld [vmem:[%s1983_s1 + $0x40] sm:$0xff]  ;;  %v1413_v31 = vld [vmem:[%s1740_s30 + $0x10] sm:$0xf0] }
  0x13   : > { %v1749_v20 = vld [vmem:[%s1983_s1 + $0x88] sm:$0xff]  ;;  %v1760_v23 = vld [vmem:[%s1983_s1 + $0x80] sm:$0xff]  ;;  %v1135_v36 = vld [vmem:[%s1740_s30 + $0x18] sm:$0xf] }
  0x14   : > { %695 = vmatpush.bf16.msra.mxu0 %v1464_v6  ;;  %1580 = vmatpush.bf16.msra.mxu3 %v1464_v6  ;;  %v1123_v24 = vld [vmem:[%s1740_s30] sm:$0xf]  ;;  %v1412_v25 = vld [vmem:[%s1740_s30 + $0x8] sm:$0xf0]  ;;  %v1411_v28 = vld [vmem:[%s1740_s30 + $0x4] sm:$0xf] }
  0x15   : > { %784 = vmatpush.bf16.msra.mxu1 %v1684_v7  ;;  %v1267_v26 = vld [vmem:[%s1740_s30 + $0x120] sm:$0xf]  ;;  %v1448_v27 = vld [vmem:[%s1740_s30 + $0x128] sm:$0xf0]  ;;  %v1131_v30 = vld [vmem:[%s1740_s30 + $0x8] sm:$0xf]  ;;  %v1124_v32 = vor.u32 %v1412_v25, %v1123_v24  ;;  %v1128_v34 = vor.u32 %v1411_v28, %v1125_v29 }
  0x16   : > { %873 = vmatpush.bf16.msra.mxu2 %v1689_v8  ;;  %v1268_v33 = vor.u32 %v1448_v27, %v1267_v26  ;;  %v1132_v35 = vor.u32 %v1413_v31, %v1131_v30  ;;  %v1415_v37 = vld [vmem:[%s1740_s30 + $0x20] sm:$0xf0]  ;;  %v1279_v38 = vld [vmem:[%s1740_s30 + $0x138] sm:$0xf]  ;;  %v1414_v40 = vld [vmem:[%s1740_s30 + $0x1c] sm:$0xf] }
  0x17   : > { %v1451_v39 = vld [vmem:[%s1740_s30 + $0x140] sm:$0xf0]  ;;  %v1137_v41 = vld [vmem:[%s1740_s30 + $0x24] sm:$0xf0]  ;;  %v1143_v42 = vld [vmem:[%s1740_s30 + $0x20] sm:$0xf]  ;;  %v1136_v44 = vor.u32 %v1415_v37, %v1135_v36 }
  0x18   : > { %696 = vmatpush.bf16.msra.mxu0 %v1463_v9  ;;  %1581 = vmatpush.bf16.msra.mxu3 %v1463_v9  ;;  %v1416_v43 = vld [vmem:[%s1740_s30 + $0x28] sm:$0xf0]  ;;  %v1280_v45 = vor.u32 %v1451_v39, %v1279_v38  ;;  %v1140_v46 = vor.u32 %v1414_v40, %v1137_v41  ;;  %v1147_v48 = vld [vmem:[%s1740_s30 + $0x30] sm:$0xf]  ;;  %v1418_v49 = vld [vmem:[%s1740_s30 + $0x38] sm:$0xf0] }
  0x19   : > { %785 = vmatpush.bf16.msra.mxu1 %v1699_v10  ;;  %v1144_v47 = vor.u32 %v1416_v43, %v1143_v42  ;;  %v1291_v50 = vld [vmem:[%s1740_s30 + $0x150] sm:$0xf]  ;;  %v1454_v51 = vld [vmem:[%s1740_s30 + $0x158] sm:$0xf0]  ;;  %v1417_v52 = vld [vmem:[%s1740_s30 + $0x34] sm:$0xf]  ;;  %v1148_v56 = vor.u32 %v1418_v49, %v1147_v48 }
  0x1a   : > { %874 = vmatpush.bf16.msra.mxu2 %v1704_v11  ;;  %v1149_v53 = vld [vmem:[%s1740_s30 + $0x3c] sm:$0xf0]  ;;  %v1155_v54 = vld [vmem:[%s1740_s30 + $0x38] sm:$0xf]  ;;  %v1419_v55 = vld [vmem:[%s1740_s30 + $0x40] sm:$0xf0]  ;;  %v1292_v57 = vor.u32 %v1454_v51, %v1291_v50 }
  0x1b   : > { %v1152_v58 = vor.u32 %v1417_v52, %v1149_v53  ;;  %v1156_v59 = vor.u32 %v1419_v55, %v1155_v54  ;;  %v1159_v60 = vld [vmem:[%s1740_s30 + $0x48] sm:$0xf]  ;;  %v1421_v61 = vld [vmem:[%s1740_s30 + $0x50] sm:$0xf0]  ;;  %v1420_v0 = vld [vmem:[%s1740_s30 + $0x4c] sm:$0xf] }
  0x1c   : > { %697 = vmatpush.bf16.msra.mxu0 %v1462_v12  ;;  %1582 = vmatpush.bf16.msra.mxu3 %v1462_v12  ;;  %v1303_v62 = vld [vmem:[%s1740_s30 + $0x168] sm:$0xf]  ;;  %v1457_v63 = vld [vmem:[%s1740_s30 + $0x170] sm:$0xf0]  ;;  %v1422_v3 = vld [vmem:[%s1740_s30 + $0x58] sm:$0xf0] }
  0x1d   : > { %786 = vmatpush.bf16.msra.mxu1 %v1470_v13  ;;  %v1424_v9 = vld [vmem:[%s1740_s30 + $0x68] sm:$0xf0]  ;;  %v1269_v12 = vld [vmem:[%s1740_s30 + $0x12c] sm:$0xf0]  ;;  %v1450_v24 = vld [vmem:[%s1740_s30 + $0x13c] sm:$0xf] }
  0x1e   : > { %875 = vmatpush.bf16.msra.mxu2 %v1719_v14  ;;  %v1281_v25 = vld [vmem:[%s1740_s30 + $0x144] sm:$0xf0]  ;;  %v1191_v26 = vld [vmem:[%s1740_s30 + $0x80] sm:$0xf]  ;;  %v1428_v27 = vld [vmem:[%s1740_s30 + $0x88] sm:$0xf0] }
  0x1f   : > { %v1284_v29 = vor.u32 %v1450_v24, %v1281_v25  ;;  %v1192_v31 = vor.u32 %v1428_v27, %v1191_v26  ;;  %v1293_v36 = vld [vmem:[%s1740_s30 + $0x15c] sm:$0xf0]  ;;  %v1203_v38 = vld [vmem:[%s1740_s30 + $0x98] sm:$0xf]  ;;  %v1431_v39 = vld [vmem:[%s1740_s30 + $0xa0] sm:$0xf0] }
  0x20   : > { %698 = vmatpush.bf16.msra.mxu0 %v1461_v15  ;;  %1583 = vmatpush.bf16.msra.mxu3 %v1461_v15  ;;  %v1425_v15 = vld [vmem:[%s1740_s30 + $0x70] sm:$0xf0]  ;;  %v1197_v37 = vld [vmem:[%s1740_s30 + $0x9c] sm:$0xf0]  ;;  %v1204_v43 = vor.u32 %v1431_v39, %v1203_v38  ;;  %v1305_v48 = vld [vmem:[%s1740_s30 + $0x174] sm:$0xf0] }
  0x21   : > { %787 = vmatpush.bf16.msra.mxu1 %v1469_v16  ;;  %v1209_v49 = vld [vmem:[%s1740_s30 + $0xb4] sm:$0xf0]  ;;  %v1215_v50 = vld [vmem:[%s1740_s30 + $0xb0] sm:$0xf]  ;;  %v1434_v51 = vld [vmem:[%s1740_s30 + $0xb8] sm:$0xf0] }
  0x22   : > { %876 = vmatpush.bf16.msra.mxu2 %v1732_v17  ;;  %v1216_v55 = vor.u32 %v1434_v51, %v1215_v50  ;;  %v1443_v50 = vld [vmem:[%s1740_s30 + $0x100] sm:$0xf0] }
  0x24   : > { %699 = vmatpush.bf16.msra.mxu0 %v1460_v18  ;;  %1584 = vmatpush.bf16.msra.mxu3 %v1460_v18 }
  0x25   : > { %788 = vmatpush.bf16.msra.mxu1 %v1468_v19 }
  0x26   : > { %877 = vmatpush.bf16.msra.mxu2 %v1749_v20 }
  0x28   : > { %700 = vmatpush.bf16.msra.mxu0 %v1459_v21  ;;  %1585 = vmatpush.bf16.msra.mxu3 %v1459_v21  ;;  %v1427_v21 = vld [vmem:[%s1740_s30 + $0x80] sm:$0xf0] }
  0x29   : > { %789 = vmatpush.bf16.msra.mxu1 %v1467_v22 }
  0x2a   : > { %878 = vmatpush.bf16.msra.mxu2 %v1760_v23 }
  0x2b   : > { %701 = vmatmul.bf16.vlgmr.msra.gmra.mxu0 %v1124_v32  ;;  %761 = vmatmul.bf16.vlgmr.msra.gmra.mxu3 %v1268_v33  ;;  %v1195_v32 = vld [vmem:[%s1740_s30 + $0x90] sm:$0xf]  ;;  %v1430_v33 = vld [vmem:[%s1740_s30 + $0x98] sm:$0xf0] }
  0x2c   : > { %1586 = vmatpush.bf16.msrb.mxu3 %v1654_v1  ;;  %790 = vmatmul.bf16.vlgmr.msra.gmra.mxu1 %v1128_v34  ;;  %v1161_v1 = vld [vmem:[%s1740_s30 + $0x54] sm:$0xf0]  ;;  %v1429_v34 = vld [vmem:[%s1740_s30 + $0x94] sm:$0xf]  ;;  %v1196_v40 = vor.u32 %v1430_v33, %v1195_v32 }
  0x2d   : > { %879 = vmatmul.bf16.vlgmr.msra.gmra.mxu2 %v1132_v35  ;;  %v1164_v6 = vor.u32 %v1420_v0, %v1161_v1  ;;  %v1453_v35 = vld [vmem:[%s1740_s30 + $0x154] sm:$0xf]  ;;  %v1200_v42 = vor.u32 %v1429_v34, %v1197_v37 }
  0x2e   : > { %v1296_v41 = vor.u32 %v1453_v35, %v1293_v36 }
  0x30   : > { %1587 = vmatpush.bf16.msrb.mxu3 %v1669_v4  ;;  %v1160_v4 = vor.u32 %v1421_v61, %v1159_v60  ;;  %v1449_v60 = vld [vmem:[%s1740_s30 + $0x130] sm:$0xf0]  ;;  %v1221_v61 = vld [vmem:[%s1740_s30 + $0xcc] sm:$0xf0] }
  0x34   : > { %1588 = vmatpush.bf16.msrb.mxu3 %v1684_v7 }
  0x38   : > { %1589 = vmatpush.bf16.msrb.mxu3 %v1699_v10  ;;  %v1423_v10 = vld [vmem:[%s1740_s30 + $0x64] sm:$0xf] }
  0x3b   : > { %706 = vmatmul.bf16.gmra.mxu0 %v1136_v44  ;;  %766 = vmatmul.bf16.gmra.mxu3 %v1280_v45  ;;  %v1207_v44 = vld [vmem:[%s1740_s30 + $0xa8] sm:$0xf]  ;;  %v1433_v45 = vld [vmem:[%s1740_s30 + $0xb0] sm:$0xf0] }
  0x3c   : > { %1590 = vmatpush.bf16.msrb.mxu3 %v1470_v13  ;;  %795 = vmatmul.bf16.gmra.mxu1 %v1140_v46  ;;  %v1173_v13 = vld [vmem:[%s1740_s30 + $0x6c] sm:$0xf0]  ;;  %v1432_v46 = vld [vmem:[%s1740_s30 + $0xac] sm:$0xf]  ;;  %v1208_v52 = vor.u32 %v1433_v45, %v1207_v44  ;;  %v1442_v44 = vld [vmem:[%s1740_s30 + $0xf8] sm:$0xf0] }
  0x3d   : > { %884 = vmatmul.bf16.gmra.mxu2 %v1144_v47  ;;  %v1176_v18 = vor.u32 %v1423_v10, %v1173_v13  ;;  %v1456_v47 = vld [vmem:[%s1740_s30 + $0x16c] sm:$0xf]  ;;  %v1212_v54 = vor.u32 %v1432_v46, %v1209_v49  ;;  %v1441_v45 = vld [vmem:[%s1740_s30 + $0xf4] sm:$0xf]  ;;  %v1299_v46 = vld [vmem:[%s1740_s30 + $0x158] sm:$0xf] }
  0x3e   : > { %v1308_v53 = vor.u32 %v1456_v47, %v1305_v48  ;;  %v1455_v47 = vld [vmem:[%s1740_s30 + $0x160] sm:$0xf0]  ;;  %v1245_v48 = vld [vmem:[%s1740_s30 + $0xfc] sm:$0xf0]  ;;  %v1251_v49 = vld [vmem:[%s1740_s30 + $0xf8] sm:$0xf] }
  0x40   : > { %1591 = vmatpush.bf16.msrb.mxu3 %v1469_v16 }
  0x44   : > { %1592 = vmatpush.bf16.msrb.mxu3 %v1468_v19 }
  0x48   : > { %1593 = vmatpush.bf16.msrb.mxu3 %v1467_v22  ;;  %v1426_v22 = vld [vmem:[%s1740_s30 + $0x7c] sm:$0xf] }
  0x4b   : > { %711 = vmatmul.bf16.gmra.mxu0 %v1148_v56  ;;  %771 = vmatmul.bf16.gmra.mxu3 %v1292_v57  ;;  %v1219_v56 = vld [vmem:[%s1740_s30 + $0xc0] sm:$0xf]  ;;  %v1436_v57 = vld [vmem:[%s1740_s30 + $0xc8] sm:$0xf0] }
  0x4c   : > { %1594 = vmatpush.bf16.msra.mxu3 %v1659_v2  ;;  %800 = vmatmul.bf16.gmra.mxu1 %v1152_v58  ;;  %v1167_v2 = vld [vmem:[%s1740_s30 + $0x50] sm:$0xf]  ;;  %v1435_v58 = vld [vmem:[%s1740_s30 + $0xc4] sm:$0xf]  ;;  %v1220_v0 = vor.u32 %v1436_v57, %v1219_v56  ;;  %v1300_v56 = vor.u32 %v1455_v47, %v1299_v46 }
  0x4d   : > { %889 = vmatmul.bf16.gmra.mxu2 %v1156_v59  ;;  %v1168_v7 = vor.u32 %v1422_v3, %v1167_v2  ;;  %v1275_v59 = vld [vmem:[%s1740_s30 + $0x128] sm:$0xf]  ;;  %v1224_v3 = vor.u32 %v1435_v58, %v1221_v61 }
  0x4e   : > { %v1276_v1 = vor.u32 %v1449_v60, %v1275_v59  ;;  %v1248_v59 = vor.u32 %v1441_v45, %v1245_v48  ;;  %v1252_v60 = vor.u32 %v1443_v50, %v1251_v49 }
  0x50   : > { %1595 = vmatpush.bf16.msra.mxu3 %v1674_v5  ;;  %v1304_v5 = vor.u32 %v1457_v63, %v1303_v62  ;;  %v1227_v62 = vld [vmem:[%s1740_s30 + $0xc8] sm:$0xf]  ;;  %v1437_v63 = vld [vmem:[%s1740_s30 + $0xd0] sm:$0xf0] }
  0x54   : > { %1596 = vmatpush.bf16.msra.mxu3 %v1689_v8  ;;  %v1171_v8 = vld [vmem:[%s1740_s30 + $0x60] sm:$0xf] }
  0x55   : > { %v1172_v16 = vor.u32 %v1424_v9, %v1171_v8 }
  0x58   : > { %1597 = vmatpush.bf16.msra.mxu3 %v1704_v11  ;;  %v1447_v11 = vld [vmem:[%s1740_s30 + $0x124] sm:$0xf] }
  0x5b   : > { %716 = vmatmul.bf16.gmra.mxu0 %v1160_v4  ;;  %776 = vmatmul.bf16.gmra.mxu3 %v1304_v5  ;;  %v1228_v4 = vor.u32 %v1437_v63, %v1227_v62 }
  0x5c   : > { %1598 = vmatpush.bf16.msra.mxu3 %v1719_v14  ;;  %805 = vmatmul.bf16.gmra.mxu1 %v1164_v6  ;;  %v1179_v14 = vld [vmem:[%s1740_s30 + $0x68] sm:$0xf]  ;;  %v1851_v6 = vld [vmem:[%s1984_s2] ss:$0 sm:$0xff] }
  0x5d   : > { %894 = vmatmul.bf16.gmra.mxu2 %v1168_v7  ;;  %v1180_v19 = vor.u32 %v1425_v15, %v1179_v14  ;;  %v1231_v14 = vld [vmem:[%s1740_s30 + $0xd8] sm:$0xf]  ;;  %v1439_v15 = vld [vmem:[%s1740_s30 + $0xe0] sm:$0xf0] }
  0x5e   : > { %v1232_v26 = vor.u32 %v1439_v15, %v1231_v14  ;;  %v1458_v14 = vld [vmem:[%s1740_s30 + $0x178] sm:$0xf0]  ;;  %v1257_v15 = vld [vmem:[%s1740_s30 + $0x114] sm:$0xf0] }
  0x60   : > { %1599 = vmatpush.bf16.msra.mxu3 %v1732_v17  ;;  %v1272_v17 = vor.u32 %v1447_v11, %v1269_v12 }
  0x64   : > { %1600 = vmatpush.bf16.msra.mxu3 %v1749_v20  ;;  %v1183_v20 = vld [vmem:[%s1740_s30 + $0x78] sm:$0xf] }
  0x65   : > { %v1184_v28 = vor.u32 %v1427_v21, %v1183_v20  ;;  %v1239_v20 = vld [vmem:[%s1740_s30 + $0xe0] sm:$0xf]  ;;  %v1440_v21 = vld [vmem:[%s1740_s30 + $0xe8] sm:$0xf0] }
  0x68   : > { %1601 = vmatpush.bf16.msra.mxu3 %v1760_v23  ;;  %v1185_v23 = vld [vmem:[%s1740_s30 + $0x84] sm:$0xf0] }
  0x69   : > { %v1188_v30 = vor.u32 %v1426_v22, %v1185_v23 }
  0x6b   : > { %721 = vmatmul.bf16.gmra.mxu0 %v1172_v16  ;;  %850 = vmatmul.bf16.vlgmr.msrb.gmra.mxu3 %v1272_v17  ;;  %v1438_v16 = vld [vmem:[%s1740_s30 + $0xdc] sm:$0xf]  ;;  %v1287_v17 = vld [vmem:[%s1740_s30 + $0x140] sm:$0xf] }
  0x6c   : > { %810 = vmatmul.bf16.gmra.mxu1 %v1176_v18  ;;  %v1452_v18 = vld [vmem:[%s1740_s30 + $0x148] sm:$0xf0] }
  0x6d   : > { %899 = vmatmul.bf16.gmra.mxu2 %v1180_v19  ;;  %v1233_v19 = vld [vmem:[%s1740_s30 + $0xe4] sm:$0xf0]  ;;  %v1288_v27 = vor.u32 %v1452_v18, %v1287_v17  ;;  %v1446_v17 = vld [vmem:[%s1740_s30 + $0x118] sm:$0xf0] }
  0x7b   : > { %726 = vmatmul.bf16.gmra.mxu0 %v1184_v28  ;;  %855 = vmatmul.bf16.gmra.mxu3 %v1284_v29 }
  0x7c   : > { %815 = vmatmul.bf16.gmra.mxu1 %v1188_v30  ;;  %v1236_v30 = vor.u32 %v1438_v16, %v1233_v19  ;;  %v1263_v16 = vld [vmem:[%s1740_s30 + $0x110] sm:$0xf] }
  0x7d   : > { %904 = vmatmul.bf16.gmra.mxu2 %v1192_v31  ;;  %v1240_v31 = vor.u32 %v1440_v21, %v1239_v20 }
  0x8b   : > { %731 = vmatmul.bf16.gmra.mxu0 %v1196_v40  ;;  %860 = vmatmul.bf16.gmra.mxu3 %v1296_v41 }
  0x8c   : > { %820 = vmatmul.bf16.gmra.mxu1 %v1200_v42 }
  0x8d   : > { %909 = vmatmul.bf16.gmra.mxu2 %v1204_v43  ;;  %v1243_v43 = vld [vmem:[%s1740_s30 + $0xf0] sm:$0xf] }
  0x9b   : > { %736 = vmatmul.bf16.gmra.mxu0 %v1208_v52  ;;  %865 = vmatmul.bf16.gmra.mxu3 %v1308_v53 }
  0x9c   : > { %825 = vmatmul.bf16.gmra.mxu1 %v1212_v54 }
  0x9d   : > { %914 = vmatmul.bf16.gmra.mxu2 %v1216_v55  ;;  %v1244_v55 = vor.u32 %v1442_v44, %v1243_v43 }
  0xa8   : > { %v702_v2 = vpop.f32.mrf.mxu0 }
  0xa9   : > { %v791_v5 = vpop.f32.mrf.mxu1  ;;  %v703_v7 = vadd.f32 %v1851_v6, %v702_v2 }
  0xab   : > { %741 = vmatmul.bf16.gmra.mxu0 %v1220_v0  ;;  %939 = vmatmul.bf16.vlgmr.msra.gmra.mxu3 %v1276_v1  ;;  %v792_v12 = vadd.f32 %v791_v5, %v703_v7 }
  0xac   : > { %830 = vmatmul.bf16.gmra.mxu1 %v1224_v3 }
  0xad   : > { %919 = vmatmul.bf16.gmra.mxu2 %v1228_v4 }
  0xae   : > { %v1854_v8 = vpop.f32.mrf.mxu3 }
  0xb0   : > { %v880_v9 = vpop.f32.mrf.mxu2  ;;  %v704_v10 = vpop.f32.mrf.mxu0 }
  0xb1   : > { %v793_v11 = vpop.f32.mrf.mxu1  ;;  %v705_v13 = vadd.f32 %v1851_v6, %v704_v10  ;;  %v881_v22 = vadd.f32 %v880_v9, %v792_v12  ;;  %v1255_v10 = vld [vmem:[%s1740_s30 + $0x108] sm:$0xf]  ;;  %v1444_v12 = vld [vmem:[%s1740_s30 + $0x10c] sm:$0xf] }
  0xb3   : > { %v794_v24 = vadd.f32 %v793_v11, %v705_v13  ;;  %v960_v33 = vmax.f32 %v881_v22, 0.0  ;;  %v1445_v11 = vld [vmem:[%s1740_s30 + $0x110] sm:$0xf0]  ;;  %v1311_v13 = vld [vmem:[%s1740_s30 + $0x170] sm:$0xf] }
  0xb4   : > { %v1256_v22 = vor.u32 %v1445_v11, %v1255_v10 }
  0xb6   : > { %v1865_v25 = vpop.f32.mrf.mxu3 }
  0xb8   : > { %v882_v23 = vpop.f32.mrf.mxu2  ;;  %v707_v29 = vpop.f32.mrf.mxu0 }
  0xb9   : > { %v883_v28 = vadd.f32 %v882_v23, %v794_v24  ;;  %v796_v32 = vpop.f32.mrf.mxu1  ;;  %v708_v36 = vadd.f32 %v1851_v6, %v707_v29  ;;  %v1312_v24 = vor.u32 %v1458_v14, %v1311_v13 }
  0xbb   : > { %v961_v34 = vmax.f32 %v883_v28, 0.0  ;;  %746 = vmatmul.bf16.gmra.mxu0 %v1232_v26  ;;  %944 = vmatmul.bf16.gmra.mxu3 %v1288_v27  ;;  %v797_v41 = vadd.f32 %v796_v32, %v708_v36  ;;  %v1260_v27 = vor.u32 %v1444_v12, %v1257_v15  ;;  %v1264_v28 = vor.u32 %v1446_v17, %v1263_v16 }
  0xbc   : > { %835 = vmatmul.bf16.gmra.mxu1 %v1236_v30 }
  0xbd   : > { %v1486_v35 = vpack.c.bf16 %v961_v34, %v960_v33  ;;  %924 = vmatmul.bf16.gmra.mxu2 %v1240_v31 }
  0xbe   : > { %v1875_v37 = vpop.f32.mrf.mxu3 }
  0xbf   : > { %1487 = vst [vmem:[%s1871_s21] sm:$0xff] %v1486_v35  }
  0xc0   : > { %v885_v38 = vpop.f32.mrf.mxu2  ;;  %v709_v39 = vpop.f32.mrf.mxu0 }
  0xc1   : > { %v798_v40 = vpop.f32.mrf.mxu1  ;;  %v710_v42 = vadd.f32 %v1851_v6, %v709_v39  ;;  %v886_v51 = vadd.f32 %v885_v38, %v797_v41 }
  0xc3   : > { %v799_v52 = vadd.f32 %v798_v40, %v710_v42  ;;  %v962_v62 = vmax.f32 %v886_v51, 0.0  ;;  %v763_v51 = vadd.f32 %v1851_v6, %v1854_v8 }
  0xc6   : > { %v1886_v53 = vpop.f32.mrf.mxu3 }
  0xc8   : > { %v887_v54 = vpop.f32.mrf.mxu2  ;;  %v712_v58 = vpop.f32.mrf.mxu0 }
  0xc9   : > { %v888_v57 = vadd.f32 %v887_v54, %v799_v52  ;;  %v801_v61 = vpop.f32.mrf.mxu1  ;;  %v713_v1 = vadd.f32 %v1851_v6, %v712_v58 }
  0xcb   : > { %v963_v63 = vmax.f32 %v888_v57, 0.0  ;;  %751 = vmatmul.bf16.gmra.mxu0 %v1244_v55  ;;  %949 = vmatmul.bf16.gmra.mxu3 %v1300_v56  ;;  %v802_v7 = vadd.f32 %v801_v61, %v713_v1 }
  0xcc   : > { %840 = vmatmul.bf16.gmra.mxu1 %v1248_v59 }
  0xcd   : > { %v1491_v0 = vpack.c.bf16 %v963_v63, %v962_v62  ;;  %929 = vmatmul.bf16.gmra.mxu2 %v1252_v60 }
  0xce   : > { %v1890_v2 = vpop.f32.mrf.mxu3 }
  0xcf   : > { %1563 = vst [vmem:[%s1871_s21 + $0x8] sm:$0xff] %v1491_v0  }
  0xd0   : > { %v890_v3 = vpop.f32.mrf.mxu2  ;;  %v714_v4 = vpop.f32.mrf.mxu0 }
  0xd1   : > { %v803_v5 = vpop.f32.mrf.mxu1  ;;  %v715_v9 = vadd.f32 %v1851_v6, %v714_v4  ;;  %v891_v18 = vadd.f32 %v890_v3, %v802_v7 }
  0xd3   : > { %v804_v19 = vadd.f32 %v803_v5, %v715_v9  ;;  %v964_v30 = vmax.f32 %v891_v18, 0.0  ;;  %v768_v9 = vadd.f32 %v1851_v6, %v1875_v37 }
  0xd6   : > { %v1901_v20 = vpop.f32.mrf.mxu3 }
  0xd8   : > { %v892_v21 = vpop.f32.mrf.mxu2  ;;  %v717_v26 = vpop.f32.mrf.mxu0 }
  0xd9   : > { %v893_v23 = vadd.f32 %v892_v21, %v804_v19  ;;  %v806_v29 = vpop.f32.mrf.mxu1  ;;  %v718_v33 = vadd.f32 %v1851_v6, %v717_v26 }
  0xdb   : > { %v965_v31 = vmax.f32 %v893_v23, 0.0  ;;  %756 = vmatmul.bf16.gmra.mxu0 %v1256_v22  ;;  %954 = vmatmul.bf16.gmra.mxu3 %v1312_v24  ;;  %v807_v39 = vadd.f32 %v806_v29, %v718_v33  ;;  %v773_v29 = vadd.f32 %v1851_v6, %v1890_v2 }
  0xdc   : > { %845 = vmatmul.bf16.gmra.mxu1 %v1260_v27 }
  0xdd   : > { %v1496_v32 = vpack.c.bf16 %v965_v31, %v964_v30  ;;  %934 = vmatmul.bf16.gmra.mxu2 %v1264_v28 }
  0xde   : > { %v1905_v34 = vpop.f32.mrf.mxu3 }
  0xdf   : > { %1564 = vst [vmem:[%s1871_s21 + $0x10] sm:$0xff] %v1496_v32  }
  0xe0   : > { %v895_v35 = vpop.f32.mrf.mxu2  ;;  %v719_v36 = vpop.f32.mrf.mxu0 }
  0xe1   : > { %v808_v38 = vpop.f32.mrf.mxu1  ;;  %v720_v40 = vadd.f32 %v1851_v6, %v719_v36  ;;  %v896_v41 = vadd.f32 %v895_v35, %v807_v39 }
  0xe3   : > { %v809_v42 = vadd.f32 %v808_v38, %v720_v40  ;;  %v966_v48 = vmax.f32 %v896_v41, 0.0 }
  0xe6   : > { %v1908_v43 = vpop.f32.mrf.mxu3 }
  0xe8   : > { %v897_v44 = vpop.f32.mrf.mxu2  ;;  %v722_v46 = vpop.f32.mrf.mxu0 }
  0xe9   : > { %v898_v45 = vadd.f32 %v897_v44, %v809_v42  ;;  %v811_v47 = vpop.f32.mrf.mxu1  ;;  %v723_v52 = vadd.f32 %v1851_v6, %v722_v46 }
  0xeb   : > { %v967_v49 = vmax.f32 %v898_v45, 0.0  ;;  %v812_v59 = vadd.f32 %v811_v47, %v723_v52 }
  0xed   : > { %v1501_v50 = vpack.c.bf16 %v967_v49, %v966_v48 }
  0xee   : > { %v851_v54 = vpop.f32.mrf.mxu3 }
  0xef   : > { %1565 = vst [vmem:[%s1871_s21 + $0x18] sm:$0xff] %v1501_v50   ;;  %v1914_v55 = vadd.f32 %v851_v54, %v763_v51  ;;  %v778_v50 = vadd.f32 %v1851_v6, %v1905_v34 }
  0xf0   : > { %v900_v56 = vpop.f32.mrf.mxu2  ;;  %v724_v57 = vpop.f32.mrf.mxu0 }
  0xf1   : > { %v813_v58 = vpop.f32.mrf.mxu1  ;;  %v725_v60 = vadd.f32 %v1851_v6, %v724_v57  ;;  %v901_v61 = vadd.f32 %v900_v56, %v812_v59 }
  0xf3   : > { %v814_v62 = vadd.f32 %v813_v58, %v725_v60  ;;  %v968_v4 = vmax.f32 %v901_v61, 0.0 }
  0xf6   : > { %v1917_v63 = vpop.f32.mrf.mxu3 }
  0xf8   : > { %v902_v0 = vpop.f32.mrf.mxu2  ;;  %v727_v8 = vpop.f32.mrf.mxu0 }
  0xf9   : > { %v903_v1 = vadd.f32 %v902_v0, %v814_v62  ;;  %v816_v3 = vpop.f32.mrf.mxu1  ;;  %v728_v10 = vadd.f32 %v1851_v6, %v727_v8 }
  0xfb   : > { %v969_v5 = vmax.f32 %v903_v1, 0.0  ;;  %v817_v16 = vadd.f32 %v816_v3, %v728_v10 }
  0xfd   : > { %v1506_v7 = vpack.c.bf16 %v969_v5, %v968_v4 }
  0xfe   : > { %v856_v11 = vpop.f32.mrf.mxu3 }
  0xff   : > { %1566 = vst [vmem:[%s1871_s21 + $0x20] sm:$0xff] %v1506_v7   ;;  %v1923_v12 = vadd.f32 %v856_v11, %v768_v9 }
 0x100   : > { %v905_v13 = vpop.f32.mrf.mxu2  ;;  %v729_v14 = vpop.f32.mrf.mxu0 }
 0x101   : > { %v818_v15 = vpop.f32.mrf.mxu1  ;;  %v730_v17 = vadd.f32 %v1851_v6, %v729_v14  ;;  %v906_v18 = vadd.f32 %v905_v13, %v817_v16 }
 0x103   : > { %v819_v19 = vadd.f32 %v818_v15, %v730_v17  ;;  %v970_v26 = vmax.f32 %v906_v18, 0.0  ;;  %v765_v17 = vadd.f32 %v1851_v6, %v1865_v25 }
 0x105   : > { %v854_v18 = vadd.f32 %v1917_v63, %v765_v17 }
 0x106   : > { %v1926_v21 = vpop.f32.mrf.mxu3 }
 0x108   : > { %v907_v22 = vpop.f32.mrf.mxu2  ;;  %v732_v37 = vpop.f32.mrf.mxu0 }
 0x109   : > { %v908_v24 = vadd.f32 %v907_v22, %v819_v19  ;;  %v821_v23 = vpop.f32.mrf.mxu1  ;;  %v733_v30 = vadd.f32 %v1851_v6, %v732_v37 }
 0x10b   : > { %v971_v27 = vmax.f32 %v908_v24, 0.0  ;;  %v822_v38 = vadd.f32 %v821_v23, %v733_v30 }
 0x10d   : > { %v1511_v28 = vpack.c.bf16 %v971_v27, %v970_v26 }
 0x10e   : > { %v861_v31 = vpop.f32.mrf.mxu3 }
 0x10f   : > { %1567 = vst [vmem:[%s1871_s21 + $0x28] sm:$0xff] %v1511_v28   ;;  %v1932_v32 = vadd.f32 %v861_v31, %v773_v29 }
 0x110   : > { %v910_v33 = vpop.f32.mrf.mxu2  ;;  %v734_v35 = vpop.f32.mrf.mxu0 }
 0x111   : > { %v823_v36 = vpop.f32.mrf.mxu1  ;;  %v735_v39 = vadd.f32 %v1851_v6, %v734_v35  ;;  %v911_v40 = vadd.f32 %v910_v33, %v822_v38 }
 0x113   : > { %v824_v41 = vadd.f32 %v823_v36, %v735_v39  ;;  %v972_v47 = vmax.f32 %v911_v40, 0.0 }
 0x116   : > { %v1935_v42 = vpop.f32.mrf.mxu3 }
 0x118   : > { %v912_v44 = vpop.f32.mrf.mxu2  ;;  %v737_v2 = vpop.f32.mrf.mxu0 }
 0x119   : > { %v913_v45 = vadd.f32 %v912_v44, %v824_v41  ;;  %v826_v46 = vpop.f32.mrf.mxu1  ;;  %v738_v51 = vadd.f32 %v1851_v6, %v737_v2 }
 0x11b   : > { %v973_v48 = vmax.f32 %v913_v45, 0.0  ;;  %v827_v59 = vadd.f32 %v826_v46, %v738_v51  ;;  %v770_v45 = vadd.f32 %v1851_v6, %v1886_v53 }
 0x11d   : > { %v1516_v49 = vpack.c.bf16 %v973_v48, %v972_v47  ;;  %v859_v2 = vadd.f32 %v1926_v21, %v770_v45 }
 0x11e   : > { %v866_v52 = vpop.f32.mrf.mxu3 }
 0x11f   : > { %1568 = vst [vmem:[%s1871_s21 + $0x30] sm:$0xff] %v1516_v49   ;;  %v1941_v54 = vadd.f32 %v866_v52, %v778_v50 }
 0x120   : > { %v915_v56 = vpop.f32.mrf.mxu2  ;;  %v739_v57 = vpop.f32.mrf.mxu0 }
 0x121   : > { %v828_v58 = vpop.f32.mrf.mxu1  ;;  %v740_v60 = vadd.f32 %v1851_v6, %v739_v57  ;;  %v916_v61 = vadd.f32 %v915_v56, %v827_v59 }
 0x123   : > { %v829_v62 = vadd.f32 %v828_v58, %v740_v60  ;;  %v974_v4 = vmax.f32 %v916_v61, 0.0 }
 0x126   : > { %v1944_v0 = vpop.f32.mrf.mxu3 }
 0x128   : > { %v917_v1 = vpop.f32.mrf.mxu2  ;;  %v742_v34 = vpop.f32.mrf.mxu0 }
 0x129   : > { %v918_v8 = vadd.f32 %v917_v1, %v829_v62  ;;  %v831_v3 = vpop.f32.mrf.mxu1  ;;  %v743_v9 = vadd.f32 %v1851_v6, %v742_v34 }
 0x12b   : > { %v975_v5 = vmax.f32 %v918_v8, 0.0  ;;  %v832_v15 = vadd.f32 %v831_v3, %v743_v9 }
 0x12d   : > { %v1521_v7 = vpack.c.bf16 %v975_v5, %v974_v4  ;;  %v775_v5 = vadd.f32 %v1851_v6, %v1901_v20 }
 0x12e   : > { %v940_v10 = vpop.f32.mrf.mxu3 }
 0x12f   : > { %1569 = vst [vmem:[%s1871_s21 + $0x38] sm:$0xff] %v1521_v7   ;;  %v941_v19 = vadd.f32 %v940_v10, %v1914_v55  ;;  %v864_v7 = vadd.f32 %v1935_v42, %v775_v5 }
 0x130   : > { %v920_v11 = vpop.f32.mrf.mxu2  ;;  %v744_v13 = vpop.f32.mrf.mxu0 }
 0x131   : > { %v833_v14 = vpop.f32.mrf.mxu1  ;;  %v745_v16 = vadd.f32 %v1851_v6, %v744_v13  ;;  %v921_v22 = vadd.f32 %v920_v11, %v832_v15  ;;  %v984_v29 = vmax.f32 %v941_v19, 0.0 }
 0x133   : > { %v834_v24 = vadd.f32 %v833_v14, %v745_v16  ;;  %v976_v33 = vmax.f32 %v921_v22, 0.0 }
 0x136   : > { %v942_v37 = vpop.f32.mrf.mxu3 }
 0x137   : > { %v943_v26 = vadd.f32 %v942_v37, %v854_v18 }
 0x138   : > { %v922_v23 = vpop.f32.mrf.mxu2  ;;  %v747_v28 = vpop.f32.mrf.mxu0 }
 0x139   : > { %v923_v27 = vadd.f32 %v922_v23, %v834_v24  ;;  %v985_v30 = vmax.f32 %v943_v26, 0.0  ;;  %v836_v31 = vpop.f32.mrf.mxu1  ;;  %v748_v63 = vadd.f32 %v1851_v6, %v747_v28 }
 0x13b   : > { %v977_v35 = vmax.f32 %v923_v27, 0.0  ;;  %v1546_v36 = vpack.c.bf16 %v985_v30, %v984_v29  ;;  %v837_v41 = vadd.f32 %v836_v31, %v748_v63  ;;  %v780_v30 = vadd.f32 %v1851_v6, %v1908_v43 }
 0x13d   : > { %v1526_v25 = vpack.c.bf16 %v977_v35, %v976_v33  ;;  %1574 = vst [vmem:[%s1871_s21 + $0x60] sm:$0xff] %v1546_v36   ;;  %v869_v31 = vadd.f32 %v1944_v0, %v780_v30 }
 0x13e   : > { %v945_v55 = vpop.f32.mrf.mxu3 }
 0x13f   : > { %1570 = vst [vmem:[%s1871_s21 + $0x40] sm:$0xff] %v1526_v25   ;;  %v946_v46 = vadd.f32 %v945_v55, %v1923_v12 }
 0x140   : > { %v925_v38 = vpop.f32.mrf.mxu2  ;;  %v749_v39 = vpop.f32.mrf.mxu0 }
 0x141   : > { %v838_v40 = vpop.f32.mrf.mxu1  ;;  %v750_v44 = vadd.f32 %v1851_v6, %v749_v39  ;;  %v926_v47 = vadd.f32 %v925_v38, %v837_v41  ;;  %v986_v57 = vmax.f32 %v946_v46, 0.0 }
 0x143   : > { %v839_v48 = vadd.f32 %v838_v40, %v750_v44  ;;  %v978_v60 = vmax.f32 %v926_v47, 0.0 }
 0x146   : > { %v947_v49 = vpop.f32.mrf.mxu3 }
 0x147   : > { %v948_v51 = vadd.f32 %v947_v49, %v859_v2 }
 0x148   : > { %v927_v50 = vpop.f32.mrf.mxu2  ;;  %v752_v56 = vpop.f32.mrf.mxu0 }
 0x149   : > { %v928_v52 = vadd.f32 %v927_v50, %v839_v48  ;;  %v987_v58 = vmax.f32 %v948_v51, 0.0  ;;  %v841_v59 = vpop.f32.mrf.mxu1  ;;  %v753_v21 = vadd.f32 %v1851_v6, %v752_v56 }
 0x14b   : > { %v979_v61 = vmax.f32 %v928_v52, 0.0  ;;  %v1551_v62 = vpack.c.bf16 %v987_v58, %v986_v57  ;;  %v842_v3 = vadd.f32 %v841_v59, %v753_v21 }
 0x14d   : > { %v1531_v53 = vpack.c.bf16 %v979_v61, %v978_v60  ;;  %1575 = vst [vmem:[%s1871_s21 + $0x68] sm:$0xff] %v1551_v62  }
 0x14e   : > { %v950_v12 = vpop.f32.mrf.mxu3 }
 0x14f   : > { %1571 = vst [vmem:[%s1871_s21 + $0x48] sm:$0xff] %v1531_v53   ;;  %v951_v9 = vadd.f32 %v950_v12, %v1932_v32 }
 0x150   : > { %v930_v1 = vpop.f32.mrf.mxu2  ;;  %v754_v8 = vpop.f32.mrf.mxu0 }
 0x151   : > { %v843_v34 = vpop.f32.mrf.mxu1  ;;  %v755_v4 = vadd.f32 %v1851_v6, %v754_v8  ;;  %v931_v10 = vadd.f32 %v930_v1, %v842_v3  ;;  %v988_v18 = vmax.f32 %v951_v9, 0.0 }
 0x153   : > { %v844_v11 = vadd.f32 %v843_v34, %v755_v4  ;;  %v980_v22 = vmax.f32 %v931_v10, 0.0 }
 0x156   : > { %v952_v13 = vpop.f32.mrf.mxu3 }
 0x157   : > { %v953_v15 = vadd.f32 %v952_v13, %v864_v7 }
 0x158   : > { %v932_v14 = vpop.f32.mrf.mxu2  ;;  %v757_v17 = vpop.f32.mrf.mxu0 }
 0x159   : > { %v933_v16 = vadd.f32 %v932_v14, %v844_v11  ;;  %v989_v19 = vmax.f32 %v953_v15, 0.0  ;;  %v846_v23 = vpop.f32.mrf.mxu1  ;;  %v758_v42 = vadd.f32 %v1851_v6, %v757_v17 }
 0x15b   : > { %v981_v24 = vmax.f32 %v933_v16, 0.0  ;;  %v1556_v37 = vpack.c.bf16 %v989_v19, %v988_v18  ;;  %v847_v28 = vadd.f32 %v846_v23, %v758_v42 }
 0x15d   : > { %v1536_v20 = vpack.c.bf16 %v981_v24, %v980_v22  ;;  %1576 = vst [vmem:[%s1871_s21 + $0x70] sm:$0xff] %v1556_v37  }
 0x15e   : > { %v955_v32 = vpop.f32.mrf.mxu3 }
 0x15f   : > { %1572 = vst [vmem:[%s1871_s21 + $0x50] sm:$0xff] %v1536_v20   ;;  %v956_v33 = vadd.f32 %v955_v32, %v1941_v54 }
 0x160   : > { %v935_v26 = vpop.f32.mrf.mxu2  ;;  %v759_v27 = vpop.f32.mrf.mxu0 }
 0x161   : > { %v760_v29 = vadd.f32 %v1851_v6, %v759_v27  ;;  %v848_v35 = vpop.f32.mrf.mxu1  ;;  %v936_v36 = vadd.f32 %v935_v26, %v847_v28  ;;  %v990_v40 = vmax.f32 %v956_v33, 0.0 }
 0x163   : > { %v849_v25 = vadd.f32 %v848_v35, %v760_v29  ;;  %v982_v44 = vmax.f32 %v936_v36, 0.0 }
 0x166   : > { %v957_v63 = vpop.f32.mrf.mxu3 }
 0x167   : > { %v958_v38 = vadd.f32 %v957_v63, %v869_v31 }
 0x168   : > { %v937_v55 = vpop.f32.mrf.mxu2 }
 0x169   : > { %v938_v39 = vadd.f32 %v937_v55, %v849_v25  ;;  %v991_v41 = vmax.f32 %v958_v38, 0.0 }
 0x16b   : > { %v983_v45 = vmax.f32 %v938_v39, 0.0  ;;  %v1561_v2 = vpack.c.bf16 %v991_v41, %v990_v40 }
 0x16d   : > { %v1541_v46 = vpack.c.bf16 %v983_v45, %v982_v44  ;;  %1577 = vst [vmem:[%s1871_s21 + $0x78] sm:$0xff] %v1561_v2  }
 0x16f   : > { %1573 = vst [vmem:[%s1871_s21 + $0x58] sm:$0xff] %v1541_v46  }
 0x170 PF: > { %s13_s12 = sadd.s32 1, %s1618_s12  }
 0x171   : > { %p10_p4 = scmp.ge.s32.totalorder %s13_s12, 4  }
 0x173   :  { %12 = sbr.rel (!%p10_p4) target bundleno = 1 (0x1), region = 62 }

// kernel: resnet20_forward.35
= control target key start
LH: loop header
LB: loop body
LE: loop exit
PB: predicated region body
PF: predicated region fallthrough
CT: control target
= control target key end

     0   :  { %s880_s12 = smov 0   ;;  %s1008_s0 = inlined_call_operand.vmem [shape: bf16[128,384], index: 0, kind: input, shape index: {}]   ;;  %s1009_s1 = inlined_call_operand.vmem [shape: bf16[384,128], index: 1, kind: input, shape index: {}]   ;;  %s1010_s2 = inlined_call_operand.vmem [shape: f32[1,128], index: 2, kind: input, shape index: {}]   ;;  %s1011_s3 = inlined_call_operand.vmem [shape: bf16[128,128], index: 3, kind: output, shape index: {}]  }
   0x1 LB: > { %s620_s13 = sadd.s32 4294967295, %s858_s12   ;;  %p624_p0 = scmp.ge.s32.totalorder %s858_s12, 1  ;;  %s858_s12 = sphi %s880_s12, %s13_s12  }
   0x2   : > { %p139_p1 = scmp.lt.s32.totalorder %s858_s12, 3 }
   0x4   : > { %p140_p2 = pnand %p624_p0, %p139_p1 }
   0x5   : > { %s625_s5 = sshll.u32 (!%p140_p2), %s620_s13, 3 }
   0x6   : > { %143 = sbr.rel (%p140_p2) target bundleno = 240 (0xf0), region = 32  ;;  %p165_p3 = scmp.lt.s32.totalorder (!%p140_p2), %s625_s5, 15 }
   0xb   : > { %v794_v0 = vld [vmem:[%s1009_s1 + $0x38] sm:$0xff]  ;;  %v793_v3 = vld [vmem:[%s1009_s1 + $0x30] sm:$0xff]  ;;  %v792_v6 = vld [vmem:[%s1009_s1 + $0x28] sm:$0xff]  ;;  %s1013_s5 = smov (!%p165_p3, %s625_s5), 15 }
   0xc   : > { %v802_v1 = vld [vmem:[%s1009_s1 + $0x78] sm:$0xff]  ;;  %453 = vmatpush.bf16.msra.mxu0 %v794_v0  ;;  %v801_v4 = vld [vmem:[%s1009_s1 + $0x70] sm:$0xff]  ;;  %834 = vmatpush.bf16.msra.mxu3 %v794_v0  ;;  %v800_v7 = vld [vmem:[%s1009_s1 + $0x68] sm:$0xff]  ;;  %s842_s23 = smul.u32 12, %s1013_s5  ;;  %s628_s18 = sshll.u32 %s1013_s5, 2 }
   0xd   : > { %v810_v2 = vld [vmem:[%s1009_s1 + $0xb8] sm:$0xff]  ;;  %482 = vmatpush.bf16.msra.mxu1 %v802_v1  ;;  %v809_v5 = vld [vmem:[%s1009_s1 + $0xb0] sm:$0xff]  ;;  %v808_v8 = vld [vmem:[%s1009_s1 + $0xa8] sm:$0xff]  ;;  %s999_s21 = scalar_lea.vmem %s1011_s3, %s628_s18 }
   0xe   : > { %511 = vmatpush.bf16.msra.mxu2 %v810_v2  ;;  %v791_v9 = vld [vmem:[%s1009_s1 + $0x20] sm:$0xff]  ;;  %v790_v12 = vld [vmem:[%s1009_s1 + $0x18] sm:$0xff]  ;;  %v789_v15 = vld [vmem:[%s1009_s1 + $0x10] sm:$0xff]  ;;  %s954_s6 = scalar_lea.vmem %s1008_s0, %s842_s23 }
   0xf   : > { %v799_v10 = vld [vmem:[%s1009_s1 + $0x60] sm:$0xff]  ;;  %v798_v13 = vld [vmem:[%s1009_s1 + $0x58] sm:$0xff]  ;;  %v797_v16 = vld [vmem:[%s1009_s1 + $0x50] sm:$0xff] }
  0x10   : > { %454 = vmatpush.bf16.msra.mxu0 %v793_v3  ;;  %835 = vmatpush.bf16.msra.mxu3 %v793_v3  ;;  %v807_v11 = vld [vmem:[%s1009_s1 + $0xa0] sm:$0xff]  ;;  %v806_v14 = vld [vmem:[%s1009_s1 + $0x98] sm:$0xff]  ;;  %v805_v17 = vld [vmem:[%s1009_s1 + $0x90] sm:$0xff] }
  0x11   : > { %483 = vmatpush.bf16.msra.mxu1 %v801_v4  ;;  %v788_v18 = vld [vmem:[%s1009_s1 + $0x8] sm:$0xff]  ;;  %v787_v21 = vld [vmem:[%s1009_s1] sm:$0xff]  ;;  %v633_v27 = vld [vmem:[%s954_s6 + $0xc] sm:$0xf0] }
  0x12   : > { %512 = vmatpush.bf16.msra.mxu2 %v809_v5  ;;  %v796_v19 = vld [vmem:[%s1009_s1 + $0x48] sm:$0xff]  ;;  %v795_v22 = vld [vmem:[%s1009_s1 + $0x40] sm:$0xff]  ;;  %v777_v29 = vld [vmem:[%s954_s6 + $0x10] sm:$0xf0] }
  0x13   : > { %v804_v20 = vld [vmem:[%s1009_s1 + $0x88] sm:$0xff]  ;;  %v803_v23 = vld [vmem:[%s1009_s1 + $0x80] sm:$0xff]  ;;  %v643_v30 = vld [vmem:[%s954_s6 + $0x18] sm:$0xf] }
  0x14   : > { %455 = vmatpush.bf16.msra.mxu0 %v792_v6  ;;  %836 = vmatpush.bf16.msra.mxu3 %v792_v6  ;;  %v631_v24 = vld [vmem:[%s954_s6] sm:$0xf]  ;;  %v776_v25 = vld [vmem:[%s954_s6 + $0x8] sm:$0xf0]  ;;  %v775_v26 = vld [vmem:[%s954_s6 + $0x4] sm:$0xf] }
  0x15   : > { %484 = vmatpush.bf16.msra.mxu1 %v800_v7  ;;  %v639_v28 = vld [vmem:[%s954_s6 + $0x8] sm:$0xf]  ;;  %v779_v31 = vld [vmem:[%s954_s6 + $0x20] sm:$0xf0]  ;;  %v632_v32 = vor.u32 %v776_v25, %v631_v24  ;;  %v636_v33 = vor.u32 %v775_v26, %v633_v27  ;;  %v778_v36 = vld [vmem:[%s954_s6 + $0x1c] sm:$0xf] }
  0x16   : > { %513 = vmatpush.bf16.msra.mxu2 %v808_v8  ;;  %v640_v34 = vor.u32 %v777_v29, %v639_v28  ;;  %v644_v35 = vor.u32 %v779_v31, %v643_v30  ;;  %v645_v37 = vld [vmem:[%s954_s6 + $0x24] sm:$0xf0]  ;;  %v651_v38 = vld [vmem:[%s954_s6 + $0x20] sm:$0xf]  ;;  %v780_v39 = vld [vmem:[%s954_s6 + $0x28] sm:$0xf0] }
  0x17   : > { %v655_v40 = vld [vmem:[%s954_s6 + $0x30] sm:$0xf]  ;;  %v782_v41 = vld [vmem:[%s954_s6 + $0x38] sm:$0xf0]  ;;  %v648_v42 = vor.u32 %v778_v36, %v645_v37  ;;  %v652_v43 = vor.u32 %v780_v39, %v651_v38  ;;  %v781_v45 = vld [vmem:[%s954_s6 + $0x34] sm:$0xf] }
  0x18   : > { %456 = vmatpush.bf16.msra.mxu0 %v791_v9  ;;  %837 = vmatpush.bf16.msra.mxu3 %v791_v9  ;;  %v656_v44 = vor.u32 %v782_v41, %v655_v40  ;;  %v657_v46 = vld [vmem:[%s954_s6 + $0x3c] sm:$0xf0]  ;;  %v663_v47 = vld [vmem:[%s954_s6 + $0x38] sm:$0xf]  ;;  %v783_v48 = vld [vmem:[%s954_s6 + $0x40] sm:$0xf0] }
  0x19   : > { %485 = vmatpush.bf16.msra.mxu1 %v799_v10  ;;  %v667_v49 = vld [vmem:[%s954_s6 + $0x48] sm:$0xf]  ;;  %v785_v50 = vld [vmem:[%s954_s6 + $0x50] sm:$0xf0]  ;;  %v660_v51 = vor.u32 %v781_v45, %v657_v46  ;;  %v664_v52 = vor.u32 %v783_v48, %v663_v47  ;;  %v784_v54 = vld [vmem:[%s954_s6 + $0x4c] sm:$0xf] }
  0x1a   : > { %514 = vmatpush.bf16.msra.mxu2 %v807_v11  ;;  %v668_v53 = vor.u32 %v785_v50, %v667_v49  ;;  %v669_v55 = vld [vmem:[%s954_s6 + $0x54] sm:$0xf0]  ;;  %v675_v56 = vld [vmem:[%s954_s6 + $0x50] sm:$0xf]  ;;  %v786_v57 = vld [vmem:[%s954_s6 + $0x58] sm:$0xf0] }
  0x1b   : > { %v672_v58 = vor.u32 %v784_v54, %v669_v55  ;;  %v676_v59 = vor.u32 %v786_v57, %v675_v56  ;;  %v851_v62 = vld [vmem:[%s1010_s2] ss:$0 sm:$0xff] }
  0x1c   : > { %457 = vmatpush.bf16.msra.mxu0 %v790_v12  ;;  %838 = vmatpush.bf16.msra.mxu3 %v790_v12 }
  0x1d   : > { %486 = vmatpush.bf16.msra.mxu1 %v798_v13 }
  0x1e   : > { %515 = vmatpush.bf16.msra.mxu2 %v806_v14 }
  0x20   : > { %458 = vmatpush.bf16.msra.mxu0 %v789_v15  ;;  %839 = vmatpush.bf16.msra.mxu3 %v789_v15 }
  0x21   : > { %487 = vmatpush.bf16.msra.mxu1 %v797_v16 }
  0x22   : > { %516 = vmatpush.bf16.msra.mxu2 %v805_v17 }
  0x24   : > { %459 = vmatpush.bf16.msra.mxu0 %v788_v18  ;;  %840 = vmatpush.bf16.msra.mxu3 %v788_v18 }
  0x25   : > { %488 = vmatpush.bf16.msra.mxu1 %v796_v19 }
  0x26   : > { %517 = vmatpush.bf16.msra.mxu2 %v804_v20 }
  0x28   : > { %460 = vmatpush.bf16.msra.mxu0 %v787_v21  ;;  %841 = vmatpush.bf16.msra.mxu3 %v787_v21 }
  0x29   : > { %489 = vmatpush.bf16.msra.mxu1 %v795_v22 }
  0x2a   : > { %518 = vmatpush.bf16.msra.mxu2 %v803_v23 }
  0x2b   : > { %461 = vmatmul.bf16.vlgmr.msra.gmra.mxu0 %v632_v32  ;;  %466 = vmatmul.bf16.vlgmr.msra.gmra.mxu3 %v644_v35 }
  0x2c   : > { %490 = vmatmul.bf16.vlgmr.msra.gmra.mxu1 %v636_v33 }
  0x2d   : > { %519 = vmatmul.bf16.vlgmr.msra.gmra.mxu2 %v640_v34 }
  0x3b   : > { %471 = vmatmul.bf16.gmra.mxu3 %v656_v44 }
  0x3c   : > { %495 = vmatmul.bf16.gmra.mxu1 %v648_v42 }
  0x3d   : > { %524 = vmatmul.bf16.gmra.mxu2 %v652_v43 }
  0x4b   : > { %476 = vmatmul.bf16.gmra.mxu3 %v668_v53 }
  0x4c   : > { %500 = vmatmul.bf16.gmra.mxu1 %v660_v51 }
  0x4d   : > { %529 = vmatmul.bf16.gmra.mxu2 %v664_v52 }
  0x5c   : > { %505 = vmatmul.bf16.gmra.mxu1 %v672_v58 }
  0x5d   : > { %534 = vmatmul.bf16.gmra.mxu2 %v676_v59 }
  0xa8   : > { %v462_v60 = vpop.f32.mrf.mxu0 }
  0xa9   : > { %v491_v61 = vpop.f32.mrf.mxu1  ;;  %v463_v63 = vadd.f32 %v851_v62, %v462_v60 }
  0xab   : > { %v492_v4 = vadd.f32 %v491_v61, %v463_v63 }
  0xae   : > { %v467_v1 = vpop.f32.mrf.mxu3 }
  0xaf   : > { %v468_v15 = vadd.f32 %v851_v62, %v467_v1 }
  0xb0   : > { %v520_v0 = vpop.f32.mrf.mxu2  ;;  %v464_v2 = vpop.f32.mrf.mxu0 }
  0xb1   : > { %v493_v3 = vpop.f32.mrf.mxu1  ;;  %v465_v5 = vadd.f32 %v851_v62, %v464_v2  ;;  %v521_v6 = vadd.f32 %v520_v0, %v492_v4 }
  0xb3   : > { %v494_v7 = vadd.f32 %v493_v3, %v465_v5  ;;  %v540_v12 = vmax.f32 %v521_v6, 0.0 }
  0xb6   : > { %v469_v11 = vpop.f32.mrf.mxu3 }
  0xb7   : > { %v470_v20 = vadd.f32 %v851_v62, %v469_v11 }
  0xb8   : > { %v522_v8 = vpop.f32.mrf.mxu2 }
  0xb9   : > { %v523_v9 = vadd.f32 %v522_v8, %v494_v7  ;;  %v496_v10 = vpop.f32.mrf.mxu1 }
  0xba   : > { %v497_v18 = vadd.f32 %v496_v10, %v468_v15 }
  0xbb   : > { %v541_v13 = vmax.f32 %v523_v9, 0.0 }
  0xbd   : > { %v814_v14 = vpack.c.bf16 %v541_v13, %v540_v12 }
  0xbe   : > { %v472_v19 = vpop.f32.mrf.mxu3 }
  0xbf   : > { %815 = vst [vmem:[%s999_s21] sm:$0xff] %v814_v14   ;;  %v473_v30 = vadd.f32 %v851_v62, %v472_v19 }
  0xc0   : > { %v525_v16 = vpop.f32.mrf.mxu2 }
  0xc1   : > { %v498_v17 = vpop.f32.mrf.mxu1  ;;  %v526_v21 = vadd.f32 %v525_v16, %v497_v18 }
  0xc2   : > { %v499_v22 = vadd.f32 %v498_v17, %v470_v20 }
  0xc3   : > { %v542_v26 = vmax.f32 %v526_v21, 0.0 }
  0xc6   : > { %v474_v29 = vpop.f32.mrf.mxu3 }
  0xc7   : > { %v475_v34 = vadd.f32 %v851_v62, %v474_v29 }
  0xc8   : > { %v527_v23 = vpop.f32.mrf.mxu2 }
  0xc9   : > { %v528_v24 = vadd.f32 %v527_v23, %v499_v22  ;;  %v501_v25 = vpop.f32.mrf.mxu1 }
  0xca   : > { %v502_v33 = vadd.f32 %v501_v25, %v473_v30 }
  0xcb   : > { %v543_v27 = vmax.f32 %v528_v24, 0.0 }
  0xcd   : > { %v819_v28 = vpack.c.bf16 %v543_v27, %v542_v26 }
  0xce   : > { %v477_v37 = vpop.f32.mrf.mxu3 }
  0xcf   : > { %831 = vst [vmem:[%s999_s21 + $0x8] sm:$0xff] %v819_v28   ;;  %v478_v44 = vadd.f32 %v851_v62, %v477_v37 }
  0xd0   : > { %v530_v31 = vpop.f32.mrf.mxu2 }
  0xd1   : > { %v503_v32 = vpop.f32.mrf.mxu1  ;;  %v531_v35 = vadd.f32 %v530_v31, %v502_v33 }
  0xd2   : > { %v504_v36 = vadd.f32 %v503_v32, %v475_v34 }
  0xd3   : > { %v544_v41 = vmax.f32 %v531_v35, 0.0 }
  0xd6   : > { %v479_v46 = vpop.f32.mrf.mxu3 }
  0xd7   : > { %v480_v49 = vadd.f32 %v851_v62, %v479_v46 }
  0xd8   : > { %v532_v38 = vpop.f32.mrf.mxu2 }
  0xd9   : > { %v533_v39 = vadd.f32 %v532_v38, %v504_v36  ;;  %v506_v40 = vpop.f32.mrf.mxu1 }
  0xda   : > { %v507_v47 = vadd.f32 %v506_v40, %v478_v44 }
  0xdb   : > { %v545_v42 = vmax.f32 %v533_v39, 0.0 }
  0xdd   : > { %v824_v43 = vpack.c.bf16 %v545_v42, %v544_v41 }
  0xdf   : > { %832 = vst [vmem:[%s999_s21 + $0x10] sm:$0xff] %v824_v43  }
  0xe0   : > { %v535_v45 = vpop.f32.mrf.mxu2 }
  0xe1   : > { %v508_v48 = vpop.f32.mrf.mxu1  ;;  %v536_v50 = vadd.f32 %v535_v45, %v507_v47 }
  0xe2   : > { %v509_v51 = vadd.f32 %v508_v48, %v480_v49 }
  0xe3   : > { %v546_v54 = vmax.f32 %v536_v50, 0.0 }
  0xe8   : > { %v537_v52 = vpop.f32.mrf.mxu2 }
  0xe9   : > { %v538_v53 = vadd.f32 %v537_v52, %v509_v51 }
  0xeb   : > { %v547_v55 = vmax.f32 %v538_v53, 0.0 }
  0xed   : > { %v829_v56 = vpack.c.bf16 %v547_v55, %v546_v54 }
  0xef   : > { %833 = vst [vmem:[%s999_s21 + $0x18] sm:$0xff] %v829_v56  }
  0xf0 PF: > { %s13_s12 = sadd.s32 1, %s858_s12  }
  0xf1   : > { %p10_p4 = scmp.ge.s32.totalorder %s13_s12, 4  }
  0xf3   :  { %12 = sbr.rel (!%p10_p4) target bundleno = 1 (0x1), region = 62 }

// kernel: resnet20_forward.36
= control target key start
LH: loop header
LB: loop body
LE: loop exit
PB: predicated region body
PF: predicated region fallthrough
CT: control target
= control target key end

     0   :  { %s530_s12 = smov 0   ;;  %s581_s0 = inlined_call_operand.vmem [shape: bf16[128,128], index: 0, kind: input, shape index: {}]   ;;  %s582_s1 = inlined_call_operand.vmem [shape: bf16[128,128], index: 1, kind: input, shape index: {}]   ;;  %s583_s2 = inlined_call_operand.vmem [shape: f32[1,128], index: 2, kind: input, shape index: {}]   ;;  %s584_s3 = inlined_call_operand.vmem [shape: bf16[128,128], index: 3, kind: output, shape index: {}]  }
   0x1 LB: > { %s375_s13 = sadd.s32 4294967295, %s508_s12   ;;  %p379_p0 = scmp.ge.s32.totalorder %s508_s12, 1  ;;  %s508_s12 = sphi %s530_s12, %s13_s12  }
   0x2   : > { %p138_p1 = scmp.lt.s32.totalorder %s508_s12, 3 }
   0x4   : > { %p139_p2 = pnand %p379_p0, %p138_p1 }
   0x5   : > { %s380_s22 = sshll.u32 (!%p139_p2), %s375_s13, 3 }
   0x6   : > { %142 = sbr.rel (%p139_p2) target bundleno = 190 (0xbe), region = 32  ;;  %p163_p3 = scmp.lt.s32.totalorder (!%p139_p2), %s380_s22, 15 }
   0xb   : > { %v445_v0 = vld [vmem:[%s582_s1 + $0x38] sm:$0xff]  ;;  %v444_v1 = vld [vmem:[%s582_s1 + $0x30] sm:$0xff]  ;;  %v443_v2 = vld [vmem:[%s582_s1 + $0x28] sm:$0xff]  ;;  %s586_s22 = smov (!%p163_p3, %s380_s22), 15 }
   0xc   : > { %274 = vmatpush.bf16.msra.mxu0 %v445_v0  ;;  %469 = vmatpush.bf16.msra.mxu1 %v445_v0  ;;  %v442_v3 = vld [vmem:[%s582_s1 + $0x20] sm:$0xff]  ;;  %v441_v4 = vld [vmem:[%s582_s1 + $0x18] sm:$0xff]  ;;  %v440_v5 = vld [vmem:[%s582_s1 + $0x10] sm:$0xff]  ;;  %s381_s29 = sshll.u32 %s586_s22, 2 }
   0xd   : > { %470 = vmatpush.bf16.msra.mxu2 %v445_v0  ;;  %471 = vmatpush.bf16.msra.mxu3 %v445_v0  ;;  %v439_v6 = vld [vmem:[%s582_s1 + $0x8] sm:$0xff]  ;;  %v438_v7 = vld [vmem:[%s582_s1] sm:$0xff]  ;;  %s166_s7 = scalar_lea.vmem %s581_s0, %s381_s29  ;;  %s172_s13 = scalar_lea.vmem %s584_s3, %s381_s29 }
   0xe   : > { %v434_v8 = vld [vmem:[%s166_s7] sm:$0xff]  ;;  %v435_v9 = vld [vmem:[%s166_s7 + $0x8] sm:$0xff]  ;;  %v436_v10 = vld [vmem:[%s166_s7 + $0x10] sm:$0xff] }
   0xf   : > { %v437_v11 = vld [vmem:[%s166_s7 + $0x18] sm:$0xff]  ;;  %v501_v14 = vld [vmem:[%s583_s2] ss:$0 sm:$0xff] }
  0x10   : > { %275 = vmatpush.bf16.msra.mxu0 %v444_v1  ;;  %472 = vmatpush.bf16.msra.mxu1 %v444_v1 }
  0x11   : > { %473 = vmatpush.bf16.msra.mxu2 %v444_v1  ;;  %474 = vmatpush.bf16.msra.mxu3 %v444_v1 }
  0x14   : > { %276 = vmatpush.bf16.msra.mxu0 %v443_v2  ;;  %475 = vmatpush.bf16.msra.mxu1 %v443_v2 }
  0x15   : > { %476 = vmatpush.bf16.msra.mxu2 %v443_v2  ;;  %477 = vmatpush.bf16.msra.mxu3 %v443_v2 }
  0x18   : > { %277 = vmatpush.bf16.msra.mxu0 %v442_v3  ;;  %478 = vmatpush.bf16.msra.mxu1 %v442_v3 }
  0x19   : > { %479 = vmatpush.bf16.msra.mxu2 %v442_v3  ;;  %480 = vmatpush.bf16.msra.mxu3 %v442_v3 }
  0x1c   : > { %278 = vmatpush.bf16.msra.mxu0 %v441_v4  ;;  %481 = vmatpush.bf16.msra.mxu1 %v441_v4 }
  0x1d   : > { %482 = vmatpush.bf16.msra.mxu2 %v441_v4  ;;  %483 = vmatpush.bf16.msra.mxu3 %v441_v4 }
  0x20   : > { %279 = vmatpush.bf16.msra.mxu0 %v440_v5  ;;  %484 = vmatpush.bf16.msra.mxu1 %v440_v5 }
  0x21   : > { %485 = vmatpush.bf16.msra.mxu2 %v440_v5  ;;  %486 = vmatpush.bf16.msra.mxu3 %v440_v5 }
  0x24   : > { %280 = vmatpush.bf16.msra.mxu0 %v439_v6  ;;  %487 = vmatpush.bf16.msra.mxu1 %v439_v6 }
  0x25   : > { %488 = vmatpush.bf16.msra.mxu2 %v439_v6  ;;  %489 = vmatpush.bf16.msra.mxu3 %v439_v6 }
  0x28   : > { %281 = vmatpush.bf16.msra.mxu0 %v438_v7  ;;  %490 = vmatpush.bf16.msra.mxu1 %v438_v7 }
  0x29   : > { %491 = vmatpush.bf16.msra.mxu2 %v438_v7  ;;  %492 = vmatpush.bf16.msra.mxu3 %v438_v7 }
  0x2b   : > { %282 = vmatmul.bf16.vlgmr.msra.gmra.mxu0 %v434_v8  ;;  %287 = vmatmul.bf16.vlgmr.msra.gmra.mxu1 %v435_v9 }
  0x2c   : > { %292 = vmatmul.bf16.vlgmr.msra.gmra.mxu2 %v436_v10  ;;  %297 = vmatmul.bf16.vlgmr.msra.gmra.mxu3 %v437_v11 }
  0xa8   : > { %v283_v12 = vpop.f32.mrf.mxu0  ;;  %v288_v13 = vpop.f32.mrf.mxu1 }
  0xa9   : > { %v284_v19 = vadd.f32 %v501_v14, %v283_v12  ;;  %v289_v20 = vadd.f32 %v501_v14, %v288_v13 }
  0xaf   : > { %v293_v15 = vpop.f32.mrf.mxu2  ;;  %v298_v16 = vpop.f32.mrf.mxu3 }
  0xb0   : > { %v285_v17 = vpop.f32.mrf.mxu0  ;;  %v290_v18 = vpop.f32.mrf.mxu1  ;;  %v294_v27 = vadd.f32 %v501_v14, %v293_v15  ;;  %v299_v28 = vadd.f32 %v501_v14, %v298_v16 }
  0xb1   : > { %v286_v21 = vadd.f32 %v501_v14, %v285_v17  ;;  %v291_v22 = vadd.f32 %v501_v14, %v290_v18 }
  0xb3   : > { %v449_v23 = vpack.c.bf16 %v286_v21, %v284_v19  ;;  %v454_v24 = vpack.c.bf16 %v291_v22, %v289_v20 }
  0xb5   : > { %450 = vst [vmem:[%s172_s13] sm:$0xff] %v449_v23  }
  0xb6   : > { %466 = vst [vmem:[%s172_s13 + $0x8] sm:$0xff] %v454_v24  }
  0xb7   : > { %v295_v25 = vpop.f32.mrf.mxu2  ;;  %v300_v26 = vpop.f32.mrf.mxu3 }
  0xb8   : > { %v296_v29 = vadd.f32 %v501_v14, %v295_v25  ;;  %v301_v30 = vadd.f32 %v501_v14, %v300_v26 }
  0xba   : > { %v459_v31 = vpack.c.bf16 %v296_v29, %v294_v27  ;;  %v464_v32 = vpack.c.bf16 %v301_v30, %v299_v28 }
  0xbc   : > { %467 = vst [vmem:[%s172_s13 + $0x10] sm:$0xff] %v459_v31  }
  0xbd   : > { %468 = vst [vmem:[%s172_s13 + $0x18] sm:$0xff] %v464_v32  }
  0xbe PF: > { %s13_s12 = sadd.s32 1, %s508_s12  }
  0xbf   : > { %p10_p4 = scmp.ge.s32.totalorder %s13_s12, 4  }
  0xc1   :  { %12 = sbr.rel (!%p10_p4) target bundleno = 1 (0x1), region = 62 }

// kernel: resnet20_forward.38
= control target key start
LH: loop header
LB: loop body
LE: loop exit
PB: predicated region body
PF: predicated region fallthrough
CT: control target
= control target key end

     0   :  { %s1242_s12 = smov 0   ;;  %s1450_s0 = inlined_call_operand.vmem [shape: bf16[128,640], index: 0, kind: input, shape index: {}]   ;;  %s1451_s1 = inlined_call_operand.vmem [shape: bf16[640,128], index: 1, kind: input, shape index: {}]   ;;  %s1452_s2 = inlined_call_operand.vmem [shape: f32[1,128], index: 2, kind: input, shape index: {}]   ;;  %s1453_s3 = inlined_call_operand.vmem [shape: bf16[128,128], index: 3, kind: output, shape index: {}]  }
   0x1 LB: > { %s854_s13 = sadd.s32 4294967295, %s1220_s12   ;;  %p858_p0 = scmp.ge.s32.totalorder %s1220_s12, 1  ;;  %s1220_s12 = sphi %s1242_s12, %s13_s12  }
   0x2   : > { %p139_p1 = scmp.lt.s32.totalorder %s1220_s12, 3 }
   0x4   : > { %p140_p2 = pnand %p858_p0, %p139_p1 }
   0x5   : > { %s859_s30 = sshll.u32 (!%p140_p2), %s854_s13, 3 }
   0x6   : > { %143 = sbr.rel (%p140_p2) target bundleno = 270 (0x10e), region = 32  ;;  %p165_p3 = scmp.lt.s32.totalorder (!%p140_p2), %s859_s30, 15 }
   0xb   : > { %v1132_v0 = vld [vmem:[%s1451_s1 + $0x38] sm:$0xff]  ;;  %v1131_v2 = vld [vmem:[%s1451_s1 + $0x30] sm:$0xff]  ;;  %v1130_v6 = vld [vmem:[%s1451_s1 + $0x28] sm:$0xff]  ;;  %s1455_s30 = smov (!%p165_p3, %s859_s30), 15 }
   0xc   : > { %v1148_v1 = vld [vmem:[%s1451_s1 + $0xb8] sm:$0xff]  ;;  %1188 = vmatpush.bf16.msra.mxu1 %v1132_v0  ;;  %629 = vmatpush.bf16.msra.mxu0 %v1132_v0  ;;  %v1147_v3 = vld [vmem:[%s1451_s1 + $0xb0] sm:$0xff]  ;;  %v1146_v7 = vld [vmem:[%s1451_s1 + $0xa8] sm:$0xff]  ;;  %s1204_s21 = smul.u32 20, %s1455_s30 }
   0xd   : > { %687 = vmatpush.bf16.msra.mxu2 %v1148_v1  ;;  %v1156_v4 = vld [vmem:[%s1451_s1 + $0xf8] sm:$0xff]  ;;  %v1155_v5 = vld [vmem:[%s1451_s1 + $0xf0] sm:$0xff]  ;;  %v1154_v8 = vld [vmem:[%s1451_s1 + $0xe8] sm:$0xff] }
   0xe   : > { %716 = vmatpush.bf16.msra.mxu3 %v1156_v4  ;;  %v1129_v9 = vld [vmem:[%s1451_s1 + $0x20] sm:$0xff]  ;;  %v1128_v12 = vld [vmem:[%s1451_s1 + $0x18] sm:$0xff]  ;;  %v1127_v15 = vld [vmem:[%s1451_s1 + $0x10] sm:$0xff]  ;;  %s1313_s4 = scalar_lea.vmem %s1450_s0, %s1204_s21 }
   0xf   : > { %v1145_v10 = vld [vmem:[%s1451_s1 + $0xa0] sm:$0xff]  ;;  %v1144_v13 = vld [vmem:[%s1451_s1 + $0x98] sm:$0xff]  ;;  %v1143_v16 = vld [vmem:[%s1451_s1 + $0x90] sm:$0xff] }
  0x10   : > { %1189 = vmatpush.bf16.msra.mxu1 %v1131_v2  ;;  %630 = vmatpush.bf16.msra.mxu0 %v1131_v2  ;;  %v1153_v11 = vld [vmem:[%s1451_s1 + $0xe0] sm:$0xff]  ;;  %v1152_v14 = vld [vmem:[%s1451_s1 + $0xd8] sm:$0xff]  ;;  %v1151_v17 = vld [vmem:[%s1451_s1 + $0xd0] sm:$0xff] }
  0x11   : > { %688 = vmatpush.bf16.msra.mxu2 %v1147_v3  ;;  %v1126_v18 = vld [vmem:[%s1451_s1 + $0x8] sm:$0xff]  ;;  %v1125_v20 = vld [vmem:[%s1451_s1] sm:$0xff]  ;;  %v905_v21 = vld [vmem:[%s1313_s4 + $0x50] sm:$0xf] }
  0x12   : > { %717 = vmatpush.bf16.msra.mxu3 %v1155_v5  ;;  %v1142_v19 = vld [vmem:[%s1451_s1 + $0x88] sm:$0xff]  ;;  %v1140_v22 = vld [vmem:[%s1451_s1 + $0x78] sm:$0xff]  ;;  %v1117_v24 = vld [vmem:[%s1313_s4 + $0x60] sm:$0xf0] }
  0x13   : > { %v1150_v23 = vld [vmem:[%s1451_s1 + $0xc8] sm:$0xff]  ;;  %v865_v25 = vld [vmem:[%s1313_s4] sm:$0xf]  ;;  %v1107_v26 = vld [vmem:[%s1313_s4 + $0x10] sm:$0xf0]  ;;  %v906_v31 = vor.u32 %v1117_v24, %v905_v21 }
  0x14   : > { %1190 = vmatpush.bf16.msra.mxu1 %v1130_v6  ;;  %631 = vmatpush.bf16.msra.mxu0 %v1130_v6  ;;  %v1141_v27 = vld [vmem:[%s1451_s1 + $0x80] sm:$0xff]  ;;  %v873_v28 = vld [vmem:[%s1313_s4 + $0x8] sm:$0xf]  ;;  %v1108_v29 = vld [vmem:[%s1313_s4 + $0x18] sm:$0xf0]  ;;  %v866_v32 = vor.u32 %v1107_v26, %v865_v25 }
  0x15   : > { %689 = vmatpush.bf16.msra.mxu2 %v1146_v7  ;;  %v1164_v30 = vld [vmem:[%s1451_s1 + $0x138] sm:$0xff]  ;;  %v874_v33 = vor.u32 %v1108_v29, %v873_v28  ;;  %v1149_v34 = vld [vmem:[%s1451_s1 + $0xc0] sm:$0xff]  ;;  %v1106_v35 = vld [vmem:[%s1313_s4 + $0xc] sm:$0xf] }
  0x16   : > { %718 = vmatpush.bf16.msra.mxu3 %v1154_v8  ;;  %v875_v36 = vld [vmem:[%s1313_s4 + $0x1c] sm:$0xf0]  ;;  %v1139_v37 = vld [vmem:[%s1451_s1 + $0x70] sm:$0xff]  ;;  %v1138_v40 = vld [vmem:[%s1451_s1 + $0x68] sm:$0xff] }
  0x17   : > { %v1163_v38 = vld [vmem:[%s1451_s1 + $0x130] sm:$0xff]  ;;  %v878_v39 = vor.u32 %v1106_v35, %v875_v36  ;;  %v1162_v41 = vld [vmem:[%s1451_s1 + $0x128] sm:$0xff]  ;;  %v1137_v42 = vld [vmem:[%s1451_s1 + $0x60] sm:$0xff] }
  0x18   : > { %1191 = vmatpush.bf16.msra.mxu1 %v1129_v9  ;;  %632 = vmatpush.bf16.msra.mxu0 %v1129_v9  ;;  %v1161_v43 = vld [vmem:[%s1451_s1 + $0x120] sm:$0xff]  ;;  %v925_v44 = vld [vmem:[%s1313_s4 + $0x78] sm:$0xf]  ;;  %v1122_v45 = vld [vmem:[%s1313_s4 + $0x88] sm:$0xf0] }
  0x19   : > { %690 = vmatpush.bf16.msra.mxu2 %v1145_v10  ;;  %v885_v46 = vld [vmem:[%s1313_s4 + $0x28] sm:$0xf]  ;;  %v1112_v47 = vld [vmem:[%s1313_s4 + $0x38] sm:$0xf0]  ;;  %v893_v49 = vld [vmem:[%s1313_s4 + $0x30] sm:$0xf]  ;;  %v926_v52 = vor.u32 %v1122_v45, %v925_v44 }
  0x1a   : > { %719 = vmatpush.bf16.msra.mxu3 %v1153_v11  ;;  %v1136_v48 = vld [vmem:[%s1451_s1 + $0x58] sm:$0xff]  ;;  %v1113_v50 = vld [vmem:[%s1313_s4 + $0x40] sm:$0xf0]  ;;  %v886_v53 = vor.u32 %v1112_v47, %v885_v46  ;;  %v1111_v55 = vld [vmem:[%s1313_s4 + $0x34] sm:$0xf] }
  0x1b   : > { %v1160_v51 = vld [vmem:[%s1451_s1 + $0x118] sm:$0xff]  ;;  %v894_v54 = vor.u32 %v1113_v50, %v893_v49  ;;  %v895_v56 = vld [vmem:[%s1313_s4 + $0x44] sm:$0xf0]  ;;  %v1135_v57 = vld [vmem:[%s1451_s1 + $0x50] sm:$0xff] }
  0x1c   : > { %1192 = vmatpush.bf16.msra.mxu1 %v1128_v12  ;;  %633 = vmatpush.bf16.msra.mxu0 %v1128_v12  ;;  %v1159_v58 = vld [vmem:[%s1451_s1 + $0x110] sm:$0xff]  ;;  %v898_v59 = vor.u32 %v1111_v55, %v895_v56  ;;  %v1134_v60 = vld [vmem:[%s1451_s1 + $0x48] sm:$0xff]  ;;  %v1133_v62 = vld [vmem:[%s1451_s1 + $0x40] sm:$0xff] }
  0x1d   : > { %691 = vmatpush.bf16.msra.mxu2 %v1144_v13  ;;  %v1158_v61 = vld [vmem:[%s1451_s1 + $0x108] sm:$0xff]  ;;  %v1157_v63 = vld [vmem:[%s1451_s1 + $0x100] sm:$0xff]  ;;  %v867_v1 = vld [vmem:[%s1313_s4 + $0x14] sm:$0xf0] }
  0x1e   : > { %720 = vmatpush.bf16.msra.mxu3 %v1152_v14  ;;  %v1105_v0 = vld [vmem:[%s1313_s4 + $0x4] sm:$0xf]  ;;  %v881_v2 = vld [vmem:[%s1313_s4 + $0x10] sm:$0xf]  ;;  %v913_v4 = vld [vmem:[%s1313_s4 + $0x58] sm:$0xf] }
  0x1f   : > { %v1109_v3 = vld [vmem:[%s1313_s4 + $0x20] sm:$0xf0]  ;;  %v1118_v5 = vld [vmem:[%s1313_s4 + $0x68] sm:$0xf0]  ;;  %v870_v6 = vor.u32 %v1105_v0, %v867_v1  ;;  %v1116_v9 = vld [vmem:[%s1313_s4 + $0x5c] sm:$0xf] }
  0x20   : > { %1193 = vmatpush.bf16.msra.mxu1 %v1127_v15  ;;  %634 = vmatpush.bf16.msra.mxu0 %v1127_v15  ;;  %v882_v7 = vor.u32 %v1109_v3, %v881_v2  ;;  %v914_v8 = vor.u32 %v1118_v5, %v913_v4  ;;  %v915_v10 = vld [vmem:[%s1313_s4 + $0x6c] sm:$0xf0]  ;;  %v1110_v12 = vld [vmem:[%s1313_s4 + $0x2c] sm:$0xf]  ;;  %v887_v13 = vld [vmem:[%s1313_s4 + $0x3c] sm:$0xf0] }
  0x21   : > { %692 = vmatpush.bf16.msra.mxu2 %v1143_v16  ;;  %v918_v11 = vor.u32 %v1116_v9, %v915_v10  ;;  %v901_v14 = vld [vmem:[%s1313_s4 + $0x38] sm:$0xf]  ;;  %v1114_v15 = vld [vmem:[%s1313_s4 + $0x48] sm:$0xf0]  ;;  %v933_v16 = vld [vmem:[%s1313_s4 + $0x80] sm:$0xf] }
  0x22   : > { %721 = vmatpush.bf16.msra.mxu3 %v1151_v17  ;;  %v1123_v17 = vld [vmem:[%s1313_s4 + $0x90] sm:$0xf0]  ;;  %v1121_v21 = vld [vmem:[%s1313_s4 + $0x84] sm:$0xf]  ;;  %v907_v25 = vld [vmem:[%s1313_s4 + $0x64] sm:$0xf0] }
  0x23   : > { %v1115_v24 = vld [vmem:[%s1313_s4 + $0x54] sm:$0xf]  ;;  %v921_v26 = vld [vmem:[%s1313_s4 + $0x60] sm:$0xf]  ;;  %v941_v28 = vld [vmem:[%s1313_s4 + $0x88] sm:$0xf] }
  0x24   : > { %1194 = vmatpush.bf16.msra.mxu1 %v1126_v18  ;;  %635 = vmatpush.bf16.msra.mxu0 %v1126_v18  ;;  %v890_v18 = vor.u32 %v1110_v12, %v887_v13  ;;  %v1124_v29 = vld [vmem:[%s1313_s4 + $0x98] sm:$0xf0] }
  0x25   : > { %693 = vmatpush.bf16.msra.mxu2 %v1142_v19  ;;  %v902_v19 = vor.u32 %v1114_v15, %v901_v14 }
  0x26   : > { %722 = vmatpush.bf16.msra.mxu3 %v1150_v23 }
  0x28   : > { %1195 = vmatpush.bf16.msra.mxu1 %v1125_v20  ;;  %636 = vmatpush.bf16.msra.mxu0 %v1125_v20  ;;  %v934_v20 = vor.u32 %v1123_v17, %v933_v16 }
  0x29   : > { %694 = vmatpush.bf16.msra.mxu2 %v1141_v27  ;;  %v1119_v27 = vld [vmem:[%s1313_s4 + $0x70] sm:$0xf0] }
  0x2a   : > { %723 = vmatpush.bf16.msra.mxu3 %v1149_v34  ;;  %v927_v34 = vld [vmem:[%s1313_s4 + $0x8c] sm:$0xf0] }
  0x2b   : > { %647 = vmatmul.bf16.vlgmr.msra.gmra.mxu1 %v906_v31  ;;  %637 = vmatmul.bf16.vlgmr.msra.gmra.mxu0 %v866_v32  ;;  %v922_v31 = vor.u32 %v1119_v27, %v921_v26  ;;  %v942_v32 = vor.u32 %v1124_v29, %v941_v28 }
  0x2c   : > { %658 = vmatpush.bf16.msrb.mxu1 %v1140_v22  ;;  %745 = vmatpush.bf16.msrb.mxu0 %v1164_v30  ;;  %v935_v22 = vld [vmem:[%s1313_s4 + $0x94] sm:$0xf0] }
  0x2d   : > { %1196 = vmatpush.bf16.msrb.mxu2 %v1164_v30  ;;  %724 = vmatmul.bf16.vlgmr.msra.gmra.mxu3 %v878_v39  ;;  %v938_v23 = vor.u32 %v1121_v21, %v935_v22  ;;  %v910_v30 = vor.u32 %v1115_v24, %v907_v25 }
  0x2e   : > { %695 = vmatmul.bf16.vlgmr.msra.gmra.mxu2 %v874_v33  ;;  %v1120_v33 = vld [vmem:[%s1313_s4 + $0x7c] sm:$0xf]  ;;  %s862_s4 = sshll.u32 %s1455_s30, 2 }
  0x2f   : > { %v930_v35 = vor.u32 %v1120_v33, %v927_v34  ;;  %s1434_s28 = scalar_lea.vmem %s1453_s3, %s862_s4 }
  0x30   : > { %659 = vmatpush.bf16.msrb.mxu1 %v1139_v37  ;;  %746 = vmatpush.bf16.msrb.mxu0 %v1163_v38 }
  0x31   : > { %1197 = vmatpush.bf16.msrb.mxu2 %v1163_v38 }
  0x34   : > { %660 = vmatpush.bf16.msrb.mxu1 %v1138_v40  ;;  %747 = vmatpush.bf16.msrb.mxu0 %v1162_v41 }
  0x35   : > { %1198 = vmatpush.bf16.msrb.mxu2 %v1162_v41 }
  0x38   : > { %661 = vmatpush.bf16.msrb.mxu1 %v1137_v42  ;;  %748 = vmatpush.bf16.msrb.mxu0 %v1161_v43 }
  0x39   : > { %1199 = vmatpush.bf16.msrb.mxu2 %v1161_v43 }
  0x3b   : > { %652 = vmatmul.bf16.gmra.mxu1 %v926_v52  ;;  %642 = vmatmul.bf16.gmra.mxu0 %v886_v53 }
  0x3c   : > { %662 = vmatpush.bf16.msrb.mxu1 %v1136_v48  ;;  %749 = vmatpush.bf16.msrb.mxu0 %v1160_v51  ;;  %v1425_v48 = vld [vmem:[%s1452_s2] ss:$0 sm:$0xff] }
  0x3d   : > { %1200 = vmatpush.bf16.msrb.mxu2 %v1160_v51  ;;  %729 = vmatmul.bf16.gmra.mxu3 %v898_v59 }
  0x3e   : > { %700 = vmatmul.bf16.gmra.mxu2 %v894_v54 }
  0x40   : > { %663 = vmatpush.bf16.msrb.mxu1 %v1135_v57  ;;  %750 = vmatpush.bf16.msrb.mxu0 %v1159_v58 }
  0x41   : > { %1201 = vmatpush.bf16.msrb.mxu2 %v1159_v58 }
  0x44   : > { %664 = vmatpush.bf16.msrb.mxu1 %v1134_v60  ;;  %751 = vmatpush.bf16.msrb.mxu0 %v1158_v61 }
  0x45   : > { %1202 = vmatpush.bf16.msrb.mxu2 %v1158_v61 }
  0x48   : > { %665 = vmatpush.bf16.msrb.mxu1 %v1133_v62  ;;  %752 = vmatpush.bf16.msrb.mxu0 %v1157_v63 }
  0x49   : > { %1203 = vmatpush.bf16.msrb.mxu2 %v1157_v63 }
  0x4b   : > { %666 = vmatmul.bf16.vlgmr.msrb.gmra.mxu1 %v870_v6  ;;  %753 = vmatmul.bf16.vlgmr.msrb.gmra.mxu0 %v882_v7 }
  0x4d   : > { %734 = vmatmul.bf16.gmra.mxu3 %v918_v11 }
  0x4e   : > { %705 = vmatmul.bf16.gmra.mxu2 %v914_v8 }
  0x5b   : > { %671 = vmatmul.bf16.gmra.mxu1 %v890_v18  ;;  %758 = vmatmul.bf16.gmra.mxu0 %v902_v19 }
  0x5d   : > { %739 = vmatmul.bf16.gmra.mxu3 %v938_v23 }
  0x5e   : > { %710 = vmatmul.bf16.gmra.mxu2 %v934_v20 }
  0x6b   : > { %676 = vmatmul.bf16.gmra.mxu1 %v910_v30  ;;  %763 = vmatmul.bf16.gmra.mxu0 %v922_v31 }
  0x6e   : > { %768 = vmatmul.bf16.vlgmr.msrb.gmra.mxu2 %v942_v32 }
  0x7b   : > { %681 = vmatmul.bf16.gmra.mxu1 %v930_v35 }
  0xa8   : > { %v648_v36 = vpop.f32.mrf.mxu1  ;;  %v638_v37 = vpop.f32.mrf.mxu0 }
  0xa9   : > { %v639_v49 = vadd.f32 %v1425_v48, %v638_v37  ;;  %v649_v22 = vadd.f32 %v1425_v48, %v648_v36 }
  0xb0   : > { %v650_v39 = vpop.f32.mrf.mxu1  ;;  %v640_v40 = vpop.f32.mrf.mxu0 }
  0xb1   : > { %v696_v38 = vpop.f32.mrf.mxu2  ;;  %v725_v44 = vpop.f32.mrf.mxu3  ;;  %v641_v56 = vadd.f32 %v1425_v48, %v640_v40  ;;  %v651_v32 = vadd.f32 %v1425_v48, %v650_v39 }
  0xb8   : > { %v1418_v42 = vpop.f32.mrf.mxu1  ;;  %v643_v43 = vpop.f32.mrf.mxu0 }
  0xb9   : > { %v698_v41 = vpop.f32.mrf.mxu2  ;;  %v727_v50 = vpop.f32.mrf.mxu3  ;;  %v644_v2 = vadd.f32 %v1425_v48, %v643_v43 }
  0xc0   : > { %v1420_v46 = vpop.f32.mrf.mxu1  ;;  %v645_v47 = vpop.f32.mrf.mxu0 }
  0xc1   : > { %v701_v45 = vpop.f32.mrf.mxu2  ;;  %v730_v61 = vpop.f32.mrf.mxu3  ;;  %v646_v13 = vadd.f32 %v1425_v48, %v645_v47 }
  0xc8   : > { %v667_v51 = vpop.f32.mrf.mxu1  ;;  %v754_v52 = vpop.f32.mrf.mxu0 }
  0xc9   : > { %v668_v53 = vadd.f32 %v667_v51, %v639_v49  ;;  %v703_v54 = vpop.f32.mrf.mxu2  ;;  %v732_v10 = vpop.f32.mrf.mxu3 }
  0xcb   : > { %v697_v55 = vadd.f32 %v696_v38, %v668_v53 }
  0xcd   : > { %v726_v59 = vadd.f32 %v725_v44, %v697_v55  ;;  %v654_v44 = vadd.f32 %v1425_v48, %v1418_v42  ;;  %v656_v55 = vadd.f32 %v1425_v48, %v1420_v46 }
  0xcf   : > { %v755_v0 = vadd.f32 %v754_v52, %v726_v59 }
  0xd0   : > { %v669_v57 = vpop.f32.mrf.mxu1  ;;  %v756_v58 = vpop.f32.mrf.mxu0 }
  0xd1   : > { %v670_v60 = vadd.f32 %v669_v57, %v641_v56  ;;  %v706_v63 = vpop.f32.mrf.mxu2  ;;  %v774_v6 = vmax.f32 %v755_v0, 0.0  ;;  %v735_v21 = vpop.f32.mrf.mxu3 }
  0xd3   : > { %v699_v62 = vadd.f32 %v698_v41, %v670_v60 }
  0xd5   : > { %v728_v1 = vadd.f32 %v727_v50, %v699_v62 }
  0xd7   : > { %v757_v3 = vadd.f32 %v756_v58, %v728_v1 }
  0xd8   : > { %v672_v4 = vpop.f32.mrf.mxu1  ;;  %v759_v5 = vpop.f32.mrf.mxu0 }
  0xd9   : > { %v775_v7 = vmax.f32 %v757_v3, 0.0  ;;  %v673_v8 = vadd.f32 %v672_v4, %v644_v2  ;;  %v708_v12 = vpop.f32.mrf.mxu2  ;;  %v737_v33 = vpop.f32.mrf.mxu3 }
  0xdb   : > { %v1168_v9 = vpack.c.bf16 %v775_v7, %v774_v6  ;;  %v702_v11 = vadd.f32 %v701_v45, %v673_v8 }
  0xdd   : > { %1169 = vst [vmem:[%s1434_s28] sm:$0xff] %v1168_v9   ;;  %v731_v16 = vadd.f32 %v730_v61, %v702_v11 }
  0xdf   : > { %v760_v19 = vadd.f32 %v759_v5, %v731_v16 }
  0xe0   : > { %v674_v14 = vpop.f32.mrf.mxu1  ;;  %v761_v15 = vpop.f32.mrf.mxu0 }
  0xe1   : > { %v675_v17 = vadd.f32 %v674_v14, %v646_v13  ;;  %v711_v24 = vpop.f32.mrf.mxu2  ;;  %v776_v26 = vmax.f32 %v760_v19, 0.0  ;;  %v740_v52 = vpop.f32.mrf.mxu3 }
  0xe3   : > { %v704_v18 = vadd.f32 %v703_v54, %v675_v17 }
  0xe5   : > { %v733_v20 = vadd.f32 %v732_v10, %v704_v18 }
  0xe7   : > { %v762_v23 = vadd.f32 %v761_v15, %v733_v20 }
  0xe8   : > { %v677_v25 = vpop.f32.mrf.mxu1  ;;  %v764_v29 = vpop.f32.mrf.mxu0 }
  0xe9   : > { %v777_v27 = vmax.f32 %v762_v23, 0.0  ;;  %v678_v28 = vadd.f32 %v677_v25, %v649_v22  ;;  %v713_v38 = vpop.f32.mrf.mxu2  ;;  %v742_v60 = vpop.f32.mrf.mxu3 }
  0xeb   : > { %v1173_v30 = vpack.c.bf16 %v777_v27, %v776_v26  ;;  %v707_v31 = vadd.f32 %v706_v63, %v678_v28 }
  0xed   : > { %1185 = vst [vmem:[%s1434_s28 + $0x8] sm:$0xff] %v1173_v30   ;;  %v736_v35 = vadd.f32 %v735_v21, %v707_v31 }
  0xef   : > { %v765_v41 = vadd.f32 %v764_v29, %v736_v35 }
  0xf0   : > { %v679_v34 = vpop.f32.mrf.mxu1  ;;  %v766_v36 = vpop.f32.mrf.mxu0 }
  0xf1   : > { %v680_v37 = vadd.f32 %v679_v34, %v651_v32  ;;  %v778_v49 = vmax.f32 %v765_v41, 0.0  ;;  %v769_v53 = vpop.f32.mrf.mxu2 }
  0xf3   : > { %v709_v40 = vadd.f32 %v708_v12, %v680_v37 }
  0xf5   : > { %v738_v43 = vadd.f32 %v737_v33, %v709_v40 }
  0xf7   : > { %v767_v45 = vadd.f32 %v766_v36, %v738_v43 }
  0xf8   : > { %v682_v47 = vpop.f32.mrf.mxu1 }
  0xf9   : > { %v779_v50 = vmax.f32 %v767_v45, 0.0  ;;  %v683_v51 = vadd.f32 %v682_v47, %v654_v44  ;;  %v771_v62 = vpop.f32.mrf.mxu2 }
  0xfb   : > { %v1178_v39 = vpack.c.bf16 %v779_v50, %v778_v49  ;;  %v712_v54 = vadd.f32 %v711_v24, %v683_v51 }
  0xfd   : > { %1186 = vst [vmem:[%s1434_s28 + $0x10] sm:$0xff] %v1178_v39   ;;  %v741_v57 = vadd.f32 %v740_v52, %v712_v54 }
  0xff   : > { %v770_v42 = vadd.f32 %v769_v53, %v741_v57 }
 0x100   : > { %v684_v56 = vpop.f32.mrf.mxu1 }
 0x101   : > { %v685_v58 = vadd.f32 %v684_v56, %v656_v55  ;;  %v780_v0 = vmax.f32 %v770_v42, 0.0 }
 0x103   : > { %v714_v59 = vadd.f32 %v713_v38, %v685_v58 }
 0x105   : > { %v743_v61 = vadd.f32 %v742_v60, %v714_v59 }
 0x107   : > { %v772_v63 = vadd.f32 %v771_v62, %v743_v61 }
 0x109   : > { %v781_v1 = vmax.f32 %v772_v63, 0.0 }
 0x10b   : > { %v1183_v2 = vpack.c.bf16 %v781_v1, %v780_v0 }
 0x10d   : > { %1187 = vst [vmem:[%s1434_s28 + $0x18] sm:$0xff] %v1183_v2  }
 0x10e PF: > { %s13_s12 = sadd.s32 1, %s1220_s12  }
 0x10f   : > { %p10_p4 = scmp.ge.s32.totalorder %s13_s12, 4  }
 0x111   :  { %12 = sbr.rel (!%p10_p4) target bundleno = 1 (0x1), region = 62 }

// kernel: resnet20_forward.37
= control target key start
LH: loop header
LB: loop body
LE: loop exit
PB: predicated region body
PF: predicated region fallthrough
CT: control target
= control target key end

     0   :  { %s1353_s15 = smov 0   ;;  %s1573_s0 = inlined_call_operand.vmem [shape: bf16[128,640], index: 0, kind: input, shape index: {}]   ;;  %s1574_s1 = inlined_call_operand.vmem [shape: bf16[640,128], index: 1, kind: input, shape index: {}]   ;;  %s1575_s2 = inlined_call_operand.vmem [shape: f32[1,128], index: 2, kind: input, shape index: {}]   ;;  %s1576_s3 = inlined_call_operand.vmem [shape: bf16[128,128], index: 3, kind: input, shape index: {}]   ;;  %s1577_s4 = inlined_call_operand.vmem [shape: bf16[128,128], index: 4, kind: output, shape index: {}]  }
   0x1 LB: > { %s939_s16 = sadd.s32 4294967295, %s1326_s15   ;;  %p943_p0 = scmp.ge.s32.totalorder %s1326_s15, 1  ;;  %s1326_s15 = sphi %s1353_s15, %s14_s15  }
   0x2   : > { %p175_p1 = scmp.lt.s32.totalorder %s1326_s15, 3 }
   0x4   : > { %p176_p2 = pnand %p943_p0, %p175_p1 }
   0x5   : > { %s944_s7 = sshll.u32 (!%p176_p2), %s939_s16, 3 }
   0x6   : > { %179 = sbr.rel (%p176_p2) target bundleno = 272 (0x110), region = 36  ;;  %p208_p3 = scmp.lt.s32.totalorder (!%p176_p2), %s944_s7, 15 }
   0xb   : > { %v1219_v0 = vld [vmem:[%s1574_s1 + $0x38] sm:$0xff]  ;;  %v1218_v2 = vld [vmem:[%s1574_s1 + $0x30] sm:$0xff]  ;;  %v1217_v6 = vld [vmem:[%s1574_s1 + $0x28] sm:$0xff]  ;;  %s1579_s7 = smov (!%p208_p3, %s944_s7), 15 }
   0xc   : > { %v1235_v1 = vld [vmem:[%s1574_s1 + $0xb8] sm:$0xff]  ;;  %1294 = vmatpush.bf16.msra.mxu1 %v1219_v0  ;;  %678 = vmatpush.bf16.msra.mxu0 %v1219_v0  ;;  %v1234_v3 = vld [vmem:[%s1574_s1 + $0xb0] sm:$0xff]  ;;  %v1233_v7 = vld [vmem:[%s1574_s1 + $0xa8] sm:$0xff]  ;;  %s1310_s25 = smul.u32 20, %s1579_s7  ;;  %s947_s5 = sshll.u32 %s1579_s7, 2 }
   0xd   : > { %736 = vmatpush.bf16.msra.mxu2 %v1235_v1  ;;  %v1243_v4 = vld [vmem:[%s1574_s1 + $0xf8] sm:$0xff]  ;;  %v1242_v5 = vld [vmem:[%s1574_s1 + $0xf0] sm:$0xff]  ;;  %v1241_v8 = vld [vmem:[%s1574_s1 + $0xe8] sm:$0xff]  ;;  %s1545_s10 = scalar_lea.vmem %s1576_s3, %s947_s5  ;;  %s1553_s12 = scalar_lea.vmem %s1577_s4, %s947_s5 }
   0xe   : > { %765 = vmatpush.bf16.msra.mxu3 %v1243_v4  ;;  %v1216_v9 = vld [vmem:[%s1574_s1 + $0x20] sm:$0xff]  ;;  %v1215_v12 = vld [vmem:[%s1574_s1 + $0x18] sm:$0xff]  ;;  %v1214_v15 = vld [vmem:[%s1574_s1 + $0x10] sm:$0xff]  ;;  %s1424_s9 = scalar_lea.vmem %s1573_s0, %s1310_s25 }
   0xf   : > { %v1232_v10 = vld [vmem:[%s1574_s1 + $0xa0] sm:$0xff]  ;;  %v1231_v13 = vld [vmem:[%s1574_s1 + $0x98] sm:$0xff]  ;;  %v1230_v16 = vld [vmem:[%s1574_s1 + $0x90] sm:$0xff] }
  0x10   : > { %1295 = vmatpush.bf16.msra.mxu1 %v1218_v2  ;;  %679 = vmatpush.bf16.msra.mxu0 %v1218_v2  ;;  %v1240_v11 = vld [vmem:[%s1574_s1 + $0xe0] sm:$0xff]  ;;  %v1239_v14 = vld [vmem:[%s1574_s1 + $0xd8] sm:$0xff]  ;;  %v1238_v17 = vld [vmem:[%s1574_s1 + $0xd0] sm:$0xff] }
  0x11   : > { %737 = vmatpush.bf16.msra.mxu2 %v1234_v3  ;;  %v1213_v18 = vld [vmem:[%s1574_s1 + $0x8] sm:$0xff]  ;;  %v1212_v20 = vld [vmem:[%s1574_s1] sm:$0xff]  ;;  %v992_v21 = vld [vmem:[%s1424_s9 + $0x50] sm:$0xf] }
  0x12   : > { %766 = vmatpush.bf16.msra.mxu3 %v1242_v5  ;;  %v1229_v19 = vld [vmem:[%s1574_s1 + $0x88] sm:$0xff]  ;;  %v1227_v22 = vld [vmem:[%s1574_s1 + $0x78] sm:$0xff]  ;;  %v1204_v24 = vld [vmem:[%s1424_s9 + $0x60] sm:$0xf0] }
  0x13   : > { %v1237_v23 = vld [vmem:[%s1574_s1 + $0xc8] sm:$0xff]  ;;  %v952_v25 = vld [vmem:[%s1424_s9] sm:$0xf]  ;;  %v1194_v26 = vld [vmem:[%s1424_s9 + $0x10] sm:$0xf0]  ;;  %v993_v31 = vor.u32 %v1204_v24, %v992_v21 }
  0x14   : > { %1296 = vmatpush.bf16.msra.mxu1 %v1217_v6  ;;  %680 = vmatpush.bf16.msra.mxu0 %v1217_v6  ;;  %v1228_v27 = vld [vmem:[%s1574_s1 + $0x80] sm:$0xff]  ;;  %v960_v28 = vld [vmem:[%s1424_s9 + $0x8] sm:$0xf]  ;;  %v1195_v29 = vld [vmem:[%s1424_s9 + $0x18] sm:$0xf0]  ;;  %v953_v32 = vor.u32 %v1194_v26, %v952_v25 }
  0x15   : > { %738 = vmatpush.bf16.msra.mxu2 %v1233_v7  ;;  %v1251_v30 = vld [vmem:[%s1574_s1 + $0x138] sm:$0xff]  ;;  %v961_v33 = vor.u32 %v1195_v29, %v960_v28  ;;  %v1236_v34 = vld [vmem:[%s1574_s1 + $0xc0] sm:$0xff]  ;;  %v1193_v35 = vld [vmem:[%s1424_s9 + $0xc] sm:$0xf] }
  0x16   : > { %767 = vmatpush.bf16.msra.mxu3 %v1241_v8  ;;  %v962_v36 = vld [vmem:[%s1424_s9 + $0x1c] sm:$0xf0]  ;;  %v1226_v37 = vld [vmem:[%s1574_s1 + $0x70] sm:$0xff]  ;;  %v1225_v40 = vld [vmem:[%s1574_s1 + $0x68] sm:$0xff] }
  0x17   : > { %v1250_v38 = vld [vmem:[%s1574_s1 + $0x130] sm:$0xff]  ;;  %v965_v39 = vor.u32 %v1193_v35, %v962_v36  ;;  %v1249_v41 = vld [vmem:[%s1574_s1 + $0x128] sm:$0xff]  ;;  %v1224_v42 = vld [vmem:[%s1574_s1 + $0x60] sm:$0xff] }
  0x18   : > { %1297 = vmatpush.bf16.msra.mxu1 %v1216_v9  ;;  %681 = vmatpush.bf16.msra.mxu0 %v1216_v9  ;;  %v1248_v43 = vld [vmem:[%s1574_s1 + $0x120] sm:$0xff]  ;;  %v1012_v44 = vld [vmem:[%s1424_s9 + $0x78] sm:$0xf]  ;;  %v1209_v45 = vld [vmem:[%s1424_s9 + $0x88] sm:$0xf0] }
  0x19   : > { %739 = vmatpush.bf16.msra.mxu2 %v1232_v10  ;;  %v972_v46 = vld [vmem:[%s1424_s9 + $0x28] sm:$0xf]  ;;  %v1199_v47 = vld [vmem:[%s1424_s9 + $0x38] sm:$0xf0]  ;;  %v980_v49 = vld [vmem:[%s1424_s9 + $0x30] sm:$0xf]  ;;  %v1013_v52 = vor.u32 %v1209_v45, %v1012_v44 }
  0x1a   : > { %768 = vmatpush.bf16.msra.mxu3 %v1240_v11  ;;  %v1223_v48 = vld [vmem:[%s1574_s1 + $0x58] sm:$0xff]  ;;  %v1200_v50 = vld [vmem:[%s1424_s9 + $0x40] sm:$0xf0]  ;;  %v973_v53 = vor.u32 %v1199_v47, %v972_v46  ;;  %v1198_v55 = vld [vmem:[%s1424_s9 + $0x34] sm:$0xf] }
  0x1b   : > { %v1247_v51 = vld [vmem:[%s1574_s1 + $0x118] sm:$0xff]  ;;  %v981_v54 = vor.u32 %v1200_v50, %v980_v49  ;;  %v982_v56 = vld [vmem:[%s1424_s9 + $0x44] sm:$0xf0]  ;;  %v1222_v57 = vld [vmem:[%s1574_s1 + $0x50] sm:$0xff] }
  0x1c   : > { %1298 = vmatpush.bf16.msra.mxu1 %v1215_v12  ;;  %682 = vmatpush.bf16.msra.mxu0 %v1215_v12  ;;  %v1246_v58 = vld [vmem:[%s1574_s1 + $0x110] sm:$0xff]  ;;  %v985_v59 = vor.u32 %v1198_v55, %v982_v56  ;;  %v1221_v60 = vld [vmem:[%s1574_s1 + $0x48] sm:$0xff]  ;;  %v1220_v62 = vld [vmem:[%s1574_s1 + $0x40] sm:$0xff] }
  0x1d   : > { %740 = vmatpush.bf16.msra.mxu2 %v1231_v13  ;;  %v1245_v61 = vld [vmem:[%s1574_s1 + $0x108] sm:$0xff]  ;;  %v1244_v63 = vld [vmem:[%s1574_s1 + $0x100] sm:$0xff]  ;;  %v954_v1 = vld [vmem:[%s1424_s9 + $0x14] sm:$0xf0] }
  0x1e   : > { %769 = vmatpush.bf16.msra.mxu3 %v1239_v14  ;;  %v1192_v0 = vld [vmem:[%s1424_s9 + $0x4] sm:$0xf]  ;;  %v968_v2 = vld [vmem:[%s1424_s9 + $0x10] sm:$0xf]  ;;  %v1000_v4 = vld [vmem:[%s1424_s9 + $0x58] sm:$0xf] }
  0x1f   : > { %v1196_v3 = vld [vmem:[%s1424_s9 + $0x20] sm:$0xf0]  ;;  %v1205_v5 = vld [vmem:[%s1424_s9 + $0x68] sm:$0xf0]  ;;  %v957_v6 = vor.u32 %v1192_v0, %v954_v1  ;;  %v1203_v9 = vld [vmem:[%s1424_s9 + $0x5c] sm:$0xf] }
  0x20   : > { %1299 = vmatpush.bf16.msra.mxu1 %v1214_v15  ;;  %683 = vmatpush.bf16.msra.mxu0 %v1214_v15  ;;  %v969_v7 = vor.u32 %v1196_v3, %v968_v2  ;;  %v1001_v8 = vor.u32 %v1205_v5, %v1000_v4  ;;  %v1002_v10 = vld [vmem:[%s1424_s9 + $0x6c] sm:$0xf0]  ;;  %v1197_v12 = vld [vmem:[%s1424_s9 + $0x2c] sm:$0xf]  ;;  %v974_v13 = vld [vmem:[%s1424_s9 + $0x3c] sm:$0xf0] }
  0x21   : > { %741 = vmatpush.bf16.msra.mxu2 %v1230_v16  ;;  %v1005_v11 = vor.u32 %v1203_v9, %v1002_v10  ;;  %v988_v14 = vld [vmem:[%s1424_s9 + $0x38] sm:$0xf]  ;;  %v1201_v15 = vld [vmem:[%s1424_s9 + $0x48] sm:$0xf0]  ;;  %v1020_v16 = vld [vmem:[%s1424_s9 + $0x80] sm:$0xf] }
  0x22   : > { %770 = vmatpush.bf16.msra.mxu3 %v1238_v17  ;;  %v1210_v17 = vld [vmem:[%s1424_s9 + $0x90] sm:$0xf0]  ;;  %v1208_v21 = vld [vmem:[%s1424_s9 + $0x84] sm:$0xf]  ;;  %v994_v25 = vld [vmem:[%s1424_s9 + $0x64] sm:$0xf0] }
  0x23   : > { %v1202_v24 = vld [vmem:[%s1424_s9 + $0x54] sm:$0xf]  ;;  %v1008_v26 = vld [vmem:[%s1424_s9 + $0x60] sm:$0xf]  ;;  %v1028_v28 = vld [vmem:[%s1424_s9 + $0x88] sm:$0xf] }
  0x24   : > { %1300 = vmatpush.bf16.msra.mxu1 %v1213_v18  ;;  %684 = vmatpush.bf16.msra.mxu0 %v1213_v18  ;;  %v977_v18 = vor.u32 %v1197_v12, %v974_v13  ;;  %v1211_v29 = vld [vmem:[%s1424_s9 + $0x98] sm:$0xf0] }
  0x25   : > { %742 = vmatpush.bf16.msra.mxu2 %v1229_v19  ;;  %v989_v19 = vor.u32 %v1201_v15, %v988_v14 }
  0x26   : > { %771 = vmatpush.bf16.msra.mxu3 %v1237_v23 }
  0x28   : > { %1301 = vmatpush.bf16.msra.mxu1 %v1212_v20  ;;  %685 = vmatpush.bf16.msra.mxu0 %v1212_v20  ;;  %v1021_v20 = vor.u32 %v1210_v17, %v1020_v16 }
  0x29   : > { %743 = vmatpush.bf16.msra.mxu2 %v1228_v27  ;;  %v1206_v27 = vld [vmem:[%s1424_s9 + $0x70] sm:$0xf0] }
  0x2a   : > { %772 = vmatpush.bf16.msra.mxu3 %v1236_v34  ;;  %v1014_v34 = vld [vmem:[%s1424_s9 + $0x8c] sm:$0xf0] }
  0x2b   : > { %696 = vmatmul.bf16.vlgmr.msra.gmra.mxu1 %v993_v31  ;;  %686 = vmatmul.bf16.vlgmr.msra.gmra.mxu0 %v953_v32  ;;  %v1009_v31 = vor.u32 %v1206_v27, %v1008_v26  ;;  %v1029_v32 = vor.u32 %v1211_v29, %v1028_v28 }
  0x2c   : > { %707 = vmatpush.bf16.msrb.mxu1 %v1227_v22  ;;  %794 = vmatpush.bf16.msrb.mxu0 %v1251_v30  ;;  %v1022_v22 = vld [vmem:[%s1424_s9 + $0x94] sm:$0xf0] }
  0x2d   : > { %1302 = vmatpush.bf16.msrb.mxu2 %v1251_v30  ;;  %773 = vmatmul.bf16.vlgmr.msra.gmra.mxu3 %v965_v39  ;;  %v1025_v23 = vor.u32 %v1208_v21, %v1022_v22  ;;  %v997_v30 = vor.u32 %v1202_v24, %v994_v25 }
  0x2e   : > { %744 = vmatmul.bf16.vlgmr.msra.gmra.mxu2 %v961_v33  ;;  %v1207_v33 = vld [vmem:[%s1424_s9 + $0x7c] sm:$0xf] }
  0x2f   : > { %v1017_v35 = vor.u32 %v1207_v33, %v1014_v34 }
  0x30   : > { %708 = vmatpush.bf16.msrb.mxu1 %v1226_v37  ;;  %795 = vmatpush.bf16.msrb.mxu0 %v1250_v38 }
  0x31   : > { %1303 = vmatpush.bf16.msrb.mxu2 %v1250_v38 }
  0x34   : > { %709 = vmatpush.bf16.msrb.mxu1 %v1225_v40  ;;  %796 = vmatpush.bf16.msrb.mxu0 %v1249_v41 }
  0x35   : > { %1304 = vmatpush.bf16.msrb.mxu2 %v1249_v41 }
  0x38   : > { %710 = vmatpush.bf16.msrb.mxu1 %v1224_v42  ;;  %797 = vmatpush.bf16.msrb.mxu0 %v1248_v43 }
  0x39   : > { %1305 = vmatpush.bf16.msrb.mxu2 %v1248_v43 }
  0x3b   : > { %701 = vmatmul.bf16.gmra.mxu1 %v1013_v52  ;;  %691 = vmatmul.bf16.gmra.mxu0 %v973_v53 }
  0x3c   : > { %711 = vmatpush.bf16.msrb.mxu1 %v1223_v48  ;;  %798 = vmatpush.bf16.msrb.mxu0 %v1247_v51  ;;  %v1538_v48 = vld [vmem:[%s1575_s2] ss:$0 sm:$0xff] }
  0x3d   : > { %1306 = vmatpush.bf16.msrb.mxu2 %v1247_v51  ;;  %778 = vmatmul.bf16.gmra.mxu3 %v985_v59 }
  0x3e   : > { %749 = vmatmul.bf16.gmra.mxu2 %v981_v54 }
  0x40   : > { %712 = vmatpush.bf16.msrb.mxu1 %v1222_v57  ;;  %799 = vmatpush.bf16.msrb.mxu0 %v1246_v58 }
  0x41   : > { %1307 = vmatpush.bf16.msrb.mxu2 %v1246_v58  ;;  %v1253_v58 = vld [vmem:[%s1545_s10] sm:$0xff]  }
  0x42   : > { %v1254_v0 = vunpack.c.l.bf16 %v1253_v58  ;;  %v1255_v4 = vunpack.c.h.bf16 %v1253_v58 }
  0x44   : > { %713 = vmatpush.bf16.msrb.mxu1 %v1221_v60  ;;  %800 = vmatpush.bf16.msrb.mxu0 %v1245_v61 }
  0x45   : > { %1308 = vmatpush.bf16.msrb.mxu2 %v1245_v61 }
  0x48   : > { %714 = vmatpush.bf16.msrb.mxu1 %v1220_v62  ;;  %801 = vmatpush.bf16.msrb.mxu0 %v1244_v63 }
  0x49   : > { %1309 = vmatpush.bf16.msrb.mxu2 %v1244_v63 }
  0x4b   : > { %715 = vmatmul.bf16.vlgmr.msrb.gmra.mxu1 %v957_v6  ;;  %802 = vmatmul.bf16.vlgmr.msrb.gmra.mxu0 %v969_v7 }
  0x4d   : > { %783 = vmatmul.bf16.gmra.mxu3 %v1005_v11 }
  0x4e   : > { %754 = vmatmul.bf16.gmra.mxu2 %v1001_v8 }
  0x5b   : > { %720 = vmatmul.bf16.gmra.mxu1 %v977_v18  ;;  %807 = vmatmul.bf16.gmra.mxu0 %v989_v19 }
  0x5d   : > { %788 = vmatmul.bf16.gmra.mxu3 %v1025_v23 }
  0x5e   : > { %759 = vmatmul.bf16.gmra.mxu2 %v1021_v20  ;;  %v1288_v20 = vld [vmem:[%s1545_s10 + $0x8] sm:$0xff]  }
  0x5f   : > { %v1258_v25 = vunpack.c.l.bf16 %v1288_v20  ;;  %v1259_v28 = vunpack.c.h.bf16 %v1288_v20 }
  0x6b   : > { %725 = vmatmul.bf16.gmra.mxu1 %v997_v30  ;;  %812 = vmatmul.bf16.gmra.mxu0 %v1009_v31 }
  0x6e   : > { %817 = vmatmul.bf16.vlgmr.msrb.gmra.mxu2 %v1029_v32 }
  0x7b   : > { %730 = vmatmul.bf16.gmra.mxu1 %v1017_v35 }
  0xa8   : > { %v697_v36 = vpop.f32.mrf.mxu1  ;;  %v687_v37 = vpop.f32.mrf.mxu0 }
  0xa9   : > { %v688_v49 = vadd.f32 %v1538_v48, %v687_v37  ;;  %v698_v30 = vadd.f32 %v1538_v48, %v697_v36 }
  0xb0   : > { %v1529_v39 = vpop.f32.mrf.mxu1  ;;  %v689_v40 = vpop.f32.mrf.mxu0 }
  0xb1   : > { %v745_v38 = vpop.f32.mrf.mxu2  ;;  %v774_v44 = vpop.f32.mrf.mxu3  ;;  %v690_v56 = vadd.f32 %v1538_v48, %v689_v40  ;;  %v1289_v40 = vld [vmem:[%s1545_s10 + $0x10] sm:$0xff]  }
  0xb8   : > { %v1531_v42 = vpop.f32.mrf.mxu1  ;;  %v692_v43 = vpop.f32.mrf.mxu0 }
  0xb9   : > { %v747_v41 = vpop.f32.mrf.mxu2  ;;  %v776_v50 = vpop.f32.mrf.mxu3  ;;  %v693_v5 = vadd.f32 %v1538_v48, %v692_v43 }
  0xc0   : > { %v1533_v46 = vpop.f32.mrf.mxu1  ;;  %v694_v47 = vpop.f32.mrf.mxu0 }
  0xc1   : > { %v750_v45 = vpop.f32.mrf.mxu2  ;;  %v779_v62 = vpop.f32.mrf.mxu3  ;;  %v695_v18 = vadd.f32 %v1538_v48, %v694_v47 }
  0xc8   : > { %v716_v51 = vpop.f32.mrf.mxu1  ;;  %v803_v52 = vpop.f32.mrf.mxu0 }
  0xc9   : > { %v717_v53 = vadd.f32 %v716_v51, %v688_v49  ;;  %v752_v54 = vpop.f32.mrf.mxu2  ;;  %v781_v15 = vpop.f32.mrf.mxu3  ;;  %v1262_v49 = vunpack.c.l.bf16 %v1289_v40 }
  0xcb   : > { %v746_v55 = vadd.f32 %v745_v38, %v717_v53 }
  0xcd   : > { %v775_v57 = vadd.f32 %v774_v44, %v746_v55 }
  0xcf   : > { %v804_v63 = vadd.f32 %v803_v52, %v775_v57 }
  0xd0   : > { %v718_v59 = vpop.f32.mrf.mxu1  ;;  %v805_v60 = vpop.f32.mrf.mxu0 }
  0xd1   : > { %v719_v61 = vadd.f32 %v718_v59, %v690_v56  ;;  %v755_v2 = vpop.f32.mrf.mxu2  ;;  %v839_v6 = vadd.f32 %v1254_v0, %v804_v63  ;;  %v784_v29 = vpop.f32.mrf.mxu3  ;;  %v1263_v59 = vunpack.c.h.bf16 %v1289_v40 }
  0xd3   : > { %v748_v1 = vadd.f32 %v747_v41, %v719_v61  ;;  %v847_v12 = vmax.f32 %v839_v6, 0.0 }
  0xd5   : > { %v777_v3 = vadd.f32 %v776_v50, %v748_v1  ;;  %v700_v50 = vadd.f32 %v1538_v48, %v1529_v39  ;;  %v1290_v1 = vld [vmem:[%s1545_s10 + $0x18] sm:$0xff]  }
  0xd7   : > { %v806_v7 = vadd.f32 %v805_v60, %v777_v3  ;;  %v703_v60 = vadd.f32 %v1538_v48, %v1531_v42 }
  0xd8   : > { %v721_v8 = vpop.f32.mrf.mxu1  ;;  %v808_v9 = vpop.f32.mrf.mxu0 }
  0xd9   : > { %v840_v10 = vadd.f32 %v1255_v4, %v806_v7  ;;  %v722_v11 = vadd.f32 %v721_v8, %v693_v5  ;;  %v757_v17 = vpop.f32.mrf.mxu2  ;;  %v786_v51 = vpop.f32.mrf.mxu3  ;;  %v1266_v8 = vunpack.c.l.bf16 %v1290_v1 }
  0xdb   : > { %v848_v13 = vmax.f32 %v840_v10, 0.0  ;;  %v751_v14 = vadd.f32 %v750_v45, %v722_v11 }
  0xdd   : > { %v1271_v16 = vpack.c.bf16 %v848_v13, %v847_v12  ;;  %v780_v19 = vadd.f32 %v779_v62, %v751_v14 }
  0xdf   : > { %1272 = vst [vmem:[%s1553_s12] sm:$0xff] %v1271_v16   ;;  %v809_v24 = vadd.f32 %v808_v9, %v780_v19  ;;  %v705_v9 = vadd.f32 %v1538_v48, %v1533_v46  ;;  %v1267_v16 = vunpack.c.h.bf16 %v1290_v1 }
  0xe0   : > { %v723_v21 = vpop.f32.mrf.mxu1  ;;  %v810_v22 = vpop.f32.mrf.mxu0 }
  0xe1   : > { %v724_v23 = vadd.f32 %v723_v21, %v695_v18  ;;  %v841_v31 = vadd.f32 %v1258_v25, %v809_v24  ;;  %v760_v33 = vpop.f32.mrf.mxu2  ;;  %v789_v0 = vpop.f32.mrf.mxu3 }
  0xe3   : > { %v753_v26 = vadd.f32 %v752_v54, %v724_v23  ;;  %v849_v41 = vmax.f32 %v841_v31, 0.0 }
  0xe5   : > { %v782_v27 = vadd.f32 %v781_v15, %v753_v26 }
  0xe7   : > { %v811_v32 = vadd.f32 %v810_v22, %v782_v27 }
  0xe8   : > { %v726_v34 = vpop.f32.mrf.mxu1  ;;  %v813_v38 = vpop.f32.mrf.mxu0 }
  0xe9   : > { %v842_v35 = vadd.f32 %v1259_v28, %v811_v32  ;;  %v727_v37 = vadd.f32 %v726_v34, %v698_v30  ;;  %v762_v55 = vpop.f32.mrf.mxu2  ;;  %v791_v14 = vpop.f32.mrf.mxu3 }
  0xeb   : > { %v850_v43 = vmax.f32 %v842_v35, 0.0  ;;  %v756_v44 = vadd.f32 %v755_v2, %v727_v37 }
  0xed   : > { %v1276_v45 = vpack.c.bf16 %v850_v43, %v849_v41  ;;  %v785_v47 = vadd.f32 %v784_v29, %v756_v44 }
  0xef   : > { %1291 = vst [vmem:[%s1553_s12 + $0x8] sm:$0xff] %v1276_v45   ;;  %v814_v36 = vadd.f32 %v813_v38, %v785_v47 }
  0xf0   : > { %v728_v52 = vpop.f32.mrf.mxu1  ;;  %v815_v57 = vpop.f32.mrf.mxu0 }
  0xf1   : > { %v843_v53 = vadd.f32 %v1262_v49, %v814_v36  ;;  %v729_v54 = vadd.f32 %v728_v52, %v700_v50  ;;  %v818_v5 = vpop.f32.mrf.mxu2 }
  0xf3   : > { %v758_v56 = vadd.f32 %v757_v17, %v729_v54  ;;  %v851_v2 = vmax.f32 %v843_v53, 0.0 }
  0xf5   : > { %v787_v58 = vadd.f32 %v786_v51, %v758_v56 }
  0xf7   : > { %v816_v61 = vadd.f32 %v815_v57, %v787_v58 }
  0xf8   : > { %v731_v62 = vpop.f32.mrf.mxu1 }
  0xf9   : > { %v844_v63 = vadd.f32 %v1263_v59, %v816_v61  ;;  %v732_v39 = vadd.f32 %v731_v62, %v703_v60  ;;  %v820_v17 = vpop.f32.mrf.mxu2 }
  0xfb   : > { %v852_v3 = vmax.f32 %v844_v63, 0.0  ;;  %v761_v4 = vadd.f32 %v760_v33, %v732_v39 }
  0xfd   : > { %v1281_v6 = vpack.c.bf16 %v852_v3, %v851_v2  ;;  %v790_v7 = vadd.f32 %v789_v0, %v761_v4 }
  0xff   : > { %1292 = vst [vmem:[%s1553_s12 + $0x10] sm:$0xff] %v1281_v6   ;;  %v819_v10 = vadd.f32 %v818_v5, %v790_v7 }
 0x100   : > { %v733_v42 = vpop.f32.mrf.mxu1 }
 0x101   : > { %v845_v11 = vadd.f32 %v1266_v8, %v819_v10  ;;  %v734_v12 = vadd.f32 %v733_v42, %v705_v9 }
 0x103   : > { %v763_v13 = vadd.f32 %v762_v55, %v734_v12  ;;  %v853_v20 = vmax.f32 %v845_v11, 0.0 }
 0x105   : > { %v792_v15 = vadd.f32 %v791_v14, %v763_v13 }
 0x107   : > { %v821_v18 = vadd.f32 %v820_v17, %v792_v15 }
 0x109   : > { %v846_v19 = vadd.f32 %v1267_v16, %v821_v18 }
 0x10b   : > { %v854_v21 = vmax.f32 %v846_v19, 0.0 }
 0x10d   : > { %v1286_v22 = vpack.c.bf16 %v854_v21, %v853_v20 }
 0x10f   : > { %1293 = vst [vmem:[%s1553_s12 + $0x18] sm:$0xff] %v1286_v22  }
 0x110 PF: > { %s14_s15 = sadd.s32 1, %s1326_s15  }
 0x111   : > { %p11_p4 = scmp.ge.s32.totalorder %s14_s15, 4  }
 0x113   :  { %13 = sbr.rel (!%p11_p4) target bundleno = 1 (0x1), region = 69 }

// kernel: resnet20_forward.41
= control target key start
LH: loop header
LB: loop body
LE: loop exit
PB: predicated region body
PF: predicated region fallthrough
CT: control target
= control target key end

     0   :  { %11 = vsyncpa [#allocation3], 0  ;;  %s1891_s0 = inlined_call_operand.vmem [shape: bf16[128,640], index: 0, kind: input, shape index: {}]   ;;  %s1892_s1 = inlined_call_operand.vmem [shape: bf16[640,128], index: 1, kind: input, shape index: {}]   ;;  %s1893_s2 = inlined_call_operand.vmem [shape: f32[1,128], index: 2, kind: input, shape index: {}]   ;;  %s1894_s3 = inlined_call_operand.vmem [shape: bf16[128,128], index: 3, kind: input, shape index: {}]   ;;  %s1895_s4 = inlined_call_operand.vmem [shape: f32[128,128], index: 4, kind: input, shape index: {}]   ;;  %s1896_s5 = inlined_call_operand.vmem [shape: f32[1,128], index: 5, kind: input, shape index: {}]   ;;  %s1897_s6 = inlined_call_operand.hbm [shape: f32[2,1,128], index: 6, kind: output, shape index: {}]  }
   0x1   :  { %13 = vsyncpa [#allocation3 + $0x1], 0  ;;  %s1544_s21 = smov 0   ;;  %s1546_s22 = smov 0  }
   0x2   :  { %s1548_s23 = smov 0   ;;  %s1550_s24 = smov 0  }
   0x3 LB: > { %s1565_s25 = sadd.s32 4294967295, %s1507_s24   ;;  %s1059_s26 = sadd.s32 4294967294, %s1507_s24   ;;  %s1507_s24 = sphi %s1550_s24, %s1903_s24   ;;  %s1503_s23 = sphi %s1548_s23, %s1902_s23   ;;  %s1499_s22 = sphi %s1546_s22, %s1901_s22   ;;  %s1495_s21 = sphi %s1544_s21, %s1900_s21  }
   0x4   : > { %s1569_s27 = sadd.s32 1, %s1507_s24   ;;  %s162_s28 = sadd.s32 1, %s1503_s23 }
   0x5   : > { %s159_s29 = ssub.s32 %s1507_s24, %s1569_s27  ;;  %p172_p0 = scmp.ne.s32.totalorder %s1503_s23, %s1499_s22 }
   0x6   : > { %p160_p1 = scmp.eq.s32.totalorder %s159_s29, 0  ;;  %p173_p2 = scmp.eq.s32.totalorder %s1565_s25, 1 }
   0x7   : > { %p178_p3 = scmp.ne.s32.totalorder %s1499_s22, %s1495_s21  ;;  %p179_p4 = scmp.eq.s32.totalorder %s1059_s26, 1 }
   0x8   : > { %s1580_s30 = scalar_select %p160_p1, %s1503_s23, %s162_s28  }
   0x9   : > { %p1582_p5 = por %p173_p2, %p172_p0  ;;  %p1586_p6 = por %p179_p4, %p178_p3 }
   0xa   : > { %p1062_p7 = scmp.ge.s32.totalorder %s1507_s24, 1  ;;  %p228_p8 = scmp.lt.s32.totalorder %s1507_s24, 3 }
   0xc   : > { %p229_p9 = pnand %p1062_p7, %p228_p8 }
   0xd   : > { %s1063_s26 = sshll.u32 (!%p229_p9), %s1565_s25, 3  ;;  %s988_s10 = scalar_lea.hbm (!%p229_p9), %s1897_s6, %s1565_s25 }
   0xe   : > { %232 = sbr.rel (%p229_p9) target bundleno = 428 (0x1ac), region = 44  ;;  %p264_p10 = scmp.lt.s32.totalorder (!%p229_p9), %s1063_s26, 15 }
   0xf   : > { %s992_s16 = sshll.u32 (!%p229_p9), %s988_s10, 4  ;;  %s1465_s20 = scalar_lea.hbm (!%p229_p9), %s1897_s6, 2  ;;  %s993_s16 = int_to_ptr.hbm [resolvable:$true] %s992_s16 }
  0x10   : > { %s1459_s18 = sshra.s32 (!%p229_p9), %s993_s16, 4  ;;  %s1460_s18 = int_to_ptr.hbm [resolvable:$true] %s1459_s18 }
  0x11   : > { %p1466_p0 = scmp.lt.s32.totalorder (!%p229_p9), %s1460_s18, %s1897_s6 }
  0x13   : > { %v1336_v0 = vld [vmem:[%s1892_s1 + $0x38] sm:$0xff]  ;;  %v1335_v2 = vld [vmem:[%s1892_s1 + $0x30] sm:$0xff]  ;;  %v1334_v4 = vld [vmem:[%s1892_s1 + $0x28] sm:$0xff]  ;;  %s1905_s26 = smov (!%p264_p10, %s1063_s26), 15 }
  0x14   : > { %v1344_v1 = vld [vmem:[%s1892_s1 + $0x78] sm:$0xff]  ;;  %1388 = vmatpush.bf16.msra.mxu2 %v1336_v0  ;;  %v1343_v3 = vld [vmem:[%s1892_s1 + $0x70] sm:$0xff]  ;;  %728 = vmatpush.bf16.msra.mxu0 %v1336_v0  ;;  %v1342_v5 = vld [vmem:[%s1892_s1 + $0x68] sm:$0xff]  ;;  %s1404_s19 = smul.u32 20, %s1905_s26 }
  0x15   : > { %1396 = vmatpush.bf16.msra.mxu3 %v1344_v1  ;;  %757 = vmatpush.bf16.msra.mxu1 %v1344_v1  ;;  %v1333_v6 = vld [vmem:[%s1892_s1 + $0x20] sm:$0xff]  ;;  %v1332_v8 = vld [vmem:[%s1892_s1 + $0x18] sm:$0xff]  ;;  %v1331_v10 = vld [vmem:[%s1892_s1 + $0x10] sm:$0xff] }
  0x16   : > { %v1341_v7 = vld [vmem:[%s1892_s1 + $0x60] sm:$0xff]  ;;  %v1340_v9 = vld [vmem:[%s1892_s1 + $0x58] sm:$0xff]  ;;  %v1339_v11 = vld [vmem:[%s1892_s1 + $0x50] sm:$0xff]  ;;  %s1641_s12 = scalar_lea.vmem %s1891_s0, %s1404_s19 }
  0x17   : > { %v1330_v12 = vld [vmem:[%s1892_s1 + $0x8] sm:$0xff]  ;;  %v1329_v14 = vld [vmem:[%s1892_s1] sm:$0xff]  ;;  %v1109_v16 = vld [vmem:[%s1641_s12 + $0x50] sm:$0xf] }
  0x18   : > { %1389 = vmatpush.bf16.msra.mxu2 %v1335_v2  ;;  %729 = vmatpush.bf16.msra.mxu0 %v1335_v2  ;;  %v1338_v13 = vld [vmem:[%s1892_s1 + $0x48] sm:$0xff]  ;;  %v1337_v15 = vld [vmem:[%s1892_s1 + $0x40] sm:$0xff]  ;;  %v1319_v18 = vld [vmem:[%s1641_s12 + $0x54] sm:$0xf] }
  0x19   : > { %1397 = vmatpush.bf16.msra.mxu3 %v1343_v3  ;;  %758 = vmatpush.bf16.msra.mxu1 %v1343_v3  ;;  %v1321_v17 = vld [vmem:[%s1641_s12 + $0x60] sm:$0xf0]  ;;  %v1111_v19 = vld [vmem:[%s1641_s12 + $0x64] sm:$0xf0]  ;;  %v1352_v20 = vld [vmem:[%s1892_s1 + $0xb8] sm:$0xff] }
  0x1a   : > { %v1069_v21 = vld [vmem:[%s1641_s12] sm:$0xf]  ;;  %v1311_v22 = vld [vmem:[%s1641_s12 + $0x10] sm:$0xf0]  ;;  %v1360_v23 = vld [vmem:[%s1892_s1 + $0xf8] sm:$0xff]  ;;  %v1110_v26 = vor.u32 %v1321_v17, %v1109_v16  ;;  %v1114_v27 = vor.u32 %v1319_v18, %v1111_v19 }
  0x1b   : > { %v1309_v24 = vld [vmem:[%s1641_s12 + $0x4] sm:$0xf]  ;;  %v1071_v25 = vld [vmem:[%s1641_s12 + $0x14] sm:$0xf0]  ;;  %v1070_v28 = vor.u32 %v1311_v22, %v1069_v21  ;;  %v1351_v31 = vld [vmem:[%s1892_s1 + $0xb0] sm:$0xff] }
  0x1c   : > { %1390 = vmatpush.bf16.msra.mxu2 %v1334_v4  ;;  %730 = vmatpush.bf16.msra.mxu0 %v1334_v4  ;;  %v1368_v29 = vld [vmem:[%s1892_s1 + $0x138] sm:$0xff]  ;;  %v1074_v30 = vor.u32 %v1309_v24, %v1071_v25  ;;  %v1359_v32 = vld [vmem:[%s1892_s1 + $0xf0] sm:$0xff]  ;;  %v1350_v34 = vld [vmem:[%s1892_s1 + $0xa8] sm:$0xff] }
  0x1d   : > { %1398 = vmatpush.bf16.msra.mxu3 %v1342_v5  ;;  %759 = vmatpush.bf16.msra.mxu1 %v1342_v5  ;;  %v1367_v33 = vld [vmem:[%s1892_s1 + $0x130] sm:$0xff]  ;;  %v1358_v35 = vld [vmem:[%s1892_s1 + $0xe8] sm:$0xff]  ;;  %v1349_v37 = vld [vmem:[%s1892_s1 + $0xa0] sm:$0xff] }
  0x1e   : > { %v1366_v36 = vld [vmem:[%s1892_s1 + $0x128] sm:$0xff]  ;;  %v1357_v38 = vld [vmem:[%s1892_s1 + $0xe0] sm:$0xff]  ;;  %v1129_v40 = vld [vmem:[%s1641_s12 + $0x78] sm:$0xf] }
  0x1f   : > { %v1365_v39 = vld [vmem:[%s1892_s1 + $0x120] sm:$0xff]  ;;  %v1326_v41 = vld [vmem:[%s1641_s12 + $0x88] sm:$0xf0]  ;;  %v1324_v42 = vld [vmem:[%s1641_s12 + $0x7c] sm:$0xf] }
  0x20   : > { %1391 = vmatpush.bf16.msra.mxu2 %v1333_v6  ;;  %731 = vmatpush.bf16.msra.mxu0 %v1333_v6  ;;  %v1131_v43 = vld [vmem:[%s1641_s12 + $0x8c] sm:$0xf0]  ;;  %v1348_v44 = vld [vmem:[%s1892_s1 + $0x98] sm:$0xff]  ;;  %v1089_v45 = vld [vmem:[%s1641_s12 + $0x28] sm:$0xf]  ;;  %v1130_v50 = vor.u32 %v1326_v41, %v1129_v40 }
  0x21   : > { %1399 = vmatpush.bf16.msra.mxu3 %v1341_v7  ;;  %760 = vmatpush.bf16.msra.mxu1 %v1341_v7  ;;  %v1316_v46 = vld [vmem:[%s1641_s12 + $0x38] sm:$0xf0]  ;;  %v1314_v48 = vld [vmem:[%s1641_s12 + $0x2c] sm:$0xf]  ;;  %v1091_v49 = vld [vmem:[%s1641_s12 + $0x3c] sm:$0xf0]  ;;  %v1134_v51 = vor.u32 %v1324_v42, %v1131_v43 }
  0x22   : > { %v1356_v47 = vld [vmem:[%s1892_s1 + $0xd8] sm:$0xff]  ;;  %v1090_v52 = vor.u32 %v1316_v46, %v1089_v45  ;;  %v1094_v54 = vor.u32 %v1314_v48, %v1091_v49  ;;  %v1347_v55 = vld [vmem:[%s1892_s1 + $0x90] sm:$0xff]  ;;  %v1346_v58 = vld [vmem:[%s1892_s1 + $0x88] sm:$0xff] }
  0x23   : > { %v1364_v53 = vld [vmem:[%s1892_s1 + $0x118] sm:$0xff]  ;;  %v1355_v56 = vld [vmem:[%s1892_s1 + $0xd0] sm:$0xff]  ;;  %v1354_v59 = vld [vmem:[%s1892_s1 + $0xc8] sm:$0xff] }
  0x24   : > { %1392 = vmatpush.bf16.msra.mxu2 %v1332_v8  ;;  %732 = vmatpush.bf16.msra.mxu0 %v1332_v8  ;;  %v1363_v57 = vld [vmem:[%s1892_s1 + $0x110] sm:$0xff]  ;;  %v1362_v60 = vld [vmem:[%s1892_s1 + $0x108] sm:$0xff]  ;;  %v1345_v61 = vld [vmem:[%s1892_s1 + $0x80] sm:$0xff] }
  0x25   : > { %1400 = vmatpush.bf16.msra.mxu3 %v1340_v9  ;;  %761 = vmatpush.bf16.msra.mxu1 %v1340_v9  ;;  %v1353_v62 = vld [vmem:[%s1892_s1 + $0xc0] sm:$0xff]  ;;  %v1077_v63 = vld [vmem:[%s1641_s12 + $0x8] sm:$0xf]  ;;  %v1312_v0 = vld [vmem:[%s1641_s12 + $0x18] sm:$0xf0] }
  0x26   : > { %v1310_v1 = vld [vmem:[%s1641_s12 + $0xc] sm:$0xf]  ;;  %v1079_v2 = vld [vmem:[%s1641_s12 + $0x1c] sm:$0xf0]  ;;  %v1085_v4 = vld [vmem:[%s1641_s12 + $0x10] sm:$0xf]  ;;  %v1078_v6 = vor.u32 %v1312_v0, %v1077_v63 }
  0x27   : > { %v1361_v3 = vld [vmem:[%s1892_s1 + $0x100] sm:$0xff]  ;;  %v1082_v7 = vor.u32 %v1310_v1, %v1079_v2  ;;  %v1097_v9 = vld [vmem:[%s1641_s12 + $0x30] sm:$0xf]  ;;  %v1117_v18 = vld [vmem:[%s1641_s12 + $0x58] sm:$0xf] }
  0x28   : > { %1393 = vmatpush.bf16.msra.mxu2 %v1331_v10  ;;  %733 = vmatpush.bf16.msra.mxu0 %v1331_v10  ;;  %v1313_v5 = vld [vmem:[%s1641_s12 + $0x20] sm:$0xf0]  ;;  %v1322_v19 = vld [vmem:[%s1641_s12 + $0x68] sm:$0xf0]  ;;  %v1119_v21 = vld [vmem:[%s1641_s12 + $0x6c] sm:$0xf0] }
  0x29   : > { %1401 = vmatpush.bf16.msra.mxu3 %v1339_v11  ;;  %762 = vmatpush.bf16.msra.mxu1 %v1339_v11  ;;  %v1086_v8 = vor.u32 %v1313_v5, %v1085_v4  ;;  %v1317_v10 = vld [vmem:[%s1641_s12 + $0x40] sm:$0xf0]  ;;  %v1315_v11 = vld [vmem:[%s1641_s12 + $0x34] sm:$0xf]  ;;  %v1125_v22 = vld [vmem:[%s1641_s12 + $0x60] sm:$0xf]  ;;  %v1118_v24 = vor.u32 %v1322_v19, %v1117_v18 }
  0x2a   : > { %v916_v40 = vld [vmem:[%s1895_s4 + $0x58] sm:$0xff]  ;;  %v915_v41 = vld [vmem:[%s1895_s4 + $0x50] sm:$0xff]  ;;  %v914_v42 = vld [vmem:[%s1895_s4 + $0x48] sm:$0xff] }
  0x2b   : > { %v913_v43 = vld [vmem:[%s1895_s4 + $0x40] sm:$0xff]  ;;  %v912_v45 = vld [vmem:[%s1895_s4 + $0x38] sm:$0xff]  ;;  %v911_v46 = vld [vmem:[%s1895_s4 + $0x30] sm:$0xff] }
  0x2c   : > { %1394 = vmatpush.bf16.msra.mxu2 %v1330_v12  ;;  %734 = vmatpush.bf16.msra.mxu0 %v1330_v12  ;;  %v1099_v12 = vld [vmem:[%s1641_s12 + $0x44] sm:$0xf0]  ;;  %v1828_v1 = vld [vmem:[%s1893_s2] ss:$0 sm:$0xff] }
  0x2d   : > { %1402 = vmatpush.bf16.msra.mxu3 %v1338_v13  ;;  %763 = vmatpush.bf16.msra.mxu1 %v1338_v13  ;;  %v1105_v13 = vld [vmem:[%s1641_s12 + $0x38] sm:$0xf]  ;;  %v1102_v16 = vor.u32 %v1315_v11, %v1099_v12 }
  0x30   : > { %1395 = vmatpush.bf16.msra.mxu2 %v1329_v14  ;;  %735 = vmatpush.bf16.msra.mxu0 %v1329_v14  ;;  %v1318_v14 = vld [vmem:[%s1641_s12 + $0x48] sm:$0xf0] }
  0x31   : > { %1403 = vmatpush.bf16.msra.mxu3 %v1337_v15  ;;  %764 = vmatpush.bf16.msra.mxu1 %v1337_v15  ;;  %v1098_v15 = vor.u32 %v1317_v10, %v1097_v9  ;;  %v1106_v17 = vor.u32 %v1318_v14, %v1105_v13 }
  0x33   : > { %746 = vmatmul.bf16.vlgmr.msra.gmra.mxu2 %v1110_v26  ;;  %736 = vmatmul.bf16.vlgmr.msra.gmra.mxu0 %v1070_v28  ;;  %v1327_v28 = vld [vmem:[%s1641_s12 + $0x90] sm:$0xf0] }
  0x34   : > { %786 = vmatpush.bf16.msrb.mxu2 %v1352_v20  ;;  %775 = vmatmul.bf16.vlgmr.msra.gmra.mxu3 %v1114_v27  ;;  %v1320_v20 = vld [vmem:[%s1641_s12 + $0x5c] sm:$0xf]  ;;  %v1137_v27 = vld [vmem:[%s1641_s12 + $0x80] sm:$0xf] }
  0x35   : > { %815 = vmatpush.bf16.msrb.mxu3 %v1360_v23  ;;  %844 = vmatpush.bf16.msrb.mxu0 %v1368_v29  ;;  %v1323_v23 = vld [vmem:[%s1641_s12 + $0x70] sm:$0xf0]  ;;  %v1122_v25 = vor.u32 %v1320_v20, %v1119_v21  ;;  %v1325_v29 = vld [vmem:[%s1641_s12 + $0x84] sm:$0xf] }
  0x36   : > { %765 = vmatmul.bf16.vlgmr.msra.gmra.mxu1 %v1074_v30  ;;  %v1126_v26 = vor.u32 %v1323_v23, %v1125_v22  ;;  %v1139_v30 = vld [vmem:[%s1641_s12 + $0x94] sm:$0xf0] }
  0x38   : > { %787 = vmatpush.bf16.msrb.mxu2 %v1351_v31  ;;  %v1145_v31 = vld [vmem:[%s1641_s12 + $0x88] sm:$0xf] }
  0x39   : > { %816 = vmatpush.bf16.msrb.mxu3 %v1359_v32  ;;  %845 = vmatpush.bf16.msrb.mxu0 %v1367_v33  ;;  %v1328_v32 = vld [vmem:[%s1641_s12 + $0x98] sm:$0xf0]  ;;  %v1138_v33 = vor.u32 %v1327_v28, %v1137_v27  ;;  %s1066_s12 = sshll.u32 %s1905_s26, 2  ;;  %s261_s26 = sand.u32 1, %s1499_s22  }
  0x3a   : > { %s1835_s28 = scalar_lea.vmem %s1894_s3, %s1066_s12  ;;  %s262_s14 = scalar_lea.vmem [#allocation2], %s261_s26 }
  0x3b   : > { %s990_s15 = sshll.u32 %s262_s14, 4  ;;  %s980_s17 = scalar_lea.sflag [#allocation3], %s261_s26  ;;  %s991_s15 = int_to_ptr.vmem [resolvable:$true] %s990_s15 }
  0x3c   : > { %788 = vmatpush.bf16.msrb.mxu2 %v1350_v34  ;;  %v1142_v34 = vor.u32 %v1325_v29, %v1139_v30  ;;  %s1461_s12 = scalar_lea.hbm %s1460_s18, 1 }
  0x3d   : > { %817 = vmatpush.bf16.msrb.mxu3 %v1358_v35  ;;  %846 = vmatpush.bf16.msrb.mxu0 %v1366_v36  ;;  %v1146_v35 = vor.u32 %v1328_v32, %v1145_v31  ;;  %v920_v36 = vld [vmem:[%s1895_s4 + $0x78] sm:$0xff]  ;;  %v1385_v31 = vld [vmem:[%s1835_s28 + $0x8] sm:$0xff]   ;;  %p1462_p11 = scmp.ne.s32.totalorder %s1460_s18, %s1461_s12  ;;  %p1467_p1 = scmp.lt.s32.totalorder %s1465_s20, %s1461_s12 }
  0x3e   : > { %921 = vmatpush.msrb.mxu1 %v920_v36 }
  0x3f   : > { %p1463_p12 = pnand %p1462_p11, %p1582_p5  ;;  %p1468_p2 = por %p1467_p1, %p1466_p0 }
  0x40   : > { %789 = vmatpush.bf16.msrb.mxu2 %v1349_v37  ;;  %v919_v37 = vld [vmem:[%s1895_s4 + $0x70] sm:$0xff] }
  0x41   : > { %818 = vmatpush.bf16.msrb.mxu3 %v1357_v38  ;;  %847 = vmatpush.bf16.msrb.mxu0 %v1365_v39  ;;  %v918_v38 = vld [vmem:[%s1895_s4 + $0x68] sm:$0xff]  ;;  %v917_v39 = vld [vmem:[%s1895_s4 + $0x60] sm:$0xff]  ;;  %p1464_p13 = pneg %p1463_p12 }
  0x42   : > { %922 = vmatpush.msrb.mxu1 %v919_v37  ;;  %v1375_v37 = vunpack.c.l.bf16 %v1385_v31 }
  0x43   : > { %751 = vmatmul.bf16.gmra.mxu2 %v1130_v50  ;;  %741 = vmatmul.bf16.gmra.mxu0 %v1090_v52  ;;  %v909_v50 = vld [vmem:[%s1895_s4 + $0x20] sm:$0xff]  ;;  %v908_v52 = vld [vmem:[%s1895_s4 + $0x18] sm:$0xff]  ;;  %p1469_p3 = pnand %p1468_p2, %p1464_p13 }
  0x44   : > { %790 = vmatpush.bf16.msrb.mxu2 %v1348_v44  ;;  %780 = vmatmul.bf16.gmra.mxu3 %v1134_v51 }
  0x45   : > { %819 = vmatpush.bf16.msrb.mxu3 %v1356_v47  ;;  %848 = vmatpush.bf16.msrb.mxu0 %v1364_v53  ;;  %v910_v47 = vld [vmem:[%s1895_s4 + $0x28] sm:$0xff]  ;;  %v907_v53 = vld [vmem:[%s1895_s4 + $0x10] sm:$0xff] }
  0x46   : > { %770 = vmatmul.bf16.gmra.mxu1 %v1094_v54  ;;  %v906_v54 = vld [vmem:[%s1895_s4 + $0x8] sm:$0xff] }
  0x47   : > { %923 = vmatpush.msrb.mxu1 %v918_v38 }
  0x48   : > { %791 = vmatpush.bf16.msrb.mxu2 %v1347_v55 }
  0x49   : > { %820 = vmatpush.bf16.msrb.mxu3 %v1355_v56  ;;  %849 = vmatpush.bf16.msrb.mxu0 %v1363_v57  ;;  %v905_v57 = vld [vmem:[%s1895_s4] sm:$0xff] }
  0x4a   : > { %924 = vmatpush.msrb.mxu1 %v917_v39 }
  0x4c   : > { %792 = vmatpush.bf16.msrb.mxu2 %v1346_v58  ;;  %925 = vmatpush.msrb.mxu1 %v916_v40 }
  0x4d   : > { %821 = vmatpush.bf16.msrb.mxu3 %v1354_v59  ;;  %850 = vmatpush.bf16.msrb.mxu0 %v1362_v60 }
  0x4e   : > { %926 = vmatpush.msrb.mxu1 %v915_v41 }
  0x50   : > { %793 = vmatpush.bf16.msrb.mxu2 %v1345_v61  ;;  %927 = vmatpush.msrb.mxu1 %v914_v42 }
  0x51   : > { %822 = vmatpush.bf16.msrb.mxu3 %v1353_v62  ;;  %851 = vmatpush.bf16.msrb.mxu0 %v1361_v3 }
  0x52   : > { %928 = vmatpush.msrb.mxu1 %v913_v43 }
  0x53   : > { %794 = vmatmul.bf16.vlgmr.msrb.gmra.mxu2 %v1078_v6 }
  0x54   : > { %823 = vmatmul.bf16.vlgmr.msrb.gmra.mxu3 %v1082_v7  ;;  %852 = vmatmul.bf16.vlgmr.msrb.gmra.mxu0 %v1086_v8  ;;  %v1370_v8 = vld [vmem:[%s1835_s28] sm:$0xff]  }
  0x55   : > { %929 = vmatpush.msrb.mxu1 %v912_v45  ;;  %v1371_v13 = vunpack.c.l.bf16 %v1370_v8 }
  0x57   : > { %930 = vmatpush.msrb.mxu1 %v911_v46 }
  0x59   : > { %931 = vmatpush.msrb.mxu1 %v910_v47 }
  0x5b   : > { %932 = vmatpush.msrb.mxu1 %v909_v50  ;;  %v1376_v50 = vunpack.c.h.bf16 %v1385_v31 }
  0x5d   : > { %933 = vmatpush.msrb.mxu1 %v908_v52 }
  0x5f   : > { %934 = vmatpush.msrb.mxu1 %v907_v53 }
  0x61   : > { %935 = vmatpush.msrb.mxu1 %v906_v54 }
  0x63   : > { %799 = vmatmul.bf16.gmra.mxu2 %v1098_v15  ;;  %936 = vmatpush.msrb.mxu1 %v905_v57 }
  0x64   : > { %828 = vmatmul.bf16.gmra.mxu3 %v1102_v16  ;;  %857 = vmatmul.bf16.gmra.mxu0 %v1106_v17 }
  0x73   : > { %804 = vmatmul.bf16.gmra.mxu2 %v1118_v24 }
  0x74   : > { %833 = vmatmul.bf16.gmra.mxu3 %v1122_v25  ;;  %862 = vmatmul.bf16.gmra.mxu0 %v1126_v26  ;;  %v1372_v25 = vunpack.c.h.bf16 %v1370_v8 }
  0x83   : > { %809 = vmatmul.bf16.gmra.mxu2 %v1138_v33 }
  0x84   : > { %838 = vmatmul.bf16.gmra.mxu3 %v1142_v34  ;;  %867 = vmatmul.bf16.gmra.mxu0 %v1146_v35 }
  0xb0   : > { %v737_v44 = vpop.f32.mrf.mxu0 }
  0xb1   : > { %v738_v2 = vadd.f32 %v1828_v1, %v737_v44 }
  0xb3   : > { %v766_v62 = vpop.f32.mrf.mxu1 }
  0xb4   : > { %v767_v4 = vadd.f32 %v766_v62, %v738_v2 }
  0xb6   : > { %v1794_v48 = vpop.f32.mrf.mxu2 }
  0xb7   : > { %v1796_v49 = vpop.f32.mrf.mxu3  ;;  %v748_v46 = vadd.f32 %v1828_v1, %v1794_v48 }
  0xb8   : > { %v739_v51 = vpop.f32.mrf.mxu0 }
  0xb9   : > { %v740_v10 = vadd.f32 %v1828_v1, %v739_v51  ;;  %v777_v53 = vadd.f32 %v1796_v49, %v748_v46 }
  0xbb   : > { %v768_v5 = vpop.f32.mrf.mxu1 }
  0xbc   : > { %v769_v15 = vadd.f32 %v768_v5, %v740_v10 }
  0xbe   : > { %v1810_v55 = vpop.f32.mrf.mxu2 }
  0xbf   : > { %v1812_v56 = vpop.f32.mrf.mxu3 }
  0xc0   : > { %v742_v58 = vpop.f32.mrf.mxu0 }
  0xc1   : > { %v743_v22 = vadd.f32 %v1828_v1, %v742_v58 }
  0xc3   : > { %v771_v21 = vpop.f32.mrf.mxu1 }
  0xc4   : > { %v772_v27 = vadd.f32 %v771_v21, %v743_v22 }
  0xc6   : > { %v1817_v59 = vpop.f32.mrf.mxu2 }
  0xc7   : > { %v1819_v60 = vpop.f32.mrf.mxu3 }
  0xc8   : > { %v744_v61 = vpop.f32.mrf.mxu0 }
  0xc9   : > { %v745_v34 = vadd.f32 %v1828_v1, %v744_v61  ;;  %v1386_v61 = vld [vmem:[%s1835_s28 + $0x10] sm:$0xff]  }
  0xca   : > { %v1379_v5 = vunpack.c.l.bf16 %v1386_v61 }
  0xcb   : > { %v773_v38 = vpop.f32.mrf.mxu1 }
  0xcc   : > { %v774_v40 = vadd.f32 %v773_v38, %v745_v34 }
  0xce   : > { %v1821_v63 = vpop.f32.mrf.mxu2 }
  0xcf   : > { %v1823_v0 = vpop.f32.mrf.mxu3  ;;  %v755_v22 = vadd.f32 %v1828_v1, %v1821_v63 }
  0xd1   : > { %v853_v3 = vpop.f32.mrf.mxu0 }
  0xd6   : > { %v795_v6 = vpop.f32.mrf.mxu2 }
  0xd7   : > { %v824_v7 = vpop.f32.mrf.mxu3  ;;  %v796_v9 = vadd.f32 %v795_v6, %v767_v4 }
  0xd9   : > { %v825_v11 = vadd.f32 %v824_v7, %v796_v9  ;;  %v855_v12 = vpop.f32.mrf.mxu0 }
  0xdb   : > { %v854_v14 = vadd.f32 %v853_v3, %v825_v11  ;;  %v750_v3 = vadd.f32 %v1828_v1, %v1810_v55 }
  0xdd   : > { %v889_v16 = vadd.f32 %v1371_v13, %v854_v14  ;;  %v779_v6 = vadd.f32 %v1812_v56, %v750_v3  ;;  %v1380_v14 = vunpack.c.h.bf16 %v1386_v61  ;;  %v1387_v56 = vld [vmem:[%s1835_s28 + $0x18] sm:$0xff]  }
  0xde   : > { %v797_v17 = vpop.f32.mrf.mxu2  ;;  %v1384_v31 = vunpack.c.h.bf16 %v1387_v56 }
  0xdf   : > { %v826_v18 = vpop.f32.mrf.mxu3  ;;  %v798_v19 = vadd.f32 %v797_v17, %v769_v15  ;;  %v897_v20 = vmax.f32 %v889_v16, 0.0 }
  0xe1   : > { %v827_v23 = vadd.f32 %v826_v18, %v798_v19  ;;  %937 = vmatmul.f32.vlgmr.msrb.gmra.mxu1 %v897_v20  ;;  %v858_v24 = vpop.f32.mrf.mxu0 }
  0xe3   : > { %v856_v26 = vadd.f32 %v855_v12, %v827_v23  ;;  %v753_v12 = vadd.f32 %v1828_v1, %v1817_v59 }
  0xe5   : > { %v890_v28 = vadd.f32 %v1372_v25, %v856_v26  ;;  %v782_v15 = vadd.f32 %v1819_v60, %v753_v12  ;;  %v784_v25 = vadd.f32 %v1823_v0, %v755_v22 }
  0xe6   : > { %v800_v29 = vpop.f32.mrf.mxu2 }
  0xe7   : > { %v829_v30 = vpop.f32.mrf.mxu3  ;;  %v801_v32 = vadd.f32 %v800_v29, %v772_v27  ;;  %v898_v33 = vmax.f32 %v890_v28, 0.0 }
  0xe9   : > { %v830_v35 = vadd.f32 %v829_v30, %v801_v32  ;;  %940 = vmatmul.f32.gmra.mxu1 %v898_v33  ;;  %v860_v36 = vpop.f32.mrf.mxu0 }
  0xeb   : > { %v859_v39 = vadd.f32 %v858_v24, %v830_v35  ;;  %v1383_v24 = vunpack.c.l.bf16 %v1387_v56 }
  0xed   : > { %v891_v41 = vadd.f32 %v1375_v37, %v859_v39 }
  0xee   : > { %v802_v42 = vpop.f32.mrf.mxu2 }
  0xef   : > { %v831_v43 = vpop.f32.mrf.mxu3  ;;  %v803_v44 = vadd.f32 %v802_v42, %v774_v40  ;;  %v899_v45 = vmax.f32 %v891_v41, 0.0 }
  0xf1   : > { %v832_v47 = vadd.f32 %v831_v43, %v803_v44  ;;  %943 = vmatmul.f32.gmra.mxu1 %v899_v45  ;;  %v863_v52 = vpop.f32.mrf.mxu0 }
  0xf3   : > { %v861_v51 = vadd.f32 %v860_v36, %v832_v47 }
  0xf5   : > { %v892_v54 = vadd.f32 %v1376_v50, %v861_v51 }
  0xf6   : > { %v805_v57 = vpop.f32.mrf.mxu2 }
  0xf7   : > { %v834_v58 = vpop.f32.mrf.mxu3  ;;  %v806_v62 = vadd.f32 %v805_v57, %v777_v53  ;;  %v900_v2 = vmax.f32 %v892_v54, 0.0 }
  0xf9   : > { %v835_v4 = vadd.f32 %v834_v58, %v806_v62  ;;  %946 = vmatmul.f32.gmra.mxu1 %v900_v2  ;;  %v865_v7 = vpop.f32.mrf.mxu0  ;;  %v976_v58 = vld [vmem:[%s1896_s5] sm:$0x1] }
  0xfb   : > { %v864_v48 = vadd.f32 %v863_v52, %v835_v4 }
  0xfd   : > { %v893_v8 = vadd.f32 %v1379_v5, %v864_v48 }
  0xfe   : > { %v807_v9 = vpop.f32.mrf.mxu2 }
  0xff   : > { %v836_v49 = vpop.f32.mrf.mxu3  ;;  %v808_v10 = vadd.f32 %v807_v9, %v779_v6  ;;  %v901_v11 = vmax.f32 %v893_v8, 0.0 }
 0x101   : > { %v837_v13 = vadd.f32 %v836_v49, %v808_v10  ;;  %949 = vmatmul.f32.gmra.mxu1 %v901_v11  ;;  %v868_v21 = vpop.f32.mrf.mxu0 }
 0x103   : > { %v866_v55 = vadd.f32 %v865_v7, %v837_v13 }
 0x105   : > { %v894_v16 = vadd.f32 %v1380_v14, %v866_v55 }
 0x106   : > { %v810_v17 = vpop.f32.mrf.mxu2 }
 0x107   : > { %v839_v18 = vpop.f32.mrf.mxu3  ;;  %v811_v19 = vadd.f32 %v810_v17, %v782_v15  ;;  %v902_v20 = vmax.f32 %v894_v16, 0.0 }
 0x109   : > { %v840_v23 = vadd.f32 %v839_v18, %v811_v19  ;;  %952 = vmatmul.f32.gmra.mxu1 %v902_v20  ;;  %v870_v32 = vpop.f32.mrf.mxu0 }
 0x10b   : > { %v869_v59 = vadd.f32 %v868_v21, %v840_v23 }
 0x10d   : > { %v895_v26 = vadd.f32 %v1383_v24, %v869_v59 }
 0x10e   : > { %v812_v27 = vpop.f32.mrf.mxu2 }
 0x10f   : > { %v813_v28 = vadd.f32 %v812_v27, %v784_v25  ;;  %v903_v60 = vmax.f32 %v895_v26, 0.0  ;;  %v841_v29 = vpop.f32.mrf.mxu3 }
 0x111   : > { %v842_v30 = vadd.f32 %v841_v29, %v813_v28  ;;  %955 = vmatmul.f32.gmra.mxu1 %v903_v60 }
 0x113   : > { %v871_v33 = vadd.f32 %v870_v32, %v842_v30 }
 0x115   : > { %v896_v34 = vadd.f32 %v1384_v31, %v871_v33 }
 0x117   : > { %v904_v35 = vmax.f32 %v896_v34, 0.0 }
 0x119   : > { %958 = vmatmul.f32.gmra.mxu1 %v904_v35 }
 0x15e   : > { %v938_v63 = vpop.f32.mrf.mxu1 }
 0x166   : > { %v941_v1 = vpop.f32.mrf.mxu1 }
 0x167   : > { %v962_v39 = vadd.f32 %v941_v1, %v938_v63 }
 0x16e   : > { %v944_v36 = vpop.f32.mrf.mxu1 }
 0x16f   : > { %v963_v40 = vadd.f32 %v962_v39, %v944_v36 }
 0x176   : > { %v947_v37 = vpop.f32.mrf.mxu1 }
 0x177   : > { %v964_v42 = vadd.f32 %v963_v40, %v947_v37 }
 0x17e   : > { %v950_v38 = vpop.f32.mrf.mxu1 }
 0x17f   : > { %v965_v43 = vadd.f32 %v964_v42, %v950_v38 }
 0x186   : > { %v953_v0 = vpop.f32.mrf.mxu1 }
 0x187   : > { %v966_v44 = vadd.f32 %v965_v43, %v953_v0 }
 0x18e   : > { %v956_v41 = vpop.f32.mrf.mxu1 }
 0x18f   : > { %v967_v45 = vadd.f32 %v966_v44, %v956_v41 }
 0x196   : > { %v959_v46 = vpop.f32.mrf.mxu1 }
 0x197   : > { %v968_v47 = vadd.f32 %v967_v45, %v959_v46 }
 0x199   : > { %v969_v50 = vrot.slane %v968_v47, 4 }
 0x19b   : > { %v970_v51 = vadd.f32 %v969_v50, %v968_v47 }
 0x19d   : > { %v971_v52 = vrot.slane %v970_v51, 2 }
 0x19f   : > { %v972_v53 = vadd.f32 %v971_v52, %v970_v51 }
 0x1a1   : > { %v973_v54 = vrot.slane %v972_v53, 1 }
 0x1a3   : > { %v974_v57 = vadd.f32 %v973_v54, %v972_v53 }
 0x1a5   : > { %v975_v61 = vmul.f32 0.015625, %v974_v57 }
 0x1a7   : > { %v977_v62 = vadd.f32 %v976_v58, %v975_v61 }
 0x1a9   : > { %978 = vst [vmem:[%s262_s14] sm:$0x1] %v977_v62 }
 0x1aa   : > { %1472 = shalt.err (!%p1469_p3)
}
 0x1ab   : > { %1405 = dma.vmem_to_hbm [thread:$0]  (%p1582_p5), %s991_s15, 16, %s993_s16, %s980_s17  }
 0x1ac PF: > { %p1411_p4 = scmp.ge.s32.totalorder %s1507_s24, 2  ;;  %s1004_s26 = sand.u32 1, %s1495_s21  }
 0x1ad   : > { %s1005_s9 = scalar_lea.sflag [#allocation3], %s1004_s26 }
 0x1ae   : > { %p1408_p7 = pnand %p1411_p4, %p1586_p6 }
 0x1b0   : > { %p1409_p8 = pneg %p1408_p7 }
 0x1b2   : > { %1490 = dma.done.wait (%p1409_p8), %s1005_s9, 16  }
 0x1b3   : > { %1492 = vsyncadd (%p1409_p8), %s1005_s9, 4294967280  ;;  %p16_p9 = scmp.ge.s32.totalorder %s1569_s27, 4   ;;  %s1900_s21 = smov %s1499_s22 }
 0x1b4   : > { %s1901_s22 = smov %s1503_s23  ;;  %s1902_s23 = smov %s1580_s30 }
 0x1b5   : > { %s1903_s24 = smov %s1569_s27  ;;  %18 = sbr.rel (!%p16_p9) target bundleno = 3 (0x3), region = 82 }
 0x1ba   :  { %1010 = vsyncpa [#allocation3], 1 }
 0x1bb   :  { %1012 = vsyncpa [#allocation3 + $0x1], 1 }

</bundles_post_ra>
